<compile_context>
chip_gen: v5e
topology: v5e:2x2
jax: 0.10.0
libtpu: 0.0.40
codegen_flags: <defaults>
</compile_context>

<pallas_src>
import functools

import jax
import jax.numpy as jnp
from jax.experimental import pallas as pl
from jax.experimental.pallas import tpu as pltpu

# ----------------------------- config ---------------------------------------
PATCH = 14            # DINOv2 patch size
IMG = 28              # small image => 2x2 = 4 patches
BATCH = 2
IN_CH = 3
EMBED = 384           # reduced from 1536 (dinov2_g) for the synthetic run
DEPTH = 2             # reduced from 40
HEADS = 6             # head_dim = 64
HEAD_DIM = EMBED // HEADS
MLP_DIM = 4 * EMBED
NUM_CLASSES = 751     # as in Net(num_classes=751)
NUM_CLASSES_PAD = 768  # 6 * 128 lanes -> unmasked stores; sliced to 751 outside
REID = True           # Net default
EPS = 1e-6

N_PATCHES = (IMG // PATCH) ** 2      # 4
TOKENS = N_PATCHES + 1               # 5 real tokens (CLS + patches)
T_PAD = 8                            # tokens padded to a full sublane tile
PATCH_PIX = IN_CH * PATCH * PATCH    # 588
PATCH_PIX_PAD = 640                  # 5 * 128 lanes (unmasked contraction dim)


# ----------------------------- kernel helpers --------------------------------
def _layernorm(x, g, b):
    mu = jnp.mean(x, axis=-1, keepdims=True)
    var = jnp.mean((x - mu) ** 2, axis=-1, keepdims=True)
    return (x - mu) * jax.lax.rsqrt(var + EPS) * g + b


def _mm(x, w_bf16, b_f32=None):
    # bf16 MXU matmul with f32 accumulation (x: f32 activations, w: bf16 weights).
    y = jnp.dot(x.astype(jnp.bfloat16), w_bf16,
                preferred_element_type=jnp.float32)
    return y if b_f32 is None else y + b_f32


# ----------------------------- fused kernel ----------------------------------
def _make_kernel(*, batch, num_heads, t_real, t_pad, with_head):
    """Kernel factory: one transformer block per grid step over grid=(DEPTH,)."""

    def kernel(*refs):
        if with_head:
            (patches_ref, tokb_ref, patch_w_ref,
             ln1_g_ref, ln1_b_ref, qkv_w_ref, qkv_b_ref, proj_w_ref, proj_b_ref,
             ln2_g_ref, ln2_b_ref, fc1_w_ref, fc1_b_ref, fc2_w_ref, fc2_b_ref,
             norm_g_ref, norm_b_ref, head_w_ref, head_b_ref,
             emb_ref, logits_ref, x_sc) = refs
        else:
            (patches_ref, tokb_ref, patch_w_ref,
             ln1_g_ref, ln1_b_ref, qkv_w_ref, qkv_b_ref, proj_w_ref, proj_b_ref,
             ln2_g_ref, ln2_b_ref, fc1_w_ref, fc1_b_ref, fc2_w_ref, fc2_b_ref,
             norm_g_ref, norm_b_ref,
             emb_ref, x_sc) = refs
            head_w_ref = head_b_ref = logits_ref = None

        layer = pl.program_id(0)
        d_model = x_sc.shape[-1]
        hd = d_model // num_heads
        scale = hd ** -0.5

        # ---- prologue (first grid step): patch embed + token assembly -------
        @pl.when(layer == 0)
        def _():
            # Patch rows for the CLS slot / pad slots are zero host-side, so
            # the matmul contributes nothing there; cls + pos + patch bias are
            # folded into tokb (a single aligned add, no small concats).
            pt = _mm(patches_ref[...], patch_w_ref[...])        # [B*Tp, D] f32
            x_sc[...] = pt + tokb_ref[...]

        # ---- one transformer block per grid step (weights streamed per layer)
        x = x_sc[...]                                           # [B*Tp, D] f32
        h = _layernorm(x, ln1_g_ref[0], ln1_b_ref[0])
        qkv = _mm(h, qkv_w_ref[0], qkv_b_ref[0])                # [B*Tp, 3D] f32

        # key-padding mask: tokens t_real..t_pad-1 are padding
        kidx = jax.lax.broadcasted_iota(jnp.int32, (1, 1, t_pad), 2)
        key_bias = jnp.where(kidx < t_real, 0.0, -1e30)         # [1,1,Tp] f32

        ctx_rows = []
        for b in range(batch):                                  # static (B=2)
            r0 = b * t_pad                                      # 8-aligned rows
            q_b = qkv[r0:r0 + t_pad, 0 * d_model:1 * d_model]   # [Tp, D]
            k_b = qkv[r0:r0 + t_pad, 1 * d_model:2 * d_model]
            v_b = qkv[r0:r0 + t_pad, 2 * d_model:3 * d_model]
            # head-batched attention: reshape once to [H, Tp, hd], single
            # batched einsum + one softmax per image (no 64-lane head slices).
            q_r = pltpu.einshape("qhd->hqd", q_b.reshape(t_pad, num_heads, hd))
            k_r = pltpu.einshape("khd->hkd", k_b.reshape(t_pad, num_heads, hd))
            v_r = pltpu.einshape("khd->hkd", v_b.reshape(t_pad, num_heads, hd))
            s = jnp.einsum("hqd,hkd->hqk",
                           q_r.astype(jnp.bfloat16), k_r.astype(jnp.bfloat16),
                           preferred_element_type=jnp.float32) * scale
            s = s + key_bias
            s = s - jnp.max(s, axis=-1, keepdims=True)
            p = jnp.exp(s)
            p = p * pl.reciprocal(jnp.sum(p, axis=-1, keepdims=True),
                                  approx=True)
            ctx = jnp.einsum("hqk,hkd->hqd",
                             p.astype(jnp.bfloat16), v_r.astype(jnp.bfloat16),
                             preferred_element_type=jnp.float32)  # [H, Tp, hd]
            ctx = pltpu.einshape("hqd->qhd", ctx).reshape(t_pad, d_model)
            ctx_rows.append(ctx)
        ctx_all = jnp.concatenate(ctx_rows, axis=0)             # [B*Tp, D]
        x = x + _mm(ctx_all, proj_w_ref[0], proj_b_ref[0])

        h2 = _layernorm(x, ln2_g_ref[0], ln2_b_ref[0])
        m = _mm(h2, fc1_w_ref[0], fc1_b_ref[0])
        # tanh-approx GELU: EUP lowering; synthetic weights make bit-parity
        # with PyTorch's exact-erf GELU moot.
        m = jax.nn.gelu(m, approximate=True)
        x = x + _mm(m, fc2_w_ref[0], fc2_b_ref[0])
        x_sc[...] = x

        # ---- epilogue (last grid step): final LN on CLS rows (+ linear head)
        @pl.when(layer == pl.num_programs(0) - 1)
        def _():
            xf = x_sc[...]
            cls_tok = jnp.concatenate(
                [xf[b * t_pad:b * t_pad + 1, :] for b in range(batch)], axis=0)
            emb = _layernorm(cls_tok, norm_g_ref[...], norm_b_ref[...])
            emb_ref[...] = emb
            if with_head:
                logits_ref[...] = _mm(emb, head_w_ref[...], head_b_ref[...])

    return kernel


# ----------------------------- wrapper ---------------------------------------
def _const_spec(a):
    # Constant across the depth grid: same block index every step -> fetched
    # once, never re-DMA'd.
    nd = a.ndim
    return pl.BlockSpec(a.shape, lambda l, _nd=nd: (0,) * _nd)


def _layer_spec(a):
    # Stacked [DEPTH, ...] parameter: stream one layer slab per grid step; the
    # pipeline double-buffers it (prefetch layer l+1 while computing layer l).
    nd = a.ndim
    blk = (1,) + tuple(a.shape[1:])
    return pl.BlockSpec(blk, lambda l, _nd=nd: (l,) + (0,) * (_nd - 1))


_LAYER_KEYS = ("ln1_g", "ln1_b", "qkv_w", "qkv_b", "proj_w", "proj_b",
               "ln2_g", "ln2_b", "fc1_w", "fc1_b", "fc2_w", "fc2_b")


def net_pallas_forward(patches_pad, tok_bias, params, *, with_head):
    batch = patches_pad.shape[0] // T_PAD
    kernel = _make_kernel(batch=batch, num_heads=HEADS, t_real=TOKENS,
                          t_pad=T_PAD, with_head=with_head)

    const_inputs = [patches_pad, tok_bias, params["patch_w"]]
    layer_inputs = [params[k] for k in _LAYER_KEYS]
    tail_inputs = [params["norm_g"], params["norm_b"]]
    if with_head:
        tail_inputs += [params["head_w"], params["head_b"]]
    inputs = const_inputs + layer_inputs + tail_inputs

    in_specs = ([_const_spec(a) for a in const_inputs]
                + [_layer_spec(a) for a in layer_inputs]
                + [_const_spec(a) for a in tail_inputs])

    if with_head:
        out_shape = (jax.ShapeDtypeStruct((batch, EMBED), jnp.float32),
                     jax.ShapeDtypeStruct((batch, NUM_CLASSES_PAD), jnp.float32))
        out_specs = (pl.BlockSpec((batch, EMBED), lambda l: (0, 0)),
                     pl.BlockSpec((batch, NUM_CLASSES_PAD), lambda l: (0, 0)))
    else:
        out_shape = jax.ShapeDtypeStruct((batch, EMBED), jnp.float32)
        out_specs = pl.BlockSpec((batch, EMBED), lambda l: (0, 0))

    return pl.pallas_call(
        kernel,
        out_shape=out_shape,
        grid=(DEPTH,),
        in_specs=in_specs,
        out_specs=out_specs,
        # Residual stream persists across grid steps in VMEM scratch.
        scratch_shapes=[pltpu.VMEM((batch * T_PAD, EMBED), jnp.float32)],
        compiler_params=pltpu.CompilerParams(
            dimension_semantics=("arbitrary",),   # carried state across depth
            vmem_limit_bytes=32 * 1024 * 1024),
    )(*inputs)


# ----------------------------- model glue ------------------------------------
def init_params(key):
    ks = jax.random.split(key, 8)
    wdt = jnp.bfloat16

    def nrm(k, shape):
        return (0.02 * jax.random.normal(k, shape, jnp.float32)).astype(wdt)

    patch_w = 0.02 * jax.random.normal(ks[0], (PATCH_PIX, EMBED), jnp.float32)
    patch_w = jnp.pad(patch_w, ((0, PATCH_PIX_PAD - PATCH_PIX), (0, 0)))

    head_w = 0.02 * jax.random.normal(ks[7], (EMBED, NUM_CLASSES), jnp.float32)
    head_w = jnp.pad(head_w, ((0, 0), (0, NUM_CLASSES_PAD - NUM_CLASSES)))

    return {
        "patch_w": patch_w.astype(wdt),                       # [640, D] bf16
        "patch_b": jnp.zeros((1, EMBED), jnp.float32),
        "cls": 0.02 * jax.random.normal(ks[1], (1, EMBED), jnp.float32),
        "pos": 0.02 * jax.random.normal(ks[2], (TOKENS, EMBED), jnp.float32),
        # per-block params, stacked along a leading DEPTH axis (streamed)
        "ln1_g": jnp.ones((DEPTH, 1, EMBED), jnp.float32),
        "ln1_b": jnp.zeros((DEPTH, 1, EMBED), jnp.float32),
        "qkv_w": nrm(ks[3], (DEPTH, EMBED, 3 * EMBED)),
        "qkv_b": jnp.zeros((DEPTH, 1, 3 * EMBED), jnp.float32),
        "proj_w": nrm(ks[4], (DEPTH, EMBED, EMBED)),
        "proj_b": jnp.zeros((DEPTH, 1, EMBED), jnp.float32),
        "ln2_g": jnp.ones((DEPTH, 1, EMBED), jnp.float32),
        "ln2_b": jnp.zeros((DEPTH, 1, EMBED), jnp.float32),
        "fc1_w": nrm(ks[5], (DEPTH, EMBED, MLP_DIM)),
        "fc1_b": jnp.zeros((DEPTH, 1, MLP_DIM), jnp.float32),
        "fc2_w": nrm(ks[6], (DEPTH, MLP_DIM, EMBED)),
        "fc2_b": jnp.zeros((DEPTH, 1, EMBED), jnp.float32),
        "norm_g": jnp.ones((1, EMBED), jnp.float32),
        "norm_b": jnp.zeros((1, EMBED), jnp.float32),
        "head_w": head_w.astype(wdt),
        "head_b": jnp.zeros((1, NUM_CLASSES_PAD), jnp.float32),
    }


@functools.partial(jax.jit, static_argnames=("reid",))
def net_forward(x, params, reid=REID):
    """Equivalent of Net.forward (synthetic backbone weights)."""
    B, C, H, W = x.shape
    hp, wp = H // PATCH, W // PATCH
    n_p = hp * wp
    # im2col patchify (glue): NCHW -> [B, N, C*p*p] with (C, ph, pw) order,
    # matching Conv2d(kernel=stride=patch) weight flattening.
    patches = x.reshape(B, C, hp, PATCH, wp, PATCH)
    patches = patches.transpose(0, 2, 4, 1, 3, 5).reshape(B, n_p,
                                                          C * PATCH * PATCH)
    # Pad token rows (1 leading CLS slot + trailing pad tokens -> 8 rows/image)
    # and the contraction dim 588 -> 640 so the patch matmul is fully unmasked.
    patches = jnp.pad(patches, ((0, 0), (1, T_PAD - 1 - n_p),
                                (0, PATCH_PIX_PAD - C * PATCH * PATCH)))
    patches = patches.reshape(B * T_PAD, PATCH_PIX_PAD)

    # Fold the per-token additive constants into one aligned table:
    #   row 0: cls + pos[0]; rows 1..n_p: patch_b + pos[i]; pad rows: 0.
    tok_bias = jnp.zeros((T_PAD, EMBED), jnp.float32)
    tok_bias = tok_bias.at[0].set(params["cls"][0] + params["pos"][0])
    tok_bias = tok_bias.at[1:1 + n_p].set(params["pos"][1:1 + n_p]
                                          + params["patch_b"][0])
    tok_bias = jnp.tile(tok_bias, (B, 1))                     # [B*Tp, D]

    if reid:  # Net default: backbone embedding only (no head weights / output)
        return net_pallas_forward(patches, tok_bias, params, with_head=False)
    _, logits_pad = net_pallas_forward(patches, tok_bias, params,
                                       with_head=True)
    return logits_pad[:, :NUM_CLASSES]     # slice off the lane padding


# ----------------------------- main -------------------------------------------
if __name__ == "__main__":
    kp, kx = jax.random.split(jax.random.PRNGKey(0))
    params = init_params(kp)
    x = jax.random.normal(kx, (BATCH, IN_CH, IMG, IMG), jnp.float32)

    emb = net_forward(x, params, reid=True)          # Net default path
    logits = net_forward(x, params, reid=False)      # exercises the linear head
    jax.block_until_ready((emb, logits))

    assert emb.shape == (BATCH, EMBED), emb.shape
    assert logits.shape == (BATCH, NUM_CLASSES), logits.shape
    assert bool(jnp.all(jnp.isfinite(emb))) and bool(jnp.all(jnp.isfinite(logits)))
    print("KERNEL_OK")
</pallas_src>

<mosaic_0001>
module attributes {stable_mosaic.version = 11 : i64} {
  func.func @kernel(%arg0: i32, %arg1: memref<16x640xf32, #tpu.memory_space<vmem>>, %arg2: memref<16x384xf32, #tpu.memory_space<vmem>>, %arg3: memref<640x384xbf16, #tpu.memory_space<vmem>>, %arg4: memref<1x1x384xf32, #tpu.memory_space<vmem>>, %arg5: memref<1x1x384xf32, #tpu.memory_space<vmem>>, %arg6: memref<1x384x1152xbf16, #tpu.memory_space<vmem>>, %arg7: memref<1x1x1152xf32, #tpu.memory_space<vmem>>, %arg8: memref<1x384x384xbf16, #tpu.memory_space<vmem>>, %arg9: memref<1x1x384xf32, #tpu.memory_space<vmem>>, %arg10: memref<1x1x384xf32, #tpu.memory_space<vmem>>, %arg11: memref<1x1x384xf32, #tpu.memory_space<vmem>>, %arg12: memref<1x384x1536xbf16, #tpu.memory_space<vmem>>, %arg13: memref<1x1x1536xf32, #tpu.memory_space<vmem>>, %arg14: memref<1x1536x384xbf16, #tpu.memory_space<vmem>>, %arg15: memref<1x1x384xf32, #tpu.memory_space<vmem>>, %arg16: memref<1x384xf32, #tpu.memory_space<vmem>>, %arg17: memref<1x384xf32, #tpu.memory_space<vmem>>, %arg18: memref<2x384xf32, #tpu.memory_space<vmem>>, %arg19: memref<16x384xf32, #tpu.memory_space<vmem>>) attributes {dimension_semantics = [#tpu.dimension_semantics<arbitrary>], iteration_bounds = array<i64: 2>, scalar_prefetch = 0 : i64, scratch_operands = 1 : i64, tpu.core_type = #tpu.core_type<tc>, window_params = [{pipeline_mode = #tpu.pipeline_mode<synchronous>, transform_indices = @transform_0, window_bounds = array<i64: 16, 640>}, {pipeline_mode = #tpu.pipeline_mode<synchronous>, transform_indices = @transform_1, window_bounds = array<i64: 16, 384>}, {pipeline_mode = #tpu.pipeline_mode<synchronous>, transform_indices = @transform_2, window_bounds = array<i64: 640, 384>}, {transform_indices = @transform_3, window_bounds = array<i64: 1, 1, 384>}, {transform_indices = @transform_4, window_bounds = array<i64: 1, 1, 384>}, {transform_indices = @transform_5, window_bounds = array<i64: 1, 384, 1152>}, {transform_indices = @transform_6, window_bounds = array<i64: 1, 1, 1152>}, {transform_indices = @transform_7, window_bounds = array<i64: 1, 384, 384>}, {transform_indices = @transform_8, window_bounds = array<i64: 1, 1, 384>}, {transform_indices = @transform_9, window_bounds = array<i64: 1, 1, 384>}, {transform_indices = @transform_10, window_bounds = array<i64: 1, 1, 384>}, {transform_indices = @transform_11, window_bounds = array<i64: 1, 384, 1536>}, {transform_indices = @transform_12, window_bounds = array<i64: 1, 1, 1536>}, {transform_indices = @transform_13, window_bounds = array<i64: 1, 1536, 384>}, {transform_indices = @transform_14, window_bounds = array<i64: 1, 1, 384>}, {pipeline_mode = #tpu.pipeline_mode<synchronous>, transform_indices = @transform_15, window_bounds = array<i64: 1, 384>}, {pipeline_mode = #tpu.pipeline_mode<synchronous>, transform_indices = @transform_16, window_bounds = array<i64: 1, 384>}, {pipeline_mode = #tpu.pipeline_mode<synchronous>, transform_indices = @transform_17, window_bounds = array<i64: 2, 384>}]} {
    %c0_i32 = arith.constant 0 : i32
    %0 = arith.cmpi eq, %arg0, %c0_i32 : i32
    %1 = arith.extui %0 : i1 to i32
    %c0_i32_0 = arith.constant 0 : i32
    %2 = arith.cmpi ne, %1, %c0_i32_0 : i32
    scf.if %2 {
      %c0_70 = arith.constant 0 : index
      %c0_71 = arith.constant 0 : index
      %176 = vector.load %arg1[%c0_70, %c0_71] : memref<16x640xf32, #tpu.memory_space<vmem>>, vector<16x640xf32>
      %c0_72 = arith.constant 0 : index
      %c0_73 = arith.constant 0 : index
      %177 = vector.load %arg3[%c0_72, %c0_73] : memref<640x384xbf16, #tpu.memory_space<vmem>>, vector<640x384xbf16>
      %178 = arith.truncf %176 : vector<16x640xf32> to vector<16x640xbf16>
      %cst_74 = arith.constant dense<0.000000e+00> : vector<16x384xf32>
      %179 = tpu.matmul %178, %177, %cst_74 {dimension_numbers = #tpu.dot_dimension_numbers<[1], [0], [0], [1], [0, 0, 1, 1], [], []>} : vector<16x640xbf16>, vector<640x384xbf16>, vector<16x384xf32> -> vector<16x384xf32>
      %c0_75 = arith.constant 0 : index
      %c0_76 = arith.constant 0 : index
      %180 = vector.load %arg2[%c0_75, %c0_76] : memref<16x384xf32, #tpu.memory_space<vmem>>, vector<16x384xf32>
      %181 = arith.addf %179, %180 : vector<16x384xf32>
      %c0_77 = arith.constant 0 : index
      %c0_78 = arith.constant 0 : index
      %182 = vector.load %arg19[%c0_77, %c0_78] : memref<16x384xf32, #tpu.memory_space<vmem>>, vector<16x384xf32>
      tpu.vector_store %arg19[%c0_77, %c0_78], %181 {strides = array<i32>} : memref<16x384xf32, #tpu.memory_space<vmem>>, vector<16x384xf32>,
    } else {
    }
    %c0 = arith.constant 0 : index
    %c0_1 = arith.constant 0 : index
    %3 = vector.load %arg19[%c0, %c0_1] : memref<16x384xf32, #tpu.memory_space<vmem>>, vector<16x384xf32>
    %c0_2 = arith.constant 0 : index
    %c0_3 = arith.constant 0 : index
    %c0_4 = arith.constant 0 : index
    %4 = vector.load %arg4[%c0_2, %c0_3, %c0_4] : memref<1x1x384xf32, #tpu.memory_space<vmem>>, vector<1x1x384xf32>
    %5 = vector.shape_cast %4 : vector<1x1x384xf32> to vector<1x384xf32>
    %c0_5 = arith.constant 0 : index
    %c0_6 = arith.constant 0 : index
    %c0_7 = arith.constant 0 : index
    %6 = vector.load %arg5[%c0_5, %c0_6, %c0_7] : memref<1x1x384xf32, #tpu.memory_space<vmem>>, vector<1x1x384xf32>
    %7 = vector.shape_cast %6 : vector<1x1x384xf32> to vector<1x384xf32>
    %cst = arith.constant dense<0.000000e+00> : vector<16xf32>
    %8 = vector.multi_reduction <add>, %3, %cst [1] : vector<16x384xf32> to vector<16xf32>
    %9 = vector.shape_cast %8 : vector<16xf32> to vector<16x1xf32>
    %cst_8 = arith.constant 3.840000e+02 : f32
    %10 = vector.broadcast %cst_8 : f32 to vector<16x1xf32>
    %11 = arith.divf %9, %10 : vector<16x1xf32>
    %12 = vector.broadcast %11 : vector<16x1xf32> to vector<16x384xf32>
    %13 = arith.subf %3, %12 : vector<16x384xf32>
    %14 = arith.mulf %13, %13 : vector<16x384xf32>
    %cst_9 = arith.constant dense<0.000000e+00> : vector<16xf32>
    %15 = vector.multi_reduction <add>, %14, %cst_9 [1] : vector<16x384xf32> to vector<16xf32>
    %16 = vector.shape_cast %15 : vector<16xf32> to vector<16x1xf32>
    %cst_10 = arith.constant 3.840000e+02 : f32
    %17 = vector.broadcast %cst_10 : f32 to vector<16x1xf32>
    %18 = arith.divf %16, %17 : vector<16x1xf32>
    %19 = vector.broadcast %11 : vector<16x1xf32> to vector<16x384xf32>
    %20 = arith.subf %3, %19 : vector<16x384xf32>
    %cst_11 = arith.constant 9.99999997E-7 : f32
    %21 = vector.broadcast %cst_11 : f32 to vector<16x1xf32>
    %22 = arith.addf %18, %21 : vector<16x1xf32>
    %23 = math.rsqrt %22 : vector<16x1xf32>
    %24 = vector.broadcast %23 : vector<16x1xf32> to vector<16x384xf32>
    %25 = arith.mulf %20, %24 : vector<16x384xf32>
    %26 = vector.broadcast %5 : vector<1x384xf32> to vector<16x384xf32>
    %27 = arith.mulf %25, %26 : vector<16x384xf32>
    %28 = vector.broadcast %7 : vector<1x384xf32> to vector<16x384xf32>
    %29 = arith.addf %27, %28 : vector<16x384xf32>
    %c0_12 = arith.constant 0 : index
    %c0_13 = arith.constant 0 : index
    %c0_14 = arith.constant 0 : index
    %30 = vector.load %arg6[%c0_12, %c0_13, %c0_14] : memref<1x384x1152xbf16, #tpu.memory_space<vmem>>, vector<1x384x1152xbf16>
    %31 = vector.shape_cast %30 : vector<1x384x1152xbf16> to vector<384x1152xbf16>
    %c0_15 = arith.constant 0 : index
    %c0_16 = arith.constant 0 : index
    %c0_17 = arith.constant 0 : index
    %32 = vector.load %arg7[%c0_15, %c0_16, %c0_17] : memref<1x1x1152xf32, #tpu.memory_space<vmem>>, vector<1x1x1152xf32>
    %33 = vector.shape_cast %32 : vector<1x1x1152xf32> to vector<1x1152xf32>
    %34 = arith.truncf %29 : vector<16x384xf32> to vector<16x384xbf16>
    %cst_18 = arith.constant dense<0.000000e+00> : vector<16x1152xf32>
    %35 = tpu.matmul %34, %31, %cst_18 {dimension_numbers = #tpu.dot_dimension_numbers<[1], [0], [0], [1], [0, 0, 1, 1], [], []>} : vector<16x384xbf16>, vector<384x1152xbf16>, vector<16x1152xf32> -> vector<16x1152xf32>
    %36 = vector.broadcast %33 : vector<1x1152xf32> to vector<16x1152xf32>
    %37 = arith.addf %35, %36 : vector<16x1152xf32>
    %38 = tpu.iota {dimensions = array<i32: 2>} : vector<1x1x8xi32>
    %c5_i32 = arith.constant 5 : i32
    %39 = vector.broadcast %c5_i32 : i32 to vector<1x1x8xi32>
    %40 = arith.cmpi slt, %38, %39 : vector<1x1x8xi32>
    %cst_19 = arith.constant 0.000000e+00 : f32
    %cst_20 = arith.constant -1.000000e+30 : f32
    %41 = vector.broadcast %cst_19 : f32 to vector<1x1x8xf32>
    %42 = vector.broadcast %cst_20 : f32 to vector<1x1x8xf32>
    %43 = arith.select %40, %41, %42 : vector<1x1x8xi1>, vector<1x1x8xf32>
    %44 = vector.extract_strided_slice %37 {offsets = [0, 0], sizes = [8, 384], strides = [1, 1]} : vector<16x1152xf32> to vector<8x384xf32>
    %45 = vector.extract_strided_slice %37 {offsets = [0, 384], sizes = [8, 384], strides = [1, 1]} : vector<16x1152xf32> to vector<8x384xf32>
    %46 = vector.extract_strided_slice %37 {offsets = [0, 768], sizes = [8, 384], strides = [1, 1]} : vector<16x1152xf32> to vector<8x384xf32>
    %47 = vector.shape_cast %44 : vector<8x384xf32> to vector<8x6x64xf32>
    %48 = tpu.transpose %47, [1, 0, 2] : vector<8x6x64xf32> -> vector<6x8x64xf32>
    %49 = vector.shape_cast %45 : vector<8x384xf32> to vector<8x6x64xf32>
    %50 = tpu.transpose %49, [1, 0, 2] : vector<8x6x64xf32> -> vector<6x8x64xf32>
    %51 = vector.shape_cast %46 : vector<8x384xf32> to vector<8x6x64xf32>
    %52 = tpu.transpose %51, [1, 0, 2] : vector<8x6x64xf32> -> vector<6x8x64xf32>
    %53 = arith.truncf %48 : vector<6x8x64xf32> to vector<6x8x64xbf16>
    %54 = arith.truncf %50 : vector<6x8x64xf32> to vector<6x8x64xbf16>
    "tpu.trace_start"() <{level = 10 : i32, message = "hqd,hkd->hqk"}> : () -> ()
    %cst_21 = arith.constant dense<0.000000e+00> : vector<6x8x8xf32>
    %55 = tpu.matmul %53, %54, %cst_21 {dimension_numbers = #tpu.dot_dimension_numbers<[2], [2], [1], [1], [0, 0, 0, 1, 1, 1], [0], [0]>} : vector<6x8x64xbf16>, vector<6x8x64xbf16>, vector<6x8x8xf32> -> vector<6x8x8xf32>
    "tpu.trace_stop"() : () -> ()
    %cst_22 = arith.constant 1.250000e-01 : f32
    %56 = vector.broadcast %cst_22 : f32 to vector<6x8x8xf32>
    %57 = arith.mulf %55, %56 : vector<6x8x8xf32>
    %58 = vector.broadcast %43 : vector<1x1x8xf32> to vector<6x8x8xf32>
    %59 = arith.addf %57, %58 : vector<6x8x8xf32>
    %cst_23 = arith.constant dense<0xFF800000> : vector<6x8xf32>
    %60 = vector.multi_reduction <maximumf>, %59, %cst_23 [2] : vector<6x8x8xf32> to vector<6x8xf32>
    %61 = vector.shape_cast %60 : vector<6x8xf32> to vector<6x8x1xf32>
    %62 = vector.broadcast %61 : vector<6x8x1xf32> to vector<6x8x8xf32>
    %63 = arith.subf %59, %62 : vector<6x8x8xf32>
    %64 = math.exp %63 : vector<6x8x8xf32>
    %cst_24 = arith.constant dense<0.000000e+00> : vector<6x8xf32>
    %65 = vector.multi_reduction <add>, %64, %cst_24 [2] : vector<6x8x8xf32> to vector<6x8xf32>
    %66 = vector.shape_cast %65 : vector<6x8xf32> to vector<6x8x1xf32>
    %67 = tpu.reciprocal %66 {approx = true} : vector<6x8x1xf32> -> vector<6x8x1xf32>
    %68 = vector.broadcast %67 : vector<6x8x1xf32> to vector<6x8x8xf32>
    %69 = arith.mulf %64, %68 : vector<6x8x8xf32>
    %70 = arith.truncf %69 : vector<6x8x8xf32> to vector<6x8x8xbf16>
    %71 = arith.truncf %52 : vector<6x8x64xf32> to vector<6x8x64xbf16>
    "tpu.trace_start"() <{level = 10 : i32, message = "hqk,hkd->hqd"}> : () -> ()
    %cst_25 = arith.constant dense<0.000000e+00> : vector<6x8x64xf32>
    %72 = tpu.matmul %70, %71, %cst_25 {dimension_numbers = #tpu.dot_dimension_numbers<[2], [1], [1], [2], [0, 0, 0, 1, 1, 2], [0], [0]>} : vector<6x8x8xbf16>, vector<6x8x64xbf16>, vector<6x8x64xf32> -> vector<6x8x64xf32>
    "tpu.trace_stop"() : () -> ()
    %73 = tpu.transpose %72, [1, 0, 2] : vector<6x8x64xf32> -> vector<8x6x64xf32>
    %74 = vector.shape_cast %73 : vector<8x6x64xf32> to vector<8x384xf32>
    %75 = vector.extract_strided_slice %37 {offsets = [8, 0], sizes = [8, 384], strides = [1, 1]} : vector<16x1152xf32> to vector<8x384xf32>
    %76 = vector.extract_strided_slice %37 {offsets = [8, 384], sizes = [8, 384], strides = [1, 1]} : vector<16x1152xf32> to vector<8x384xf32>
    %77 = vector.extract_strided_slice %37 {offsets = [8, 768], sizes = [8, 384], strides = [1, 1]} : vector<16x1152xf32> to vector<8x384xf32>
    %78 = vector.shape_cast %75 : vector<8x384xf32> to vector<8x6x64xf32>
    %79 = tpu.transpose %78, [1, 0, 2] : vector<8x6x64xf32> -> vector<6x8x64xf32>
    %80 = vector.shape_cast %76 : vector<8x384xf32> to vector<8x6x64xf32>
    %81 = tpu.transpose %80, [1, 0, 2] : vector<8x6x64xf32> -> vector<6x8x64xf32>
    %82 = vector.shape_cast %77 : vector<8x384xf32> to vector<8x6x64xf32>
    %83 = tpu.transpose %82, [1, 0, 2] : vector<8x6x64xf32> -> vector<6x8x64xf32>
    %84 = arith.truncf %79 : vector<6x8x64xf32> to vector<6x8x64xbf16>
    %85 = arith.truncf %81 : vector<6x8x64xf32> to vector<6x8x64xbf16>
    "tpu.trace_start"() <{level = 10 : i32, message = "hqd,hkd->hqk"}> : () -> ()
    %cst_26 = arith.constant dense<0.000000e+00> : vector<6x8x8xf32>
    %86 = tpu.matmul %84, %85, %cst_26 {dimension_numbers = #tpu.dot_dimension_numbers<[2], [2], [1], [1], [0, 0, 0, 1, 1, 1], [0], [0]>} : vector<6x8x64xbf16>, vector<6x8x64xbf16>, vector<6x8x8xf32> -> vector<6x8x8xf32>
    "tpu.trace_stop"() : () -> ()
    %cst_27 = arith.constant 1.250000e-01 : f32
    %87 = vector.broadcast %cst_27 : f32 to vector<6x8x8xf32>
    %88 = arith.mulf %86, %87 : vector<6x8x8xf32>
    %89 = vector.broadcast %43 : vector<1x1x8xf32> to vector<6x8x8xf32>
    %90 = arith.addf %88, %89 : vector<6x8x8xf32>
    %cst_28 = arith.constant dense<0xFF800000> : vector<6x8xf32>
    %91 = vector.multi_reduction <maximumf>, %90, %cst_28 [2] : vector<6x8x8xf32> to vector<6x8xf32>
    %92 = vector.shape_cast %91 : vector<6x8xf32> to vector<6x8x1xf32>
    %93 = vector.broadcast %92 : vector<6x8x1xf32> to vector<6x8x8xf32>
    %94 = arith.subf %90, %93 : vector<6x8x8xf32>
    %95 = math.exp %94 : vector<6x8x8xf32>
    %cst_29 = arith.constant dense<0.000000e+00> : vector<6x8xf32>
    %96 = vector.multi_reduction <add>, %95, %cst_29 [2] : vector<6x8x8xf32> to vector<6x8xf32>
    %97 = vector.shape_cast %96 : vector<6x8xf32> to vector<6x8x1xf32>
    %98 = tpu.reciprocal %97 {approx = true} : vector<6x8x1xf32> -> vector<6x8x1xf32>
    %99 = vector.broadcast %98 : vector<6x8x1xf32> to vector<6x8x8xf32>
    %100 = arith.mulf %95, %99 : vector<6x8x8xf32>
    %101 = arith.truncf %100 : vector<6x8x8xf32> to vector<6x8x8xbf16>
    %102 = arith.truncf %83 : vector<6x8x64xf32> to vector<6x8x64xbf16>
    "tpu.trace_start"() <{level = 10 : i32, message = "hqk,hkd->hqd"}> : () -> ()
    %cst_30 = arith.constant dense<0.000000e+00> : vector<6x8x64xf32>
    %103 = tpu.matmul %101, %102, %cst_30 {dimension_numbers = #tpu.dot_dimension_numbers<[2], [1], [1], [2], [0, 0, 0, 1, 1, 2], [0], [0]>} : vector<6x8x8xbf16>, vector<6x8x64xbf16>, vector<6x8x64xf32> -> vector<6x8x64xf32>
    "tpu.trace_stop"() : () -> ()
    %104 = tpu.transpose %103, [1, 0, 2] : vector<6x8x64xf32> -> vector<8x6x64xf32>
    %105 = vector.shape_cast %104 : vector<8x6x64xf32> to vector<8x384xf32>
    %106 = tpu.concatenate %74, %105 in 0 : vector<8x384xf32>, vector<8x384xf32> -> vector<16x384xf32>
    %c0_31 = arith.constant 0 : index
    %c0_32 = arith.constant 0 : index
    %c0_33 = arith.constant 0 : index
    %107 = vector.load %arg8[%c0_31, %c0_32, %c0_33] : memref<1x384x384xbf16, #tpu.memory_space<vmem>>, vector<1x384x384xbf16>
    %108 = vector.shape_cast %107 : vector<1x384x384xbf16> to vector<384x384xbf16>
    %c0_34 = arith.constant 0 : index
    %c0_35 = arith.constant 0 : index
    %c0_36 = arith.constant 0 : index
    %109 = vector.load %arg9[%c0_34, %c0_35, %c0_36] : memref<1x1x384xf32, #tpu.memory_space<vmem>>, vector<1x1x384xf32>
    %110 = vector.shape_cast %109 : vector<1x1x384xf32> to vector<1x384xf32>
    %111 = arith.truncf %106 : vector<16x384xf32> to vector<16x384xbf16>
    %cst_37 = arith.constant dense<0.000000e+00> : vector<16x384xf32>
    %112 = tpu.matmul %111, %108, %cst_37 {dimension_numbers = #tpu.dot_dimension_numbers<[1], [0], [0], [1], [0, 0, 1, 1], [], []>} : vector<16x384xbf16>, vector<384x384xbf16>, vector<16x384xf32> -> vector<16x384xf32>
    %113 = vector.broadcast %110 : vector<1x384xf32> to vector<16x384xf32>
    %114 = arith.addf %112, %113 : vector<16x384xf32>
    %115 = arith.addf %3, %114 : vector<16x384xf32>
    %c0_38 = arith.constant 0 : index
    %c0_39 = arith.constant 0 : index
    %c0_40 = arith.constant 0 : index
    %116 = vector.load %arg10[%c0_38, %c0_39, %c0_40] : memref<1x1x384xf32, #tpu.memory_space<vmem>>, vector<1x1x384xf32>
    %117 = vector.shape_cast %116 : vector<1x1x384xf32> to vector<1x384xf32>
    %c0_41 = arith.constant 0 : index
    %c0_42 = arith.constant 0 : index
    %c0_43 = arith.constant 0 : index
    %118 = vector.load %arg11[%c0_41, %c0_42, %c0_43] : memref<1x1x384xf32, #tpu.memory_space<vmem>>, vector<1x1x384xf32>
    %119 = vector.shape_cast %118 : vector<1x1x384xf32> to vector<1x384xf32>
    %cst_44 = arith.constant dense<0.000000e+00> : vector<16xf32>
    %120 = vector.multi_reduction <add>, %115, %cst_44 [1] : vector<16x384xf32> to vector<16xf32>
    %121 = vector.shape_cast %120 : vector<16xf32> to vector<16x1xf32>
    %cst_45 = arith.constant 3.840000e+02 : f32
    %122 = vector.broadcast %cst_45 : f32 to vector<16x1xf32>
    %123 = arith.divf %121, %122 : vector<16x1xf32>
    %124 = vector.broadcast %123 : vector<16x1xf32> to vector<16x384xf32>
    %125 = arith.subf %115, %124 : vector<16x384xf32>
    %126 = arith.mulf %125, %125 : vector<16x384xf32>
    %cst_46 = arith.constant dense<0.000000e+00> : vector<16xf32>
    %127 = vector.multi_reduction <add>, %126, %cst_46 [1] : vector<16x384xf32> to vector<16xf32>
    %128 = vector.shape_cast %127 : vector<16xf32> to vector<16x1xf32>
    %cst_47 = arith.constant 3.840000e+02 : f32
    %129 = vector.broadcast %cst_47 : f32 to vector<16x1xf32>
    %130 = arith.divf %128, %129 : vector<16x1xf32>
    %131 = vector.broadcast %123 : vector<16x1xf32> to vector<16x384xf32>
    %132 = arith.subf %115, %131 : vector<16x384xf32>
    %cst_48 = arith.constant 9.99999997E-7 : f32
    %133 = vector.broadcast %cst_48 : f32 to vector<16x1xf32>
    %134 = arith.addf %130, %133 : vector<16x1xf32>
    %135 = math.rsqrt %134 : vector<16x1xf32>
    %136 = vector.broadcast %135 : vector<16x1xf32> to vector<16x384xf32>
    %137 = arith.mulf %132, %136 : vector<16x384xf32>
    %138 = vector.broadcast %117 : vector<1x384xf32> to vector<16x384xf32>
    %139 = arith.mulf %137, %138 : vector<16x384xf32>
    %140 = vector.broadcast %119 : vector<1x384xf32> to vector<16x384xf32>
    %141 = arith.addf %139, %140 : vector<16x384xf32>
    %c0_49 = arith.constant 0 : index
    %c0_50 = arith.constant 0 : index
    %c0_51 = arith.constant 0 : index
    %142 = vector.load %arg12[%c0_49, %c0_50, %c0_51] : memref<1x384x1536xbf16, #tpu.memory_space<vmem>>, vector<1x384x1536xbf16>
    %143 = vector.shape_cast %142 : vector<1x384x1536xbf16> to vector<384x1536xbf16>
    %c0_52 = arith.constant 0 : index
    %c0_53 = arith.constant 0 : index
    %c0_54 = arith.constant 0 : index
    %144 = vector.load %arg13[%c0_52, %c0_53, %c0_54] : memref<1x1x1536xf32, #tpu.memory_space<vmem>>, vector<1x1x1536xf32>
    %145 = vector.shape_cast %144 : vector<1x1x1536xf32> to vector<1x1536xf32>
    %146 = arith.truncf %141 : vector<16x384xf32> to vector<16x384xbf16>
    %cst_55 = arith.constant dense<0.000000e+00> : vector<16x1536xf32>
    %147 = tpu.matmul %146, %143, %cst_55 {dimension_numbers = #tpu.dot_dimension_numbers<[1], [0], [0], [1], [0, 0, 1, 1], [], []>} : vector<16x384xbf16>, vector<384x1536xbf16>, vector<16x1536xf32> -> vector<16x1536xf32>
    %148 = vector.broadcast %145 : vector<1x1536xf32> to vector<16x1536xf32>
    %149 = arith.addf %147, %148 : vector<16x1536xf32>
    %150 = arith.mulf %149, %149 : vector<16x1536xf32>
    %151 = arith.mulf %149, %150 : vector<16x1536xf32>
    %cst_56 = arith.constant 4.471500e-02 : f32
    %152 = vector.broadcast %cst_56 : f32 to vector<16x1536xf32>
    %153 = arith.mulf %152, %151 : vector<16x1536xf32>
    %154 = arith.addf %149, %153 : vector<16x1536xf32>
    %cst_57 = arith.constant 0.797884583 : f32
    %155 = vector.broadcast %cst_57 : f32 to vector<16x1536xf32>
    %156 = arith.mulf %155, %154 : vector<16x1536xf32>
    %157 = math.tanh %156 : vector<16x1536xf32>
    %cst_58 = arith.constant 1.000000e+00 : f32
    %158 = vector.broadcast %cst_58 : f32 to vector<16x1536xf32>
    %159 = arith.addf %158, %157 : vector<16x1536xf32>
    %cst_59 = arith.constant 5.000000e-01 : f32
    %160 = vector.broadcast %cst_59 : f32 to vector<16x1536xf32>
    %161 = arith.mulf %160, %159 : vector<16x1536xf32>
    %162 = arith.mulf %149, %161 : vector<16x1536xf32>
    %c0_60 = arith.constant 0 : index
    %c0_61 = arith.constant 0 : index
    %c0_62 = arith.constant 0 : index
    %163 = vector.load %arg14[%c0_60, %c0_61, %c0_62] : memref<1x1536x384xbf16, #tpu.memory_space<vmem>>, vector<1x1536x384xbf16>
    %164 = vector.shape_cast %163 : vector<1x1536x384xbf16> to vector<1536x384xbf16>
    %c0_63 = arith.constant 0 : index
    %c0_64 = arith.constant 0 : index
    %c0_65 = arith.constant 0 : index
    %165 = vector.load %arg15[%c0_63, %c0_64, %c0_65] : memref<1x1x384xf32, #tpu.memory_space<vmem>>, vector<1x1x384xf32>
    %166 = vector.shape_cast %165 : vector<1x1x384xf32> to vector<1x384xf32>
    %167 = arith.truncf %162 : vector<16x1536xf32> to vector<16x1536xbf16>
    %cst_66 = arith.constant dense<0.000000e+00> : vector<16x384xf32>
    %168 = tpu.matmul %167, %164, %cst_66 {dimension_numbers = #tpu.dot_dimension_numbers<[1], [0], [0], [1], [0, 0, 1, 1], [], []>} : vector<16x1536xbf16>, vector<1536x384xbf16>, vector<16x384xf32> -> vector<16x384xf32>
    %169 = vector.broadcast %166 : vector<1x384xf32> to vector<16x384xf32>
    %170 = arith.addf %168, %169 : vector<16x384xf32>
    %171 = arith.addf %115, %170 : vector<16x384xf32>
    %c0_67 = arith.constant 0 : index
    %c0_68 = arith.constant 0 : index
    %172 = vector.load %arg19[%c0_67, %c0_68] : memref<16x384xf32, #tpu.memory_space<vmem>>, vector<16x384xf32>
    tpu.vector_store %arg19[%c0_67, %c0_68], %171 {strides = array<i32>} : memref<16x384xf32, #tpu.memory_space<vmem>>, vector<16x384xf32>,
    %c1_i32 = arith.constant 1 : i32
    %173 = arith.cmpi eq, %arg0, %c1_i32 : i32
    %174 = arith.extui %173 : i1 to i32
    %c0_i32_69 = arith.constant 0 : i32
    %175 = arith.cmpi ne, %174, %c0_i32_69 : i32
    scf.if %175 {
      %c0_70 = arith.constant 0 : index
      %c0_71 = arith.constant 0 : index
      %176 = vector.load %arg19[%c0_70, %c0_71] : memref<16x384xf32, #tpu.memory_space<vmem>>, vector<16x384xf32>
      %177 = vector.extract_strided_slice %176 {offsets = [0, 0], sizes = [1, 384], strides = [1, 1]} : vector<16x384xf32> to vector<1x384xf32>
      %178 = vector.extract_strided_slice %176 {offsets = [8, 0], sizes = [1, 384], strides = [1, 1]} : vector<16x384xf32> to vector<1x384xf32>
      %179 = tpu.concatenate %177, %178 in 0 : vector<1x384xf32>, vector<1x384xf32> -> vector<2x384xf32>
      %c0_72 = arith.constant 0 : index
      %c0_73 = arith.constant 0 : index
      %180 = vector.load %arg16[%c0_72, %c0_73] : memref<1x384xf32, #tpu.memory_space<vmem>>, vector<1x384xf32>
      %c0_74 = arith.constant 0 : index
      %c0_75 = arith.constant 0 : index
      %181 = vector.load %arg17[%c0_74, %c0_75] : memref<1x384xf32, #tpu.memory_space<vmem>>, vector<1x384xf32>
      %cst_76 = arith.constant dense<0.000000e+00> : vector<2xf32>
      %182 = vector.multi_reduction <add>, %179, %cst_76 [1] : vector<2x384xf32> to vector<2xf32>
      %183 = vector.shape_cast %182 : vector<2xf32> to vector<2x1xf32>
      %cst_77 = arith.constant 3.840000e+02 : f32
      %184 = vector.broadcast %cst_77 : f32 to vector<2x1xf32>
      %185 = arith.divf %183, %184 : vector<2x1xf32>
      %186 = vector.broadcast %185 : vector<2x1xf32> to vector<2x384xf32>
      %187 = arith.subf %179, %186 : vector<2x384xf32>
      %188 = arith.mulf %187, %187 : vector<2x384xf32>
      %cst_78 = arith.constant dense<0.000000e+00> : vector<2xf32>
      %189 = vector.multi_reduction <add>, %188, %cst_78 [1] : vector<2x384xf32> to vector<2xf32>
      %190 = vector.shape_cast %189 : vector<2xf32> to vector<2x1xf32>
      %cst_79 = arith.constant 3.840000e+02 : f32
      %191 = vector.broadcast %cst_79 : f32 to vector<2x1xf32>
      %192 = arith.divf %190, %191 : vector<2x1xf32>
      %193 = vector.broadcast %185 : vector<2x1xf32> to vector<2x384xf32>
      %194 = arith.subf %179, %193 : vector<2x384xf32>
      %cst_80 = arith.constant 9.99999997E-7 : f32
      %195 = vector.broadcast %cst_80 : f32 to vector<2x1xf32>
      %196 = arith.addf %192, %195 : vector<2x1xf32>
      %197 = math.rsqrt %196 : vector<2x1xf32>
      %198 = vector.broadcast %197 : vector<2x1xf32> to vector<2x384xf32>
      %199 = arith.mulf %194, %198 : vector<2x384xf32>
      %200 = vector.broadcast %180 : vector<1x384xf32> to vector<2x384xf32>
      %201 = arith.mulf %199, %200 : vector<2x384xf32>
      %202 = vector.broadcast %181 : vector<1x384xf32> to vector<2x384xf32>
      %203 = arith.addf %201, %202 : vector<2x384xf32>
      %c0_81 = arith.constant 0 : index
      %c0_82 = arith.constant 0 : index
      %204 = vector.load %arg18[%c0_81, %c0_82] : memref<2x384xf32, #tpu.memory_space<vmem>>, vector<2x384xf32>
      tpu.vector_store %arg18[%c0_81, %c0_82], %203 {strides = array<i32>} : memref<2x384xf32, #tpu.memory_space<vmem>>, vector<2x384xf32>,
    } else {
    }
    return
  }
  func.func @transform_0(%arg0: i32) -> (i32, i32) {
    %c0_i32 = arith.constant 0 : i32
    %c0_i32_0 = arith.constant 0 : i32
    %c0_i32_1 = arith.constant 0 : i32
    return %c0_i32, %c0_i32_0 : i32, i32
  }
  func.func @transform_1(%arg0: i32) -> (i32, i32) {
    %c0_i32 = arith.constant 0 : i32
    %c0_i32_0 = arith.constant 0 : i32
    %c0_i32_1 = arith.constant 0 : i32
    return %c0_i32, %c0_i32_0 : i32, i32
  }
  func.func @transform_2(%arg0: i32) -> (i32, i32) {
    %c0_i32 = arith.constant 0 : i32
    %c0_i32_0 = arith.constant 0 : i32
    %c0_i32_1 = arith.constant 0 : i32
    return %c0_i32, %c0_i32_0 : i32, i32
  }
  func.func @transform_3(%arg0: i32) -> (i32, i32, i32) {
    %c0_i32 = arith.constant 0 : i32
    %c0_i32_0 = arith.constant 0 : i32
    %c0_i32_1 = arith.constant 0 : i32
    return %arg0, %c0_i32, %c0_i32_0 : i32, i32, i32
  }
  func.func @transform_4(%arg0: i32) -> (i32, i32, i32) {
    %c0_i32 = arith.constant 0 : i32
    %c0_i32_0 = arith.constant 0 : i32
    %c0_i32_1 = arith.constant 0 : i32
    return %arg0, %c0_i32, %c0_i32_0 : i32, i32, i32
  }
  func.func @transform_5(%arg0: i32) -> (i32, i32, i32) {
    %c0_i32 = arith.constant 0 : i32
    %c0_i32_0 = arith.constant 0 : i32
    %c0_i32_1 = arith.constant 0 : i32
    return %arg0, %c0_i32, %c0_i32_0 : i32, i32, i32
  }
  func.func @transform_6(%arg0: i32) -> (i32, i32, i32) {
    %c0_i32 = arith.constant 0 : i32
    %c0_i32_0 = arith.constant 0 : i32
    %c0_i32_1 = arith.constant 0 : i32
    return %arg0, %c0_i32, %c0_i32_0 : i32, i32, i32
  }
  func.func @transform_7(%arg0: i32) -> (i32, i32, i32) {
    %c0_i32 = arith.constant 0 : i32
    %c0_i32_0 = arith.constant 0 : i32
    %c0_i32_1 = arith.constant 0 : i32
    return %arg0, %c0_i32, %c0_i32_0 : i32, i32, i32
  }
  func.func @transform_8(%arg0: i32) -> (i32, i32, i32) {
    %c0_i32 = arith.constant 0 : i32
    %c0_i32_0 = arith.constant 0 : i32
    %c0_i32_1 = arith.constant 0 : i32
    return %arg0, %c0_i32, %c0_i32_0 : i32, i32, i32
  }
  func.func @transform_9(%arg0: i32) -> (i32, i32, i32) {
    %c0_i32 = arith.constant 0 : i32
    %c0_i32_0 = arith.constant 0 : i32
    %c0_i32_1 = arith.constant 0 : i32
    return %arg0, %c0_i32, %c0_i32_0 : i32, i32, i32
  }
  func.func @transform_10(%arg0: i32) -> (i32, i32, i32) {
    %c0_i32 = arith.constant 0 : i32
    %c0_i32_0 = arith.constant 0 : i32
    %c0_i32_1 = arith.constant 0 : i32
    return %arg0, %c0_i32, %c0_i32_0 : i32, i32, i32
  }
  func.func @transform_11(%arg0: i32) -> (i32, i32, i32) {
    %c0_i32 = arith.constant 0 : i32
    %c0_i32_0 = arith.constant 0 : i32
    %c0_i32_1 = arith.constant 0 : i32
    return %arg0, %c0_i32, %c0_i32_0 : i32, i32, i32
  }
  func.func @transform_12(%arg0: i32) -> (i32, i32, i32) {
    %c0_i32 = arith.constant 0 : i32
    %c0_i32_0 = arith.constant 0 : i32
    %c0_i32_1 = arith.constant 0 : i32
    return %arg0, %c0_i32, %c0_i32_0 : i32, i32, i32
  }
  func.func @transform_13(%arg0: i32) -> (i32, i32, i32) {
    %c0_i32 = arith.constant 0 : i32
    %c0_i32_0 = arith.constant 0 : i32
    %c0_i32_1 = arith.constant 0 : i32
    return %arg0, %c0_i32, %c0_i32_0 : i32, i32, i32
  }
  func.func @transform_14(%arg0: i32) -> (i32, i32, i32) {
    %c0_i32 = arith.constant 0 : i32
    %c0_i32_0 = arith.constant 0 : i32
    %c0_i32_1 = arith.constant 0 : i32
    return %arg0, %c0_i32, %c0_i32_0 : i32, i32, i32
  }
  func.func @transform_15(%arg0: i32) -> (i32, i32) {
    %c0_i32 = arith.constant 0 : i32
    %c0_i32_0 = arith.constant 0 : i32
    %c0_i32_1 = arith.constant 0 : i32
    return %c0_i32, %c0_i32_0 : i32, i32
  }
  func.func @transform_16(%arg0: i32) -> (i32, i32) {
    %c0_i32 = arith.constant 0 : i32
    %c0_i32_0 = arith.constant 0 : i32
    %c0_i32_1 = arith.constant 0 : i32
    return %c0_i32, %c0_i32_0 : i32, i32
  }
  func.func @transform_17(%arg0: i32) -> (i32, i32) {
    %c0_i32 = arith.constant 0 : i32
    %c0_i32_0 = arith.constant 0 : i32
    %c0_i32_1 = arith.constant 0 : i32
    return %c0_i32, %c0_i32_0 : i32, i32
  }
}

</mosaic_0001>

<bundles_post_ra>
// kernel: net_forward.1
= control target key start
LH: loop header
LB: loop body
LE: loop exit
PB: predicated region body
PF: predicated region fallthrough
CT: control target
= control target key end

     0   :  { %s22189_s0 = inlined_call_operand.vmem [shape: f32[16,640], index: 0, kind: input, shape index: {}]   ;;  %s22190_s1 = inlined_call_operand.vmem [shape: f32[16,384], index: 1, kind: input, shape index: {}]   ;;  %s22191_s2 = inlined_call_operand.hbm [shape: bf16[640,384], index: 2, kind: input, shape index: {}]   ;;  %s22192_s3 = inlined_call_operand.hbm [shape: f32[2,1,384], index: 3, kind: input, shape index: {}]   ;;  %s22193_s4 = inlined_call_operand.hbm [shape: f32[2,1,384], index: 4, kind: input, shape index: {}]   ;;  %s22194_s5 = inlined_call_operand.hbm [shape: bf16[2,384,1152], index: 5, kind: input, shape index: {}]   ;;  %s22195_s6 = inlined_call_operand.hbm [shape: f32[2,1,1152], index: 6, kind: input, shape index: {}]   ;;  %s22196_s7 = inlined_call_operand.hbm [shape: bf16[2,384,384], index: 7, kind: input, shape index: {}]   ;;  %s22197_s8 = inlined_call_operand.hbm [shape: f32[2,1,384], index: 8, kind: input, shape index: {}]   ;;  %s22198_s9 = inlined_call_operand.hbm [shape: f32[2,1,384], index: 9, kind: input, shape index: {}]   ;;  %s22199_s10 = inlined_call_operand.hbm [shape: f32[2,1,384], index: 10, kind: input, shape index: {}]   ;;  %s22200_s11 = inlined_call_operand.hbm [shape: bf16[2,384,1536], index: 11, kind: input, shape index: {}]   ;;  %s22201_s12 = inlined_call_operand.hbm [shape: f32[2,1,1536], index: 12, kind: input, shape index: {}]   ;;  %s22202_s13 = inlined_call_operand.hbm [shape: bf16[2,1536,384], index: 13, kind: input, shape index: {}]   ;;  %s22203_s14 = inlined_call_operand.hbm [shape: f32[2,1,384], index: 14, kind: input, shape index: {}]   ;;  %s22204_s15 = inlined_call_operand.hbm [shape: f32[1,384], index: 15, kind: input, shape index: {}]   ;;  %s22205_s16 = inlined_call_operand.hbm [shape: f32[1,384], index: 16, kind: input, shape index: {}]   ;;  %s22206_s17 = inlined_call_operand.hbm [shape: f32[2,384], index: 17, kind: output, shape index: {}]  }
   0x1   :  { %22227 = sst [smem:[#allocation44_spill]] %s22189_s0 }
   0x2   :  { %22228 = sst [smem:[#allocation45_spill]] %s22190_s1 }
   0x3   :  { %22229 = sst [smem:[#allocation46_spill]] %s22191_s2 }
   0x4   :  { %22230 = sst [smem:[#allocation47_spill]] %s22192_s3 }
   0x5   :  { %22231 = sst [smem:[#allocation48_spill]] %s22194_s5 }
   0x6   :  { %22232 = sst [smem:[#allocation49_spill]] %s22196_s7 }
   0x7   :  { %22233 = sst [smem:[#allocation50_spill]] %s22201_s12 }
   0x8   :  { %22234 = sst [smem:[#allocation51_spill]] %s22203_s14 }
   0x9   :  { %22235 = sst [smem:[#allocation52_spill]] %s22204_s15 }
   0xa   :  { %22236 = sst [smem:[#allocation53_spill]] %s22205_s16 }
   0xb   :  { %22237 = sst [smem:[#allocation54_spill]] %s22206_s17 }
   0xc   :  { %22 = vsyncpa [#allocation4], 0 }
   0xd   :  { %23 = vsyncpa [#allocation7], 0 }
   0xe   :  { %25 = vsyncpa [#allocation7 + $0x1], 0 }
   0xf   :  { %26 = vsyncpa [#allocation10], 0 }
  0x10   :  { %28 = vsyncpa [#allocation10 + $0x1], 0 }
  0x11   :  { %29 = vsyncpa [#allocation13], 0 }
  0x12   :  { %31 = vsyncpa [#allocation13 + $0x1], 0 }
  0x13   :  { %32 = vsyncpa [#allocation16], 0 }
  0x14   :  { %34 = vsyncpa [#allocation16 + $0x1], 0 }
  0x15   :  { %35 = vsyncpa [#allocation19], 0 }
  0x16   :  { %37 = vsyncpa [#allocation19 + $0x1], 0 }
  0x17   :  { %38 = vsyncpa [#allocation22], 0 }
  0x18   :  { %40 = vsyncpa [#allocation22 + $0x1], 0 }
  0x19   :  { %41 = vsyncpa [#allocation25], 0 }
  0x1a   :  { %42 = vsyncpa [#allocation5], 0  ;;  %s18279_s24 = smov 0   ;;  %s18281_s25 = smov 0  }
  0x1b   :  { %s18283_s26 = smov 0   ;;  %s18285_s27 = smov 0  }
  0x1c LB: > { %22238 = sst [smem:[#allocation37_spill]] %s18162_s25  ;;  %s18298_s28 = sadd.s32 4294967295, %s18170_s27   ;;  %s18170_s27 = sphi %s18285_s27, %s22273_s27   ;;  %s18166_s26 = sphi %s18283_s26, %s22276_s26   ;;  %s18162_s25 = sphi %s18281_s25, %s22275_s25   ;;  %s18158_s24 = sphi %s18279_s24, %s22274_s24  }
  0x1d   : > { %22239 = sst [smem:[#allocation38_spill]] %s18166_s26  ;;  %s18301_s29 = sadd.s32 1, %s18170_s27  }
  0x1e   : > { %22240 = sst [smem:[#allocation39_spill]] %s18298_s28  ;;  %s115_s0 = ssub.s32 %s18170_s27, %s18301_s29 }
  0x1f   : > { %22241 = sst [smem:[#allocation40_spill]] %s18301_s29  ;;  %s118_s30 = sadd.s32 1, %s18166_s26 }
  0x20   : > { %p116_p0 = scmp.eq.s32.totalorder %s115_s0, 0  ;;  %p125_p1 = scmp.ne.s32.totalorder %s18166_s26, %s18162_s25 }
  0x21   : > { %p126_p2 = scmp.eq.s32.totalorder %s18170_s27, 0  ;;  %p131_p3 = scmp.ne.s32.totalorder %s18162_s25, %s18158_s24 }
  0x22   : > { %s18311_s18 = scalar_select %p116_p0, %s18166_s26, %s118_s30  }
  0x23   : > { %p18313_p4 = por %p126_p2, %p125_p1  ;;  %p132_p5 = scmp.eq.s32.totalorder %s18298_s28, 0 }
  0x24   : > { %22242 = sst [smem:[#allocation41_spill]] %s18311_s18  ;;  %p12378_p6 = scmp.ge.s32.totalorder %s18170_s27, 1 }
  0x25   : > { %p491_p7 = scmp.lt.s32.totalorder %s18170_s27, 3  ;;  %p18322_p8 = por %p132_p5, %p131_p3 }
  0x26   : > { %p12379_p9 = scmp.ne.s32.totalorder %s18298_s28, 0  ;;  %s22248_s15 = sld [smem:[#allocation52_spill]] }
  0x27   : > { %s22244_s1 = scalar_select %p18322_p8, 1, 0 }
  0x28   : > { %p18327_p10 = pnand %p12378_p6, %p491_p7  ;;  %s18172_s24 = smov [#allocation24]  }
  0x29   : > { %22245 = sst [smem:[#allocation42_spill]] %s22244_s1  ;;  %s525_s0 = sshll.u32 %s18172_s24, 4  ;;  %s526_s0 = int_to_ptr.vmem [resolvable:$true] %s525_s0 }
  0x2a   : > { %s22246_s20 = scalar_select %p18327_p10, 1, 0 }
  0x2b   : > { %p17411_p11 = pneg %p18327_p10  ;;  %s22249_s2 = sld [smem:[#allocation46_spill]] }
  0x2c   : > { %22247 = sst [smem:[#allocation43_spill]] %s22246_s20  ;;  %s523_s23 = sshll.u32 %s22248_s15, 4  ;;  %s524_s23 = int_to_ptr.hbm [resolvable:$true] %s523_s23 }
  0x2d   : > { %p18341_p12 = pnand %p17411_p11, %p132_p5  ;;  %s18173_s21 = smov [#allocation3]  }
  0x2e   : > { %s510_s22 = sshll.u32 %s18173_s21, 4  ;;  %s18174_s24 = smov 192   ;;  %s511_s22 = int_to_ptr.vmem [resolvable:$true] %s510_s22 }
  0x2f   : > { %17417 = dma.hbm_to_vmem [thread:$0]  (!%p18341_p12), %s524_s23, 48, %s526_s0, [#allocation25]  }
  0x30   : > { %s18175_s15 = smov 12   ;;  %s22251_s16 = sld [smem:[#allocation53_spill]] }
  0x31   : > { %s508_s29 = sshll.u32 %s22249_s2, 4  ;;  %s18176_s1 = smov [#allocation26]   ;;  %s509_s29 = int_to_ptr.hbm [resolvable:$true] %s508_s29 }
  0x32   : > { %17414 = dma.hbm_to_vmem [thread:$0]  (!%p18341_p12), %s509_s29, 15360, %s511_s22, [#allocation4], %s18174_s24, %s18174_s24, %s18175_s15  }
  0x33   : > { %s537_s25 = sshll.u32 %s18176_s1, 4  ;;  %p12382_p13 = scmp.ge.s32.totalorder %s18170_s27, 2  ;;  %s538_s25 = int_to_ptr.vmem [resolvable:$true] %s537_s25 }
  0x34   : > { %s18356_s23 = sand.u32 (!%p12382_p13), 1, %s18170_s27   ;;  %s18359_s15 = sand.u32 (!%p12382_p13), 1, %s18166_s26  }
  0x35   : > { %544 = sbr.rel (%p12382_p13) target bundleno = 257 (0x101), region = 36  ;;  %s22252_s3 = sld [smem:[#allocation47_spill]] (!%p12382_p13) }
  0x36   : > { %s535_s2 = sshll.u32 %s22251_s16, 4  ;;  %s18362_s29 = smul.u32 (!%p12382_p13), 3, %s18359_s15  ;;  %s536_s2 = int_to_ptr.hbm [resolvable:$true] %s535_s2 }
  0x37   : > { %17420 = dma.hbm_to_vmem [thread:$0]  (!%p18341_p12), %s536_s2, 48, %s538_s25, [#allocation25]  }
  0x38   : > { %s18365_s1 = smul.u32 (!%p12382_p13), 3, %s18170_s27  ;;  %s552_s21 = scalar_lea.vmem (!%p12382_p13), [#allocation6], %s18362_s29 }
  0x39   : > { %s17345_s2 = smul.u32 (!%p12382_p13), 1728, %s18359_s15  ;;  %s560_s22 = sshll.u32 (!%p12382_p13), %s552_s21, 4  ;;  %s561_s22 = int_to_ptr.vmem [resolvable:$true] %s560_s22 }
  0x3a   : > { %s22219_s18 = scalar_lea.sflag [#allocation7], %s18356_s23 }
  0x3b   : > { %s556_s0 = scalar_lea.hbm %s22252_s3, %s18365_s1  ;;  %s17746_s20 = scalar_lea.hbm %s22252_s3, 6 }
  0x3c   : > { %s558_s24 = sshll.u32 %s556_s0, 4  ;;  %s559_s24 = int_to_ptr.hbm [resolvable:$true] %s558_s24 }
  0x3d   : > { %s17740_s30 = sshra.s32 %s559_s24, 4  ;;  %s17741_s30 = int_to_ptr.hbm [resolvable:$true] %s17740_s30 }
  0x3e   : > { %s17742_s16 = scalar_lea.hbm %s17741_s30, 3  ;;  %p17747_p3 = scmp.lt.s32.totalorder %s17741_s30, %s22252_s3 }
  0x3f   : > { %p17743_p0 = scmp.ne.s32.totalorder %s17741_s30, %s17742_s16  ;;  %p17748_p6 = scmp.lt.s32.totalorder %s17746_s20, %s17742_s16 }
  0x41   : > { %p17744_p1 = pnand %p17743_p0, %p18313_p4  ;;  %p17749_p7 = por %p17748_p6, %p17747_p3 }
  0x43   : > { %p17745_p2 = pneg %p17744_p1 }
  0x45   : > { %p17750_p11 = pnand %p17749_p7, %p17745_p2 }
  0x47   : > { %17753 = shalt.err (!%p17750_p11)
}
  0x48   : > { %17377 = dma.hbm_to_vmem [thread:$0]  (%p18313_p4), %s559_s24, 48, %s561_s22, %s22219_s18  }
  0x49   : > { %s17346_s25 = smul.u32 1728, %s18170_s27  ;;  %s590_s26 = scalar_lea.vmem [#allocation9], %s17345_s2 }
  0x4a   : > { %s598_s28 = sshll.u32 %s590_s26, 4  ;;  %s22253_s5 = sld [smem:[#allocation48_spill]]  ;;  %s599_s28 = int_to_ptr.vmem [resolvable:$true] %s598_s28 }
  0x4b   : > { %s17349_s21 = smul.u32 576, %s18359_s15  ;;  %s22223_s30 = scalar_lea.sflag [#allocation10], %s18356_s23 }
  0x50   : > { %s595_s16 = scalar_lea.hbm %s22253_s5, %s17346_s25  ;;  %s17774_s2 = scalar_lea.hbm %s22253_s5, 3456 }
  0x51   : > { %s596_s20 = sshll.u32 %s595_s16, 4  ;;  %s597_s20 = int_to_ptr.hbm [resolvable:$true] %s596_s20 }
  0x52   : > { %s17768_s17 = sshra.s32 %s597_s20, 4  ;;  %s17769_s17 = int_to_ptr.hbm [resolvable:$true] %s17768_s17 }
  0x53   : > { %s17770_s3 = scalar_lea.hbm %s17769_s17, 1728  ;;  %p17775_p1 = scmp.lt.s32.totalorder %s17769_s17, %s22253_s5 }
  0x54   : > { %p17771_p12 = scmp.ne.s32.totalorder %s17769_s17, %s17770_s3  ;;  %p17776_p2 = scmp.lt.s32.totalorder %s17774_s2, %s17770_s3 }
  0x56   : > { %p17772_p13 = pnand %p17771_p12, %p18313_p4  ;;  %p17777_p3 = por %p17776_p2, %p17775_p1 }
  0x58   : > { %p17773_p0 = pneg %p17772_p13 }
  0x5a   : > { %p17778_p6 = pnand %p17777_p3, %p17773_p0 }
  0x5c   : > { %17781 = shalt.err (!%p17778_p6)
}
  0x5d   : > { %s18177_s25 = smov 576   ;;  %s18178_s0 = smov 36  }
  0x5e   : > { %17379 = dma.hbm_to_vmem [thread:$0]  (%p18313_p4), %s597_s20, 27648, %s599_s28, %s22223_s30, %s18177_s25, %s18177_s25, %s18178_s0  }
  0x5f   : > { %s17350_s12 = smul.u32 576, %s18170_s27  ;;  %s631_s16 = scalar_lea.vmem [#allocation12], %s17349_s21 }
  0x60   : > { %s639_s22 = sshll.u32 %s631_s16, 4  ;;  %s22254_s7 = sld [smem:[#allocation49_spill]]  ;;  %s640_s22 = int_to_ptr.vmem [resolvable:$true] %s639_s22 }
  0x61   : > { %s22221_s2 = scalar_lea.sflag [#allocation13], %s18356_s23 }
  0x66   : > { %s636_s3 = scalar_lea.hbm %s22254_s7, %s17350_s12  ;;  %s17802_s20 = scalar_lea.hbm %s22254_s7, 1152 }
  0x67   : > { %s637_s17 = sshll.u32 %s636_s3, 4  ;;  %s638_s17 = int_to_ptr.hbm [resolvable:$true] %s637_s17 }
  0x68   : > { %s17796_s26 = sshra.s32 %s638_s17, 4  ;;  %s17797_s26 = int_to_ptr.hbm [resolvable:$true] %s17796_s26 }
  0x69   : > { %s17798_s5 = scalar_lea.hbm %s17797_s26, 576  ;;  %p17803_p13 = scmp.lt.s32.totalorder %s17797_s26, %s22254_s7 }
  0x6a   : > { %p17799_p7 = scmp.ne.s32.totalorder %s17797_s26, %s17798_s5  ;;  %p17804_p0 = scmp.lt.s32.totalorder %s17802_s20, %s17798_s5 }
  0x6c   : > { %p17800_p11 = pnand %p17799_p7, %p18313_p4  ;;  %p17805_p1 = por %p17804_p0, %p17803_p13 }
  0x6e   : > { %p17801_p12 = pneg %p17800_p11 }
  0x70   : > { %p17806_p2 = pnand %p17805_p1, %p17801_p12 }
  0x72   : > { %17809 = shalt.err (!%p17806_p2)
}
  0x73   : > { %s22224_s0 = smov 192   ;;  %s22225_s12 = smov 12  }
  0x74   : > { %17381 = dma.hbm_to_vmem [thread:$0]  (%p18313_p4), %s638_s17, 9216, %s640_s22, %s22221_s2, %s22224_s0, %s22224_s0, %s22225_s12  }
  0x75   : > { %s676_s5 = scalar_lea.hbm %s22198_s9, %s18365_s1  ;;  %s672_s18 = scalar_lea.vmem [#allocation15], %s18362_s29 }
  0x76   : > { %s678_s24 = sshll.u32 %s676_s5, 4  ;;  %s680_s3 = sshll.u32 %s672_s18, 4  ;;  %s679_s24 = int_to_ptr.hbm [resolvable:$true] %s678_s24  ;;  %s681_s3 = int_to_ptr.vmem [resolvable:$true] %s680_s3 }
  0x77   : > { %s22222_s26 = scalar_lea.sflag [#allocation16], %s18356_s23  ;;  %s17824_s28 = sshra.s32 %s679_s24, 4  ;;  %s17825_s28 = int_to_ptr.hbm [resolvable:$true] %s17824_s28 }
  0x78   : > { %s17826_s20 = scalar_lea.hbm %s17825_s28, 3  ;;  %s17830_s22 = scalar_lea.hbm %s22198_s9, 6 }
  0x79   : > { %p17827_p3 = scmp.ne.s32.totalorder %s17825_s28, %s17826_s20  ;;  %p17831_p11 = scmp.lt.s32.totalorder %s17825_s28, %s22198_s9 }
  0x7a   : > { %p17832_p12 = scmp.lt.s32.totalorder %s17830_s22, %s17826_s20 }
  0x7b   : > { %p17828_p6 = pnand %p17827_p3, %p18313_p4 }
  0x7c   : > { %p17833_p13 = por %p17832_p12, %p17831_p11 }
  0x7d   : > { %p17829_p7 = pneg %p17828_p6 }
  0x7f   : > { %p17834_p0 = pnand %p17833_p13, %p17829_p7 }
  0x81   : > { %17837 = shalt.err (!%p17834_p0)
}
  0x82   : > { %17383 = dma.hbm_to_vmem [thread:$0]  (%p18313_p4), %s679_s24, 48, %s681_s3, %s22222_s26  }
  0x83   : > { %s17357_s16 = smul.u32 2304, %s18359_s15  ;;  %s707_s17 = scalar_lea.sflag [#allocation19], %s18356_s23 }
  0x84   : > { %s17358_s5 = smul.u32 2304, %s18170_s27  ;;  %s17858_s26 = scalar_lea.hbm %s22200_s11, 4608 }
  0x85   : > { %s710_s28 = scalar_lea.vmem [#allocation18], %s17357_s16 }
  0x86   : > { %s715_s25 = scalar_lea.hbm %s22200_s11, %s17358_s5  ;;  %s718_s20 = sshll.u32 %s710_s28, 4  ;;  %s719_s20 = int_to_ptr.vmem [resolvable:$true] %s718_s20 }
  0x87   : > { %s716_s22 = sshll.u32 %s715_s25, 4  ;;  %s717_s22 = int_to_ptr.hbm [resolvable:$true] %s716_s22 }
  0x88   : > { %s17852_s14 = sshra.s32 %s717_s22, 4  ;;  %s17853_s14 = int_to_ptr.hbm [resolvable:$true] %s17852_s14 }
  0x89   : > { %s17854_s2 = scalar_lea.hbm %s17853_s14, 2304  ;;  %p17859_p6 = scmp.lt.s32.totalorder %s17853_s14, %s22200_s11 }
  0x8a   : > { %p17855_p1 = scmp.ne.s32.totalorder %s17853_s14, %s17854_s2  ;;  %p17860_p7 = scmp.lt.s32.totalorder %s17858_s26, %s17854_s2 }
  0x8c   : > { %p17856_p2 = pnand %p17855_p1, %p18313_p4  ;;  %p17861_p11 = por %p17860_p7, %p17859_p6 }
  0x8e   : > { %p17857_p3 = pneg %p17856_p2 }
  0x90   : > { %p17862_p12 = pnand %p17861_p11, %p17857_p3 }
  0x92   : > { %17865 = shalt.err (!%p17862_p12)
}
  0x93   : > { %s18181_s21 = smov 768   ;;  %s18182_s25 = smov 48  }
  0x94   : > { %17385 = dma.hbm_to_vmem [thread:$0]  (%p18313_p4), %s717_s22, 36864, %s719_s20, %s707_s17, %s18181_s21, %s18181_s21, %s18182_s25  }
  0x95   : > { %s756_s3 = scalar_lea.hbm %s22202_s13, %s17358_s5  ;;  %s751_s30 = scalar_lea.vmem [#allocation21], %s17357_s16 }
  0x96   : > { %s757_s0 = sshll.u32 %s756_s3, 4  ;;  %s759_s14 = sshll.u32 %s751_s30, 4  ;;  %s758_s0 = int_to_ptr.hbm [resolvable:$true] %s757_s0  ;;  %s760_s14 = int_to_ptr.vmem [resolvable:$true] %s759_s14 }
  0x97   : > { %s22226_s2 = scalar_lea.sflag [#allocation22], %s18356_s23  ;;  %s17880_s26 = sshra.s32 %s758_s0, 4  ;;  %s17881_s26 = int_to_ptr.hbm [resolvable:$true] %s17880_s26 }
  0x98   : > { %s17882_s18 = scalar_lea.hbm %s17881_s26, 2304  ;;  %s17886_s20 = scalar_lea.hbm %s22202_s13, 4608 }
  0x99   : > { %p17883_p13 = scmp.ne.s32.totalorder %s17881_s26, %s17882_s18  ;;  %p17887_p2 = scmp.lt.s32.totalorder %s17881_s26, %s22202_s13 }
  0x9a   : > { %p17888_p3 = scmp.lt.s32.totalorder %s17886_s20, %s17882_s18 }
  0x9b   : > { %p17884_p0 = pnand %p17883_p13, %p18313_p4 }
  0x9c   : > { %p17889_p6 = por %p17888_p3, %p17887_p2 }
  0x9d   : > { %p17885_p1 = pneg %p17884_p0 }
  0x9f   : > { %p17890_p7 = pnand %p17889_p6, %p17885_p1 }
  0xa1   : > { %17893 = shalt.err (!%p17890_p7)
}
  0xa2   : > { %s22255_s16 = smov 12   ;;  %s22256_s5 = smov 192  }
  0xa3   : > { %17387 = dma.hbm_to_vmem [thread:$0]  (%p18313_p4), %s758_s0, 36864, %s760_s14, %s22226_s2, %s22256_s5, %s22256_s5, %s22255_s16  }
  0xa4   : > { %s575_s25 = scalar_lea.hbm %s22193_s4, %s18365_s1  ;;  %s571_s24 = scalar_lea.vmem [#allocation8], %s18362_s29 }
  0xa5   : > { %s577_s28 = sshll.u32 %s575_s25, 4  ;;  %s579_s3 = sshll.u32 %s571_s24, 4  ;;  %s578_s28 = int_to_ptr.hbm [resolvable:$true] %s577_s28  ;;  %s580_s3 = int_to_ptr.vmem [resolvable:$true] %s579_s3 }
  0xa6   : > { %s17908_s30 = sshra.s32 %s578_s28, 4  ;;  %s17914_s0 = scalar_lea.hbm %s22193_s4, 6  ;;  %s17909_s30 = int_to_ptr.hbm [resolvable:$true] %s17908_s30 }
  0xa7   : > { %s17910_s26 = scalar_lea.hbm %s17909_s30, 3  ;;  %p17915_p0 = scmp.lt.s32.totalorder %s17909_s30, %s22193_s4 }
  0xa8   : > { %p17911_p11 = scmp.ne.s32.totalorder %s17909_s30, %s17910_s26  ;;  %p17916_p1 = scmp.lt.s32.totalorder %s17914_s0, %s17910_s26 }
  0xaa   : > { %p17912_p12 = pnand %p17911_p11, %p18313_p4  ;;  %p17917_p2 = por %p17916_p1, %p17915_p0 }
  0xac   : > { %p17913_p13 = pneg %p17912_p12 }
  0xae   : > { %p17918_p3 = pnand %p17917_p2, %p17913_p13 }
  0xb0   : > { %17921 = shalt.err (!%p17918_p3)
}
  0xb1   : > { %s22257_s21 = scalar_lea.sflag [#allocation7], %s18356_s23  ;;  %s17347_s16 = smul.u32 9, %s18359_s15 }
  0xb2   : > { %17378 = dma.hbm_to_vmem [thread:$0]  (%p18313_p4), %s578_s28, 48, %s580_s3, %s22257_s21  }
  0xb3   : > { %s17348_s5 = smul.u32 9, %s18170_s27  ;;  %s657_s25 = scalar_lea.hbm %s22197_s8, %s18365_s1 }
  0xb4   : > { %s18502_s24 = sshll.u32 %s657_s25, 4  ;;  %s612_s20 = scalar_lea.vmem [#allocation11], %s17347_s16  ;;  %s660_s24 = int_to_ptr.hbm [resolvable:$true] %s18502_s24 }
  0xb5   : > { %s616_s18 = scalar_lea.hbm %s22195_s6, %s17348_s5  ;;  %s620_s0 = sshll.u32 %s612_s20, 4  ;;  %s621_s0 = int_to_ptr.vmem [resolvable:$true] %s620_s0 }
  0xb6   : > { %s618_s14 = sshll.u32 %s616_s18, 4  ;;  %s17942_s7 = scalar_lea.hbm %s22195_s6, 18  ;;  %s619_s14 = int_to_ptr.hbm [resolvable:$true] %s618_s14 }
  0xb7   : > { %s17936_s28 = sshra.s32 %s619_s14, 4  ;;  %s17937_s28 = int_to_ptr.hbm [resolvable:$true] %s17936_s28 }
  0xb8   : > { %s17938_s3 = scalar_lea.hbm %s17937_s28, 9  ;;  %p17943_p12 = scmp.lt.s32.totalorder %s17937_s28, %s22195_s6 }
  0xb9   : > { %p17939_p6 = scmp.ne.s32.totalorder %s17937_s28, %s17938_s3  ;;  %p17944_p13 = scmp.lt.s32.totalorder %s17942_s7, %s17938_s3 }
  0xbb   : > { %p17940_p7 = pnand %p17939_p6, %p18313_p4  ;;  %p17945_p0 = por %p17944_p13, %p17943_p12 }
  0xbd   : > { %p17941_p11 = pneg %p17940_p7 }
  0xbf   : > { %p17946_p1 = pnand %p17945_p0, %p17941_p11 }
  0xc1   : > { %17949 = shalt.err (!%p17946_p1)
}
  0xc2   : > { %s22258_s16 = scalar_lea.sflag [#allocation10], %s18356_s23  ;;  %s653_s5 = scalar_lea.vmem [#allocation14], %s18362_s29 }
  0xc3   : > { %17380 = dma.hbm_to_vmem [thread:$0]  (%p18313_p4), %s619_s14, 144, %s621_s0, %s22258_s16  }
  0xc4   : > { %s661_s30 = sshll.u32 %s653_s5, 4  ;;  %s695_s20 = scalar_lea.hbm %s22199_s10, %s18365_s1  ;;  %s662_s30 = int_to_ptr.vmem [resolvable:$true] %s661_s30 }
  0xc5   : > { %s17964_s28 = sshra.s32 %s660_s24, 4  ;;  %s17970_s7 = scalar_lea.hbm %s22197_s8, 6  ;;  %s17965_s28 = int_to_ptr.hbm [resolvable:$true] %s17964_s28 }
  0xc6   : > { %s17966_s3 = scalar_lea.hbm %s17965_s28, 3  ;;  %p17971_p7 = scmp.lt.s32.totalorder %s17965_s28, %s22197_s8 }
  0xc7   : > { %p17967_p2 = scmp.ne.s32.totalorder %s17965_s28, %s17966_s3  ;;  %p17972_p11 = scmp.lt.s32.totalorder %s17970_s7, %s17966_s3 }
  0xc9   : > { %p17968_p3 = pnand %p17967_p2, %p18313_p4  ;;  %p17973_p12 = por %p17972_p11, %p17971_p7 }
  0xcb   : > { %p17969_p6 = pneg %p17968_p3 }
  0xcd   : > { %p17974_p13 = pnand %p17973_p12, %p17969_p6 }
  0xcf   : > { %17977 = shalt.err (!%p17974_p13)
}
  0xd0   : > { %s22259_s12 = scalar_lea.sflag [#allocation13], %s18356_s23  ;;  %s697_s25 = sshll.u32 %s695_s20, 4  ;;  %s698_s25 = int_to_ptr.hbm [resolvable:$true] %s697_s25 }
  0xd1   : > { %17382 = dma.hbm_to_vmem [thread:$0]  (%p18313_p4), %s660_s24, 48, %s662_s30, %s22259_s12  }
  0xd2   : > { %s691_s16 = scalar_lea.vmem [#allocation17], %s18362_s29  ;;  %s17992_s26 = sshra.s32 %s698_s25, 4  ;;  %s17993_s26 = int_to_ptr.hbm [resolvable:$true] %s17992_s26 }
  0xd3   : > { %s699_s5 = sshll.u32 %s691_s16, 4  ;;  %s17994_s18 = scalar_lea.hbm %s17993_s26, 3  ;;  %s700_s5 = int_to_ptr.vmem [resolvable:$true] %s699_s5 }
  0xd4   : > { %p17995_p0 = scmp.ne.s32.totalorder %s17993_s26, %s17994_s18  ;;  %s17998_s22 = scalar_lea.hbm %s22199_s10, 6 }
  0xd5   : > { %p17999_p3 = scmp.lt.s32.totalorder %s17993_s26, %s22199_s10  ;;  %p18000_p6 = scmp.lt.s32.totalorder %s17998_s22, %s17994_s18 }
  0xd6   : > { %p17996_p1 = pnand %p17995_p0, %p18313_p4 }
  0xd7   : > { %p18001_p7 = por %p18000_p6, %p17999_p3 }
  0xd8   : > { %p17997_p2 = pneg %p17996_p1 }
  0xda   : > { %p18002_p11 = pnand %p18001_p7, %p17997_p2 }
  0xdc   : > { %18005 = shalt.err (!%p18002_p11)
}
  0xdd   : > { %s22260_s24 = scalar_lea.sflag [#allocation16], %s18356_s23  ;;  %s17359_s30 = smul.u32 12, %s18359_s15 }
  0xde   : > { %17384 = dma.hbm_to_vmem [thread:$0]  (%p18313_p4), %s698_s25, 48, %s700_s5, %s22260_s24  }
  0xdf   : > { %s17360_s20 = smul.u32 12, %s18170_s27  ;;  %s22261_s12 = sld [smem:[#allocation51_spill]] }
  0xe0   : > { %s22262_s3 = sld [smem:[#allocation50_spill]]  ;;  %s732_s21 = scalar_lea.vmem [#allocation20], %s17359_s30 }
  0xe1   : > { %s740_s7 = sshll.u32 %s732_s21, 4  ;;  %s741_s7 = int_to_ptr.vmem [resolvable:$true] %s740_s7 }
  0xe5   : > { %s777_s16 = scalar_lea.hbm %s22261_s12, %s18365_s1 }
  0xe6   : > { %s18560_s26 = sshll.u32 %s777_s16, 4  ;;  %s736_s22 = scalar_lea.hbm %s22262_s3, %s17360_s20  ;;  %s780_s26 = int_to_ptr.hbm [resolvable:$true] %s18560_s26 }
  0xe7   : > { %s738_s2 = sshll.u32 %s736_s22, 4  ;;  %s18026_s5 = scalar_lea.hbm %s22262_s3, 24  ;;  %s739_s2 = int_to_ptr.hbm [resolvable:$true] %s738_s2 }
  0xe8   : > { %s18020_s25 = sshra.s32 %s739_s2, 4  ;;  %s18021_s25 = int_to_ptr.hbm [resolvable:$true] %s18020_s25 }
  0xe9   : > { %s18022_s27 = scalar_lea.hbm %s18021_s25, 12  ;;  %p18027_p1 = scmp.lt.s32.totalorder %s18021_s25, %s22262_s3 }
  0xea   : > { %p18023_p12 = scmp.ne.s32.totalorder %s18021_s25, %s18022_s27  ;;  %p18028_p2 = scmp.lt.s32.totalorder %s18026_s5, %s18022_s27 }
  0xec   : > { %p18024_p13 = pnand %p18023_p12, %p18313_p4  ;;  %p18029_p3 = por %p18028_p2, %p18027_p1 }
  0xee   : > { %p18025_p0 = pneg %p18024_p13 }
  0xf0   : > { %p18030_p6 = pnand %p18029_p3, %p18025_p0 }
  0xf2   : > { %18033 = shalt.err (!%p18030_p6)
}
  0xf3   : > { %17386 = dma.hbm_to_vmem [thread:$0]  (%p18313_p4), %s739_s2, 192, %s741_s7, %s707_s17  }
  0xf4   : > { %s773_s30 = scalar_lea.vmem [#allocation23], %s18362_s29  ;;  %s18048_s14 = sshra.s32 %s780_s26, 4  ;;  %s18049_s14 = int_to_ptr.hbm [resolvable:$true] %s18048_s14 }
  0xf5   : > { %s781_s20 = sshll.u32 %s773_s30, 4  ;;  %s18050_s16 = scalar_lea.hbm %s18049_s14, 3  ;;  %s782_s20 = int_to_ptr.vmem [resolvable:$true] %s781_s20 }
  0xf6   : > { %p18051_p7 = scmp.ne.s32.totalorder %s18049_s14, %s18050_s16  ;;  %s18054_s22 = scalar_lea.hbm %s22261_s12, 6 }
  0xf7   : > { %p18055_p13 = scmp.lt.s32.totalorder %s18049_s14, %s22261_s12  ;;  %p18056_p0 = scmp.lt.s32.totalorder %s18054_s22, %s18050_s16 }
  0xf8   : > { %p18052_p11 = pnand %p18051_p7, %p18313_p4 }
  0xf9   : > { %p18057_p1 = por %p18056_p0, %p18055_p13 }
  0xfa   : > { %p18053_p12 = pneg %p18052_p11 }
  0xfc   : > { %p18058_p2 = pnand %p18057_p1, %p18053_p12 }
  0xfe   : > { %18061 = shalt.err (!%p18058_p2)
}
  0xff   : > { %s22263_s29 = scalar_lea.sflag [#allocation22], %s18356_s23 }
 0x100   : > { %17388 = dma.hbm_to_vmem [thread:$0]  (%p18313_p4), %s780_s26, 48, %s782_s20, %s22263_s29  }
 0x101 PF: > { %790 = sbr.rel (%p18327_p10) target bundleno = 3837 (0xefd), region = 88  ;;  %s22265_s2 = sld [smem:[#allocation39_spill]] (!%p18327_p10) }
 0x106   : > { %18121 = dma.done.wait (%p132_p5), [#allocation4], 15360  }
 0x107   : > { %18123 = vsyncadd (%p132_p5), [#allocation4], 4294951936  ;;  %s22266_s7 = sld [smem:[#allocation37_spill]]  ;;  %s18602_s15 = sand.u32 1, %s22265_s2  }
 0x108   : > { %s798_s26 = scalar_lea.sflag [#allocation7], %s18602_s15 }
 0x10d   : > { %s18605_s19 = sand.u32 1, %s22266_s7  }
 0x10e   : > { %s18608_s23 = smul.u32 3, %s18605_s19 }
 0x110   : > { %s801_s1 = scalar_lea.vmem [#allocation6], %s18608_s23 }
 0x111   : > { %18125 = dma.done.wait (%p18322_p8), %s798_s26, 96  }
 0x112   : > { %18127 = vsyncadd (%p18322_p8), %s798_s26, 4294967200  ;;  %s17366_s5 = smul.u32 1728, %s18605_s19  ;;  %s811_s24 = scalar_lea.vmem [#allocation8], %s18608_s23 }
 0x113   : > { %s818_s0 = scalar_lea.sflag [#allocation10], %s18602_s15 }
 0x114   : > { %s18619_s30 = scalar_lea.vmem [#allocation9], %s17366_s5 }
 0x115   : > { %18129 = dma.done.wait (%p18322_p8), %s818_s0, 27792  }
 0x116   : > { %18131 = vsyncadd (%p18322_p8), %s818_s0, 4294939504  ;;  %s17367_s20 = smul.u32 9, %s18605_s19  ;;  %s838_s18 = scalar_lea.sflag [#allocation13], %s18602_s15 }
 0x117   : > { %s17368_s14 = smul.u32 576, %s18605_s19 }
 0x118   : > { %s18627_s16 = scalar_lea.vmem [#allocation11], %s17367_s20 }
 0x119   : > { %s18630_s28 = scalar_lea.vmem [#allocation12], %s17368_s14 }
 0x11a   : > { %18133 = dma.done.wait (%p18322_p8), %s838_s18, 9264  }
 0x11b   : > { %18135 = vsyncadd (%p18322_p8), %s838_s18, 4294958032  ;;  %s851_s22 = scalar_lea.vmem [#allocation14], %s18608_s23  ;;  %s858_s21 = scalar_lea.sflag [#allocation16], %s18602_s15 }
 0x11c   : > { %s861_s25 = scalar_lea.vmem [#allocation15], %s18608_s23 }
 0x11d   : > { %18137 = dma.done.wait (%p18322_p8), %s858_s21, 96  }
 0x11e   : > { %18139 = vsyncadd (%p18322_p8), %s858_s21, 4294967200  ;;  %s17369_s29 = smul.u32 2304, %s18605_s19  ;;  %s871_s17 = scalar_lea.vmem [#allocation17], %s18608_s23 }
 0x11f   : > { %s878_s7 = scalar_lea.sflag [#allocation19], %s18602_s15 }
 0x120   : > { %s18646_s26 = scalar_lea.vmem [#allocation18], %s17369_s29 }
 0x121   : > { %18141 = dma.done.wait (%p18322_p8), %s878_s7, 37056  }
 0x122   : > { %18143 = vsyncadd (%p18322_p8), %s878_s7, 4294930240  ;;  %s17370_s5 = smul.u32 12, %s18605_s19  ;;  %s898_s20 = scalar_lea.sflag [#allocation22], %s18602_s15 }
 0x123   : > { %s18656_s14 = scalar_lea.vmem [#allocation21], %s17369_s29 }
 0x124   : > { %s18653_s0 = scalar_lea.vmem [#allocation20], %s17370_s5 }
 0x125   : > { %18145 = dma.done.wait (%p18322_p8), %s898_s20, 36912  }
 0x126   : > { %18147 = vsyncadd (%p18322_p8), %s898_s20, 4294930384  ;;  %s911_s18 = scalar_lea.vmem [#allocation23], %s18608_s23 }
 0x127   : > { %18149 = dma.done.wait (%p132_p5), [#allocation25], 96  }
 0x128   : > { %18151 = vsyncadd (%p132_p5), [#allocation25], 4294967200  ;;  %1027 = sbr.rel (%p12379_p9) target bundleno = 576 (0x240), region = 152  ;;  %s22268_s15 = sld [smem:[#allocation44_spill]] (!%p12379_p9) }
 0x129   : > { %s22269_s5 = sld [smem:[#allocation45_spill]] (!%p12379_p9) }
 0x12d   : > { %v12478_v0 = vld [vmem:[#allocation3 + $0xa8] sm:$0xf]  ;;  %v16379_v1 = vld [vmem:[#allocation3 + $0xb0] sm:$0xf0]  ;;  %v12466_v9 = vld [vmem:[#allocation3 + $0x90] sm:$0xf] }
 0x12e   : > { %v12574_v2 = vld [vmem:[#allocation3 + $0x168] sm:$0xf]  ;;  %v12479_v3 = vor.u32 %v16379_v1, %v12478_v0  ;;  %v16403_v4 = vld [vmem:[#allocation3 + $0x170] sm:$0xf0]  ;;  %v16376_v10 = vld [vmem:[#allocation3 + $0x98] sm:$0xf0] }
 0x12f   : > { %v12670_v5 = vld [vmem:[#allocation3 + $0x228] sm:$0xf]  ;;  %v16427_v6 = vld [vmem:[#allocation3 + $0x230] sm:$0xf0]  ;;  %v12575_v7 = vor.u32 %v16403_v4, %v12574_v2  ;;  %v12562_v11 = vld [vmem:[#allocation3 + $0x150] sm:$0xf]  ;;  %v12467_v12 = vor.u32 %v16376_v10, %v12466_v9 }
 0x130   : > { %v12671_v8 = vor.u32 %v16427_v6, %v12670_v5  ;;  %1849 = vmatpush.bf16.msra.mxu0 %v12479_v3  ;;  %v16400_v13 = vld [vmem:[#allocation3 + $0x158] sm:$0xf0]  ;;  %v12658_v14 = vld [vmem:[#allocation3 + $0x210] sm:$0xf]  ;;  %v12766_v18 = vld [vmem:[#allocation3 + $0x2e8] sm:$0xf] }
 0x131   : > { %v16424_v15 = vld [vmem:[#allocation3 + $0x218] sm:$0xf0]  ;;  %1863 = vmatpush.bf16.msra.mxu1 %v12575_v7  ;;  %v12563_v16 = vor.u32 %v16400_v13, %v12562_v11  ;;  %v16451_v19 = vld [vmem:[#allocation3 + $0x2f0] sm:$0xf0]  ;;  %v12454_v20 = vld [vmem:[#allocation3 + $0x78] sm:$0xf] }
 0x132   : > { %1877 = vmatpush.bf16.msra.mxu2 %v12671_v8  ;;  %v12659_v17 = vor.u32 %v16424_v15, %v12658_v14  ;;  %v12767_v21 = vor.u32 %v16451_v19, %v12766_v18  ;;  %v16373_v22 = vld [vmem:[#allocation3 + $0x80] sm:$0xf0]  ;;  %v12550_v23 = vld [vmem:[#allocation3 + $0x138] sm:$0xf]  ;;  %v12754_v27 = vld [vmem:[#allocation3 + $0x2d0] sm:$0xf] }
 0x133   : > { %v16397_v24 = vld [vmem:[#allocation3 + $0x140] sm:$0xf0]  ;;  %v12646_v25 = vld [vmem:[#allocation3 + $0x1f8] sm:$0xf]  ;;  %v12455_v28 = vor.u32 %v16373_v22, %v12454_v20  ;;  %v16448_v29 = vld [vmem:[#allocation3 + $0x2d8] sm:$0xf0] }
 0x134   : > { %v16421_v26 = vld [vmem:[#allocation3 + $0x200] sm:$0xf0]  ;;  %1850 = vmatpush.bf16.msra.mxu0 %v12467_v12  ;;  %1891 = vmatpush.bf16.msra.mxu3 %v12767_v21  ;;  %v12442_v30 = vld [vmem:[#allocation3 + $0x60] sm:$0xf]  ;;  %v16370_v31 = vld [vmem:[#allocation3 + $0x68] sm:$0xf0]  ;;  %v12551_v32 = vor.u32 %v16397_v24, %v12550_v23  ;;  %v12755_v34 = vor.u32 %v16448_v29, %v12754_v27 }
 0x135   : > { %1864 = vmatpush.bf16.msra.mxu1 %v12563_v16  ;;  %v12647_v33 = vor.u32 %v16421_v26, %v12646_v25  ;;  %v12538_v35 = vld [vmem:[#allocation3 + $0x120] sm:$0xf]  ;;  %v16394_v36 = vld [vmem:[#allocation3 + $0x128] sm:$0xf0]  ;;  %v12742_v39 = vld [vmem:[#allocation3 + $0x2b8] sm:$0xf]  ;;  %v12443_v41 = vor.u32 %v16370_v31, %v12442_v30 }
 0x136   : > { %1878 = vmatpush.bf16.msra.mxu2 %v12659_v17  ;;  %v12634_v37 = vld [vmem:[#allocation3 + $0x1e0] sm:$0xf]  ;;  %v16418_v38 = vld [vmem:[#allocation3 + $0x1e8] sm:$0xf0]  ;;  %v16445_v40 = vld [vmem:[#allocation3 + $0x2c0] sm:$0xf0]  ;;  %v12539_v45 = vor.u32 %v16394_v36, %v12538_v35 }
 0x137   : > { %v12743_v42 = vor.u32 %v16445_v40, %v12742_v39  ;;  %v12430_v43 = vld [vmem:[#allocation3 + $0x48] sm:$0xf]  ;;  %v16367_v44 = vld [vmem:[#allocation3 + $0x50] sm:$0xf0]  ;;  %v12635_v46 = vor.u32 %v16418_v38, %v12634_v37  ;;  %v12730_v48 = vld [vmem:[#allocation3 + $0x2a0] sm:$0xf] }
 0x138   : > { %1851 = vmatpush.bf16.msra.mxu0 %v12455_v28  ;;  %1892 = vmatpush.bf16.msra.mxu3 %v12755_v34  ;;  %v12526_v47 = vld [vmem:[#allocation3 + $0x108] sm:$0xf]  ;;  %v16442_v49 = vld [vmem:[#allocation3 + $0x2a8] sm:$0xf0]  ;;  %v16391_v50 = vld [vmem:[#allocation3 + $0x110] sm:$0xf0]  ;;  %v12431_v53 = vor.u32 %v16367_v44, %v12430_v43 }
 0x139   : > { %1865 = vmatpush.bf16.msra.mxu1 %v12551_v32  ;;  %v12622_v51 = vld [vmem:[#allocation3 + $0x1c8] sm:$0xf]  ;;  %v16415_v52 = vld [vmem:[#allocation3 + $0x1d0] sm:$0xf0]  ;;  %v12731_v54 = vor.u32 %v16442_v49, %v12730_v48  ;;  %v12418_v55 = vld [vmem:[#allocation3 + $0x30] sm:$0xf]  ;;  %v12527_v57 = vor.u32 %v16391_v50, %v12526_v47 }
 0x13a   : > { %1879 = vmatpush.bf16.msra.mxu2 %v12647_v33  ;;  %v16364_v56 = vld [vmem:[#allocation3 + $0x38] sm:$0xf0]  ;;  %v12623_v58 = vor.u32 %v16415_v52, %v12622_v51  ;;  %v12514_v59 = vld [vmem:[#allocation3 + $0xf0] sm:$0xf]  ;;  %v12718_v60 = vld [vmem:[#allocation3 + $0x288] sm:$0xf] }
 0x13b   : > { %v16439_v61 = vld [vmem:[#allocation3 + $0x290] sm:$0xf0]  ;;  %v16388_v62 = vld [vmem:[#allocation3 + $0xf8] sm:$0xf0]  ;;  %v12610_v63 = vld [vmem:[#allocation3 + $0x1b0] sm:$0xf]  ;;  %v12419_v1 = vor.u32 %v16364_v56, %v12418_v55 }
 0x13c   : > { %1852 = vmatpush.bf16.msra.mxu0 %v12443_v41  ;;  %1893 = vmatpush.bf16.msra.mxu3 %v12743_v42  ;;  %v16412_v0 = vld [vmem:[#allocation3 + $0x1b8] sm:$0xf0]  ;;  %v12719_v2 = vor.u32 %v16439_v61, %v12718_v60  ;;  %v12406_v3 = vld [vmem:[#allocation3 + $0x18] sm:$0xf]  ;;  %v16361_v4 = vld [vmem:[#allocation3 + $0x20] sm:$0xf0]  ;;  %v12515_v5 = vor.u32 %v16388_v62, %v12514_v59 }
 0x13d   : > { %1866 = vmatpush.bf16.msra.mxu1 %v12539_v45  ;;  %v12611_v6 = vor.u32 %v16412_v0, %v12610_v63  ;;  %v12502_v7 = vld [vmem:[#allocation3 + $0xd8] sm:$0xf]  ;;  %v12706_v8 = vld [vmem:[#allocation3 + $0x270] sm:$0xf]  ;;  %v16436_v9 = vld [vmem:[#allocation3 + $0x278] sm:$0xf0]  ;;  %v12407_v13 = vor.u32 %v16361_v4, %v12406_v3 }
 0x13e   : > { %1880 = vmatpush.bf16.msra.mxu2 %v12635_v46  ;;  %v16385_v10 = vld [vmem:[#allocation3 + $0xe0] sm:$0xf0]  ;;  %v12598_v11 = vld [vmem:[#allocation3 + $0x198] sm:$0xf]  ;;  %v12707_v14 = vor.u32 %v16436_v9, %v12706_v8  ;;  %v12394_v15 = vld [vmem:[#allocation3] sm:$0xf] }
 0x13f   : > { %v16409_v12 = vld [vmem:[#allocation3 + $0x1a0] sm:$0xf0]  ;;  %v16358_v16 = vld [vmem:[#allocation3 + $0x8] sm:$0xf0]  ;;  %v12490_v17 = vld [vmem:[#allocation3 + $0xc0] sm:$0xf]  ;;  %v12503_v18 = vor.u32 %v16385_v10, %v12502_v7 }
 0x140   : > { %1853 = vmatpush.bf16.msra.mxu0 %v12431_v53  ;;  %1894 = vmatpush.bf16.msra.mxu3 %v12731_v54  ;;  %v12599_v19 = vor.u32 %v16409_v12, %v12598_v11  ;;  %v16382_v20 = vld [vmem:[#allocation3 + $0xc8] sm:$0xf0]  ;;  %v12694_v21 = vld [vmem:[#allocation3 + $0x258] sm:$0xf]  ;;  %v16433_v22 = vld [vmem:[#allocation3 + $0x260] sm:$0xf0]  ;;  %v12395_v29 = vor.u32 %v16358_v16, %v12394_v15 }
 0x141   : > { %1867 = vmatpush.bf16.msra.mxu1 %v12527_v57  ;;  %v12586_v23 = vld [vmem:[#allocation3 + $0x180] sm:$0xf]  ;;  %v16406_v24 = vld [vmem:[#allocation3 + $0x188] sm:$0xf0]  ;;  %v12862_v25 = vld [vmem:[#allocation3 + $0x3a8] sm:$0xf]  ;;  %v12695_v32 = vor.u32 %v16433_v22, %v12694_v21  ;;  %v12491_v33 = vor.u32 %v16382_v20, %v12490_v17 }
 0x142   : > { %1881 = vmatpush.bf16.msra.mxu2 %v12623_v58  ;;  %v16475_v26 = vld [vmem:[#allocation3 + $0x3b0] sm:$0xf0]  ;;  %v16378_v27 = vld [vmem:[#allocation3 + $0xac] sm:$0xf]  ;;  %v12480_v28 = vld [vmem:[#allocation3 + $0xb4] sm:$0xf0]  ;;  %v12587_v34 = vor.u32 %v16406_v24, %v12586_v23 }
 0x143   : > { %v16402_v30 = vld [vmem:[#allocation3 + $0x16c] sm:$0xf]  ;;  %v12576_v31 = vld [vmem:[#allocation3 + $0x174] sm:$0xf0]  ;;  %v12850_v35 = vld [vmem:[#allocation3 + $0x390] sm:$0xf]  ;;  %v12863_v38 = vor.u32 %v16475_v26, %v12862_v25  ;;  %v12483_v39 = vor.u32 %v16378_v27, %v12480_v28 }
 0x144   : > { %1854 = vmatpush.bf16.msra.mxu0 %v12419_v1  ;;  %1895 = vmatpush.bf16.msra.mxu3 %v12719_v2  ;;  %v12682_v36 = vld [vmem:[#allocation3 + $0x240] sm:$0xf]  ;;  %v16430_v37 = vld [vmem:[#allocation3 + $0x248] sm:$0xf0]  ;;  %v16472_v40 = vld [vmem:[#allocation3 + $0x398] sm:$0xf0]  ;;  %v12579_v43 = vor.u32 %v16402_v30, %v12576_v31 }
 0x145   : > { %1868 = vmatpush.bf16.msra.mxu1 %v12515_v5  ;;  %v16426_v41 = vld [vmem:[#allocation3 + $0x22c] sm:$0xf]  ;;  %v12672_v42 = vld [vmem:[#allocation3 + $0x234] sm:$0xf0]  ;;  %v16375_v44 = vld [vmem:[#allocation3 + $0x94] sm:$0xf]  ;;  %v12683_v49 = vor.u32 %v16430_v37, %v12682_v36  ;;  %v12851_v53 = vor.u32 %v16472_v40, %v12850_v35 }
 0x146   : > { %1882 = vmatpush.bf16.msra.mxu2 %v12611_v6  ;;  %v12468_v45 = vld [vmem:[#allocation3 + $0x9c] sm:$0xf0]  ;;  %v1028_v46 = vld [vmem:[%s22268_s15] sm:$0xff]  ;;  %v1033_v50 = vld [vmem:[%s22268_s15 + $0x28] sm:$0xff]  ;;  %v12675_v51 = vor.u32 %v16426_v41, %v12672_v42 }
 0x147   : > { %v16399_v47 = vld [vmem:[#allocation3 + $0x154] sm:$0xf]  ;;  %v12564_v48 = vld [vmem:[#allocation3 + $0x15c] sm:$0xf0]  ;;  %v18675_v52 = vpack.c.bf16 %v1033_v50, %v1028_v46  ;;  %v12471_v54 = vor.u32 %v16375_v44, %v12468_v45  ;;  %v12838_v55 = vld [vmem:[#allocation3 + $0x378] sm:$0xf] }
 0x148   : > { %1855 = vmatpush.bf16.msra.mxu0 %v12407_v13  ;;  %1896 = vmatpush.bf16.msra.mxu3 %v12707_v14  ;;  %v16423_v56 = vld [vmem:[#allocation3 + $0x214] sm:$0xf]  ;;  %v12660_v57 = vld [vmem:[#allocation3 + $0x21c] sm:$0xf0]  ;;  %v12567_v58 = vor.u32 %v16399_v47, %v12564_v48  ;;  %v16469_v59 = vld [vmem:[#allocation3 + $0x380] sm:$0xf0] }
 0x149   : > { %1869 = vmatpush.bf16.msra.mxu1 %v12503_v18  ;;  %v16372_v60 = vld [vmem:[#allocation3 + $0x7c] sm:$0xf]  ;;  %v12456_v61 = vld [vmem:[#allocation3 + $0x84] sm:$0xf0]  ;;  %v12663_v0 = vor.u32 %v16423_v56, %v12660_v57  ;;  %v12826_v1 = vld [vmem:[#allocation3 + $0x360] sm:$0xf]  ;;  %v12839_v5 = vor.u32 %v16469_v59, %v12838_v55 }
 0x14a   : > { %1883 = vmatpush.bf16.msra.mxu2 %v12599_v19  ;;  %v16396_v62 = vld [vmem:[#allocation3 + $0x13c] sm:$0xf]  ;;  %v12552_v63 = vld [vmem:[#allocation3 + $0x144] sm:$0xf0]  ;;  %v1030_v4 = vld [vmem:[%s22268_s15 + $0x10] sm:$0xff]  ;;  %v12459_v6 = vor.u32 %v16372_v60, %v12456_v61 }
 0x14b   : > { %v16420_v2 = vld [vmem:[#allocation3 + $0x1fc] sm:$0xf]  ;;  %v12648_v3 = vld [vmem:[#allocation3 + $0x204] sm:$0xf0]  ;;  %v1036_v9 = vld [vmem:[%s22268_s15 + $0x40] sm:$0xff]  ;;  %v12555_v10 = vor.u32 %v16396_v62, %v12552_v63 }
 0x14c   : > { %1856 = vmatpush.bf16.msra.mxu0 %v12395_v29  ;;  %1897 = vmatpush.bf16.msra.mxu3 %v12695_v32  ;;  %v1035_v7 = vld [vmem:[%s22268_s15 + $0x38] sm:$0xff]  ;;  %v16369_v12 = vld [vmem:[#allocation3 + $0x64] sm:$0xf]  ;;  %v12444_v13 = vld [vmem:[#allocation3 + $0x6c] sm:$0xf0]  ;;  %v12651_v18 = vor.u32 %v16420_v2, %v12648_v3 }
 0x14d   : > { %1870 = vmatpush.bf16.msra.mxu1 %v12491_v33  ;;  %v1031_v8 = vld [vmem:[%s22268_s15 + $0x18] sm:$0xff]  ;;  %v18690_v14 = vpack.c.bf16 %v1035_v7, %v1030_v4  ;;  %v16393_v16 = vld [vmem:[#allocation3 + $0x124] sm:$0xf]  ;;  %v12540_v17 = vld [vmem:[#allocation3 + $0x12c] sm:$0xf0]  ;;  %v12447_v22 = vor.u32 %v16369_v12, %v12444_v13 }
 0x14e   : > { %1884 = vmatpush.bf16.msra.mxu2 %v12587_v34  ;;  %v16466_v11 = vld [vmem:[#allocation3 + $0x368] sm:$0xf0]  ;;  %v18692_v15 = vpack.c.bf16 %v1036_v9, %v1031_v8  ;;  %v12814_v19 = vld [vmem:[#allocation3 + $0x348] sm:$0xf]  ;;  %v1029_v20 = vld [vmem:[%s22268_s15 + $0x8] sm:$0xff]  ;;  %v12543_v26 = vor.u32 %v16393_v16, %v12540_v17 }
 0x14f   : > { %1857 = vmatmul.bf16.vlgmr.msra.gmra.mxu0 %v18675_v52  ;;  %v12827_v21 = vor.u32 %v16466_v11, %v12826_v1  ;;  %v16417_v23 = vld [vmem:[#allocation3 + $0x1e4] sm:$0xf]  ;;  %v12636_v24 = vld [vmem:[#allocation3 + $0x1ec] sm:$0xf0]  ;;  %v16463_v27 = vld [vmem:[#allocation3 + $0x350] sm:$0xf0] }
 0x150   : > { %1905 = vmatpush.bf16.msrb.mxu0 %v12863_v38  ;;  %1898 = vmatpush.bf16.msra.mxu3 %v12683_v49  ;;  %v1034_v25 = vld [vmem:[%s22268_s15 + $0x30] sm:$0xff]  ;;  %v16366_v28 = vld [vmem:[#allocation3 + $0x4c] sm:$0xf]  ;;  %v12432_v29 = vld [vmem:[#allocation3 + $0x54] sm:$0xf0]  ;;  %v12639_v33 = vor.u32 %v16417_v23, %v12636_v24  ;;  %v12815_v34 = vor.u32 %v16463_v27, %v12814_v19 }
 0x151   : > { %1919 = vmatpush.bf16.msrb.mxu1 %v12483_v39  ;;  %1885 = vmatmul.bf16.vlgmr.msra.gmra.mxu2 %v18690_v14  ;;  %v18702_v30 = vpack.c.bf16 %v1034_v25, %v1029_v20  ;;  %v16390_v31 = vld [vmem:[#allocation3 + $0x10c] sm:$0xf]  ;;  %v12528_v32 = vld [vmem:[#allocation3 + $0x114] sm:$0xf0]  ;;  %v12435_v35 = vor.u32 %v16366_v28, %v12432_v29  ;;  %v12802_v36 = vld [vmem:[#allocation3 + $0x330] sm:$0xf] }
 0x152   : > { %1933 = vmatpush.bf16.msrb.mxu2 %v12579_v43  ;;  %v16414_v37 = vld [vmem:[#allocation3 + $0x1cc] sm:$0xf]  ;;  %v12624_v38 = vld [vmem:[#allocation3 + $0x1d4] sm:$0xf0]  ;;  %v12531_v39 = vor.u32 %v16390_v31, %v12528_v32  ;;  %v16460_v40 = vld [vmem:[#allocation3 + $0x338] sm:$0xf0] }
 0x153   : > { %1899 = vmatmul.bf16.vlgmr.msra.gmra.mxu3 %v18692_v15  ;;  %1871 = vmatmul.bf16.vlgmr.msra.gmra.mxu1 %v18702_v30  ;;  %v16363_v41 = vld [vmem:[#allocation3 + $0x34] sm:$0xf]  ;;  %v12420_v42 = vld [vmem:[#allocation3 + $0x3c] sm:$0xf0]  ;;  %v12627_v45 = vor.u32 %v16414_v37, %v12624_v38  ;;  %v12803_v46 = vor.u32 %v16460_v40, %v12802_v36  ;;  %v12790_v48 = vld [vmem:[#allocation3 + $0x318] sm:$0xf] }
 0x154   : > { %1947 = vmatpush.bf16.msrb.mxu3 %v12675_v51  ;;  %1906 = vmatpush.bf16.msrb.mxu0 %v12851_v53  ;;  %v16387_v43 = vld [vmem:[#allocation3 + $0xf4] sm:$0xf]  ;;  %v12516_v44 = vld [vmem:[#allocation3 + $0xfc] sm:$0xf0]  ;;  %v12423_v47 = vor.u32 %v16363_v41, %v12420_v42  ;;  %v16457_v53 = vld [vmem:[#allocation3 + $0x320] sm:$0xf0] }
 0x155   : > { %1920 = vmatpush.bf16.msrb.mxu1 %v12471_v54  ;;  %v16411_v49 = vld [vmem:[#allocation3 + $0x1b4] sm:$0xf]  ;;  %v12612_v50 = vld [vmem:[#allocation3 + $0x1bc] sm:$0xf0]  ;;  %v12519_v51 = vor.u32 %v16387_v43, %v12516_v44  ;;  %v16360_v54 = vld [vmem:[#allocation3 + $0x1c] sm:$0xf]  ;;  %v12791_v62 = vor.u32 %v16457_v53, %v12790_v48 }
 0x156   : > { %1934 = vmatpush.bf16.msrb.mxu2 %v12567_v58  ;;  %v12408_v55 = vld [vmem:[#allocation3 + $0x24] sm:$0xf0]  ;;  %v16384_v56 = vld [vmem:[#allocation3 + $0xdc] sm:$0xf]  ;;  %v12615_v58 = vor.u32 %v16411_v49, %v12612_v50  ;;  %v12778_v59 = vld [vmem:[#allocation3 + $0x300] sm:$0xf] }
 0x157   : > { %v12504_v57 = vld [vmem:[#allocation3 + $0xe4] sm:$0xf0]  ;;  %v16454_v60 = vld [vmem:[#allocation3 + $0x308] sm:$0xf0]  ;;  %v16357_v61 = vld [vmem:[#allocation3 + $0x4] sm:$0xf]  ;;  %v12411_v63 = vor.u32 %v16360_v54, %v12408_v55 }
 0x158   : > { %1948 = vmatpush.bf16.msrb.mxu3 %v12663_v0  ;;  %1907 = vmatpush.bf16.msrb.mxu0 %v12839_v5  ;;  %v12396_v0 = vld [vmem:[#allocation3 + $0xc] sm:$0xf0]  ;;  %v16408_v1 = vld [vmem:[#allocation3 + $0x19c] sm:$0xf]  ;;  %v12600_v2 = vld [vmem:[#allocation3 + $0x1a4] sm:$0xf0]  ;;  %v12507_v3 = vor.u32 %v16384_v56, %v12504_v57  ;;  %v12779_v16 = vor.u32 %v16454_v60, %v12778_v59 }
 0x159   : > { %1921 = vmatpush.bf16.msrb.mxu1 %v12459_v6  ;;  %v16381_v4 = vld [vmem:[#allocation3 + $0xc4] sm:$0xf]  ;;  %v12492_v5 = vld [vmem:[#allocation3 + $0xcc] sm:$0xf0]  ;;  %v16450_v6 = vld [vmem:[#allocation3 + $0x2ec] sm:$0xf]  ;;  %v12603_v13 = vor.u32 %v16408_v1, %v12600_v2  ;;  %v12399_v17 = vor.u32 %v16357_v61, %v12396_v0 }
 0x15a   : > { %1935 = vmatpush.bf16.msrb.mxu2 %v12555_v10  ;;  %v12768_v7 = vld [vmem:[#allocation3 + $0x2f4] sm:$0xf0]  ;;  %v16474_v8 = vld [vmem:[#allocation3 + $0x3ac] sm:$0xf]  ;;  %v12486_v10 = vld [vmem:[#allocation3 + $0xb0] sm:$0xf] }
 0x15b   : > { %v12864_v9 = vld [vmem:[#allocation3 + $0x3b4] sm:$0xf0]  ;;  %v16380_v11 = vld [vmem:[#allocation3 + $0xb8] sm:$0xf0]  ;;  %v1032_v12 = vld [vmem:[%s22268_s15 + $0x20] sm:$0xff] }
 0x15c   : > { %1949 = vmatpush.bf16.msrb.mxu3 %v12651_v18  ;;  %1908 = vmatpush.bf16.msrb.mxu0 %v12827_v21  ;;  %v1037_v18 = vld [vmem:[%s22268_s15 + $0x48] sm:$0xff]  ;;  %v16405_v19 = vld [vmem:[#allocation3 + $0x184] sm:$0xf]  ;;  %v12588_v20 = vld [vmem:[#allocation3 + $0x18c] sm:$0xf0]  ;;  %v12495_v21 = vor.u32 %v16381_v4, %v12492_v5  ;;  %v12867_v25 = vor.u32 %v16474_v8, %v12864_v9 }
 0x15d   : > { %1922 = vmatpush.bf16.msrb.mxu1 %v12447_v22  ;;  %v12771_v22 = vor.u32 %v16450_v6, %v12768_v7  ;;  %v12582_v23 = vld [vmem:[#allocation3 + $0x170] sm:$0xf]  ;;  %v16404_v24 = vld [vmem:[#allocation3 + $0x178] sm:$0xf0]  ;;  %v16447_v27 = vld [vmem:[#allocation3 + $0x2d4] sm:$0xf]  ;;  %v18711_v31 = vpack.c.bf16 %v1037_v18, %v1032_v12 }
 0x15e   : > { %1936 = vmatpush.bf16.msrb.mxu2 %v12543_v26  ;;  %v12487_v26 = vor.u32 %v16380_v11, %v12486_v10  ;;  %v12756_v28 = vld [vmem:[#allocation3 + $0x2dc] sm:$0xf0]  ;;  %v16471_v29 = vld [vmem:[#allocation3 + $0x394] sm:$0xf]  ;;  %v12583_v36 = vor.u32 %v16404_v24, %v12582_v23  ;;  %v12570_v38 = vld [vmem:[#allocation3 + $0x158] sm:$0xf] }
 0x15f   : > { %v12852_v32 = vld [vmem:[#allocation3 + $0x39c] sm:$0xf0]  ;;  %v12759_v37 = vor.u32 %v16447_v27, %v12756_v28  ;;  %v16444_v42 = vld [vmem:[#allocation3 + $0x2bc] sm:$0xf]  ;;  %v12744_v43 = vld [vmem:[#allocation3 + $0x2c4] sm:$0xf0] }
 0x160   : > { %1950 = vmatpush.bf16.msrb.mxu3 %v12639_v33  ;;  %1909 = vmatpush.bf16.msrb.mxu0 %v12815_v34  ;;  %v12474_v33 = vld [vmem:[#allocation3 + $0x98] sm:$0xf]  ;;  %v16377_v34 = vld [vmem:[#allocation3 + $0xa0] sm:$0xf0]  ;;  %v12855_v40 = vor.u32 %v16471_v29, %v12852_v32  ;;  %v16468_v44 = vld [vmem:[#allocation3 + $0x37c] sm:$0xf]  ;;  %v12747_v49 = vor.u32 %v16444_v42, %v12744_v43 }
 0x161   : > { %1923 = vmatpush.bf16.msrb.mxu1 %v12435_v35  ;;  %v12591_v35 = vor.u32 %v16405_v19, %v12588_v20  ;;  %v12475_v41 = vor.u32 %v16377_v34, %v12474_v33  ;;  %v12558_v50 = vld [vmem:[#allocation3 + $0x140] sm:$0xf]  ;;  %v16441_v55 = vld [vmem:[#allocation3 + $0x2a4] sm:$0xf]  ;;  %v12732_v56 = vld [vmem:[#allocation3 + $0x2ac] sm:$0xf0] }
 0x162   : > { %1937 = vmatpush.bf16.msrb.mxu2 %v12531_v39  ;;  %v16401_v39 = vld [vmem:[#allocation3 + $0x160] sm:$0xf0]  ;;  %v12450_v59 = vld [vmem:[#allocation3 + $0x68] sm:$0xf]  ;;  %v16371_v60 = vld [vmem:[#allocation3 + $0x70] sm:$0xf0] }
 0x163   : > { %v12571_v48 = vor.u32 %v16401_v39, %v12570_v38  ;;  %v16465_v57 = vld [vmem:[#allocation3 + $0x364] sm:$0xf]  ;;  %v16395_v0 = vld [vmem:[#allocation3 + $0x130] sm:$0xf0]  ;;  %v12451_v2 = vor.u32 %v16371_v60, %v12450_v59  ;;  %v12720_v4 = vld [vmem:[#allocation3 + $0x294] sm:$0xf0] }
 0x164   : > { %1951 = vmatpush.bf16.msrb.mxu3 %v12627_v45  ;;  %1910 = vmatpush.bf16.msrb.mxu0 %v12803_v46  ;;  %v12840_v45 = vld [vmem:[#allocation3 + $0x384] sm:$0xf0]  ;;  %v12462_v46 = vld [vmem:[#allocation3 + $0x80] sm:$0xf]  ;;  %v16462_v5 = vld [vmem:[#allocation3 + $0x34c] sm:$0xf] }
 0x165   : > { %1924 = vmatpush.bf16.msrb.mxu1 %v12423_v47  ;;  %v16374_v47 = vld [vmem:[#allocation3 + $0x88] sm:$0xf0]  ;;  %v12843_v53 = vor.u32 %v16468_v44, %v12840_v45  ;;  %v12816_v6 = vld [vmem:[#allocation3 + $0x354] sm:$0xf0]  ;;  %v12438_v7 = vld [vmem:[#allocation3 + $0x50] sm:$0xf] }
 0x166   : > { %1938 = vmatpush.bf16.msrb.mxu2 %v12519_v51  ;;  %v16398_v51 = vld [vmem:[#allocation3 + $0x148] sm:$0xf0]  ;;  %v12463_v54 = vor.u32 %v16374_v47, %v12462_v46  ;;  %v16368_v8 = vld [vmem:[#allocation3 + $0x58] sm:$0xf0]  ;;  %v12534_v11 = vld [vmem:[#allocation3 + $0x110] sm:$0xf] }
 0x167   : > { %v12559_v61 = vor.u32 %v16398_v51, %v12558_v50  ;;  %v16392_v12 = vld [vmem:[#allocation3 + $0x118] sm:$0xf0]  ;;  %v12708_v18 = vld [vmem:[#allocation3 + $0x27c] sm:$0xf0]  ;;  %v16459_v19 = vld [vmem:[#allocation3 + $0x334] sm:$0xf] }
 0x168   : > { %1952 = vmatpush.bf16.msrb.mxu3 %v12615_v58  ;;  %1911 = vmatpush.bf16.msrb.mxu0 %v12791_v62  ;;  %v12828_v58 = vld [vmem:[#allocation3 + $0x36c] sm:$0xf0]  ;;  %v12735_v62 = vor.u32 %v16441_v55, %v12732_v56  ;;  %v12804_v20 = vld [vmem:[#allocation3 + $0x33c] sm:$0xf0]  ;;  %v12535_v23 = vor.u32 %v16392_v12, %v12534_v11  ;;  %v16432_v29 = vld [vmem:[#allocation3 + $0x25c] sm:$0xf] }
 0x169   : > { %1925 = vmatpush.bf16.msrb.mxu1 %v12411_v63  ;;  %v12546_v63 = vld [vmem:[#allocation3 + $0x128] sm:$0xf]  ;;  %v12831_v1 = vor.u32 %v16465_v57, %v12828_v58  ;;  %v12807_v27 = vor.u32 %v16459_v19, %v12804_v20  ;;  %v16456_v33 = vld [vmem:[#allocation3 + $0x31c] sm:$0xf]  ;;  %v16429_v39 = vld [vmem:[#allocation3 + $0x244] sm:$0xf] }
 0x16a   : > { %1939 = vmatpush.bf16.msrb.mxu2 %v12507_v3  ;;  %v16438_v3 = vld [vmem:[#allocation3 + $0x28c] sm:$0xf]  ;;  %v12547_v9 = vor.u32 %v16395_v0, %v12546_v63  ;;  %v12696_v32 = vld [vmem:[#allocation3 + $0x264] sm:$0xf0]  ;;  %v12684_v44 = vld [vmem:[#allocation3 + $0x24c] sm:$0xf0] }
 0x16b   : > { %v12723_v10 = vor.u32 %v16438_v3, %v12720_v4  ;;  %v12792_v34 = vld [vmem:[#allocation3 + $0x324] sm:$0xf0]  ;;  %v12699_v38 = vor.u32 %v16432_v29, %v12696_v32  ;;  %v16453_v45 = vld [vmem:[#allocation3 + $0x304] sm:$0xf]  ;;  %v12780_v46 = vld [vmem:[#allocation3 + $0x30c] sm:$0xf0]  ;;  %v12687_v55 = vor.u32 %v16429_v39, %v12684_v44 }
 0x16c   : > { %1953 = vmatpush.bf16.msrb.mxu3 %v12603_v13  ;;  %1912 = vmatpush.bf16.msrb.mxu0 %v12779_v16  ;;  %v12819_v13 = vor.u32 %v16462_v5, %v12816_v6  ;;  %v12439_v16 = vor.u32 %v16368_v8, %v12438_v7  ;;  %v12795_v42 = vor.u32 %v16456_v33, %v12792_v34  ;;  %v12402_v47 = vld [vmem:[#allocation3 + $0x8] sm:$0xf]  ;;  %v16428_v50 = vld [vmem:[#allocation3 + $0x238] sm:$0xf0]  ;;  %v12774_v51 = vld [vmem:[#allocation3 + $0x2f0] sm:$0xf] }
 0x16d   : > { %1926 = vmatpush.bf16.msrb.mxu1 %v12399_v17  ;;  %v16435_v17 = vld [vmem:[#allocation3 + $0x274] sm:$0xf]  ;;  %v12870_v56 = vld [vmem:[#allocation3 + $0x3b0] sm:$0xf]  ;;  %v16476_v57 = vld [vmem:[#allocation3 + $0x3b8] sm:$0xf0]  ;;  %v12783_v58 = vor.u32 %v16453_v45, %v12780_v46 }
 0x16e   : > { %1940 = vmatpush.bf16.msrb.mxu2 %v12495_v21  ;;  %v12426_v21 = vld [vmem:[#allocation3 + $0x38] sm:$0xf]  ;;  %v12711_v24 = vor.u32 %v16435_v17, %v12708_v18  ;;  %v12498_v60 = vld [vmem:[#allocation3 + $0xc8] sm:$0xf]  ;;  %v16449_v4 = vld [vmem:[#allocation3 + $0x2e0] sm:$0xf0] }
 0x16f   : > { %1913 = vmatmul.bf16.vlgmr.msrb.gmra.mxu0 %v18711_v31  ;;  %v12666_v0 = vld [vmem:[#allocation3 + $0x218] sm:$0xf]  ;;  %v16473_v6 = vld [vmem:[#allocation3 + $0x3a0] sm:$0xf0]  ;;  %v16422_v12 = vld [vmem:[#allocation3 + $0x208] sm:$0xf0] }
 0x170   : > { %1961 = vmatpush.bf16.msra.mxu0 %v12771_v22  ;;  %1954 = vmatpush.bf16.msrb.mxu3 %v12591_v35  ;;  %v16365_v22 = vld [vmem:[#allocation3 + $0x40] sm:$0xf0]  ;;  %v12414_v35 = vld [vmem:[#allocation3 + $0x20] sm:$0xf]  ;;  %v12762_v3 = vld [vmem:[#allocation3 + $0x2d8] sm:$0xf] }
 0x171   : > { %1975 = vmatpush.bf16.msra.mxu1 %v12867_v25  ;;  %1941 = vmatmul.bf16.vlgmr.msrb.gmra.mxu2 %v18702_v30  ;;  %v12522_v25 = vld [vmem:[#allocation3 + $0xf8] sm:$0xf]  ;;  %v12427_v28 = vor.u32 %v16365_v22, %v12426_v21  ;;  %v12846_v17 = vld [vmem:[#allocation3 + $0x380] sm:$0xf]  ;;  %v16470_v18 = vld [vmem:[#allocation3 + $0x388] sm:$0xf0] }
 0x172   : > { %1989 = vmatpush.bf16.msra.mxu2 %v12487_v26  ;;  %1927 = vmatmul.bf16.vlgmr.msrb.gmra.mxu1 %v18675_v52  ;;  %v16389_v26 = vld [vmem:[#allocation3 + $0x100] sm:$0xf0]  ;;  %v12858_v5 = vld [vmem:[#allocation3 + $0x398] sm:$0xf]  ;;  %v12642_v21 = vld [vmem:[#allocation3 + $0x1e8] sm:$0xf]  ;;  %v12847_v22 = vor.u32 %v16470_v18, %v12846_v17 }
 0x173   : > { %1955 = vmatmul.bf16.vlgmr.msrb.gmra.mxu3 %v18690_v14  ;;  %v12859_v11 = vor.u32 %v16473_v6, %v12858_v5  ;;  %v12630_v32 = vld [vmem:[#allocation3 + $0x1d0] sm:$0xf]  ;;  %v16416_v33 = vld [vmem:[#allocation3 + $0x1d8] sm:$0xf0]  ;;  %v12618_v39 = vld [vmem:[#allocation3 + $0x1b8] sm:$0xf] }
 0x174   : > { %2003 = vmatpush.bf16.msra.mxu3 %v12583_v36  ;;  %1962 = vmatpush.bf16.msra.mxu0 %v12759_v37  ;;  %v16362_v36 = vld [vmem:[#allocation3 + $0x28] sm:$0xf0]  ;;  %v12523_v37 = vor.u32 %v16389_v26, %v12522_v25  ;;  %v16443_v25 = vld [vmem:[#allocation3 + $0x2b0] sm:$0xf0]  ;;  %v12834_v26 = vld [vmem:[#allocation3 + $0x368] sm:$0xf] }
 0x175   : > { %1976 = vmatpush.bf16.msra.mxu1 %v12855_v40  ;;  %v12510_v40 = vld [vmem:[#allocation3 + $0xe0] sm:$0xf]  ;;  %v12415_v43 = vor.u32 %v16362_v36, %v12414_v35  ;;  %v12726_v34 = vld [vmem:[#allocation3 + $0x290] sm:$0xf]  ;;  %v16440_v35 = vld [vmem:[#allocation3 + $0x298] sm:$0xf0] }
 0x176   : > { %1990 = vmatpush.bf16.msra.mxu2 %v12475_v41  ;;  %v16386_v41 = vld [vmem:[#allocation3 + $0xe8] sm:$0xf0]  ;;  %v12822_v36 = vld [vmem:[#allocation3 + $0x350] sm:$0xf]  ;;  %v12810_v44 = vld [vmem:[#allocation3 + $0x338] sm:$0xf] }
 0x177   : > { %v16461_v45 = vld [vmem:[#allocation3 + $0x340] sm:$0xf0]  ;;  %v1203_v5 = vld [vmem:[%s22269_s5] sm:$0xff] }
 0x178   : > { %2004 = vmatpush.bf16.msra.mxu3 %v12571_v48  ;;  %1963 = vmatpush.bf16.msra.mxu0 %v12747_v49  ;;  %v16359_v48 = vld [vmem:[#allocation3 + $0x10] sm:$0xf0]  ;;  %v12678_v49 = vld [vmem:[#allocation3 + $0x230] sm:$0xf] }
 0x179   : > { %1977 = vmatpush.bf16.msra.mxu1 %v12843_v53  ;;  %v16452_v53 = vld [vmem:[#allocation3 + $0x2f8] sm:$0xf0]  ;;  %v12403_v59 = vor.u32 %v16359_v48, %v12402_v47  ;;  %v12606_v48 = vld [vmem:[#allocation3 + $0x1a0] sm:$0xf] }
 0x17a   : > { %1991 = vmatpush.bf16.msra.mxu2 %v12463_v54  ;;  %v12511_v54 = vor.u32 %v16386_v41, %v12510_v40  ;;  %v12775_v63 = vor.u32 %v16452_v53, %v12774_v51  ;;  %v16413_v41 = vld [vmem:[#allocation3 + $0x1c0] sm:$0xf0]  ;;  %v12702_v51 = vld [vmem:[#allocation3 + $0x260] sm:$0xf]  ;;  %v16434_v53 = vld [vmem:[#allocation3 + $0x268] sm:$0xf0] }
 0x17b   : > { %v12619_v46 = vor.u32 %v16413_v41, %v12618_v39 }
 0x17c   : > { %2005 = vmatpush.bf16.msra.mxu3 %v12559_v61  ;;  %1964 = vmatpush.bf16.msra.mxu0 %v12735_v62  ;;  %v16383_v61 = vld [vmem:[#allocation3 + $0xd0] sm:$0xf0]  ;;  %v12679_v62 = vor.u32 %v16428_v50, %v12678_v49  ;;  %v12811_v49 = vor.u32 %v16461_v45, %v12810_v44  ;;  %v16410_v50 = vld [vmem:[#allocation3 + $0x1a8] sm:$0xf0] }
 0x17d   : > { %1978 = vmatpush.bf16.msra.mxu1 %v12831_v1  ;;  %v12871_v1 = vor.u32 %v16476_v57, %v12870_v56  ;;  %v12499_v7 = vor.u32 %v16383_v61, %v12498_v60  ;;  %v12607_v56 = vor.u32 %v16410_v50, %v12606_v48  ;;  %v12703_v57 = vor.u32 %v16434_v53, %v12702_v51  ;;  %v16407_v60 = vld [vmem:[#allocation3 + $0x190] sm:$0xf0]  ;;  %v12690_v61 = vld [vmem:[#allocation3 + $0x248] sm:$0xf]  ;;  %v1205_v48 = vld [vmem:[%s22269_s5 + $0x10] sm:$0xff] }
 0x17e   : > { %1992 = vmatpush.bf16.msra.mxu2 %v12451_v2  ;;  %v16425_v2 = vld [vmem:[#allocation3 + $0x220] sm:$0xf0] }
 0x17f   : > { %v12667_v8 = vor.u32 %v16425_v2, %v12666_v0  ;;  %v16455_v0 = vld [vmem:[#allocation3 + $0x310] sm:$0xf0] }
 0x180   : > { %2006 = vmatpush.bf16.msra.mxu3 %v12547_v9  ;;  %1965 = vmatpush.bf16.msra.mxu0 %v12723_v10  ;;  %v12763_v9 = vor.u32 %v16449_v4, %v12762_v3  ;;  %v12654_v10 = vld [vmem:[#allocation3 + $0x200] sm:$0xf] }
 0x181   : > { %1979 = vmatpush.bf16.msra.mxu1 %v12819_v13  ;;  %v12750_v13 = vld [vmem:[#allocation3 + $0x2c0] sm:$0xf]  ;;  %v12655_v19 = vor.u32 %v16422_v12, %v12654_v10  ;;  %v1206_v10 = vld [vmem:[%s22269_s5 + $0x18] sm:$0xff] }
 0x182   : > { %1993 = vmatpush.bf16.msra.mxu2 %v12439_v16  ;;  %v16446_v16 = vld [vmem:[#allocation3 + $0x2c8] sm:$0xf0] }
 0x183   : > { %v12751_v20 = vor.u32 %v16446_v16, %v12750_v13 }
 0x184   : > { %2007 = vmatpush.bf16.msra.mxu3 %v12535_v23  ;;  %1966 = vmatpush.bf16.msra.mxu0 %v12711_v24  ;;  %v16419_v23 = vld [vmem:[#allocation3 + $0x1f0] sm:$0xf0]  ;;  %v12738_v24 = vld [vmem:[#allocation3 + $0x2a8] sm:$0xf] }
 0x185   : > { %1980 = vmatpush.bf16.msra.mxu1 %v12807_v27  ;;  %v16467_v27 = vld [vmem:[#allocation3 + $0x370] sm:$0xf0]  ;;  %v12739_v29 = vor.u32 %v16443_v25, %v12738_v24 }
 0x186   : > { %1994 = vmatpush.bf16.msra.mxu2 %v12427_v28  ;;  %v12643_v28 = vor.u32 %v16419_v23, %v12642_v21 }
 0x188   : > { %2008 = vmatpush.bf16.msra.mxu3 %v12523_v37  ;;  %1967 = vmatpush.bf16.msra.mxu0 %v12699_v38  ;;  %v16464_v37 = vld [vmem:[#allocation3 + $0x358] sm:$0xf0]  ;;  %v12727_v38 = vor.u32 %v16440_v35, %v12726_v34 }
 0x189   : > { %1981 = vmatpush.bf16.msra.mxu1 %v12795_v42  ;;  %v12823_v40 = vor.u32 %v16464_v37, %v12822_v36  ;;  %v12714_v42 = vld [vmem:[#allocation3 + $0x278] sm:$0xf] }
 0x18a   : > { %1995 = vmatpush.bf16.msra.mxu2 %v12415_v43  ;;  %v16437_v43 = vld [vmem:[#allocation3 + $0x280] sm:$0xf0] }
 0x18b   : > { %v12715_v47 = vor.u32 %v16437_v43, %v12714_v42 }
 0x18c   : > { %2009 = vmatpush.bf16.msra.mxu3 %v12511_v54  ;;  %1968 = vmatpush.bf16.msra.mxu0 %v12687_v55  ;;  %v12798_v54 = vld [vmem:[#allocation3 + $0x320] sm:$0xf]  ;;  %v16458_v55 = vld [vmem:[#allocation3 + $0x328] sm:$0xf0] }
 0x18d   : > { %1982 = vmatpush.bf16.msra.mxu1 %v12783_v58  ;;  %v12594_v58 = vld [vmem:[#allocation3 + $0x188] sm:$0xf] }
 0x18e   : > { %1996 = vmatpush.bf16.msra.mxu2 %v12403_v59  ;;  %v12799_v59 = vor.u32 %v16458_v55, %v12798_v54  ;;  %v1208_v55 = vld [vmem:[%s22269_s5 + $0x28] sm:$0xff] }
 0x18f   : > { %1969 = vmatmul.bf16.vlgmr.msra.gmra.mxu0 %v18692_v15 }
 0x190   : > { %2017 = vmatpush.bf16.msrb.mxu0 %v12679_v62  ;;  %1983 = vmatmul.bf16.vlgmr.msra.gmra.mxu1 %v18711_v31  ;;  %v16431_v62 = vld [vmem:[#allocation3 + $0x250] sm:$0xf0] }
 0x191   : > { %2031 = vmatpush.bf16.msrb.mxu1 %v12775_v63  ;;  %2010 = vmatpush.bf16.msra.mxu3 %v12499_v7  ;;  %v12786_v63 = vld [vmem:[#allocation3 + $0x308] sm:$0xf]  ;;  %v12691_v2 = vor.u32 %v16431_v62, %v12690_v61 }
 0x192   : > { %2045 = vmatpush.bf16.msrb.mxu2 %v12871_v1  ;;  %v12595_v1 = vor.u32 %v16407_v60, %v12594_v58  ;;  %v12787_v3 = vor.u32 %v16455_v0, %v12786_v63 }
 0x193   : > { %1997 = vmatmul.bf16.vlgmr.msra.gmra.mxu2 %v18675_v52  ;;  %v12835_v52 = vor.u32 %v16467_v27, %v12834_v26  ;;  %v1204_v26 = vld [vmem:[%s22269_s5 + $0x8] sm:$0xff] }
 0x194   : > { %2018 = vmatpush.bf16.msrb.mxu0 %v12667_v8  ;;  %2011 = vmatmul.bf16.vlgmr.msra.gmra.mxu3 %v18702_v30  ;;  %v12631_v30 = vor.u32 %v16416_v33, %v12630_v32  ;;  %v1207_v33 = vld [vmem:[%s22269_s5 + $0x20] sm:$0xff] }
 0x195   : > { %2032 = vmatpush.bf16.msrb.mxu1 %v12763_v9 }
 0x196   : > { %2046 = vmatpush.bf16.msrb.mxu2 %v12859_v11 }
 0x198   : > { %2019 = vmatpush.bf16.msrb.mxu0 %v12655_v19 }
 0x199   : > { %2033 = vmatpush.bf16.msrb.mxu1 %v12751_v20 }
 0x19a   : > { %2047 = vmatpush.bf16.msrb.mxu2 %v12847_v22 }
 0x19c   : > { %2020 = vmatpush.bf16.msrb.mxu0 %v12643_v28 }
 0x19d   : > { %2034 = vmatpush.bf16.msrb.mxu1 %v12739_v29 }
 0x19e   : > { %2048 = vmatpush.bf16.msrb.mxu2 %v12835_v52 }
 0x1a0   : > { %2021 = vmatpush.bf16.msrb.mxu0 %v12631_v30 }
 0x1a1   : > { %2035 = vmatpush.bf16.msrb.mxu1 %v12727_v38 }
 0x1a2   : > { %2049 = vmatpush.bf16.msrb.mxu2 %v12823_v40 }
 0x1a4   : > { %2022 = vmatpush.bf16.msrb.mxu0 %v12619_v46 }
 0x1a5   : > { %2036 = vmatpush.bf16.msrb.mxu1 %v12715_v47 }
 0x1a6   : > { %2050 = vmatpush.bf16.msrb.mxu2 %v12811_v49 }
 0x1a8   : > { %2023 = vmatpush.bf16.msrb.mxu0 %v12607_v56 }
 0x1a9   : > { %2037 = vmatpush.bf16.msrb.mxu1 %v12703_v57 }
 0x1aa   : > { %2051 = vmatpush.bf16.msrb.mxu2 %v12799_v59 }
 0x1ac   : > { %2024 = vmatpush.bf16.msrb.mxu0 %v12595_v1 }
 0x1ad   : > { %2038 = vmatpush.bf16.msrb.mxu1 %v12691_v2 }
 0x1ae   : > { %2052 = vmatpush.bf16.msrb.mxu2 %v12787_v3 }
 0x1af   : > { %2025 = vmatmul.bf16.vlgmr.msrb.gmra.mxu0 %v18690_v14 }
 0x1b0   : > { %2039 = vmatmul.bf16.vlgmr.msrb.gmra.mxu1 %v18692_v15 }
 0x1b1   : > { %2053 = vmatmul.bf16.vlgmr.msrb.gmra.mxu2 %v18711_v31 }
 0x1cc   : > { %v1858_v4 = vpop.f32.mrf.mxu0 }
 0x1cd   : > { %v1859_v7 = vadd.f32 %v1858_v4, %v1203_v5 }
 0x1d0   : > { %v1872_v6 = vpop.f32.mrf.mxu1 }
 0x1d1   : > { %v1873_v9 = vadd.f32 %v1872_v6, %v1859_v7 }
 0x1d4   : > { %v1886_v8 = vpop.f32.mrf.mxu2  ;;  %v1860_v11 = vpop.f32.mrf.mxu0 }
 0x1d5   : > { %v1861_v14 = vadd.f32 %v1860_v11, %v1206_v10  ;;  %v1887_v13 = vadd.f32 %v1886_v8, %v1873_v9 }
 0x1d6   : > { %v1900_v12 = vpop.f32.mrf.mxu3 }
 0x1d7   : > { %v1901_v16 = vadd.f32 %v1900_v12, %v1887_v13 }
 0x1d8   : > { %v1874_v15 = vpop.f32.mrf.mxu1 }
 0x1d9   : > { %v1875_v31 = vadd.f32 %v1874_v15, %v1861_v14 }
 0x1dc   : > { %v1888_v17 = vpop.f32.mrf.mxu2 }
 0x1dd   : > { %v1889_v20 = vadd.f32 %v1888_v17, %v1875_v31 }
 0x1de   : > { %v1902_v21 = vpop.f32.mrf.mxu3 }
 0x1df   : > { %v1903_v22 = vadd.f32 %v1902_v21, %v1889_v20 }
 0x1ec   : > { %v1914_v18 = vpop.f32.mrf.mxu0 }
 0x1ed   : > { %v1915_v19 = vadd.f32 %v1914_v18, %v1901_v16 }
 0x1ef   : > { %2059 = vst [vmem:[#allocation2 + $0x28] sm:$0xff] %v1915_v19  ;;  %v1928_v25 = vpop.f32.mrf.mxu1 }
 0x1f0   : > { %v1929_v28 = vadd.f32 %v1928_v25, %v1204_v26 }
 0x1f4   : > { %v1916_v23 = vpop.f32.mrf.mxu0  ;;  %v1942_v27 = vpop.f32.mrf.mxu2 }
 0x1f5   : > { %v1917_v24 = vadd.f32 %v1916_v23, %v1903_v22  ;;  %v1943_v52 = vadd.f32 %v1942_v27, %v1929_v28 }
 0x1f6   : > { %v1956_v32 = vpop.f32.mrf.mxu3 }
 0x1f7   : > { %2062 = vst [vmem:[#allocation2] sm:$0xff] %v1917_v24  ;;  %v1930_v29 = vpop.f32.mrf.mxu1  ;;  %v1957_v35 = vadd.f32 %v1956_v32, %v1943_v52 }
 0x1f8   : > { %v1931_v34 = vadd.f32 %v1930_v29, %v1207_v33 }
 0x1fc   : > { %v1944_v36 = vpop.f32.mrf.mxu2 }
 0x1fd   : > { %v1945_v39 = vadd.f32 %v1944_v36, %v1931_v34 }
 0x1fe   : > { %v1958_v40 = vpop.f32.mrf.mxu3 }
 0x1ff   : > { %v1959_v42 = vadd.f32 %v1958_v40, %v1945_v39 }
 0x20c   : > { %v1970_v37 = vpop.f32.mrf.mxu0 }
 0x20d   : > { %v1971_v30 = vadd.f32 %v1970_v37, %v1957_v35  ;;  %v1984_v38 = vpop.f32.mrf.mxu1 }
 0x20f   : > { %v1985_v41 = vadd.f32 %v1984_v38, %v1971_v30 }
 0x211   : > { %2060 = vst [vmem:[#allocation2 + $0x10] sm:$0xff] %v1985_v41 }
 0x214   : > { %v1972_v43 = vpop.f32.mrf.mxu0 }
 0x215   : > { %v1973_v44 = vadd.f32 %v1972_v43, %v1959_v42  ;;  %v1986_v45 = vpop.f32.mrf.mxu1 }
 0x216   : > { %v1998_v47 = vpop.f32.mrf.mxu2 }
 0x217   : > { %v1987_v46 = vadd.f32 %v1986_v45, %v1973_v44  ;;  %v2012_v49 = vpop.f32.mrf.mxu3  ;;  %v1999_v50 = vadd.f32 %v1998_v47, %v1205_v48 }
 0x219   : > { %2063 = vst [vmem:[#allocation2 + $0x18] sm:$0xff] %v1987_v46  ;;  %v2013_v53 = vadd.f32 %v2012_v49, %v1999_v50 }
 0x21e   : > { %v2000_v51 = vpop.f32.mrf.mxu2 }
 0x21f   : > { %v2001_v58 = vadd.f32 %v2000_v51, %v1208_v55  ;;  %v2014_v59 = vpop.f32.mrf.mxu3 }
 0x221   : > { %v2015_v62 = vadd.f32 %v2014_v59, %v2001_v58 }
 0x22c   : > { %v2026_v54 = vpop.f32.mrf.mxu0 }
 0x22d   : > { %v2027_v56 = vadd.f32 %v2026_v54, %v2013_v53  ;;  %v2040_v57 = vpop.f32.mrf.mxu1 }
 0x22f   : > { %v2041_v60 = vadd.f32 %v2040_v57, %v2027_v56 }
 0x234   : > { %v2054_v61 = vpop.f32.mrf.mxu2  ;;  %v2028_v0 = vpop.f32.mrf.mxu0 }
 0x235   : > { %v2055_v63 = vadd.f32 %v2054_v61, %v2041_v60  ;;  %v2029_v1 = vadd.f32 %v2028_v0, %v2015_v62  ;;  %v2042_v2 = vpop.f32.mrf.mxu1 }
 0x237   : > { %2061 = vst [vmem:[#allocation2 + $0x8] sm:$0xff] %v2055_v63  ;;  %v2043_v3 = vadd.f32 %v2042_v2, %v2029_v1 }
 0x23c   : > { %v2056_v4 = vpop.f32.mrf.mxu2 }
 0x23d   : > { %v2057_v5 = vadd.f32 %v2056_v4, %v2043_v3 }
 0x23f   : > { %2064 = vst [vmem:[#allocation2 + $0x20] sm:$0xff] %v2057_v5 }
 0x240 PF: > { %v18742_v6 = vld [vmem:[#allocation2 + $0x28] sm:$0xff]  ;;  %v18744_v7 = vld [vmem:[#allocation2 + $0x10] sm:$0xff]  ;;  %v18750_v10 = vld [vmem:[#allocation2] sm:$0xff]  ;;  %v18183_v16 = vmov 384.0   ;;  %vm3930_vm7 = vcmask 1047556   ;;  %vm4578_vm8 = vcmask 523264  }
 0x241   : > { %v18746_v8 = vld [vmem:[#allocation2 + $0x8] sm:$0xff]  ;;  %v2073_v9 = vadd.f32 %v18744_v7, %v18742_v6  ;;  %v18752_v11 = vld [vmem:[#allocation2 + $0x18] sm:$0xff]  ;;  %17534 = vrcp.f32 %v18183_v16  ;;  %v13126_v19 = vld [vmem:[%s18619_s30 + $0x1f8] sm:$0xf]  ;;  %vm4787_vm9 = vcmask 1043456   ;;  %vm4705_vm11 = vcmask 64512  }
 0x242   : > { %v2077_v14 = vadd.f32 %v18752_v11, %v18750_v10  ;;  %v16544_v20 = vld [vmem:[%s18619_s30 + $0x218] sm:$0xf0]  ;;  %v13414_v21 = vld [vmem:[%s18619_s30 + $0x438] sm:$0xf]  ;;  %v13128_v29 = vld [vmem:[%s18619_s30 + $0x21c] sm:$0xf0] }
 0x243   : > { %v2074_v12 = vadd.f32 %v2073_v9, %v18746_v8  ;;  %v13127_v22 = vor.u32 %v16544_v20, %v13126_v19  ;;  %v16616_v23 = vld [vmem:[%s18619_s30 + $0x458] sm:$0xf0]  ;;  %v13702_v24 = vld [vmem:[%s18619_s30 + $0x678] sm:$0xf]  ;;  %v13090_v32 = vld [vmem:[%s18619_s30 + $0x1b0] sm:$0xf] }
 0x244   : > { %v16688_v25 = vld [vmem:[%s18619_s30 + $0x698] sm:$0xf0]  ;;  %v13415_v26 = vor.u32 %v16616_v23, %v13414_v21  ;;  %v16535_v34 = vld [vmem:[%s18619_s30 + $0x1d0] sm:$0xf0]  ;;  %v13378_v35 = vld [vmem:[%s18619_s30 + $0x3f0] sm:$0xf] }
 0x245   : > { %2075 = vadd.xlane.f32.xlu0 %v2074_v12  ;;  %v13703_v27 = vor.u32 %v16688_v25, %v13702_v24  ;;  %v16540_v28 = vld [vmem:[%s18619_s30 + $0x1fc] sm:$0xf]  ;;  %3535 = vmatpush.bf16.msra.mxu0 %v13127_v22  ;;  %v16607_v36 = vld [vmem:[%s18619_s30 + $0x410] sm:$0xf0]  ;;  %v13091_v37 = vor.u32 %v16535_v34, %v13090_v32  ;;  %v13666_v38 = vld [vmem:[%s18619_s30 + $0x630] sm:$0xf] }
 0x246   : > { %v18757_v13 = vld [vmem:[#allocation2 + $0x20] sm:$0xff]  ;;  %v13131_v33 = vor.u32 %v16540_v28, %v13128_v29  ;;  %3549 = vmatpush.bf16.msra.mxu1 %v13415_v26  ;;  %v13379_v30 = vor.u32 %v16607_v36, %v13378_v35  ;;  %v16679_v39 = vld [vmem:[%s18619_s30 + $0x650] sm:$0xf0]  ;;  %v13092_v42 = vld [vmem:[%s18619_s30 + $0x1d4] sm:$0xf0]  ;;  %s22270_s23 = sld [smem:[#allocation39_spill]] }
 0x247   : > { %v2078_v15 = vadd.f32 %v2077_v14, %v18757_v13  ;;  %v17535_v31 = vpop.eup %17534  ;;  %3563 = vmatpush.bf16.msra.mxu2 %v13703_v27  ;;  %v16531_v40 = vld [vmem:[%s18619_s30 + $0x1b4] sm:$0xf]  ;;  %v13667_v41 = vor.u32 %v16679_v39, %v13666_v38  ;;  %v13054_v43 = vld [vmem:[%s18619_s30 + $0x168] sm:$0xf]  ;;  %v16526_v44 = vld [vmem:[%s18619_s30 + $0x188] sm:$0xf0] }
 0x248   : > { %v2082_v17 = vmul.f32 384.0, %v17535_v31  ;;  %3577 = vmatpush.bf16.msra.mxu3 %v13131_v33  ;;  %v13095_v45 = vor.u32 %v16531_v40, %v13092_v42  ;;  %v13342_v46 = vld [vmem:[%s18619_s30 + $0x3a8] sm:$0xf]  ;;  %v16598_v47 = vld [vmem:[%s18619_s30 + $0x3c8] sm:$0xf0]  ;;  %v13055_v50 = vor.u32 %v16526_v44, %v13054_v43  ;;  %vm2086_vm0 = vweird.f32 %v17535_v31 }
 0x249   : > { %v13630_v48 = vld [vmem:[%s18619_s30 + $0x5e8] sm:$0xf]  ;;  %3536 = vmatpush.bf16.msra.mxu0 %v13091_v37  ;;  %v16670_v51 = vld [vmem:[%s18619_s30 + $0x608] sm:$0xf0]  ;;  %v13056_v54 = vld [vmem:[%s18619_s30 + $0x18c] sm:$0xf0]  ;;  %v13343_v55 = vor.u32 %v16598_v47, %v13342_v46 }
 0x24a   : > { %v2083_v18 = vsub.f32 1.0, %v2082_v17  ;;  %v16522_v53 = vld [vmem:[%s18619_s30 + $0x16c] sm:$0xf]  ;;  %3550 = vmatpush.bf16.msra.mxu1 %v13379_v30  ;;  %v13631_v56 = vor.u32 %v16670_v51, %v13630_v48  ;;  %v13018_v57 = vld [vmem:[%s18619_s30 + $0x120] sm:$0xf] }
 0x24b   : > { %3564 = vmatpush.bf16.msra.mxu2 %v13667_v41  ;;  %v16517_v58 = vld [vmem:[%s18619_s30 + $0x140] sm:$0xf0]  ;;  %v13306_v59 = vld [vmem:[%s18619_s30 + $0x360] sm:$0xf]  ;;  %v13059_v60 = vor.u32 %v16522_v53, %v13056_v54  ;;  %v13020_v1 = vld [vmem:[%s18619_s30 + $0x144] sm:$0xf0] }
 0x24c   : > { %v2084_v52 = vmul.f32 %v17535_v31, %v2083_v18  ;;  %3578 = vmatpush.bf16.msra.mxu3 %v13095_v45  ;;  %v16589_v61 = vld [vmem:[%s18619_s30 + $0x380] sm:$0xf0]  ;;  %v13594_v62 = vld [vmem:[%s18619_s30 + $0x5a0] sm:$0xf]  ;;  %v13019_v3 = vor.u32 %v16517_v58, %v13018_v57  ;;  %v12982_v4 = vld [vmem:[%s18619_s30 + $0xd8] sm:$0xf] }
 0x24d   : > { %2079 = vadd.xlane.f32.xlu0 %v2078_v15  ;;  %v16661_v63 = vld [vmem:[%s18619_s30 + $0x5c0] sm:$0xf0]  ;;  %3537 = vmatpush.bf16.msra.mxu0 %v13055_v50  ;;  %v16508_v5 = vld [vmem:[%s18619_s30 + $0xf8] sm:$0xf0]  ;;  %v13270_v9 = vld [vmem:[%s18619_s30 + $0x318] sm:$0xf]  ;;  %v13307_v12 = vor.u32 %v16589_v61, %v13306_v59 }
 0x24e   : > { %v2085_v49 = vadd.f32 %v17535_v31, %v2084_v52  ;;  %v16513_v0 = vld [vmem:[%s18619_s30 + $0x124] sm:$0xf]  ;;  %3551 = vmatpush.bf16.msra.mxu1 %v13343_v55  ;;  %v13595_v14 = vor.u32 %v16661_v63, %v13594_v62  ;;  %v16580_v15 = vld [vmem:[%s18619_s30 + $0x338] sm:$0xf0]  ;;  %v13558_v16 = vld [vmem:[%s18619_s30 + $0x558] sm:$0xf]  ;;  %v12983_v22 = vor.u32 %v16508_v5, %v12982_v4 }
 0x24f   : > { %3565 = vmatpush.bf16.msra.mxu2 %v13631_v56  ;;  %v16652_v17 = vld [vmem:[%s18619_s30 + $0x578] sm:$0xf0]  ;;  %v13023_v19 = vor.u32 %v16513_v0, %v13020_v1  ;;  %v12984_v21 = vld [vmem:[%s18619_s30 + $0xfc] sm:$0xf0]  ;;  %v13271_v23 = vor.u32 %v16580_v15, %v13270_v9  ;;  %v13234_v40 = vld [vmem:[%s18619_s30 + $0x2d0] sm:$0xf] }
 0x250   : > { %v18792_v2 = vsel %vm2086_vm0, %v17535_v31, %v2085_v49  ;;  %3579 = vmatpush.bf16.msra.mxu3 %v13059_v60  ;;  %v16504_v20 = vld [vmem:[%s18619_s30 + $0xdc] sm:$0xf]  ;;  %v13559_v24 = vor.u32 %v16652_v17, %v13558_v16  ;;  %v16571_v42 = vld [vmem:[%s18619_s30 + $0x2f0] sm:$0xf0]  ;;  %v13522_v43 = vld [vmem:[%s18619_s30 + $0x510] sm:$0xf] }
 0x251   : > { %3538 = vmatpush.bf16.msra.mxu0 %v13019_v3  ;;  %v12987_v28 = vor.u32 %v16504_v20, %v12984_v21  ;;  %v16643_v44 = vld [vmem:[%s18619_s30 + $0x530] sm:$0xf0]  ;;  %v13235_v45 = vor.u32 %v16571_v42, %v13234_v40  ;;  %v12948_v48 = vld [vmem:[%s18619_s30 + $0xb4] sm:$0xf0]  ;;  %v12910_v50 = vld [vmem:[%s18619_s30 + $0x48] sm:$0xf] }
 0x252   : > { %3552 = vmatpush.bf16.msra.mxu1 %v13307_v12  ;;  %v13523_v46 = vor.u32 %v16643_v44, %v13522_v43  ;;  %v16495_v47 = vld [vmem:[%s18619_s30 + $0x94] sm:$0xf]  ;;  %v16490_v51 = vld [vmem:[%s18619_s30 + $0x68] sm:$0xf0]  ;;  %v13198_v53 = vld [vmem:[%s18619_s30 + $0x288] sm:$0xf] }
 0x253   : > { %3566 = vmatpush.bf16.msra.mxu2 %v13595_v14  ;;  %v12951_v49 = vor.u32 %v16495_v47, %v12948_v48  ;;  %v12911_v54 = vor.u32 %v16490_v51, %v12910_v50  ;;  %v16562_v55 = vld [vmem:[%s18619_s30 + $0x2a8] sm:$0xf0]  ;;  %v13486_v56 = vld [vmem:[%s18619_s30 + $0x4c8] sm:$0xf]  ;;  %v12912_v61 = vld [vmem:[%s18619_s30 + $0x6c] sm:$0xf0] }
 0x254   : > { %3580 = vmatpush.bf16.msra.mxu3 %v13023_v19  ;;  %v16634_v57 = vld [vmem:[%s18619_s30 + $0x4e8] sm:$0xf0]  ;;  %v13199_v58 = vor.u32 %v16562_v55, %v13198_v53  ;;  %v12874_v63 = vld [vmem:[%s18619_s30] sm:$0xf]  ;;  %v16481_v0 = vld [vmem:[%s18619_s30 + $0x20] sm:$0xf0] }
 0x255   : > { %3539 = vmatpush.bf16.msra.mxu0 %v12983_v22  ;;  %v13487_v59 = vor.u32 %v16634_v57, %v13486_v56  ;;  %v16486_v60 = vld [vmem:[%s18619_s30 + $0x4c] sm:$0xf]  ;;  %v13162_v1 = vld [vmem:[%s18619_s30 + $0x240] sm:$0xf]  ;;  %v12875_v3 = vor.u32 %v16481_v0, %v12874_v63  ;;  %v16553_v4 = vld [vmem:[%s18619_s30 + $0x260] sm:$0xf0] }
 0x256   : > { %3553 = vmatpush.bf16.msra.mxu1 %v13271_v23  ;;  %v12915_v62 = vor.u32 %v16486_v60, %v12912_v61  ;;  %v13450_v5 = vld [vmem:[%s18619_s30 + $0x480] sm:$0xf]  ;;  %v16625_v9 = vld [vmem:[%s18619_s30 + $0x4a0] sm:$0xf0]  ;;  %v13163_v12 = vor.u32 %v16553_v4, %v13162_v1  ;;  %v12876_v16 = vld [vmem:[%s18619_s30 + $0x24] sm:$0xf0] }
 0x257   : > { %3567 = vmatpush.bf16.msra.mxu2 %v13559_v24  ;;  %v13451_v14 = vor.u32 %v16625_v9, %v13450_v5  ;;  %v16477_v15 = vld [vmem:[%s18619_s30 + $0x4] sm:$0xf]  ;;  %v16612_v17 = vld [vmem:[%s18619_s30 + $0x43c] sm:$0xf]  ;;  %v13416_v19 = vld [vmem:[%s18619_s30 + $0x45c] sm:$0xf0] }
 0x258   : > { %3581 = vmatpush.bf16.msra.mxu3 %v12987_v28  ;;  %v13704_v20 = vld [vmem:[%s18619_s30 + $0x69c] sm:$0xf0]  ;;  %v13419_v21 = vor.u32 %v16612_v17, %v13416_v19  ;;  %v16545_v24 = vld [vmem:[%s18619_s30 + $0x220] sm:$0xf0]  ;;  %v13344_v42 = vld [vmem:[%s18619_s30 + $0x3cc] sm:$0xf0] }
 0x259   : > { %v13134_v23 = vld [vmem:[%s18619_s30 + $0x200] sm:$0xf]  ;;  %v16666_v43 = vld [vmem:[%s18619_s30 + $0x5ec] sm:$0xf]  ;;  %v16527_v47 = vld [vmem:[%s18619_s30 + $0x190] sm:$0xf0] }
 0x25a   : > { %3554 = vmatpush.bf16.msra.mxu1 %v13235_v45  ;;  %v13422_v28 = vld [vmem:[%s18619_s30 + $0x440] sm:$0xf]  ;;  %v13632_v45 = vld [vmem:[%s18619_s30 + $0x60c] sm:$0xf0]  ;;  %v16599_v51 = vld [vmem:[%s18619_s30 + $0x3d0] sm:$0xf0] }
 0x25b   : > { %3568 = vmatpush.bf16.msra.mxu2 %v13523_v46  ;;  %v13062_v46 = vld [vmem:[%s18619_s30 + $0x170] sm:$0xf]  ;;  %v13635_v48 = vor.u32 %v16666_v43, %v13632_v45  ;;  %v13308_v55 = vld [vmem:[%s18619_s30 + $0x384] sm:$0xf0]  ;;  %v16657_v56 = vld [vmem:[%s18619_s30 + $0x5a4] sm:$0xf] }
 0x25c   : > { %3582 = vmatpush.bf16.msra.mxu3 %v12951_v49  ;;  %v13063_v49 = vor.u32 %v16527_v47, %v13062_v46  ;;  %v13350_v50 = vld [vmem:[%s18619_s30 + $0x3b0] sm:$0xf]  ;;  %v16518_v60 = vld [vmem:[%s18619_s30 + $0x148] sm:$0xf0]  ;;  %v13314_v63 = vld [vmem:[%s18619_s30 + $0x368] sm:$0xf] }
 0x25d   : > { %v13351_v53 = vor.u32 %v16599_v51, %v13350_v50  ;;  %v16590_v0 = vld [vmem:[%s18619_s30 + $0x388] sm:$0xf0]  ;;  %v13272_v4 = vld [vmem:[%s18619_s30 + $0x33c] sm:$0xf0]  ;;  %v16648_v5 = vld [vmem:[%s18619_s30 + $0x55c] sm:$0xf] }
 0x25e   : > { %3555 = vmatpush.bf16.msra.mxu1 %v13199_v58  ;;  %v13596_v58 = vld [vmem:[%s18619_s30 + $0x5c4] sm:$0xf0]  ;;  %v13315_v1 = vor.u32 %v16590_v0, %v13314_v63  ;;  %v16581_v19 = vld [vmem:[%s18619_s30 + $0x340] sm:$0xf0]  ;;  %v13206_v43 = vld [vmem:[%s18619_s30 + $0x290] sm:$0xf] }
 0x25f   : > { %3569 = vmatpush.bf16.msra.mxu2 %v13487_v59  ;;  %v13026_v59 = vld [vmem:[%s18619_s30 + $0x128] sm:$0xf]  ;;  %v13599_v61 = vor.u32 %v16657_v56, %v13596_v58  ;;  %v16549_v47 = vld [vmem:[%s18619_s30 + $0x244] sm:$0xf]  ;;  %p16352_p4 = scmp.ne.s32.totalorder %s22270_s23, 1 }
 0x260   : > { %3583 = vmatpush.bf16.msra.mxu3 %v12915_v62  ;;  %v13027_v62 = vor.u32 %v16518_v60, %v13026_v59  ;;  %v16621_v50 = vld [vmem:[%s18619_s30 + $0x484] sm:$0xf]  ;;  %v13452_v51 = vld [vmem:[%s18619_s30 + $0x4a4] sm:$0xf0] }
 0x261   : > { %v13170_v56 = vld [vmem:[%s18619_s30 + $0x248] sm:$0xf] }
 0x262   : > { %3556 = vmatpush.bf16.msra.mxu1 %v13163_v12  ;;  %v13560_v12 = vld [vmem:[%s18619_s30 + $0x57c] sm:$0xf0] }
 0x263   : > { %3570 = vmatpush.bf16.msra.mxu2 %v13451_v14  ;;  %v12990_v14 = vld [vmem:[%s18619_s30 + $0xe0] sm:$0xf] }
 0x2b8   : > { %v2076_v18 = vpop.xlane.xlu0 %2075 }
 0x2b9   : > { %v2088_v31 = vmul.f32 %v18792_v2, %v2076_v18  ;;  %v12879_v18 = vor.u32 %v16477_v15, %v12876_v16  ;;  %v16509_v15 = vld [vmem:[%s18619_s30 + $0x100] sm:$0xf0]  ;;  %v13563_v16 = vor.u32 %v16648_v5, %v13560_v12 }
 0x2ba   : > { %v12991_v17 = vor.u32 %v16509_v15, %v12990_v14  ;;  %v2071_v14 = vld [vmem:[%s801_s1] sm:$0x7]  ;;  %s18184_s1 = smov 64  }
 0x2bb   : > { %v18804_v25 = vsub.f32 %v18742_v6, %v2088_v31  ;;  %v18807_v26 = vsub.f32 %v18744_v7, %v2088_v31  ;;  %v18810_v27 = vsub.f32 %v18746_v8, %v2088_v31  ;;  %v16684_v31 = vld [vmem:[%s18619_s30 + $0x67c] sm:$0xf]  ;;  %3584 = vmatpush.bf16.msra.mxu3 %v12879_v18  ;;  %v13278_v18 = vld [vmem:[%s18619_s30 + $0x320] sm:$0xf] }
 0x2bc   : > { %v13707_v22 = vor.u32 %v16684_v31, %v13704_v20  ;;  %v13279_v31 = vor.u32 %v16581_v19, %v13278_v18  ;;  %v16567_v20 = vld [vmem:[%s18619_s30 + $0x2d4] sm:$0xf]  ;;  %v2141_v18 = vperm.slane %v2071_v14, 0  ;;  %v2142_v19 = vperm.slane %v2071_v14, 1 }
 0x2bd   : > { %v2096_v29 = vmul.f32 %v18804_v25, %v18804_v25  ;;  %v2097_v32 = vmul.f32 %v18807_v26, %v18807_v26  ;;  %v2098_v6 = vmul.f32 %v18810_v27, %v18810_v27 }
 0x2be   : > { %3605 = vmatpush.bf16.msrb.mxu1 %v13707_v22  ;;  %v16639_v22 = vld [vmem:[%s18619_s30 + $0x514] sm:$0xf] }
 0x2bf   : > { %v2102_v52 = vadd.f32 %v2097_v32, %v2096_v29  ;;  %v13135_v29 = vor.u32 %v16545_v24, %v13134_v23  ;;  %v16617_v32 = vld [vmem:[%s18619_s30 + $0x460] sm:$0xf0]  ;;  %v13524_v24 = vld [vmem:[%s18619_s30 + $0x534] sm:$0xf0] }
 0x2c0   : > { %v2080_v7 = vpop.xlane.xlu0 %2079 }
 0x2c1   : > { %v2089_v8 = vmul.f32 %v18792_v2, %v2080_v7  ;;  %v2103_v33 = vadd.f32 %v2102_v52, %v2098_v6  ;;  %v16603_v6 = vld [vmem:[%s18619_s30 + $0x3f4] sm:$0xf]  ;;  %v13380_v52 = vld [vmem:[%s18619_s30 + $0x414] sm:$0xf0]  ;;  %v13423_v7 = vor.u32 %v16617_v32, %v13422_v28  ;;  %3619 = vmatpush.bf16.msrb.mxu2 %v13135_v29  ;;  %v16500_v29 = vld [vmem:[%s18619_s30 + $0xb8] sm:$0xf0]  ;;  %v13527_v32 = vor.u32 %v16639_v22, %v13524_v24 }
 0x2c2   : > { %v12954_v28 = vld [vmem:[%s18619_s30 + $0x98] sm:$0xf] }
 0x2c3   : > { %v18820_v34 = vsub.f32 %v18750_v10, %v2089_v8  ;;  %v18823_v35 = vsub.f32 %v18752_v11, %v2089_v8  ;;  %v18826_v36 = vsub.f32 %v18757_v13, %v2089_v8  ;;  %2104 = vadd.xlane.f32.xlu1 %v2103_v33  ;;  %v12946_v11 = vld [vmem:[%s18619_s30 + $0x90] sm:$0xf]  ;;  %v16499_v13 = vld [vmem:[%s18619_s30 + $0xb0] sm:$0xf0]  ;;  %v13383_v8 = vor.u32 %v16603_v6, %v13380_v52  ;;  %v13242_v52 = vld [vmem:[%s18619_s30 + $0x2d8] sm:$0xf] }
 0x2c4   : > { %v12947_v41 = vor.u32 %v16499_v13, %v12946_v11  ;;  %v16675_v33 = vld [vmem:[%s18619_s30 + $0x634] sm:$0xf]  ;;  %v16608_v11 = vld [vmem:[%s18619_s30 + $0x418] sm:$0xf0]  ;;  %3633 = vmatpush.bf16.msrb.mxu3 %v13423_v7  ;;  %v12955_v6 = vor.u32 %v16500_v29, %v12954_v28 }
 0x2c5   : > { %v2099_v37 = vmul.f32 %v18820_v34, %v18820_v34  ;;  %v2100_v30 = vmul.f32 %v18823_v35, %v18823_v35  ;;  %v2101_v10 = vmul.f32 %v18826_v36, %v18826_v36  ;;  %v16572_v7 = vld [vmem:[%s18619_s30 + $0x2f8] sm:$0xf0] }
 0x2c6   : > { %3540 = vmatpush.bf16.msra.mxu0 %v12947_v41  ;;  %v16594_v41 = vld [vmem:[%s18619_s30 + $0x3ac] sm:$0xf] }
 0x2c7   : > { %v2106_v38 = vadd.f32 %v2100_v30, %v2099_v37  ;;  %v13668_v37 = vld [vmem:[%s18619_s30 + $0x654] sm:$0xf0]  ;;  %v13347_v44 = vor.u32 %v16594_v41, %v13344_v42 }
 0x2c8   : > { %v13098_v30 = vld [vmem:[%s18619_s30 + $0x1b8] sm:$0xf] }
 0x2c9   : > { %v2107_v39 = vadd.f32 %v2106_v38, %v2101_v10  ;;  %v13671_v10 = vor.u32 %v16675_v33, %v13668_v37  ;;  %v16536_v38 = vld [vmem:[%s18619_s30 + $0x1d8] sm:$0xf0]  ;;  %v16558_v33 = vld [vmem:[%s18619_s30 + $0x28c] sm:$0xf]  ;;  %v13200_v37 = vld [vmem:[%s18619_s30 + $0x2ac] sm:$0xf0] }
 0x2ca   : > { %3541 = vmatpush.bf16.msra.mxu0 %v12911_v54  ;;  %v13099_v13 = vor.u32 %v16536_v38, %v13098_v30  ;;  %v16585_v54 = vld [vmem:[%s18619_s30 + $0x364] sm:$0xf]  ;;  %v16630_v30 = vld [vmem:[%s18619_s30 + $0x4cc] sm:$0xf]  ;;  %v13203_v38 = vor.u32 %v16558_v33, %v13200_v37 }
 0x2cb   : > { %2108 = vadd.xlane.f32.xlu1 %v2107_v39  ;;  %v13386_v39 = vld [vmem:[%s18619_s30 + $0x3f8] sm:$0xf]  ;;  %3606 = vmatpush.bf16.msrb.mxu1 %v13671_v10  ;;  %v13311_v57 = vor.u32 %v16585_v54, %v13308_v55  ;;  %v13455_v54 = vor.u32 %v16621_v50, %v13452_v51  ;;  %v16482_v55 = vld [vmem:[%s18619_s30 + $0x28] sm:$0xf0] }
 0x2cc   : > { %v13387_v40 = vor.u32 %v16608_v11, %v13386_v39  ;;  %3620 = vmatpush.bf16.msrb.mxu2 %v13099_v13  ;;  %v13488_v39 = vld [vmem:[%s18619_s30 + $0x4ec] sm:$0xf0]  ;;  %v16491_v13 = vld [vmem:[%s18619_s30 + $0x70] sm:$0xf0] }
 0x2cd   : > { %v12918_v11 = vld [vmem:[%s18619_s30 + $0x50] sm:$0xf]  ;;  %v13491_v41 = vor.u32 %v16630_v30, %v13488_v39  ;;  %v16689_v39 = vld [vmem:[%s18619_s30 + $0x6a0] sm:$0xf0] }
 0x2ce   : > { %3542 = vmatpush.bf16.msra.mxu0 %v12875_v3  ;;  %3634 = vmatpush.bf16.msrb.mxu3 %v13387_v40  ;;  %v16576_v3 = vld [vmem:[%s18619_s30 + $0x31c] sm:$0xf]  ;;  %v12919_v42 = vor.u32 %v16491_v13, %v12918_v11 }
 0x2cf   : > { %3607 = vmatpush.bf16.msrb.mxu1 %v13635_v48  ;;  %v13275_v9 = vor.u32 %v16576_v3, %v13272_v4  ;;  %v13164_v48 = vld [vmem:[%s18619_s30 + $0x264] sm:$0xf0] }
 0x2d0   : > { %3621 = vmatpush.bf16.msrb.mxu2 %v13063_v49  ;;  %v13167_v49 = vor.u32 %v16549_v47, %v13164_v48 }
 0x2d2   : > { %3591 = vmatpush.bf16.msrb.mxu0 %v13419_v21  ;;  %3635 = vmatpush.bf16.msrb.mxu3 %v13351_v53  ;;  %v13236_v21 = vld [vmem:[%s18619_s30 + $0x2f4] sm:$0xf0]  ;;  %v12882_v53 = vld [vmem:[%s18619_s30 + $0x8] sm:$0xf] }
 0x2d3   : > { %3608 = vmatpush.bf16.msrb.mxu1 %v13599_v61  ;;  %v13239_v23 = vor.u32 %v16567_v20, %v13236_v21  ;;  %v12883_v58 = vor.u32 %v16482_v55, %v12882_v53  ;;  %v13674_v53 = vld [vmem:[%s18619_s30 + $0x638] sm:$0xf] }
 0x2d4   : > { %3622 = vmatpush.bf16.msrb.mxu2 %v13027_v62 }
 0x2d6   : > { %3592 = vmatpush.bf16.msrb.mxu0 %v13383_v8  ;;  %3636 = vmatpush.bf16.msrb.mxu3 %v13315_v1  ;;  %v13243_v8 = vor.u32 %v16572_v7, %v13242_v52 }
 0x2d7   : > { %3609 = vmatpush.bf16.msrb.mxu1 %v13563_v16 }
 0x2d8   : > { %3623 = vmatpush.bf16.msrb.mxu2 %v12991_v17 }
 0x2da   : > { %3593 = vmatpush.bf16.msrb.mxu0 %v13347_v44  ;;  %3637 = vmatpush.bf16.msrb.mxu3 %v13279_v31  ;;  %v16563_v44 = vld [vmem:[%s18619_s30 + $0x2b0] sm:$0xf0]  ;;  %v2072_v31 = vld [vmem:[%s811_s24] sm:$0x7] }
 0x2db   : > { %3610 = vmatpush.bf16.msrb.mxu1 %v13527_v32  ;;  %v13207_v45 = vor.u32 %v16563_v44, %v13206_v43  ;;  %v2154_v29 = vperm.slane %v2072_v31, 0  ;;  %v2155_v32 = vperm.slane %v2072_v31, 1  ;;  %v13424_v44 = vld [vmem:[%s18619_s30 + $0x464] sm:$0xf0] }
 0x2dc   : > { %3624 = vmatpush.bf16.msrb.mxu2 %v12955_v6  ;;  %v2156_v6 = vperm.slane %v2072_v31, 2  ;;  %v13602_v31 = vld [vmem:[%s18619_s30 + $0x5a8] sm:$0xf] }
 0x2de   : > { %3594 = vmatpush.bf16.msrb.mxu0 %v13311_v57  ;;  %3638 = vmatpush.bf16.msrb.mxu3 %v13243_v8  ;;  %v16554_v57 = vld [vmem:[%s18619_s30 + $0x268] sm:$0xf0] }
 0x2df   : > { %3611 = vmatpush.bf16.msrb.mxu1 %v13491_v41  ;;  %v13171_v59 = vor.u32 %v16554_v57, %v13170_v56  ;;  %v13136_v41 = vld [vmem:[%s18619_s30 + $0x224] sm:$0xf0]  ;;  %v16532_v57 = vld [vmem:[%s18619_s30 + $0x1bc] sm:$0xf] }
 0x2e0   : > { %3625 = vmatpush.bf16.msrb.mxu2 %v12919_v42  ;;  %v16613_v42 = vld [vmem:[%s18619_s30 + $0x444] sm:$0xf] }
 0x2e1   : > { %v13427_v55 = vor.u32 %v16613_v42, %v13424_v44  ;;  %v13244_v44 = vld [vmem:[%s18619_s30 + $0x2fc] sm:$0xf0] }
 0x2e2   : > { %3595 = vmatpush.bf16.msrb.mxu0 %v13275_v9  ;;  %3639 = vmatpush.bf16.msrb.mxu3 %v13207_v45  ;;  %v16685_v45 = vld [vmem:[%s18619_s30 + $0x684] sm:$0xf] }
 0x2e3   : > { %3612 = vmatpush.bf16.msrb.mxu1 %v13455_v54  ;;  %v16680_v54 = vld [vmem:[%s18619_s30 + $0x658] sm:$0xf0] }
 0x2e4   : > { %3626 = vmatpush.bf16.msrb.mxu2 %v12883_v58  ;;  %v13100_v58 = vld [vmem:[%s18619_s30 + $0x1dc] sm:$0xf0] }
 0x2e6   : > { %3596 = vmatpush.bf16.msrb.mxu0 %v13239_v23  ;;  %3640 = vmatpush.bf16.msrb.mxu3 %v13171_v59  ;;  %v2143_v23 = vperm.slane %v2071_v14, 2  ;;  %v16604_v59 = vld [vmem:[%s18619_s30 + $0x3fc] sm:$0xf]  ;;  %v16595_v14 = vld [vmem:[%s18619_s30 + $0x3b4] sm:$0xf] }
 0x2ea   : > { %3597 = vmatpush.bf16.msrb.mxu0 %v13203_v38  ;;  %v13710_v38 = vld [vmem:[%s18619_s30 + $0x680] sm:$0xf] }
 0x2eb   : > { %v13711_v47 = vor.u32 %v16689_v39, %v13710_v38  ;;  %v16649_v38 = vld [vmem:[%s18619_s30 + $0x564] sm:$0xf]  ;;  %v13568_v39 = vld [vmem:[%s18619_s30 + $0x584] sm:$0xf0] }
 0x2ee   : > { %3598 = vmatpush.bf16.msrb.mxu0 %v13167_v49 }
 0x336   : > { %v2105_v10 = vpop.xlane.xlu1 %2104 }
 0x337   : > { %v2110_v40 = vmul.f32 %v2105_v10, %v18792_v2 }
 0x339   : > { %v2112_v46 = vadd.f32 1e-06, %v2110_v40  ;;  %v16541_v40 = vld [vmem:[%s18619_s30 + $0x204] sm:$0xf] }
 0x33a   : > { %v13139_v51 = vor.u32 %v16541_v40, %v13136_v41  ;;  %v13530_v40 = vld [vmem:[%s18619_s30 + $0x518] sm:$0xf]  ;;  %v16644_v41 = vld [vmem:[%s18619_s30 + $0x538] sm:$0xf0] }
 0x33b   : > { %17536 = vrsqrt.f32 %v2112_v46  ;;  %vm2120_vm2 = vweird.f32 %v2112_v46 }
 0x33e   : > { %v2109_v60 = vpop.xlane.xlu1 %2108 }
 0x33f   : > { %v2111_v61 = vmul.f32 %v2109_v60, %v18792_v2  ;;  %v13388_v60 = vld [vmem:[%s18619_s30 + $0x41c] sm:$0xf0] }
 0x341   : > { %v17537_v62 = vpop.eup %17536  ;;  %v2113_v63 = vadd.f32 1e-06, %v2111_v61  ;;  %v16676_v61 = vld [vmem:[%s18619_s30 + $0x63c] sm:$0xf] }
 0x342   : > { %v2115_v0 = vmul.f32 %v17537_v62, %v2112_v46  ;;  %vm2121_vm1 = vweird.f32 %v17537_v62  ;;  %v13712_v46 = vld [vmem:[%s18619_s30 + $0x6a4] sm:$0xf0] }
 0x343   : > { %17538 = vrsqrt.f32 %v2113_v63  ;;  %vm2122_vm3 = vmor %vm2120_vm2, %vm2121_vm1  ;;  %vm2130_vm5 = vweird.f32 %v2113_v63  ;;  %v13715_v56 = vor.u32 %v16685_v45, %v13712_v46  ;;  %v16640_v45 = vld [vmem:[%s18619_s30 + $0x51c] sm:$0xf]  ;;  %v13532_v46 = vld [vmem:[%s18619_s30 + $0x53c] sm:$0xf0] }
 0x344   : > { %v2116_v1 = vmul.f32 %v17537_v62, %v2115_v0  ;;  %v13103_v0 = vor.u32 %v16532_v57, %v13100_v58  ;;  %v16487_v57 = vld [vmem:[%s18619_s30 + $0x54] sm:$0xf]  ;;  %v12920_v58 = vld [vmem:[%s18619_s30 + $0x74] sm:$0xf0] }
 0x346   : > { %v2117_v3 = vmul.f32 0.5, %v2116_v1  ;;  %v13638_v1 = vld [vmem:[%s18619_s30 + $0x5f0] sm:$0xf] }
 0x348   : > { %v2118_v4 = vsub.f32 1.5, %v2117_v3  ;;  %v16671_v3 = vld [vmem:[%s18619_s30 + $0x610] sm:$0xf0] }
 0x349   : > { %v17539_v5 = vpop.eup %17538 }
 0x34a   : > { %v2119_v9 = vmul.f32 %v17537_v62, %v2118_v4  ;;  %v2125_v12 = vmul.f32 %v17539_v5, %v2113_v63  ;;  %vm2131_vm4 = vweird.f32 %v17539_v5  ;;  %v13675_v63 = vor.u32 %v16680_v54, %v13674_v53  ;;  %v13494_v53 = vld [vmem:[%s18619_s30 + $0x4d0] sm:$0xf]  ;;  %v16635_v54 = vld [vmem:[%s18619_s30 + $0x4f0] sm:$0xf0] }
 0x34b   : > { %vm2132_vm6 = vmor %vm2130_vm5, %vm2131_vm4  ;;  %v13391_v4 = vor.u32 %v16604_v59, %v13388_v60  ;;  %v16559_v59 = vld [vmem:[%s18619_s30 + $0x294] sm:$0xf]  ;;  %v13208_v60 = vld [vmem:[%s18619_s30 + $0x2b4] sm:$0xf0] }
 0x34c   : > { %v2126_v15 = vmul.f32 %v17539_v5, %v2125_v12  ;;  %v2123_v16 = vsel %vm2122_vm3, %v17537_v62, %v2119_v9  ;;  %v13676_v62 = vld [vmem:[%s18619_s30 + $0x65c] sm:$0xf0]  ;;  %v16523_v9 = vld [vmem:[%s18619_s30 + $0x174] sm:$0xf]  ;;  %v13064_v12 = vld [vmem:[%s18619_s30 + $0x194] sm:$0xf0] }
 0x34d   : > { %v2134_v20 = vmul.f32 %v2123_v16, %v18804_v25  ;;  %v2135_v21 = vmul.f32 %v2123_v16, %v18807_v26  ;;  %v2136_v24 = vmul.f32 %v2123_v16, %v18810_v27  ;;  %v16667_v16 = vld [vmem:[%s18619_s30 + $0x5f4] sm:$0xf] }
 0x34e   : > { %v2127_v17 = vmul.f32 0.5, %v2126_v15  ;;  %v13352_v15 = vld [vmem:[%s18619_s30 + $0x3d4] sm:$0xf0] }
 0x34f   : > { %v2147_v52 = vmul.f32 %v2141_v18, %v2134_v20  ;;  %v2148_v25 = vmul.f32 %v2142_v19, %v2135_v21  ;;  %v2149_v26 = vmul.f32 %v2143_v23, %v2136_v24  ;;  %v16662_v20 = vld [vmem:[%s18619_s30 + $0x5c8] sm:$0xf0]  ;;  %v13355_v21 = vor.u32 %v16595_v14, %v13352_v15  ;;  %v13028_v24 = vld [vmem:[%s18619_s30 + $0x14c] sm:$0xf0] }
 0x350   : > { %v2128_v22 = vsub.f32 1.5, %v2127_v17  ;;  %v13640_v17 = vld [vmem:[%s18619_s30 + $0x614] sm:$0xf0]  ;;  %v16550_v14 = vld [vmem:[%s18619_s30 + $0x24c] sm:$0xf] }
 0x351   : > { %v2160_v11 = vadd.f32 %v2154_v29, %v2147_v52  ;;  %v2161_v13 = vadd.f32 %v2155_v32, %v2148_v25  ;;  %v13603_v52 = vor.u32 %v16662_v20, %v13602_v31  ;;  %v13172_v15 = vld [vmem:[%s18619_s30 + $0x26c] sm:$0xf0]  ;;  %v13430_v31 = vld [vmem:[%s18619_s30 + $0x448] sm:$0xf]  ;;  %v16618_v20 = vld [vmem:[%s18619_s30 + $0x468] sm:$0xf0] }
 0x352   : > { %v2129_v28 = vmul.f32 %v17539_v5, %v2128_v22  ;;  %v13643_v22 = vor.u32 %v16667_v16, %v13640_v17  ;;  %v16622_v16 = vld [vmem:[%s18619_s30 + $0x48c] sm:$0xf]  ;;  %v13460_v17 = vld [vmem:[%s18619_s30 + $0x4ac] sm:$0xf0] }
 0x354   : > { %v2133_v7 = vsel %vm2132_vm6, %v17539_v5, %v2129_v28  ;;  %v13679_v5 = vor.u32 %v16676_v61, %v13676_v62  ;;  %v16586_v28 = vld [vmem:[%s18619_s30 + $0x36c] sm:$0xf]  ;;  %v16631_v61 = vld [vmem:[%s18619_s30 + $0x4d4] sm:$0xf]  ;;  %v13496_v62 = vld [vmem:[%s18619_s30 + $0x4f4] sm:$0xf0] }
 0x355   : > { %v2137_v8 = vmul.f32 %v2133_v7, %v18820_v34  ;;  %v2138_v33 = vmul.f32 %v2133_v7, %v18823_v35  ;;  %v2139_v27 = vmul.f32 %v2133_v7, %v18826_v36  ;;  %v2162_v34 = vadd.f32 %v2156_v6, %v2149_v26  ;;  %v13566_v7 = vld [vmem:[%s18619_s30 + $0x560] sm:$0xf]  ;;  %v16653_v26 = vld [vmem:[%s18619_s30 + $0x580] sm:$0xf0] }
 0x357   : > { %v2150_v37 = vmul.f32 %v2141_v18, %v2137_v8  ;;  %v2151_v30 = vmul.f32 %v2142_v19, %v2138_v33  ;;  %v2152_v10 = vmul.f32 %v2143_v23, %v2139_v27  ;;  %v13639_v18 = vor.u32 %v16671_v3, %v13638_v1  ;;  %v16514_v23 = vld [vmem:[%s18619_s30 + $0x12c] sm:$0xf]  ;;  %v16505_v27 = vld [vmem:[%s18619_s30 + $0xe4] sm:$0xf] }
 0x358   : > { %v13067_v19 = vor.u32 %v16523_v9, %v13064_v12  ;;  %v13031_v25 = vor.u32 %v16514_v23, %v13028_v24  ;;  %v12923_v1 = vor.u32 %v16487_v57, %v12920_v58  ;;  %v16626_v3 = vld [vmem:[%s18619_s30 + $0x4a8] sm:$0xf0]  ;;  %v13211_v9 = vor.u32 %v16559_v59, %v13208_v60  ;;  %v13322_v57 = vld [vmem:[%s18619_s30 + $0x370] sm:$0xf]  ;;  %v16591_v58 = vld [vmem:[%s18619_s30 + $0x390] sm:$0xf0] }
 0x359   : > { %v2163_v35 = vadd.f32 %v2154_v29, %v2150_v37  ;;  %v2164_v43 = vadd.f32 %v2155_v32, %v2151_v30  ;;  %v2165_v36 = vadd.f32 %v2156_v6, %v2152_v10  ;;  %v13316_v29 = vld [vmem:[%s18619_s30 + $0x38c] sm:$0xf0]  ;;  %v16658_v32 = vld [vmem:[%s18619_s30 + $0x5ac] sm:$0xf]  ;;  %v12992_v37 = vld [vmem:[%s18619_s30 + $0x104] sm:$0xf0]  ;;  %v13499_v12 = vor.u32 %v16631_v61, %v13496_v62 }
 0x35a   : > { %v13604_v6 = vld [vmem:[%s18619_s30 + $0x5cc] sm:$0xf0]  ;;  %v13319_v8 = vor.u32 %v16586_v28, %v13316_v29  ;;  %v16577_v30 = vld [vmem:[%s18619_s30 + $0x324] sm:$0xf]  ;;  %v13280_v10 = vld [vmem:[%s18619_s30 + $0x344] sm:$0xf0] }
 0x35b   : > { %v18942_v48 = vpack.c.bf16 %v2163_v35, %v2160_v11  ;;  %v18944_v49 = vpack.c.bf16 %v2164_v43, %v2161_v13  ;;  %v18946_v50 = vpack.c.bf16 %v2165_v36, %v2162_v34  ;;  %v13607_v33 = vor.u32 %v16658_v32, %v13604_v6  ;;  %v16496_v35 = vld [vmem:[%s18619_s30 + $0x9c] sm:$0xf]  ;;  %v12956_v43 = vld [vmem:[%s18619_s30 + $0xbc] sm:$0xf0]  ;;  %v16690_v24 = vld [vmem:[%s18619_s30 + $0x6a8] sm:$0xf0] }
 0x35c   : > { %v13567_v11 = vor.u32 %v16653_v26, %v13566_v7  ;;  %v12995_v13 = vor.u32 %v16505_v27, %v12992_v37  ;;  %v13283_v42 = vor.u32 %v16577_v30, %v13280_v10  ;;  %v13571_v34 = vor.u32 %v16649_v38, %v13568_v39  ;;  %v16568_v36 = vld [vmem:[%s18619_s30 + $0x2dc] sm:$0xf]  ;;  %v16542_v28 = vld [vmem:[%s18619_s30 + $0x20c] sm:$0xf]  ;;  %v13144_v29 = vld [vmem:[%s18619_s30 + $0x22c] sm:$0xf0] }
 0x35d   : > { %3543 = vmatmul.bf16.vlgmr.msra.gmra.mxu0 %v18942_v48  ;;  %3557 = vmatmul.bf16.vlgmr.msra.gmra.mxu1 %v18944_v49  ;;  %v13175_v32 = vor.u32 %v16550_v14, %v13172_v15  ;;  %v13463_v6 = vor.u32 %v16622_v16, %v13460_v17  ;;  %v13106_v7 = vld [vmem:[%s18619_s30 + $0x1c0] sm:$0xf]  ;;  %v16537_v26 = vld [vmem:[%s18619_s30 + $0x1e0] sm:$0xf0]  ;;  %v13108_v39 = vld [vmem:[%s18619_s30 + $0x1e4] sm:$0xf0] }
 0x35e   : > { %3571 = vmatmul.bf16.vlgmr.msra.gmra.mxu2 %v18946_v50  ;;  %3585 = vmatmul.bf16.vlgmr.msra.gmra.mxu3 %v18942_v48  ;;  %v13394_v27 = vld [vmem:[%s18619_s30 + $0x400] sm:$0xf]  ;;  %v16609_v37 = vld [vmem:[%s18619_s30 + $0x420] sm:$0xf0]  ;;  %v13610_v59 = vld [vmem:[%s18619_s30 + $0x5b0] sm:$0xf] }
 0x35f   : > { %3647 = vmatpush.bf16.msra.mxu0 %v13711_v47  ;;  %3661 = vmatpush.bf16.msra.mxu1 %v13139_v51  ;;  %v13531_v47 = vor.u32 %v16644_v41, %v13530_v40  ;;  %v12959_v51 = vor.u32 %v16496_v35, %v12956_v43  ;;  %v13682_v30 = vld [vmem:[%s18619_s30 + $0x640] sm:$0xf]  ;;  %v16681_v10 = vld [vmem:[%s18619_s30 + $0x660] sm:$0xf0]  ;;  %v13070_v40 = vld [vmem:[%s18619_s30 + $0x178] sm:$0xf] }
 0x360   : > { %3675 = vmatpush.bf16.msra.mxu2 %v13427_v55  ;;  %3689 = vmatpush.bf16.msra.mxu3 %v13715_v56  ;;  %v13247_v55 = vor.u32 %v16568_v36, %v13244_v44  ;;  %v13535_v56 = vor.u32 %v16640_v45, %v13532_v46  ;;  %v16533_v38 = vld [vmem:[%s18619_s30 + $0x1c4] sm:$0xf]  ;;  %v16528_v41 = vld [vmem:[%s18619_s30 + $0x198] sm:$0xf0]  ;;  %v13358_v35 = vld [vmem:[%s18619_s30 + $0x3b8] sm:$0xf] }
 0x361   : > { %v16600_v43 = vld [vmem:[%s18619_s30 + $0x3d8] sm:$0xf0]  ;;  %v13646_v36 = vld [vmem:[%s18619_s30 + $0x5f8] sm:$0xf]  ;;  %v13072_v46 = vld [vmem:[%s18619_s30 + $0x19c] sm:$0xf0] }
 0x362   : > { %v16672_v44 = vld [vmem:[%s18619_s30 + $0x618] sm:$0xf0]  ;;  %v16663_v60 = vld [vmem:[%s18619_s30 + $0x5d0] sm:$0xf0]  ;;  %v13036_v62 = vld [vmem:[%s18619_s30 + $0x154] sm:$0xf0] }
 0x363   : > { %3648 = vmatpush.bf16.msra.mxu0 %v13675_v63  ;;  %3662 = vmatpush.bf16.msra.mxu1 %v13103_v0  ;;  %v13458_v63 = vld [vmem:[%s18619_s30 + $0x488] sm:$0xf]  ;;  %v13495_v0 = vor.u32 %v16635_v54, %v13494_v53  ;;  %v16524_v45 = vld [vmem:[%s18619_s30 + $0x17c] sm:$0xf]  ;;  %v13034_v53 = vld [vmem:[%s18619_s30 + $0x130] sm:$0xf] }
 0x364   : > { %3676 = vmatpush.bf16.msra.mxu2 %v13391_v4  ;;  %3690 = vmatpush.bf16.msra.mxu3 %v13679_v5  ;;  %v16478_v4 = vld [vmem:[%s18619_s30 + $0xc] sm:$0xf]  ;;  %v12884_v5 = vld [vmem:[%s18619_s30 + $0x2c] sm:$0xf0]  ;;  %v16519_v54 = vld [vmem:[%s18619_s30 + $0x150] sm:$0xf0] }
 0x365   : > { %v12887_v23 = vor.u32 %v16478_v4, %v12884_v5  ;;  %v16515_v61 = vld [vmem:[%s18619_s30 + $0x134] sm:$0xf]  ;;  %v13611_v4 = vor.u32 %v16663_v60, %v13610_v59  ;;  %v13574_v14 = vld [vmem:[%s18619_s30 + $0x568] sm:$0xf]  ;;  %v16654_v15 = vld [vmem:[%s18619_s30 + $0x588] sm:$0xf0] }
 0x366   : > { %v13039_v5 = vor.u32 %v16515_v61, %v13036_v62  ;;  %v16506_v16 = vld [vmem:[%s18619_s30 + $0xec] sm:$0xf]  ;;  %v13000_v17 = vld [vmem:[%s18619_s30 + $0x10c] sm:$0xf0]  ;;  %v16619_v60 = vld [vmem:[%s18619_s30 + $0x470] sm:$0xf0] }
 0x367   : > { %3649 = vmatpush.bf16.msra.mxu0 %v13639_v18  ;;  %3663 = vmatpush.bf16.msra.mxu1 %v13067_v19  ;;  %v13142_v18 = vld [vmem:[%s18619_s30 + $0x208] sm:$0xf]  ;;  %v16546_v19 = vld [vmem:[%s18619_s30 + $0x228] sm:$0xf0]  ;;  %v13438_v59 = vld [vmem:[%s18619_s30 + $0x450] sm:$0xf] }
 0x368   : > { %3677 = vmatpush.bf16.msra.mxu2 %v13355_v21  ;;  %3691 = vmatpush.bf16.msra.mxu3 %v13643_v22  ;;  %v13718_v21 = vld [vmem:[%s18619_s30 + $0x688] sm:$0xf]  ;;  %v13459_v22 = vor.u32 %v16626_v3, %v13458_v63  ;;  %v13035_v63 = vor.u32 %v16519_v54, %v13034_v53  ;;  %v16510_v3 = vld [vmem:[%s18619_s30 + $0x108] sm:$0xf0]  ;;  %v13720_v54 = vld [vmem:[%s18619_s30 + $0x6ac] sm:$0xf0] }
 0x369   : > { %v16686_v53 = vld [vmem:[%s18619_s30 + $0x68c] sm:$0xf] }
 0x36b   : > { %3650 = vmatpush.bf16.msra.mxu0 %v13603_v52  ;;  %3664 = vmatpush.bf16.msra.mxu1 %v13031_v25  ;;  %v13143_v52 = vor.u32 %v16546_v19, %v13142_v18  ;;  %v13431_v25 = vor.u32 %v16618_v20, %v13430_v31  ;;  %v12962_v31 = vld [vmem:[%s18619_s30 + $0xa0] sm:$0xf]  ;;  %v16501_v20 = vld [vmem:[%s18619_s30 + $0xc0] sm:$0xf0] }
 0x36c   : > { %3678 = vmatpush.bf16.msra.mxu2 %v13319_v8  ;;  %3692 = vmatpush.bf16.msra.mxu3 %v13607_v33  ;;  %v13719_v8 = vor.u32 %v16690_v24, %v13718_v21  ;;  %v13147_v33 = vor.u32 %v16542_v28, %v13144_v29  ;;  %v13575_v21 = vor.u32 %v16654_v15, %v13574_v14  ;;  %v16573_v24 = vld [vmem:[%s18619_s30 + $0x300] sm:$0xf0]  ;;  %v13538_v28 = vld [vmem:[%s18619_s30 + $0x520] sm:$0xf]  ;;  %v13114_v14 = vld [vmem:[%s18619_s30 + $0x1c8] sm:$0xf] }
 0x36d   : > { %3599 = vmatmul.bf16.vlgmr.msrb.gmra.mxu0 %v18944_v49  ;;  %3613 = vmatmul.bf16.vlgmr.msrb.gmra.mxu1 %v18946_v50  ;;  %v16645_v29 = vld [vmem:[%s18619_s30 + $0x540] sm:$0xf0]  ;;  %v16538_v15 = vld [vmem:[%s18619_s30 + $0x1e8] sm:$0xf0] }
 0x36e   : > { %3627 = vmatmul.bf16.vlgmr.msrb.gmra.mxu2 %v18942_v48  ;;  %3641 = vmatmul.bf16.vlgmr.msrb.gmra.mxu3 %v18944_v49 }
 0x36f   : > { %3651 = vmatpush.bf16.msra.mxu0 %v13567_v11  ;;  %3665 = vmatpush.bf16.msra.mxu1 %v12995_v13  ;;  %v13107_v11 = vor.u32 %v16537_v26, %v13106_v7  ;;  %v13395_v13 = vor.u32 %v16609_v37, %v13394_v27  ;;  %v12926_v7 = vld [vmem:[%s18619_s30 + $0x58] sm:$0xf]  ;;  %v16492_v26 = vld [vmem:[%s18619_s30 + $0x78] sm:$0xf0] }
 0x370   : > { %3679 = vmatpush.bf16.msra.mxu2 %v13283_v42  ;;  %3693 = vmatpush.bf16.msra.mxu3 %v13571_v34  ;;  %v13683_v42 = vor.u32 %v16681_v10, %v13682_v30  ;;  %v13111_v34 = vor.u32 %v16533_v38, %v13108_v39  ;;  %v13214_v27 = vld [vmem:[%s18619_s30 + $0x298] sm:$0xf]  ;;  %v16564_v37 = vld [vmem:[%s18619_s30 + $0x2b8] sm:$0xf0]  ;;  %v12928_v39 = vld [vmem:[%s18619_s30 + $0x7c] sm:$0xf0] }
 0x371   : > { %v13502_v30 = vld [vmem:[%s18619_s30 + $0x4d8] sm:$0xf]  ;;  %v16636_v10 = vld [vmem:[%s18619_s30 + $0x4f8] sm:$0xf0] }
 0x372   : > { %v16488_v38 = vld [vmem:[%s18619_s30 + $0x5c] sm:$0xf] }
 0x373   : > { %3652 = vmatpush.bf16.msra.mxu0 %v13531_v47  ;;  %3666 = vmatpush.bf16.msra.mxu1 %v12959_v51  ;;  %v13071_v47 = vor.u32 %v16528_v41, %v13070_v40  ;;  %v13359_v51 = vor.u32 %v16600_v43, %v13358_v35  ;;  %v13215_v40 = vor.u32 %v16564_v37, %v13214_v27  ;;  %v16483_v41 = vld [vmem:[%s18619_s30 + $0x30] sm:$0xf0]  ;;  %v13612_v37 = vld [vmem:[%s18619_s30 + $0x5d4] sm:$0xf0] }
 0x374   : > { %3680 = vmatpush.bf16.msra.mxu2 %v13247_v55  ;;  %3694 = vmatpush.bf16.msra.mxu3 %v13535_v56  ;;  %v13647_v55 = vor.u32 %v16672_v44, %v13646_v36  ;;  %v13075_v56 = vor.u32 %v16524_v45, %v13072_v46  ;;  %v13503_v35 = vor.u32 %v16636_v10, %v13502_v30  ;;  %v13466_v36 = vld [vmem:[%s18619_s30 + $0x490] sm:$0xf]  ;;  %v16627_v44 = vld [vmem:[%s18619_s30 + $0x4b0] sm:$0xf0]  ;;  %v12892_v46 = vld [vmem:[%s18619_s30 + $0x34] sm:$0xf0] }
 0x375   : > { %v12931_v43 = vor.u32 %v16488_v38, %v12928_v39  ;;  %v16479_v45 = vld [vmem:[%s18619_s30 + $0x14] sm:$0xf]  ;;  %v13467_v61 = vor.u32 %v16627_v44, %v13466_v36  ;;  %v13042_v30 = vld [vmem:[%s18619_s30 + $0x138] sm:$0xf]  ;;  %v16520_v10 = vld [vmem:[%s18619_s30 + $0x158] sm:$0xf0] }
 0x376   : > { %v12895_v62 = vor.u32 %v16479_v45, %v12892_v46  ;;  %v16659_v27 = vld [vmem:[%s18619_s30 + $0x5b4] sm:$0xf]  ;;  %v13330_v38 = vld [vmem:[%s18619_s30 + $0x378] sm:$0xf]  ;;  %v16592_v39 = vld [vmem:[%s18619_s30 + $0x398] sm:$0xf0] }
 0x377   : > { %3653 = vmatpush.bf16.msra.mxu0 %v13495_v0  ;;  %3667 = vmatpush.bf16.msra.mxu1 %v12923_v1  ;;  %v13323_v0 = vor.u32 %v16591_v58, %v13322_v57  ;;  %v12998_v1 = vld [vmem:[%s18619_s30 + $0xe8] sm:$0xf]  ;;  %v16547_v58 = vld [vmem:[%s18619_s30 + $0x230] sm:$0xf0]  ;;  %v13006_v36 = vld [vmem:[%s18619_s30 + $0xf0] sm:$0xf] }
 0x378   : > { %3681 = vmatpush.bf16.msra.mxu2 %v13211_v9  ;;  %3695 = vmatpush.bf16.msra.mxu3 %v13499_v12  ;;  %v13286_v9 = vld [vmem:[%s18619_s30 + $0x328] sm:$0xf]  ;;  %v16582_v12 = vld [vmem:[%s18619_s30 + $0x348] sm:$0xf0]  ;;  %v12999_v18 = vor.u32 %v16510_v3, %v12998_v1  ;;  %v16605_v1 = vld [vmem:[%s18619_s30 + $0x404] sm:$0xf] }
 0x379   : > { %v13287_v19 = vor.u32 %v16582_v12, %v13286_v9  ;;  %v13396_v3 = vld [vmem:[%s18619_s30 + $0x424] sm:$0xf0]  ;;  %v16677_v9 = vld [vmem:[%s18619_s30 + $0x644] sm:$0xf]  ;;  %v16511_v44 = vld [vmem:[%s18619_s30 + $0x110] sm:$0xf0] }
 0x37a   : > { %v13684_v12 = vld [vmem:[%s18619_s30 + $0x664] sm:$0xf0]  ;;  %v13294_v45 = vld [vmem:[%s18619_s30 + $0x330] sm:$0xf]  ;;  %v16583_v46 = vld [vmem:[%s18619_s30 + $0x350] sm:$0xf0] }
 0x37b   : > { %3654 = vmatpush.bf16.msra.mxu0 %v13459_v22  ;;  %3668 = vmatpush.bf16.msra.mxu1 %v12887_v23  ;;  %v13003_v22 = vor.u32 %v16506_v16, %v13000_v17  ;;  %v13250_v23 = vld [vmem:[%s18619_s30 + $0x2e0] sm:$0xf]  ;;  %v13402_v16 = vld [vmem:[%s18619_s30 + $0x408] sm:$0xf]  ;;  %v16610_v17 = vld [vmem:[%s18619_s30 + $0x428] sm:$0xf0] }
 0x37c   : > { %3682 = vmatpush.bf16.msra.mxu2 %v13175_v32  ;;  %3696 = vmatpush.bf16.msra.mxu3 %v13463_v6  ;;  %v16497_v32 = vld [vmem:[%s18619_s30 + $0xa4] sm:$0xf]  ;;  %v12964_v6 = vld [vmem:[%s18619_s30 + $0xc4] sm:$0xf0] }
 0x37e   : > { %3655 = vmatmul.bf16.vlgmr.msra.gmra.mxu0 %v18946_v50  ;;  %3669 = vmatmul.bf16.vlgmr.msra.gmra.mxu1 %v18942_v48 }
 0x37f   : > { %3703 = vmatpush.bf16.msrb.mxu0 %v13143_v52  ;;  %3717 = vmatpush.bf16.msrb.mxu1 %v13431_v25  ;;  %v12963_v52 = vor.u32 %v16501_v20, %v12962_v31  ;;  %v13251_v25 = vor.u32 %v16573_v24, %v13250_v23  ;;  %v16596_v31 = vld [vmem:[%s18619_s30 + $0x3bc] sm:$0xf]  ;;  %v13360_v20 = vld [vmem:[%s18619_s30 + $0x3dc] sm:$0xf0] }
 0x380   : > { %3731 = vmatpush.bf16.msrb.mxu2 %v13719_v8  ;;  %3745 = vmatpush.bf16.msrb.mxu3 %v13147_v33  ;;  %v13539_v8 = vor.u32 %v16645_v29, %v13538_v28  ;;  %v12967_v33 = vor.u32 %v16497_v32, %v12964_v6  ;;  %v16668_v23 = vld [vmem:[%s18619_s30 + $0x5fc] sm:$0xf]  ;;  %v13648_v24 = vld [vmem:[%s18619_s30 + $0x61c] sm:$0xf0]  ;;  %v16529_v29 = vld [vmem:[%s18619_s30 + $0x1a0] sm:$0xf0] }
 0x381   : > { %3683 = vmatmul.bf16.vlgmr.msra.gmra.mxu2 %v18944_v49  ;;  %3697 = vmatmul.bf16.vlgmr.msra.gmra.mxu3 %v18946_v50  ;;  %v13078_v28 = vld [vmem:[%s18619_s30 + $0x180] sm:$0xf]  ;;  %v16601_v6 = vld [vmem:[%s18619_s30 + $0x3e0] sm:$0xf0] }
 0x382   : > { %v13366_v32 = vld [vmem:[%s18619_s30 + $0x3c0] sm:$0xf] }
 0x383   : > { %3704 = vmatpush.bf16.msrb.mxu0 %v13107_v11  ;;  %3718 = vmatpush.bf16.msrb.mxu1 %v13395_v13  ;;  %v12890_v11 = vld [vmem:[%s18619_s30 + $0x10] sm:$0xf]  ;;  %v12927_v13 = vor.u32 %v16492_v26, %v12926_v7  ;;  %v16587_v7 = vld [vmem:[%s18619_s30 + $0x374] sm:$0xf]  ;;  %v13324_v26 = vld [vmem:[%s18619_s30 + $0x394] sm:$0xf0] }
 0x384   : > { %3732 = vmatpush.bf16.msrb.mxu2 %v13683_v42  ;;  %3746 = vmatpush.bf16.msrb.mxu3 %v13111_v34  ;;  %v13178_v42 = vld [vmem:[%s18619_s30 + $0x250] sm:$0xf]  ;;  %v16555_v34 = vld [vmem:[%s18619_s30 + $0x270] sm:$0xf0] }
 0x385   : > { %v13179_v57 = vor.u32 %v16555_v34, %v13178_v42  ;;  %v13043_v42 = vor.u32 %v16520_v10, %v13042_v30  ;;  %v13331_v34 = vor.u32 %v16592_v39, %v13330_v38  ;;  %v16687_v30 = vld [vmem:[%s18619_s30 + $0x694] sm:$0xf]  ;;  %v13728_v10 = vld [vmem:[%s18619_s30 + $0x6b4] sm:$0xf0] }
 0x387   : > { %3705 = vmatpush.bf16.msrb.mxu0 %v13071_v47  ;;  %3719 = vmatpush.bf16.msrb.mxu1 %v13359_v51  ;;  %v16614_v47 = vld [vmem:[%s18619_s30 + $0x44c] sm:$0xf]  ;;  %v13432_v51 = vld [vmem:[%s18619_s30 + $0x46c] sm:$0xf0] }
 0x388   : > { %3733 = vmatpush.bf16.msrb.mxu2 %v13647_v55  ;;  %3747 = vmatpush.bf16.msrb.mxu3 %v13075_v56  ;;  %v13150_v55 = vld [vmem:[%s18619_s30 + $0x210] sm:$0xf]  ;;  %v12891_v56 = vor.u32 %v16483_v41, %v12890_v11  ;;  %v13327_v11 = vor.u32 %v16587_v7, %v13324_v26  ;;  %v16543_v7 = vld [vmem:[%s18619_s30 + $0x214] sm:$0xf]  ;;  %v13152_v26 = vld [vmem:[%s18619_s30 + $0x234] sm:$0xf0] }
 0x389   : > { %v13288_v41 = vld [vmem:[%s18619_s30 + $0x34c] sm:$0xf0] }
 0x38b   : > { %3706 = vmatpush.bf16.msrb.mxu0 %v13035_v63  ;;  %3720 = vmatpush.bf16.msrb.mxu1 %v13323_v0  ;;  %v13435_v63 = vor.u32 %v16614_v47, %v13432_v51  ;;  %v13723_v0 = vor.u32 %v16686_v53, %v13720_v54  ;;  %v16569_v53 = vld [vmem:[%s18619_s30 + $0x2e4] sm:$0xf]  ;;  %v13252_v54 = vld [vmem:[%s18619_s30 + $0x304] sm:$0xf0] }
 0x38c   : > { %3734 = vmatpush.bf16.msrb.mxu2 %v13611_v4  ;;  %3748 = vmatpush.bf16.msrb.mxu3 %v13039_v5  ;;  %v13151_v4 = vor.u32 %v16547_v58, %v13150_v55  ;;  %v13439_v5 = vor.u32 %v16619_v60, %v13438_v59  ;;  %v13007_v55 = vor.u32 %v16511_v44, %v13006_v36  ;;  %v13540_v58 = vld [vmem:[%s18619_s30 + $0x544] sm:$0xf0]  ;;  %v16502_v60 = vld [vmem:[%s18619_s30 + $0xc8] sm:$0xf0]  ;;  %v13404_v44 = vld [vmem:[%s18619_s30 + $0x42c] sm:$0xf0] }
 0x38d   : > { %v12970_v59 = vld [vmem:[%s18619_s30 + $0xa8] sm:$0xf]  ;;  %v16606_v36 = vld [vmem:[%s18619_s30 + $0x40c] sm:$0xf] }
 0x38f   : > { %3707 = vmatpush.bf16.msrb.mxu0 %v12999_v18  ;;  %3721 = vmatpush.bf16.msrb.mxu1 %v13287_v19  ;;  %v13399_v18 = vor.u32 %v16605_v1, %v13396_v3  ;;  %v13687_v19 = vor.u32 %v16677_v9, %v13684_v12  ;;  %v16560_v1 = vld [vmem:[%s18619_s30 + $0x29c] sm:$0xf]  ;;  %v13216_v3 = vld [vmem:[%s18619_s30 + $0x2bc] sm:$0xf0] }
 0x390   : > { %3735 = vmatpush.bf16.msrb.mxu2 %v13575_v21  ;;  %3749 = vmatpush.bf16.msrb.mxu3 %v13003_v22  ;;  %v13115_v21 = vor.u32 %v16538_v15, %v13114_v14  ;;  %v13403_v22 = vor.u32 %v16610_v17, %v13402_v16  ;;  %v16632_v9 = vld [vmem:[%s18619_s30 + $0x4dc] sm:$0xf]  ;;  %v13504_v12 = vld [vmem:[%s18619_s30 + $0x4fc] sm:$0xf0]  ;;  %v16493_v15 = vld [vmem:[%s18619_s30 + $0x80] sm:$0xf0] }
 0x391   : > { %v12934_v14 = vld [vmem:[%s18619_s30 + $0x60] sm:$0xf]  ;;  %v16565_v17 = vld [vmem:[%s18619_s30 + $0x2c0] sm:$0xf0] }
 0x392   : > { %v13222_v16 = vld [vmem:[%s18619_s30 + $0x2a0] sm:$0xf] }
 0x393   : > { %3708 = vmatpush.bf16.msrb.mxu0 %v12963_v52  ;;  %3722 = vmatpush.bf16.msrb.mxu1 %v13251_v25  ;;  %v13363_v52 = vor.u32 %v16596_v31, %v13360_v20  ;;  %v13651_v25 = vor.u32 %v16668_v23, %v13648_v24  ;;  %v13507_v31 = vor.u32 %v16632_v9, %v13504_v12  ;;  %v13180_v20 = vld [vmem:[%s18619_s30 + $0x274] sm:$0xf0]  ;;  %v16516_v9 = vld [vmem:[%s18619_s30 + $0x13c] sm:$0xf]  ;;  %v13044_v12 = vld [vmem:[%s18619_s30 + $0x15c] sm:$0xf0] }
 0x394   : > { %3736 = vmatpush.bf16.msrb.mxu2 %v13539_v8  ;;  %3750 = vmatpush.bf16.msrb.mxu3 %v12967_v33  ;;  %v13079_v8 = vor.u32 %v16529_v29, %v13078_v28  ;;  %v13367_v33 = vor.u32 %v16601_v6, %v13366_v32  ;;  %v12935_v23 = vor.u32 %v16493_v15, %v12934_v14  ;;  %v12898_v28 = vld [vmem:[%s18619_s30 + $0x18] sm:$0xf]  ;;  %v16484_v29 = vld [vmem:[%s18619_s30 + $0x38] sm:$0xf0]  ;;  %v13332_v15 = vld [vmem:[%s18619_s30 + $0x39c] sm:$0xf0] }
 0x395   : > { %v13223_v24 = vor.u32 %v16565_v17, %v13222_v16  ;;  %v13186_v32 = vld [vmem:[%s18619_s30 + $0x258] sm:$0xf]  ;;  %v16556_v6 = vld [vmem:[%s18619_s30 + $0x278] sm:$0xf0]  ;;  %v12899_v38 = vor.u32 %v16484_v29, %v12898_v28  ;;  %v13620_v17 = vld [vmem:[%s18619_s30 + $0x5dc] sm:$0xf0] }
 0x396   : > { %v13187_v39 = vor.u32 %v16556_v6, %v13186_v32  ;;  %v16588_v14 = vld [vmem:[%s18619_s30 + $0x37c] sm:$0xf]  ;;  %v16579_v28 = vld [vmem:[%s18619_s30 + $0x334] sm:$0xf]  ;;  %v13296_v29 = vld [vmem:[%s18619_s30 + $0x354] sm:$0xf0] }
 0x397   : > { %3709 = vmatpush.bf16.msrb.mxu0 %v12927_v13  ;;  %3723 = vmatpush.bf16.msrb.mxu1 %v13215_v40  ;;  %v13615_v13 = vor.u32 %v16659_v27, %v13612_v37  ;;  %v16578_v40 = vld [vmem:[%s18619_s30 + $0x32c] sm:$0xf]  ;;  %v13440_v37 = vld [vmem:[%s18619_s30 + $0x474] sm:$0xf0]  ;;  %v16660_v16 = vld [vmem:[%s18619_s30 + $0x5bc] sm:$0xf] }
 0x398   : > { %3737 = vmatpush.bf16.msrb.mxu2 %v13503_v35  ;;  %3751 = vmatpush.bf16.msrb.mxu3 %v12931_v43  ;;  %v16650_v35 = vld [vmem:[%s18619_s30 + $0x56c] sm:$0xf]  ;;  %v13576_v43 = vld [vmem:[%s18619_s30 + $0x58c] sm:$0xf0]  ;;  %v13291_v47 = vor.u32 %v16578_v40, %v13288_v41  ;;  %v13690_v40 = vld [vmem:[%s18619_s30 + $0x648] sm:$0xf] }
 0x399   : > { %v13579_v51 = vor.u32 %v16650_v35, %v13576_v43  ;;  %v16682_v41 = vld [vmem:[%s18619_s30 + $0x668] sm:$0xf0]  ;;  %v13116_v43 = vld [vmem:[%s18619_s30 + $0x1ec] sm:$0xf0]  ;;  %v16651_v32 = vld [vmem:[%s18619_s30 + $0x574] sm:$0xf] }
 0x39a   : > { %v16534_v35 = vld [vmem:[%s18619_s30 + $0x1cc] sm:$0xf]  ;;  %v13584_v6 = vld [vmem:[%s18619_s30 + $0x594] sm:$0xf0] }
 0x39b   : > { %3710 = vmatpush.bf16.msrb.mxu0 %v12891_v56  ;;  %3724 = vmatpush.bf16.msrb.mxu1 %v13179_v57  ;;  %v13295_v56 = vor.u32 %v16583_v46, %v13294_v45  ;;  %v16641_v57 = vld [vmem:[%s18619_s30 + $0x524] sm:$0xf]  ;;  %v16678_v45 = vld [vmem:[%s18619_s30 + $0x64c] sm:$0xf]  ;;  %v13692_v46 = vld [vmem:[%s18619_s30 + $0x66c] sm:$0xf0] }
 0x39c   : > { %3738 = vmatpush.bf16.msrb.mxu2 %v13467_v61  ;;  %3752 = vmatpush.bf16.msrb.mxu3 %v12895_v62  ;;  %v13258_v61 = vld [vmem:[%s18619_s30 + $0x2e8] sm:$0xf]  ;;  %v16574_v62 = vld [vmem:[%s18619_s30 + $0x308] sm:$0xf0] }
 0x39e   : > { %3711 = vmatmul.bf16.vlgmr.msrb.gmra.mxu0 %v18942_v48  ;;  %3725 = vmatmul.bf16.vlgmr.msrb.gmra.mxu1 %v18944_v49 }
 0x39f   : > { %3759 = vmatpush.bf16.msra.mxu0 %v13435_v63  ;;  %3773 = vmatpush.bf16.msra.mxu1 %v13723_v0  ;;  %v13255_v63 = vor.u32 %v16569_v53, %v13252_v54  ;;  %v13543_v0 = vor.u32 %v16641_v57, %v13540_v58  ;;  %v13654_v53 = vld [vmem:[%s18619_s30 + $0x600] sm:$0xf]  ;;  %v16673_v54 = vld [vmem:[%s18619_s30 + $0x620] sm:$0xf0]  ;;  %v13080_v58 = vld [vmem:[%s18619_s30 + $0x1a4] sm:$0xf0] }
 0x3a0   : > { %3787 = vmatpush.bf16.msra.mxu2 %v13151_v4  ;;  %3801 = vmatpush.bf16.msra.mxu3 %v13439_v5  ;;  %v12971_v4 = vor.u32 %v16502_v60, %v12970_v59  ;;  %v13259_v5 = vor.u32 %v16574_v62, %v13258_v61  ;;  %v16525_v57 = vld [vmem:[%s18619_s30 + $0x184] sm:$0xf]  ;;  %v13368_v60 = vld [vmem:[%s18619_s30 + $0x3e4] sm:$0xf0] }
 0x3a1   : > { %3739 = vmatmul.bf16.vlgmr.msrb.gmra.mxu2 %v18946_v50  ;;  %3753 = vmatmul.bf16.vlgmr.msrb.gmra.mxu3 %v18942_v48  ;;  %v16597_v59 = vld [vmem:[%s18619_s30 + $0x3c4] sm:$0xf]  ;;  %v13656_v62 = vld [vmem:[%s18619_s30 + $0x624] sm:$0xf0] }
 0x3a2   : > { %v16669_v61 = vld [vmem:[%s18619_s30 + $0x604] sm:$0xf] }
 0x3a3   : > { %3760 = vmatpush.bf16.msra.mxu0 %v13399_v18  ;;  %3774 = vmatpush.bf16.msra.mxu1 %v13687_v19  ;;  %v16551_v18 = vld [vmem:[%s18619_s30 + $0x254] sm:$0xf]  ;;  %v13219_v19 = vor.u32 %v16560_v1, %v13216_v3  ;;  %v13618_v1 = vld [vmem:[%s18619_s30 + $0x5b8] sm:$0xf]  ;;  %v16664_v3 = vld [vmem:[%s18619_s30 + $0x5d8] sm:$0xf0] }
 0x3a4   : > { %3788 = vmatpush.bf16.msra.mxu2 %v13115_v21  ;;  %3802 = vmatpush.bf16.msra.mxu3 %v13403_v22  ;;  %v16623_v21 = vld [vmem:[%s18619_s30 + $0x494] sm:$0xf]  ;;  %v13468_v22 = vld [vmem:[%s18619_s30 + $0x4b4] sm:$0xf0] }
 0x3a5   : > { %v13471_v27 = vor.u32 %v16623_v21, %v13468_v22  ;;  %v13335_v21 = vor.u32 %v16588_v14, %v13332_v15  ;;  %v13623_v22 = vor.u32 %v16660_v16, %v13620_v17 }
 0x3a7   : > { %3761 = vmatpush.bf16.msra.mxu0 %v13363_v52  ;;  %3775 = vmatpush.bf16.msra.mxu1 %v13651_v25  ;;  %v13726_v52 = vld [vmem:[%s18619_s30 + $0x690] sm:$0xf]  ;;  %v16691_v25 = vld [vmem:[%s18619_s30 + $0x6b0] sm:$0xf0] }
 0x3a8   : > { %3789 = vmatpush.bf16.msra.mxu2 %v13079_v8  ;;  %3803 = vmatpush.bf16.msra.mxu3 %v13367_v33  ;;  %v16615_v8 = vld [vmem:[%s18619_s30 + $0x454] sm:$0xf]  ;;  %v13183_v33 = vor.u32 %v16551_v18, %v13180_v20  ;;  %v13619_v18 = vor.u32 %v16664_v3, %v13618_v1  ;;  %v13446_v1 = vld [vmem:[%s18619_s30 + $0x458] sm:$0xf]  ;;  %v16620_v3 = vld [vmem:[%s18619_s30 + $0x478] sm:$0xf0] }
 0x3a9   : > { %v16655_v20 = vld [vmem:[%s18619_s30 + $0x590] sm:$0xf0]  ;;  %v13447_v17 = vor.u32 %v16620_v3, %v13446_v1  ;;  %v13266_v1 = vld [vmem:[%s18619_s30 + $0x2f0] sm:$0xf] }
 0x3aa   : > { %v16575_v3 = vld [vmem:[%s18619_s30 + $0x310] sm:$0xf0] }
 0x3ab   : > { %3762 = vmatpush.bf16.msra.mxu0 %v13327_v11  ;;  %3776 = vmatpush.bf16.msra.mxu1 %v13615_v13  ;;  %v13727_v11 = vor.u32 %v16691_v25, %v13726_v52  ;;  %v13155_v13 = vor.u32 %v16543_v7, %v13152_v26  ;;  %v13546_v7 = vld [vmem:[%s18619_s30 + $0x528] sm:$0xf]  ;;  %v16646_v26 = vld [vmem:[%s18619_s30 + $0x548] sm:$0xf0] }
 0x3ac   : > { %3790 = vmatpush.bf16.msra.mxu2 %v13043_v42  ;;  %3804 = vmatpush.bf16.msra.mxu3 %v13331_v34  ;;  %v13443_v42 = vor.u32 %v16615_v8, %v13440_v37  ;;  %v13731_v34 = vor.u32 %v16687_v30, %v13728_v10  ;;  %v13299_v8 = vor.u32 %v16579_v28, %v13296_v29  ;;  %v12972_v37 = vld [vmem:[%s18619_s30 + $0xcc] sm:$0xf0]  ;;  %v16570_v30 = vld [vmem:[%s18619_s30 + $0x2ec] sm:$0xf] }
 0x3ad   : > { %v13260_v10 = vld [vmem:[%s18619_s30 + $0x30c] sm:$0xf0] }
 0x3af   : > { %3763 = vmatpush.bf16.msra.mxu0 %v13291_v47  ;;  %3777 = vmatpush.bf16.msra.mxu1 %v13579_v51  ;;  %v13691_v47 = vor.u32 %v16682_v41, %v13690_v40  ;;  %v13119_v51 = vor.u32 %v16534_v35, %v13116_v43  ;;  %v13510_v40 = vld [vmem:[%s18619_s30 + $0x4e0] sm:$0xf]  ;;  %v16637_v41 = vld [vmem:[%s18619_s30 + $0x500] sm:$0xf0]  ;;  %v12936_v43 = vld [vmem:[%s18619_s30 + $0x84] sm:$0xf0] }
 0x3b0   : > { %3791 = vmatpush.bf16.msra.mxu2 %v13007_v55  ;;  %3805 = vmatpush.bf16.msra.mxu3 %v13295_v56  ;;  %v13407_v55 = vor.u32 %v16606_v36, %v13404_v44  ;;  %v13695_v56 = vor.u32 %v16678_v45, %v13692_v46  ;;  %v16489_v35 = vld [vmem:[%s18619_s30 + $0x64] sm:$0xf]  ;;  %v13224_v44 = vld [vmem:[%s18619_s30 + $0x2c4] sm:$0xf0] }
 0x3b1   : > { %v16561_v36 = vld [vmem:[%s18619_s30 + $0x2a4] sm:$0xf]  ;;  %v13512_v46 = vld [vmem:[%s18619_s30 + $0x504] sm:$0xf0] }
 0x3b2   : > { %v16633_v45 = vld [vmem:[%s18619_s30 + $0x4e4] sm:$0xf] }
 0x3b3   : > { %3764 = vmatpush.bf16.msra.mxu0 %v13255_v63  ;;  %3778 = vmatpush.bf16.msra.mxu1 %v13543_v0  ;;  %v13655_v63 = vor.u32 %v16673_v54, %v13654_v53  ;;  %v13083_v0 = vor.u32 %v16525_v57, %v13080_v58  ;;  %v13474_v53 = vld [vmem:[%s18619_s30 + $0x498] sm:$0xf]  ;;  %v16628_v54 = vld [vmem:[%s18619_s30 + $0x4b8] sm:$0xf0]  ;;  %v13515_v57 = vor.u32 %v16633_v45, %v13512_v46  ;;  %v12900_v58 = vld [vmem:[%s18619_s30 + $0x3c] sm:$0xf0] }
 0x3b4   : > { %3792 = vmatpush.bf16.msra.mxu2 %v12971_v4  ;;  %3806 = vmatpush.bf16.msra.mxu3 %v13259_v5  ;;  %v13371_v4 = vor.u32 %v16597_v59, %v13368_v60  ;;  %v13659_v5 = vor.u32 %v16669_v61, %v13656_v62  ;;  %v16552_v59 = vld [vmem:[%s18619_s30 + $0x25c] sm:$0xf]  ;;  %v13188_v60 = vld [vmem:[%s18619_s30 + $0x27c] sm:$0xf0] }
 0x3b5   : > { %v16624_v61 = vld [vmem:[%s18619_s30 + $0x49c] sm:$0xf]  ;;  %v13476_v62 = vld [vmem:[%s18619_s30 + $0x4bc] sm:$0xf0]  ;;  %v13191_v14 = vor.u32 %v16552_v59, %v13188_v60 }
 0x3b6   : > { %v13479_v15 = vor.u32 %v16624_v61, %v13476_v62  ;;  %v16512_v46 = vld [vmem:[%s18619_s30 + $0x118] sm:$0xf0]  ;;  %v12978_v61 = vld [vmem:[%s18619_s30 + $0xb0] sm:$0xf] }
 0x3b7   : > { %3765 = vmatpush.bf16.msra.mxu0 %v13219_v19  ;;  %3779 = vmatpush.bf16.msra.mxu1 %v13507_v31  ;;  %v13047_v19 = vor.u32 %v16516_v9, %v13044_v12  ;;  %v13582_v31 = vld [vmem:[%s18619_s30 + $0x570] sm:$0xf]  ;;  %v13734_v9 = vld [vmem:[%s18619_s30 + $0x698] sm:$0xf]  ;;  %v16692_v12 = vld [vmem:[%s18619_s30 + $0x6b8] sm:$0xf0] }
 0x3b8   : > { %3793 = vmatpush.bf16.msra.mxu2 %v12935_v23  ;;  %3807 = vmatpush.bf16.msra.mxu3 %v13223_v24  ;;  %v16507_v23 = vld [vmem:[%s18619_s30 + $0xf4] sm:$0xf]  ;;  %v13008_v24 = vld [vmem:[%s18619_s30 + $0x114] sm:$0xf0]  ;;  %v13583_v52 = vor.u32 %v16655_v20, %v13582_v31  ;;  %v13735_v31 = vor.u32 %v16692_v12, %v13734_v9  ;;  %v13410_v20 = vld [vmem:[%s18619_s30 + $0x410] sm:$0xf]  ;;  %v13267_v12 = vor.u32 %v16575_v3, %v13266_v1 }
 0x3b9   : > { %v13011_v25 = vor.u32 %v16507_v23, %v13008_v24  ;;  %v13698_v23 = vld [vmem:[%s18619_s30 + $0x650] sm:$0xf]  ;;  %v16683_v24 = vld [vmem:[%s18619_s30 + $0x670] sm:$0xf0] }
 0x3bb   : > { %3766 = vmatpush.bf16.msra.mxu0 %v13183_v33  ;;  %3780 = vmatpush.bf16.msra.mxu1 %v13471_v27  ;;  %v13587_v33 = vor.u32 %v16651_v32, %v13584_v6  ;;  %v16498_v27 = vld [vmem:[%s18619_s30 + $0xac] sm:$0xf]  ;;  %v13086_v32 = vld [vmem:[%s18619_s30 + $0x188] sm:$0xf] }
 0x3bc   : > { %3794 = vmatpush.bf16.msra.mxu2 %v12899_v38  ;;  %3808 = vmatpush.bf16.msra.mxu3 %v13187_v39  ;;  %v16642_v38 = vld [vmem:[%s18619_s30 + $0x52c] sm:$0xf]  ;;  %v13548_v39 = vld [vmem:[%s18619_s30 + $0x54c] sm:$0xf0] }
 0x3be   : > { %3767 = vmatmul.bf16.vlgmr.msra.gmra.mxu0 %v18944_v49  ;;  %3781 = vmatmul.bf16.vlgmr.msra.gmra.mxu1 %v18946_v50 }
 0x3bf   : > { %3815 = vmatpush.bf16.msrb.mxu0 %v13727_v11  ;;  %3829 = vmatpush.bf16.msrb.mxu1 %v13155_v13  ;;  %v13547_v11 = vor.u32 %v16646_v26, %v13546_v7  ;;  %v12975_v13 = vor.u32 %v16498_v27, %v12972_v37  ;;  %v13374_v7 = vld [vmem:[%s18619_s30 + $0x3c8] sm:$0xf]  ;;  %v16602_v26 = vld [vmem:[%s18619_s30 + $0x3e8] sm:$0xf0] }
 0x3c0   : > { %3843 = vmatpush.bf16.msrb.mxu2 %v13443_v42  ;;  %3857 = vmatpush.bf16.msrb.mxu3 %v13731_v34  ;;  %v13263_v42 = vor.u32 %v16570_v30, %v13260_v10  ;;  %v13551_v34 = vor.u32 %v16642_v38, %v13548_v39  ;;  %v13375_v10 = vor.u32 %v16602_v26, %v13374_v7  ;;  %v13050_v39 = vld [vmem:[%s18619_s30 + $0x140] sm:$0xf]  ;;  %v16557_v26 = vld [vmem:[%s18619_s30 + $0x280] sm:$0xf0] }
 0x3c1   : > { %3795 = vmatmul.bf16.vlgmr.msra.gmra.mxu2 %v18942_v48  ;;  %3809 = vmatmul.bf16.vlgmr.msra.gmra.mxu3 %v18944_v49  ;;  %v13194_v7 = vld [vmem:[%s18619_s30 + $0x260] sm:$0xf] }
 0x3c3   : > { %3816 = vmatpush.bf16.msrb.mxu0 %v13691_v47  ;;  %3830 = vmatpush.bf16.msrb.mxu1 %v13119_v51  ;;  %v13511_v47 = vor.u32 %v16637_v41, %v13510_v40  ;;  %v12939_v51 = vor.u32 %v16489_v35, %v12936_v43  ;;  %v13338_v40 = vld [vmem:[%s18619_s30 + $0x380] sm:$0xf]  ;;  %v16593_v41 = vld [vmem:[%s18619_s30 + $0x3a0] sm:$0xf0] }
 0x3c4   : > { %3844 = vmatpush.bf16.msrb.mxu2 %v13407_v55  ;;  %3858 = vmatpush.bf16.msrb.mxu3 %v13695_v56  ;;  %v16480_v55 = vld [vmem:[%s18619_s30 + $0x1c] sm:$0xf]  ;;  %v13227_v56 = vor.u32 %v16561_v36, %v13224_v44  ;;  %v16665_v35 = vld [vmem:[%s18619_s30 + $0x5e0] sm:$0xf0]  ;;  %v13339_v36 = vor.u32 %v16593_v41, %v13338_v40  ;;  %v13014_v44 = vld [vmem:[%s18619_s30 + $0xf8] sm:$0xf] }
 0x3c5   : > { %v13015_v59 = vor.u32 %v16512_v46, %v13014_v44 }
 0x3c7   : > { %3817 = vmatpush.bf16.msrb.mxu0 %v13655_v63  ;;  %3831 = vmatpush.bf16.msrb.mxu1 %v13083_v0  ;;  %v13158_v63 = vld [vmem:[%s18619_s30 + $0x218] sm:$0xf]  ;;  %v16548_v0 = vld [vmem:[%s18619_s30 + $0x238] sm:$0xf0] }
 0x3c8   : > { %3845 = vmatpush.bf16.msrb.mxu2 %v13371_v4  ;;  %3859 = vmatpush.bf16.msrb.mxu3 %v13659_v5  ;;  %v13475_v4 = vor.u32 %v16628_v54, %v13474_v53  ;;  %v12903_v5 = vor.u32 %v16480_v55, %v12900_v58  ;;  %v13159_v16 = vor.u32 %v16548_v0, %v13158_v63  ;;  %v13590_v54 = vld [vmem:[%s18619_s30 + $0x578] sm:$0xf]  ;;  %v16656_v55 = vld [vmem:[%s18619_s30 + $0x598] sm:$0xf0]  ;;  %v16503_v0 = vld [vmem:[%s18619_s30 + $0xd0] sm:$0xf0] }
 0x3c9   : > { %v13591_v63 = vor.u32 %v16656_v55, %v13590_v54  ;;  %v12979_v9 = vor.u32 %v16503_v0, %v12978_v61 }
 0x3cb   : > { %3818 = vmatpush.bf16.msrb.mxu0 %v13619_v18  ;;  %3832 = vmatpush.bf16.msrb.mxu1 %v13047_v19  ;;  %v13122_v18 = vld [vmem:[%s18619_s30 + $0x1d0] sm:$0xf]  ;;  %v16539_v19 = vld [vmem:[%s18619_s30 + $0x1f0] sm:$0xf0] }
 0x3cc   : > { %3846 = vmatpush.bf16.msrb.mxu2 %v13335_v21  ;;  %3860 = vmatpush.bf16.msrb.mxu3 %v13623_v22  ;;  %v16611_v21 = vld [vmem:[%s18619_s30 + $0x430] sm:$0xf0]  ;;  %v19227_v22 = vld [vmem:[%s18627_s16] sm:$0xff]  ;;  %v13123_v28 = vor.u32 %v16539_v19, %v13122_v18 }
 0x3cd   : > { %v13411_v29 = vor.u32 %v16611_v21, %v13410_v20  ;;  %v2413_v6 = vperm.slane %v19227_v22, 0  ;;  %v16566_v18 = vld [vmem:[%s18619_s30 + $0x2c8] sm:$0xf0]  ;;  %v2415_v40 = vperm.slane %v19227_v22, 2  ;;  %v2417_v3 = vperm.slane %v19227_v22, 4 }
 0x3ce   : > { %v16638_v20 = vld [vmem:[%s18619_s30 + $0x508] sm:$0xf0] }
 0x3cf   : > { %3819 = vmatpush.bf16.msrb.mxu0 %v13583_v52  ;;  %3833 = vmatpush.bf16.msrb.mxu1 %v13011_v25  ;;  %v13699_v52 = vor.u32 %v16683_v24, %v13698_v23  ;;  %v16530_v25 = vld [vmem:[%s18619_s30 + $0x1a8] sm:$0xf0] }
 0x3d0   : > { %3847 = vmatpush.bf16.msrb.mxu2 %v13299_v8  ;;  %3861 = vmatpush.bf16.msrb.mxu3 %v13587_v33  ;;  %v13662_v8 = vld [vmem:[%s18619_s30 + $0x608] sm:$0xf]  ;;  %v16674_v33 = vld [vmem:[%s18619_s30 + $0x628] sm:$0xf0]  ;;  %v13087_v30 = vor.u32 %v16530_v25, %v13086_v32  ;;  %v12906_v32 = vld [vmem:[%s18619_s30 + $0x20] sm:$0xf] }
 0x3d1   : > { %v16485_v25 = vld [vmem:[%s18619_s30 + $0x40] sm:$0xf0] }
 0x3d3   : > { %3820 = vmatpush.bf16.msrb.mxu0 %v13547_v11  ;;  %3834 = vmatpush.bf16.msrb.mxu1 %v12975_v13  ;;  %v13663_v11 = vor.u32 %v16674_v33, %v13662_v8  ;;  %v16521_v13 = vld [vmem:[%s18619_s30 + $0x160] sm:$0xf0]  ;;  %v13482_v8 = vld [vmem:[%s18619_s30 + $0x4a0] sm:$0xf] }
 0x3d4   : > { %3848 = vmatpush.bf16.msrb.mxu2 %v13263_v42  ;;  %3862 = vmatpush.bf16.msrb.mxu3 %v13551_v34  ;;  %v13626_v34 = vld [vmem:[%s18619_s30 + $0x5c0] sm:$0xf]  ;;  %v13051_v43 = vor.u32 %v16521_v13, %v13050_v39  ;;  %v16629_v33 = vld [vmem:[%s18619_s30 + $0x4c0] sm:$0xf0] }
 0x3d5   : > { %v13627_v45 = vor.u32 %v16665_v35, %v13626_v34 }
 0x3d7   : > { %3821 = vmatpush.bf16.msrb.mxu0 %v13511_v47  ;;  %3835 = vmatpush.bf16.msrb.mxu1 %v12939_v51  ;;  %v13302_v47 = vld [vmem:[%s18619_s30 + $0x338] sm:$0xf]  ;;  %v16584_v51 = vld [vmem:[%s18619_s30 + $0x358] sm:$0xf0] }
 0x3d8   : > { %3849 = vmatpush.bf16.msrb.mxu2 %v13227_v56  ;;  %3863 = vmatpush.bf16.msrb.mxu3 %v13515_v57  ;;  %v13303_v60 = vor.u32 %v16584_v51, %v13302_v47 }
 0x3da   : > { %v3544_v27 = vpop.f32.mrf.mxu0  ;;  %v3558_v37 = vpop.f32.mrf.mxu1 }
 0x3db   : > { %3822 = vmatpush.bf16.msrb.mxu0 %v13475_v4  ;;  %3836 = vmatpush.bf16.msrb.mxu1 %v12903_v5  ;;  %v3545_v38 = vadd.f32 %v3544_v27, %v2413_v6  ;;  %v13554_v4 = vld [vmem:[%s18619_s30 + $0x530] sm:$0xf]  ;;  %v16647_v5 = vld [vmem:[%s18619_s30 + $0x550] sm:$0xf0] }
 0x3dc   : > { %3850 = vmatpush.bf16.msrb.mxu2 %v13191_v14  ;;  %3864 = vmatpush.bf16.msrb.mxu3 %v13479_v15  ;;  %v12942_v14 = vld [vmem:[%s18619_s30 + $0x68] sm:$0xf]  ;;  %v13555_v15 = vor.u32 %v16647_v5, %v13554_v4 }
 0x3dd   : > { %v3559_v42 = vadd.f32 %v3558_v37, %v3545_v38  ;;  %v2414_v37 = vperm.slane %v19227_v22, 1  ;;  %v13483_v38 = vor.u32 %v16629_v33, %v13482_v8 }
 0x3de   : > { %3823 = vmatmul.bf16.vlgmr.msrb.gmra.mxu0 %v18946_v50  ;;  %3837 = vmatmul.bf16.vlgmr.msrb.gmra.mxu1 %v18942_v48 }
 0x3df   : > { %3871 = vmatpush.bf16.msra.mxu0 %v13159_v16  ;;  %3885 = vmatpush.bf16.msra.mxu1 %v13447_v17  ;;  %v16494_v16 = vld [vmem:[%s18619_s30 + $0x88] sm:$0xf0]  ;;  %v13230_v17 = vld [vmem:[%s18619_s30 + $0x2a8] sm:$0xf] }
 0x3e0   : > { %3899 = vmatpush.bf16.msra.mxu2 %v13735_v31  ;;  %3865 = vmatmul.bf16.vlgmr.msrb.gmra.mxu3 %v18946_v50  ;;  %v13518_v31 = vld [vmem:[%s18619_s30 + $0x4e8] sm:$0xf] }
 0x3e1   : > { %3851 = vmatmul.bf16.vlgmr.msrb.gmra.mxu2 %v18944_v49  ;;  %v3572_v53 = vpop.f32.mrf.mxu2  ;;  %v3586_v62 = vpop.f32.mrf.mxu3 }
 0x3e2   : > { %v19256_v56 = vadd.f32 %v3572_v53, %v3559_v42  ;;  %v3546_v57 = vpop.f32.mrf.mxu0  ;;  %v3560_v58 = vpop.f32.mrf.mxu1 }
 0x3e3   : > { %3872 = vmatpush.bf16.msra.mxu0 %v13123_v28  ;;  %3886 = vmatpush.bf16.msra.mxu1 %v13411_v29  ;;  %v3547_v24 = vadd.f32 %v3546_v57, %v2413_v6  ;;  %v12943_v28 = vor.u32 %v16494_v16, %v12942_v14  ;;  %v13231_v29 = vor.u32 %v16566_v18, %v13230_v17 }
 0x3e4   : > { %3900 = vmatpush.bf16.msra.mxu2 %v13699_v52  ;;  %v13519_v52 = vor.u32 %v16638_v20, %v13518_v31  ;;  %v13195_v6 = vor.u32 %v16557_v26, %v13194_v7 }
 0x3e7   : > { %3873 = vmatpush.bf16.msra.mxu0 %v13087_v30  ;;  %3887 = vmatpush.bf16.msra.mxu1 %v13375_v10  ;;  %v3561_v30 = vadd.f32 %v3560_v58, %v3547_v24  ;;  %v12907_v10 = vor.u32 %v16485_v25, %v12906_v32  ;;  %v2418_v25 = vperm.slane %v19227_v22, 5 }
 0x3e8   : > { %3901 = vmatpush.bf16.msra.mxu2 %v13663_v11 }
 0x3e9   : > { %v3574_v19 = vpop.f32.mrf.mxu2  ;;  %v3588_v27 = vpop.f32.mrf.mxu3 }
 0x3ea   : > { %v3600_v21 = vpop.f32.mrf.mxu0  ;;  %v3614_v23 = vpop.f32.mrf.mxu1  ;;  %v19279_v39 = vadd.f32 %v3574_v19, %v3561_v30  ;;  %v3589_v11 = vadd.f32 %v3588_v27, %v2414_v37 }
 0x3eb   : > { %3874 = vmatpush.bf16.msra.mxu0 %v13051_v43  ;;  %3888 = vmatpush.bf16.msra.mxu1 %v13339_v36  ;;  %v3587_v36 = vadd.f32 %v3586_v62, %v2414_v37 }
 0x3ec   : > { %3902 = vmatpush.bf16.msra.mxu2 %v13627_v45  ;;  %v5132_v35 = vrot.slane %v19279_v39, 4 }
 0x3ed   : > { %v3601_v51 = vadd.f32 %v3600_v21, %v3587_v36 }
 0x3ef   : > { %3875 = vmatpush.bf16.msra.mxu0 %v13015_v59  ;;  %3889 = vmatpush.bf16.msra.mxu1 %v13303_v60  ;;  %v19301_v55 = vadd.f32 %v3614_v23, %v3601_v51  ;;  %v2419_v51 = vperm.slane %v19227_v22, 6 }
 0x3f0   : > { %3903 = vmatpush.bf16.msra.mxu2 %v13591_v63  ;;  %v2416_v63 = vperm.slane %v19227_v22, 3 }
 0x3f1   : > { %v3628_v42 = vpop.f32.mrf.mxu2 }
 0x3f2   : > { %v3602_v13 = vpop.f32.mrf.mxu0  ;;  %v3616_v34 = vpop.f32.mrf.mxu1  ;;  %v3629_v44 = vadd.f32 %v3628_v42, %v2415_v40 }
 0x3f3   : > { %3876 = vmatpush.bf16.msra.mxu0 %v12979_v9  ;;  %3890 = vmatpush.bf16.msra.mxu1 %v13267_v12  ;;  %v3603_v41 = vadd.f32 %v3602_v13, %v3589_v11 }
 0x3f4   : > { %3904 = vmatpush.bf16.msra.mxu2 %v13555_v15 }
 0x3f5   : > { %v19283_v43 = vadd.f32 %v3616_v34, %v3603_v41 }
 0x3f7   : > { %3877 = vmatpush.bf16.msra.mxu0 %v12943_v28  ;;  %3891 = vmatpush.bf16.msra.mxu1 %v13231_v29  ;;  %v5130_v45 = vrot.slane %v19283_v43, 4  ;;  %v19293_v46 = vsel %vm3930_vm7, %v19283_v43, %v5132_v35  ;;  %v17508_v47 = vpack.i.bf16 %v19283_v43, %v19279_v39 }
 0x3f8   : > { %3905 = vmatpush.bf16.msra.mxu2 %v13519_v52 }
 0x3f9   : > { %v19308_v58 = vpop.f32.mrf.mxu2 }
 0x3fb   : > { %3878 = vmatpush.bf16.msra.mxu0 %v12907_v10  ;;  %3892 = vmatpush.bf16.msra.mxu1 %v13195_v6  ;;  %v3656_v54 = vpop.f32.mrf.mxu0  ;;  %v3670_v59 = vpop.f32.mrf.mxu1 }
 0x3fc   : > { %3906 = vmatpush.bf16.msra.mxu2 %v13483_v38  ;;  %v3671_v1 = vadd.f32 %v3670_v59, %v2416_v63 }
 0x3fe   : > { %3879 = vmatmul.bf16.vlgmr.msra.gmra.mxu0 %v18942_v48  ;;  %3893 = vmatmul.bf16.vlgmr.msra.gmra.mxu1 %v18944_v49  ;;  %v19299_v48 = vsel %vm3930_vm7, %v5130_v45, %v19279_v39  ;;  %v3642_v49 = vpop.f32.mrf.mxu3 }
 0x3ff   : > { %3907 = vmatmul.bf16.vlgmr.msra.gmra.mxu2 %v18946_v50  ;;  %v3643_v53 = vadd.f32 %v3642_v49, %v3629_v44 }
 0x401   : > { %v19303_v50 = vadd.f32 %v3656_v54, %v3643_v53 }
 0x403   : > { %v17488_v57 = vpack.i.bf16 %v19303_v50, %v19301_v55  ;;  %v19310_v61 = vpop.f32.mrf.mxu0  ;;  %v19315_v0 = vpop.f32.mrf.mxu1 }
 0x404   : > { %v3684_v60 = vpop.f32.mrf.mxu2 }
 0x405   : > { %17489 = vrot.lane.b32.xlu0 %v17488_v57, %s18184_s1  ;;  %v3685_v5 = vadd.f32 %v3684_v60, %v3671_v1  ;;  %v2420_v60 = vperm.slane %v19227_v22, 7 }
 0x406   : > { %v19312_v62 = vpop.f32.mrf.mxu3 }
 0x40c   : > { %v19320_v4 = vpop.f32.mrf.mxu2 }
 0x40e   : > { %v3698_v14 = vpop.f32.mrf.mxu3 }
 0x40f   : > { %v3699_v15 = vadd.f32 %v3698_v14, %v3685_v5 }
 0x411   : > { %v4148_v19 = vrot.slane %v3699_v15, 4 }
 0x416   : > { %v19329_v28 = vpop.f32.mrf.mxu3 }
 0x41b   : > { %v3712_v9 = vpop.f32.mrf.mxu0  ;;  %v3726_v16 = vpop.f32.mrf.mxu1 }
 0x41c   : > { %v3713_v12 = vadd.f32 %v3712_v9, %v2417_v3 }
 0x41e   : > { %v3727_v17 = vadd.f32 %v3726_v16, %v3713_v12 }
 0x423   : > { %v3714_v29 = vpop.f32.mrf.mxu0  ;;  %v3728_v32 = vpop.f32.mrf.mxu1 }
 0x424   : > { %v3740_v18 = vpop.f32.mrf.mxu2  ;;  %v3754_v52 = vpop.f32.mrf.mxu3  ;;  %v3715_v30 = vadd.f32 %v3714_v29, %v2417_v3 }
 0x425   : > { %v3741_v31 = vadd.f32 %v3740_v18, %v3727_v17  ;;  %v3755_v7 = vadd.f32 %v3754_v52, %v2418_v25 }
 0x426   : > { %v3729_v13 = vadd.f32 %v3728_v32, %v3715_v30 }
 0x427   : > { %v4146_v20 = vrot.slane %v3741_v31, 4  ;;  %v19323_v21 = vsel %vm3930_vm7, %v3741_v31, %v4148_v19  ;;  %v17478_v23 = vpack.i.bf16 %v3741_v31, %v3699_v15 }
 0x429   : > { %v19326_v24 = vsel %vm3930_vm7, %v4146_v20, %v3699_v15  ;;  %17479 = vrot.lane.b32.xlu2 %v17478_v23, %s18184_s1 }
 0x42c   : > { %v3756_v37 = vpop.f32.mrf.mxu3  ;;  %v3742_v38 = vpop.f32.mrf.mxu2 }
 0x42d   : > { %v3757_v6 = vadd.f32 %v3756_v37, %v2418_v25  ;;  %v19337_v34 = vadd.f32 %v3742_v38, %v3729_v13 }
 0x43b   : > { %v3768_v26 = vpop.f32.mrf.mxu0  ;;  %v3782_v8 = vpop.f32.mrf.mxu1 }
 0x43c   : > { %v3769_v33 = vadd.f32 %v3768_v26, %v3755_v7 }
 0x43e   : > { %v19332_v27 = vadd.f32 %v3782_v8, %v3769_v33 }
 0x440   : > { %v17483_v10 = vpack.i.bf16 %v19256_v56, %v19332_v27 }
 0x442   : > { %17484 = vrot.lane.b32.xlu2 %v17483_v10, %s18184_s1 }
 0x443   : > { %v3770_v11 = vpop.f32.mrf.mxu0  ;;  %v3784_v42 = vpop.f32.mrf.mxu1 }
 0x444   : > { %v3771_v41 = vadd.f32 %v3770_v11, %v3757_v6  ;;  %v3796_v44 = vpop.f32.mrf.mxu2  ;;  %v3810_v45 = vpop.f32.mrf.mxu3  ;;  %v17533_v11 = vld [vmem:[%s18627_s16 + $0x8] ss:$0 sm:$0xff] }
 0x445   : > { %v3797_v53 = vadd.f32 %v3796_v44, %v2419_v51 }
 0x446   : > { %v19339_v35 = vadd.f32 %v3784_v42, %v3771_v41  ;;  %v3673_v42 = vadd.f32 %v19315_v0, %v2416_v63  ;;  %v3954_v0 = vrot.slane %v19303_v50, 4 }
 0x447   : > { %v3811_v1 = vadd.f32 %v3810_v45, %v3797_v53 }
 0x448   : > { %v17503_v36 = vpack.i.bf16 %v19339_v35, %v19337_v34  ;;  %v3687_v44 = vadd.f32 %v19320_v4, %v3673_v42  ;;  %v18185_v4 = vmov 1983009808  }
 0x44c   : > { %v3798_v49 = vpop.f32.mrf.mxu2  ;;  %v3812_v54 = vpop.f32.mrf.mxu3 }
 0x44d   : > { %v3799_v12 = vadd.f32 %v3798_v49, %v2419_v51 }
 0x44f   : > { %v3813_v31 = vadd.f32 %v3812_v54, %v3799_v12  ;;  %v19376_v54 = vadd.f32 %v19329_v28, %v3687_v44  ;;  %v3955_v28 = vsel %vm3930_vm7, 0.0, %v3954_v0 }
 0x45b   : > { %v3824_v57 = vpop.f32.mrf.mxu0  ;;  %v3838_v59 = vpop.f32.mrf.mxu1 }
 0x45c   : > { %v3825_v3 = vadd.f32 %v3824_v57, %v3811_v1  ;;  %v3839_v5 = vadd.f32 %v3838_v59, %v2420_v60  ;;  %v3935_v1 = vunpack.c.l.s4 %v18185_v4 }
 0x45e   : > { %v4364_v16 = vrot.slane %v3825_v3, 4  ;;  %v19386_v12 = vunpack.c.0.s8 %v3935_v1 }
 0x460   : > { %v4153_v42 = vperm.slane %v19326_v24, %v19386_v12  ;;  %v4157_v44 = vperm.slane %v19323_v21, %v19386_v12  ;;  %v4175_v24 = vperm.slane %v19332_v27, %v19386_v12 }
 0x462   : > { %v4204_v4 = vrot.slane %v4157_v44, 4 }
 0x463   : > { %v3866_v15 = vpop.f32.mrf.mxu3  ;;  %v3826_v18 = vpop.f32.mrf.mxu0 }
 0x464   : > { %v3852_v9 = vpop.f32.mrf.mxu2  ;;  %v3840_v19 = vpop.f32.mrf.mxu1  ;;  %v19351_v52 = vadd.f32 %v3826_v18, %v3813_v31  ;;  %v3959_v18 = vperm.slane %v19303_v50, %v19386_v12 }
 0x465   : > { %v3853_v14 = vadd.f32 %v3852_v9, %v3839_v5  ;;  %v3841_v25 = vadd.f32 %v3840_v19, %v2420_v60  ;;  %v3963_v19 = vperm.slane %v3955_v28, %v19386_v12 }
 0x466   : > { %v5564_v33 = vrot.slane %v19351_v52, 4 }
 0x467   : > { %v3867_v17 = vadd.f32 %v3866_v15, %v3853_v14 }
 0x469   : > { %v4362_v20 = vrot.slane %v3867_v17, 4  ;;  %v19346_v23 = vsel %vm3930_vm7, %v3867_v17, %v4364_v16  ;;  %v17493_v29 = vpack.i.bf16 %v3867_v17, %v3825_v3  ;;  %v3929_v17 = vrot.slane %v19301_v55, 4 }
 0x46b   : > { %v19349_v32 = vsel %vm3930_vm7, %v4362_v20, %v3825_v3  ;;  %17494 = vrot.lane.b32.xlu1 %v17493_v29, %s18184_s1  ;;  %v3868_v8 = vpop.f32.mrf.mxu3  ;;  %v3932_v20 = vrot.slane %v19256_v56, 4  ;;  %v4170_v29 = vrot.slane %v19332_v27, 4  ;;  %v3931_v50 = vsel %vm3930_vm7, %v3929_v17, %v19256_v56 }
 0x46c   : > { %v3854_v7 = vpop.f32.mrf.mxu2 }
 0x46d   : > { %v3855_v26 = vadd.f32 %v3854_v7, %v3841_v25  ;;  %v18186_v25 = vmov 1934713408  }
 0x46e   : > { %v3979_v7 = vunpack.c.l.s4 %v18186_v25 }
 0x46f   : > { %v19355_v37 = vadd.f32 %v3868_v8, %v3855_v26  ;;  %v3933_v8 = vsel %vm3930_vm7, %v19301_v55, %v3932_v20 }
 0x471   : > { %v5562_v30 = vrot.slane %v19355_v37, 4  ;;  %v19360_v10 = vsel %vm3930_vm7, %v19355_v37, %v5564_v33  ;;  %v17513_v6 = vpack.i.bf16 %v19355_v37, %v19351_v52 }
 0x473   : > { %v19366_v38 = vsel %vm3930_vm7, %v5562_v30, %v19351_v52 }
 0x477   : > { %v19380_v59 = vpop.permute.xlu0 %17489 }
 0x478   : > { %v17492_v60 = vunpack.i.h.bf16 %v19380_v59 }
 0x47a   : > { %v3964_v3 = vrot.slane %v17492_v60, 4  ;;  %v3969_v31 = vperm.slane %v17492_v60, %v19386_v12  ;;  %v3941_v60 = vperm.slane %v3933_v8, %v19386_v12 }
 0x47b   : > { %v3880_v13 = vpop.f32.mrf.mxu0  ;;  %v3894_v45 = vpop.f32.mrf.mxu1 }
 0x47c   : > { %v3881_v41 = vadd.f32 %v17533_v11, %v3880_v13  ;;  %v3965_v14 = vsel %vm3930_vm7, 0.0, %v3964_v3  ;;  %v4000_v11 = vrot.slane %v3959_v18, 4  ;;  %v4012_v13 = vrot.slane %v3963_v19, 4 }
 0x47d   : > { %v3973_v26 = vperm.slane %v3965_v14, %v19386_v12 }
 0x47e   : > { %v3895_v51 = vadd.f32 %v3894_v45, %v3881_v41  ;;  %v3998_v41 = vrot.slane %v3969_v31, 4  ;;  %v4171_v45 = vsel %vm3930_vm7, 0.0, %v4170_v29  ;;  %v4001_v55 = vsel %vm3930_vm7, %v3969_v31, %v4000_v11 }
 0x47f   : > { %v4013_v0 = vsel %vm3930_vm7, %v3973_v26, %v4012_v13  ;;  %v19420_v1 = vperm.slane %v4171_v45, %v19386_v12  ;;  %v4216_v31 = vrot.slane %v4175_v24, 4 }
 0x480   : > { %v3999_v21 = vsel %vm3930_vm7, %v3998_v41, %v3959_v18 }
 0x481   : > { %v4228_v25 = vrot.slane %v19420_v1, 4 }
 0x482   : > { %v3908_v49 = vpop.f32.mrf.mxu2 }
 0x483   : > { %v19373_v53 = vadd.f32 %v3908_v49, %v3895_v51  ;;  %v17480_v63 = vpop.permute.xlu2 %17479  ;;  %v19408_v51 = vunpack.c.0.s8 %v3979_v7  ;;  %v4010_v49 = vrot.slane %v3973_v26, 4 }
 0x484   : > { %v17482_v5 = vunpack.i.h.bf16 %v17480_v63  ;;  %v17481_v9 = vunpack.i.l.bf16 %v17480_v63  ;;  %v3937_v63 = vperm.slane %v3931_v50, %v19386_v12 }
 0x485   : > { %v17498_v57 = vpack.i.bf16 %v19376_v54, %v19373_v53  ;;  %v4009_v3 = vperm.slane %v4001_v55, %v19408_v51  ;;  %v4011_v28 = vsel %vm3930_vm7, %v4010_v49, %v3963_v19  ;;  %v4005_v27 = vperm.slane %v3999_v21, %v19408_v51 }
 0x486   : > { %v4158_v15 = vrot.slane %v17482_v5, 4  ;;  %v4160_v16 = vrot.slane %v17481_v9, 4  ;;  %v19427_v17 = vperm.slane %v4013_v0, %v19408_v51  ;;  %v3976_v18 = vrot.slane %v3937_v63, 4 }
 0x487   : > { %17499 = vrot.lane.b32.xlu2 %v17498_v57, %s18184_s1  ;;  %v4026_v7 = vrot.slane %v4009_v3, 4  ;;  %v4022_v11 = vrot.slane %v4005_v27, 4 }
 0x488   : > { %v4159_v33 = vsel %vm3930_vm7, %v4158_v15, %v17481_v9  ;;  %v4161_v30 = vsel %vm3930_vm7, %v17482_v5, %v4160_v16  ;;  %v17491_v5 = vunpack.i.l.bf16 %v19380_v59  ;;  %v4192_v9 = vrot.slane %v4153_v42, 4 }
 0x489   : > { %v4165_v57 = vperm.slane %v4159_v33, %v19386_v12  ;;  %v4169_v56 = vperm.slane %v4161_v30, %v19386_v12  ;;  %v3988_v16 = vrot.slane %v3941_v60, 4  ;;  %v4017_v59 = vperm.slane %v4011_v28, %v19408_v51 }
 0x48a   : > { %v3942_v19 = vrot.slane %v17491_v5, 4  ;;  %v4034_v13 = vrot.slane %v19427_v17, 4 }
 0x48b   : > { %v4190_v14 = vrot.slane %v4165_v57, 4  ;;  %v4202_v15 = vrot.slane %v4169_v56, 4  ;;  %v4193_v20 = vsel %vm3930_vm7, %v4165_v57, %v4192_v9  ;;  %v4205_v29 = vsel %vm3930_vm7, %v4169_v56, %v4204_v4 }
 0x48c   : > { %v19437_v41 = vperm.slane %v4193_v20, %v19408_v51  ;;  %v19440_v45 = vperm.slane %v4205_v29, %v19408_v51 }
 0x48d   : > { %v4191_v8 = vsel %vm3930_vm7, %v4190_v14, %v4153_v42  ;;  %v4203_v33 = vsel %vm3930_vm7, %v4202_v15, %v4157_v44  ;;  %v4030_v42 = vrot.slane %v4017_v59, 4 }
 0x48e   : > { %v19445_v44 = vperm.slane %v4191_v8, %v19408_v51  ;;  %v19448_v21 = vperm.slane %v4203_v33, %v19408_v51  ;;  %v4252_v8 = vrot.slane %v19440_v45, 4 }
 0x49c   : > { %v17485_v26 = vpop.permute.xlu2 %17484 }
 0x49d   : > { %v17487_v30 = vunpack.i.h.bf16 %v17485_v26  ;;  %v17486_v50 = vunpack.i.l.bf16 %v17485_v26  ;;  %v4244_v26 = vrot.slane %v19437_v41, 4 }
 0x49f   : > { %v3943_v55 = vsel %vm3930_vm7, %v3942_v19, %v17487_v30  ;;  %v3944_v49 = vrot.slane %v17487_v30, 4  ;;  %v4180_v57 = vrot.slane %v17486_v50, 4  ;;  %v4185_v56 = vperm.slane %v17486_v50, %v19386_v12 }
 0x4a0   : > { %v3949_v0 = vperm.slane %v3943_v55, %v19386_v12 }
 0x4a1   : > { %v3945_v4 = vsel %vm3930_vm7, %v17491_v5, %v3944_v49  ;;  %v4181_v9 = vsel %vm3930_vm7, 0.0, %v4180_v57  ;;  %v4214_v28 = vrot.slane %v4185_v56, 4  ;;  %v4217_v14 = vsel %vm3930_vm7, %v4185_v56, %v4216_v31 }
 0x4a2   : > { %v3953_v15 = vperm.slane %v3945_v4, %v19386_v12  ;;  %v3974_v20 = vrot.slane %v3949_v0, 4  ;;  %v3977_v29 = vsel %vm3930_vm7, %v3949_v0, %v3976_v18  ;;  %v4189_v19 = vperm.slane %v4181_v9, %v19386_v12 }
 0x4a3   : > { %v3985_v33 = vperm.slane %v3977_v29, %v19408_v51  ;;  %v4215_v5 = vsel %vm3930_vm7, %v4214_v28, %v4175_v24  ;;  %v4225_v55 = vperm.slane %v4217_v14, %v19408_v51 }
 0x4a4   : > { %v3986_v30 = vrot.slane %v3953_v15, 4  ;;  %v3975_v50 = vsel %vm3930_vm7, %v3974_v20, %v3937_v63  ;;  %v3989_v31 = vsel %vm3930_vm7, %v3953_v15, %v3988_v16  ;;  %v4226_v9 = vrot.slane %v4189_v19, 4 }
 0x4a5   : > { %v3981_v49 = vperm.slane %v3975_v50, %v19408_v51  ;;  %v3997_v18 = vperm.slane %v3989_v31, %v19408_v51  ;;  %v4027_v57 = vsel %vm3930_vm7, %v4026_v7, %v3985_v33  ;;  %v4028_v56 = vrot.slane %v3985_v33, 4 }
 0x4a6   : > { %v3987_v0 = vsel %vm3930_vm7, %v3986_v30, %v3941_v60  ;;  %v4038_v4 = vrot.slane %v4027_v57, 4  ;;  %v4229_v24 = vsel %vm3930_vm7, %v4189_v19, %v4228_v25 }
 0x4a7   : > { %v3993_v28 = vperm.slane %v3987_v0, %v19408_v51  ;;  %v4023_v63 = vsel %vm3930_vm7, %v4022_v11, %v3981_v49  ;;  %v4024_v16 = vrot.slane %v3981_v49, 4  ;;  %v4029_v14 = vsel %vm3930_vm7, %v4009_v3, %v4028_v56 }
 0x4a8   : > { %v4035_v15 = vsel %vm3930_vm7, %v4034_v13, %v3997_v18  ;;  %v4036_v20 = vrot.slane %v3997_v18, 4  ;;  %v4039_v29 = vsel %vm3930_vm7, %v4038_v4, %v4023_v63  ;;  %v4040_v7 = vrot.slane %v4023_v63, 4 }
 0x4a9   : > { %v4025_v33 = vsel %vm3930_vm7, %v4005_v27, %v4024_v16  ;;  %v4031_v60 = vsel %vm3930_vm7, %v4030_v42, %v3993_v28  ;;  %v4032_v30 = vrot.slane %v3993_v28, 4  ;;  %v4050_v50 = vrot.slane %v4029_v14, 4 }
 0x4aa   : > { %v4037_v25 = vsel %vm3930_vm7, %v19427_v17, %v4036_v20  ;;  %v19479_v11 = vsel %vm3930_vm7, %v4027_v57, %v4040_v7  ;;  %v4052_v19 = vrot.slane %v4025_v33, 4  ;;  %v4062_v3 = vrot.slane %v4035_v15, 4 }
 0x4ab   : > { %v4033_v13 = vsel %vm3930_vm7, %v4017_v59, %v4032_v30  ;;  %v4051_v31 = vsel %vm3930_vm7, %v4050_v50, %v4025_v33  ;;  %v4064_v49 = vrot.slane %v4031_v60, 4  ;;  %v4221_v18 = vperm.slane %v4215_v5, %v19408_v51 }
 0x4ac   : > { %v19485_v27 = vsel %vm3930_vm7, %v4029_v14, %v4052_v19  ;;  %v4063_v42 = vsel %vm3930_vm7, %v4062_v3, %v4031_v60  ;;  %v4074_v56 = vrot.slane %v4037_v25, 4  ;;  %v4076_v0 = vrot.slane %v4033_v13, 4 }
 0x4ad   : > { %v4240_v17 = vrot.slane %v19445_v44, 4  ;;  %v19490_v57 = vsel %vm3930_vm7, %v4035_v15, %v4064_v49  ;;  %v4227_v59 = vsel %vm3930_vm7, %v4226_v9, %v19420_v1  ;;  %v4237_v4 = vperm.slane %v4229_v24, %v19408_v51 }
 0x4ae   : > { %v4248_v28 = vrot.slane %v19448_v21, 4  ;;  %v4075_v5 = vsel %vm3930_vm7, %v4074_v56, %v4033_v13  ;;  %v19498_v63 = vsel %vm3930_vm7, %v4037_v25, %v4076_v0  ;;  %v4233_v16 = vperm.slane %v4227_v59, %v19408_v51 }
 0x4af   : > { %v4061_v14 = vperm.slane %v19485_v27, %v19386_v12  ;;  %v4238_v20 = vrot.slane %v4221_v18, 4  ;;  %v4241_v15 = vsel %vm3930_vm7, %v4221_v18, %v4240_v17  ;;  %v4242_v7 = vrot.slane %v4225_v55, 4 }
 0x4b0   : > { %v4245_v1 = vsel %vm3930_vm7, %v4225_v55, %v4244_v26  ;;  %v4246_v9 = vrot.slane %v4233_v16, 4  ;;  %v4249_v24 = vsel %vm3930_vm7, %v4233_v16, %v4248_v28  ;;  %v4250_v33 = vrot.slane %v4237_v4, 4 }
 0x4b1   : > { %v4239_v60 = vsel %vm3930_vm7, %v4238_v20, %v19445_v44  ;;  %v4243_v30 = vsel %vm3930_vm7, %v4242_v7, %v19437_v41  ;;  %v4253_v50 = vsel %vm3930_vm7, %v4237_v4, %v4252_v8  ;;  %v4266_v25 = vrot.slane %v4245_v1, 4 }
 0x4b2   : > { %v19513_v19 = vsel %vm3930_vm7, %v4246_v9, %v19448_v21  ;;  %v19517_v26 = vsel %vm3930_vm7, %v4250_v33, %v19440_v45  ;;  %v4254_v55 = vrot.slane %v4243_v30, 4  ;;  %v4256_v3 = vrot.slane %v4239_v60, 4 }
 0x4b3   : > { %v4267_v13 = vsel %vm3930_vm7, %v4266_v25, %v4241_v15  ;;  %v4268_v49 = vrot.slane %v4241_v15, 4  ;;  %v4278_v44 = vrot.slane %v19517_v26, 4  ;;  %v4280_v41 = vrot.slane %v19513_v19, 4 }
 0x4b4   : > { %v4290_v18 = vrot.slane %v4253_v50, 4  ;;  %v4292_v8 = vrot.slane %v4249_v24, 4  ;;  %v4255_v56 = vsel %vm3930_vm7, %v4254_v55, %v4239_v60  ;;  %v4273_v21 = vperm.slane %v4267_v13, %v19386_v12 }
 0x4b5   : > { %v19525_v0 = vsel %vm3930_vm7, %v4245_v1, %v4268_v49  ;;  %v4261_v45 = vperm.slane %v4255_v56, %v19386_v12  ;;  %v4279_v17 = vsel %vm3930_vm7, %v4278_v44, %v19513_v19  ;;  %v4045_v59 = vperm.slane %v4039_v29, %v19386_v12 }
 0x4b6   : > { %v19532_v4 = vsel %vm3930_vm7, %v4253_v50, %v4292_v8  ;;  %v4285_v28 = vperm.slane %v4279_v17, %v19386_v12  ;;  %v4291_v16 = vsel %vm3930_vm7, %v4290_v18, %v4249_v24  ;;  %v4302_v20 = vrot.slane %v4273_v21, 4 }
 0x4b7   : > { %v4297_v15 = vperm.slane %v4291_v16, %v19386_v12  ;;  %v4304_v7 = vrot.slane %v4261_v45, 4  ;;  %v4057_v1 = vperm.slane %v4051_v31, %v19386_v12  ;;  %v4069_v9 = vperm.slane %v4063_v42, %v19386_v12 }
 0x4b8   : > { %v4303_v33 = vsel %vm3930_vm7, %v4302_v20, %v4261_v45  ;;  %v4322_v60 = vrot.slane %v4285_v28, 4  ;;  %v4081_v29 = vperm.slane %v4075_v5, %v19386_v12  ;;  %v4088_v50 = vrot.slane %v4045_v59, 4 }
 0x4b9   : > { %v4309_v25 = vperm.slane %v4303_v33, %v19408_v51  ;;  %v4320_v55 = vrot.slane %v4297_v15, 4  ;;  %v4305_v24 = vsel %vm3930_vm7, %v4273_v21, %v4304_v7  ;;  %v4086_v13 = vrot.slane %v4057_v1, 4 }
 0x4ba   : > { %v4313_v49 = vperm.slane %v4305_v24, %v19408_v51  ;;  %v4323_v44 = vsel %vm3930_vm7, %v4297_v15, %v4322_v60  ;;  %v4104_v18 = vrot.slane %v4081_v29, 4  ;;  %v4089_v31 = vsel %vm3930_vm7, %v4057_v1, %v4088_v50 }
 0x4bb   : > { %v4321_v42 = vsel %vm3930_vm7, %v4320_v55, %v4285_v28  ;;  %v4331_v8 = vperm.slane %v4323_v44, %v19408_v51  ;;  %v4340_v56 = vrot.slane %v4309_v25, 4  ;;  %v4087_v5 = vsel %vm3930_vm7, %v4086_v13, %v4045_v59 }
 0x4bc   : > { %v4327_v45 = vperm.slane %v4321_v42, %v19408_v51  ;;  %v4344_v17 = vrot.slane %v4313_v49, 4  ;;  %v4093_v21 = vperm.slane %v4087_v5, %v19408_v51  ;;  %v4105_v16 = vsel %vm3930_vm7, %v4104_v18, %v4069_v9 }
 0x4bd   : > { %v4342_v20 = vrot.slane %v4331_v8, 4  ;;  %v4111_v15 = vperm.slane %v4105_v16, %v19408_v51  ;;  %v4097_v7 = vperm.slane %v4089_v31, %v19408_v51  ;;  %v4106_v1 = vrot.slane %v4069_v9, 4 }
 0x4be   : > { %v4338_v33 = vrot.slane %v4327_v45, 4  ;;  %v4345_v28 = vsel %vm3930_vm7, %v4331_v8, %v4344_v17  ;;  %v4341_v60 = vsel %vm3930_vm7, %v4327_v45, %v4340_v56  ;;  %v4257_v59 = vsel %vm3930_vm7, %v4243_v30, %v4256_v3 }
 0x4bf   : > { %v4575_v50 = vpack.c.bf16 %v4345_v28, %v4345_v28  ;;  %v4573_v55 = vpack.c.bf16 %v4341_v60, %v4341_v60  ;;  %v4343_v24 = vsel %vm3930_vm7, %v4342_v20, %v4313_v49  ;;  %v4122_v13 = vrot.slane %v4111_v15, 4 }
 0x4c0   : > { %v4339_v44 = vsel %vm3930_vm7, %v4338_v33, %v4309_v25  ;;  %v4574_v18 = vpack.c.bf16 %v4343_v24, %v4343_v24  ;;  %v4107_v42 = vsel %vm3930_vm7, %v4081_v29, %v4106_v1  ;;  %v4128_v5 = vrot.slane %v4097_v7, 4 }
 0x4c1   : > { %v4085_v9 = vperm.slane %v19498_v63, %v19386_v12  ;;  %v4572_v31 = vpack.c.bf16 %v4339_v44, %v4339_v44  ;;  %v4640_v8 = vsel %vm4578_vm8, %v4575_v50, 0  ;;  %v4123_v56 = vsel %vm3930_vm7, %v4122_v13, %v4093_v21 }
 0x4c2   : > { %4649 = vmatpush.bf16.xpose.msrb.mxu1 %v4640_v8  ;;  %v4602_v30 = vsel %vm4578_vm8, %v4573_v55, 0  ;;  %v4621_v3 = vsel %vm4578_vm8, %v4574_v18, 0  ;;  %v4115_v49 = vperm.slane %v4107_v42, %v19408_v51  ;;  %v4265_v25 = vperm.slane %v4257_v59, %v19386_v12 }
 0x4c3   : > { %v4583_v29 = vsel %vm4578_vm8, %v4572_v31, 0  ;;  %4630 = vmatpush.bf16.xpose.msrb.mxu0 %v4621_v3  ;;  %v4277_v63 = vperm.slane %v19525_v0, %v19386_v12  ;;  %v4281_v45 = vsel %vm3930_vm7, %v19517_v26, %v4280_v41  ;;  %v4301_v17 = vperm.slane %v19532_v4, %v19386_v12 }
 0x4c4   : > { %4592 = vmatpush.bf16.xpose.msra.mxu3 %v4583_v29  ;;  %v4129_v16 = vsel %vm3930_vm7, %v4115_v49, %v4128_v5  ;;  %v4289_v20 = vperm.slane %v4281_v45, %v19386_v12  ;;  %v4126_v1 = vrot.slane %v4115_v49, 4  ;;  %v4124_v33 = vrot.slane %v4093_v21, 4 }
 0x4c5   : > { %v4049_v28 = vperm.slane %v19479_v11, %v19386_v12  ;;  %v4314_v0 = vrot.slane %v4277_v63, 4  ;;  %v4332_v60 = vrot.slane %v4301_v17, 4  ;;  %v4098_v19 = vrot.slane %v4061_v14, 4 }
 0x4c6   : > { %v4073_v26 = vperm.slane %v19490_v57, %v19386_v12  ;;  %v4127_v41 = vsel %vm3930_vm7, %v4126_v1, %v4097_v7  ;;  %v4125_v4 = vsel %vm3930_vm7, %v4111_v15, %v4124_v33  ;;  %v4116_v59 = vrot.slane %v4085_v9, 4 }
 0x4c7   : > { %v4569_v50 = vpack.c.bf16 %v4129_v16, %v4129_v16  ;;  %v4315_v21 = vsel %vm3930_vm7, %v4314_v0, %v4265_v25  ;;  %v4333_v11 = vsel %vm3930_vm7, %v4332_v60, %v4289_v20  ;;  %v4568_v55 = vpack.c.bf16 %v4127_v41, %v4127_v41 }
 0x4c8   : > { %v4319_v24 = vperm.slane %v4315_v21, %v19408_v51  ;;  %v4337_v13 = vperm.slane %v4333_v11, %v19408_v51  ;;  %v4099_v27 = vsel %vm3930_vm7, %v4098_v19, %v4049_v28  ;;  %v4117_v14 = vsel %vm3930_vm7, %v4116_v59, %v4073_v26 }
 0x4c9   : > { %v4566_v57 = vpack.c.bf16 %v4123_v56, %v4123_v56  ;;  %13739 = vmatmul.msk.bf16.vlgmr.msrb.gmra.mxu1 %vm4578_vm8, %v4569_v50  ;;  %v4103_v15 = vperm.slane %v4099_v27, %v19408_v51  ;;  %v4121_v7 = vperm.slane %v4117_v14, %v19408_v51  ;;  %v4373_v25 = vperm.slane %v19346_v23, %v19386_v12 }
 0x4ca   : > { %v4346_v44 = vrot.slane %v4337_v13, 4  ;;  %13738 = vmatmul.msk.bf16.vlgmr.msrb.gmra.mxu0 %vm4578_vm8, %v4568_v55  ;;  %v4348_v18 = vrot.slane %v4319_v24, 4  ;;  %v4369_v63 = vperm.slane %v19349_v32, %v19386_v12  ;;  %v4567_v45 = vpack.c.bf16 %v4125_v4, %v4125_v4 }
 0x4cb   : > { %13736 = vmatmul.msk.bf16.vlgmr.msra.gmra.mxu3 %vm4578_vm8, %v4566_v57  ;;  %v4130_v42 = vrot.slane %v4121_v7, 4  ;;  %v4132_v5 = vrot.slane %v4103_v15, 4  ;;  %v4386_v20 = vrot.slane %v19373_v53, 4  ;;  %v4420_v0 = vrot.slane %v4373_v25, 4 }
 0x4cc   : > { %4611 = vmatpush.bf16.xpose.msrb.mxu3 %v4602_v30  ;;  %v4347_v9 = vsel %vm3930_vm7, %v4346_v44, %v4319_v24  ;;  %v4349_v31 = vsel %vm3930_vm7, %v4337_v13, %v4348_v18  ;;  %v4408_v60 = vrot.slane %v4369_v63, 4  ;;  %v4391_v23 = vperm.slane %v19373_v53, %v19386_v12 }
 0x4cd   : > { %v4576_v8 = vpack.c.bf16 %v4347_v9, %v4347_v9  ;;  %v19602_v56 = vsel %vm3930_vm7, %v4130_v42, %v4103_v15  ;;  %v19605_v30 = vsel %vm3930_vm7, %v4121_v7, %v4132_v5  ;;  %v4577_v49 = vpack.c.bf16 %v4349_v31, %v4349_v31 }
 0x4ce   : > { %v4387_v41 = vsel %vm3930_vm7, 0.0, %v4386_v20  ;;  %v4432_v13 = vrot.slane %v4391_v23, 4 }
 0x4cf   : > { %v4659_v3 = vsel %vm4578_vm8, %v4576_v8, 0  ;;  %v4678_v1 = vsel %vm4578_vm8, %v4577_v49, 0  ;;  %v4395_v24 = vperm.slane %v4387_v41, %v19386_v12 }
 0x4d4   : > { %4668 = vmatpush.bf16.xpose.msra.mxu3 %v4659_v3  ;;  %v4444_v3 = vrot.slane %v4395_v24, 4 }
 0x4db   : > { %13737 = vmatmul.msk.bf16.vlgmr.msrb.gmra.mxu3 %vm4578_vm8, %v4567_v45 }
 0x4dc   : > { %4687 = vmatpush.bf16.xpose.msrb.mxu3 %v4678_v1 }
 0x4dd   : > { %v17495_v29 = vpop.permute.xlu1 %17494 }
 0x4de   : > { %v17497_v17 = vunpack.i.h.bf16 %v17495_v29  ;;  %v17496_v16 = vunpack.i.l.bf16 %v17495_v29 }
 0x4e0   : > { %v4374_v33 = vrot.slane %v17497_v17, 4  ;;  %v4376_v28 = vrot.slane %v17496_v16, 4 }
 0x4e1   : > { %v19619_v26 = vpop.permute.xlu2 %17499 }
 0x4e2   : > { %v4375_v19 = vsel %vm3930_vm7, %v4374_v33, %v17496_v16  ;;  %v4377_v32 = vsel %vm3930_vm7, %v17497_v17, %v4376_v28  ;;  %v17501_v50 = vunpack.i.l.bf16 %v19619_v26 }
 0x4e3   : > { %v4381_v4 = vperm.slane %v4375_v19, %v19386_v12  ;;  %v4385_v59 = vperm.slane %v4377_v32, %v19386_v12 }
 0x4e4   : > { %v4396_v14 = vrot.slane %v17501_v50, 4  ;;  %v4401_v44 = vperm.slane %v17501_v50, %v19386_v12 }
 0x4e5   : > { %v4406_v21 = vrot.slane %v4381_v4, 4  ;;  %v4409_v11 = vsel %vm3930_vm7, %v4381_v4, %v4408_v60  ;;  %v4418_v55 = vrot.slane %v4385_v59, 4  ;;  %v4421_v53 = vsel %vm3930_vm7, %v4385_v59, %v4420_v0 }
 0x4e6   : > { %v4417_v27 = vperm.slane %v4409_v11, %v19408_v51  ;;  %v4429_v7 = vperm.slane %v4421_v53, %v19408_v51  ;;  %v4397_v9 = vsel %vm3930_vm7, 0.0, %v4396_v14  ;;  %v4430_v31 = vrot.slane %v4401_v44, 4 }
 0x4e7   : > { %v4407_v57 = vsel %vm3930_vm7, %v4406_v21, %v4369_v63  ;;  %v4419_v15 = vsel %vm3930_vm7, %v4418_v55, %v4373_v25  ;;  %v4433_v8 = vsel %vm3930_vm7, %v4401_v44, %v4432_v13  ;;  %v4405_v29 = vperm.slane %v4397_v9, %v19386_v12 }
 0x4e8   : > { %v4413_v18 = vperm.slane %v4407_v57, %v19408_v51  ;;  %v4425_v42 = vperm.slane %v4419_v15, %v19408_v51  ;;  %v4460_v5 = vrot.slane %v4417_v27, 4  ;;  %v4441_v25 = vperm.slane %v4433_v8, %v19408_v51 }
 0x4e9   : > { %v4468_v63 = vrot.slane %v4429_v7, 4  ;;  %v4431_v45 = vsel %vm3930_vm7, %v4430_v31, %v4391_v23  ;;  %v4442_v16 = vrot.slane %v4405_v29, 4  ;;  %v4445_v20 = vsel %vm3930_vm7, %v4405_v29, %v4444_v3 }
 0x4ea   : > { %v4456_v49 = vrot.slane %v4413_v18, 4  ;;  %v4437_v17 = vperm.slane %v4431_v45, %v19408_v51  ;;  %v4458_v1 = vrot.slane %v4441_v25, 4  ;;  %v4464_v33 = vrot.slane %v4425_v42, 4 }
 0x4eb   : > { %v4453_v28 = vperm.slane %v4445_v20, %v19408_v51  ;;  %v4461_v0 = vsel %vm3930_vm7, %v4441_v25, %v4460_v5  ;;  %v4570_v60 = vpack.c.bf16 %v19602_v56, %v19602_v56  ;;  %v4443_v19 = vsel %vm3930_vm7, %v4442_v16, %v4395_v24 }
 0x4ec   : > { %v4454_v32 = vrot.slane %v4437_v17, 4  ;;  %v4457_v41 = vsel %vm3930_vm7, %v4437_v17, %v4456_v49  ;;  %v4459_v23 = vsel %vm3930_vm7, %v4458_v1, %v4417_v27  ;;  %v4449_v4 = vperm.slane %v4443_v19, %v19408_v51 }
 0x4ed   : > { %v4466_v59 = vrot.slane %v4453_v28, 4  ;;  %v4469_v50 = vsel %vm3930_vm7, %v4453_v28, %v4468_v63  ;;  %v4470_v21 = vrot.slane %v4459_v23, 4  ;;  %v4482_v55 = vrot.slane %v4461_v0, 4  ;;  %13740 = vmatmul.msk.bf16.vlgmr.msra.gmra.mxu3 %vm4578_vm8, %v4570_v60 }
 0x4ee   : > { %v4455_v11 = vsel %vm3930_vm7, %v4454_v32, %v4413_v18  ;;  %v4484_v53 = vrot.slane %v4457_v41, 4  ;;  %v4506_v13 = vrot.slane %v4469_v50, 4  ;;  %v4462_v56 = vrot.slane %v4449_v4, 4 }
 0x4ef   : > { %v4465_v24 = vsel %vm3930_vm7, %v4449_v4, %v4464_v33  ;;  %v4467_v14 = vsel %vm3930_vm7, %v4466_v59, %v4429_v7  ;;  %v4472_v57 = vrot.slane %v4455_v11, 4  ;;  %v4483_v27 = vsel %vm3930_vm7, %v4482_v55, %v4457_v41 }
 0x4f0   : > { %v4485_v15 = vsel %vm3930_vm7, %v4461_v0, %v4484_v53  ;;  %v4494_v44 = vrot.slane %v4467_v14, 4  ;;  %v4508_v5 = vrot.slane %v4465_v24, 4  ;;  %v4489_v18 = vperm.slane %v4483_v27, %v19386_v12 }
 0x4f1   : > { %v4473_v9 = vsel %vm3930_vm7, %v4459_v23, %v4472_v57  ;;  %v4493_v31 = vperm.slane %v4485_v15, %v19386_v12  ;;  %v4463_v8 = vsel %vm3930_vm7, %v4462_v56, %v4425_v42  ;;  %v4471_v3 = vsel %vm3930_vm7, %v4470_v21, %v4455_v11 }
 0x4f2   : > { %v4495_v49 = vsel %vm3930_vm7, %v4494_v44, %v4463_v8  ;;  %v4496_v7 = vrot.slane %v4463_v8, 4  ;;  %v4507_v29 = vsel %vm3930_vm7, %v4506_v13, %v4465_v24  ;;  %v4477_v63 = vperm.slane %v4471_v3, %v19386_v12 }
 0x4f3   : > { %v4530_v25 = vrot.slane %v4493_v31, 4  ;;  %v4501_v45 = vperm.slane %v4495_v49, %v19386_v12  ;;  %v4513_v17 = vperm.slane %v4507_v29, %v19386_v12  ;;  %v4518_v16 = vrot.slane %v4489_v18, 4 }
 0x4f4   : > { %v4481_v20 = vperm.slane %v4473_v9, %v19386_v12  ;;  %v4497_v1 = vsel %vm3930_vm7, %v4467_v14, %v4496_v7  ;;  %v4509_v42 = vsel %vm3930_vm7, %v4469_v50, %v4508_v5  ;;  %v4520_v28 = vrot.slane %v4477_v63, 4 }
 0x4f5   : > { %v4536_v33 = vrot.slane %v4513_v17, 4  ;;  %v4538_v0 = vrot.slane %v4501_v45, 4  ;;  %v4519_v60 = vsel %vm3930_vm7, %v4518_v16, %v4477_v63  ;;  %v4505_v19 = vperm.slane %v4497_v1, %v19386_v12 }
 0x4f6   : > { %v4517_v32 = vperm.slane %v4509_v42, %v19386_v12  ;;  %v4531_v41 = vsel %vm3930_vm7, %v4530_v25, %v4481_v20  ;;  %v4525_v23 = vperm.slane %v4519_v60, %v19408_v51  ;;  %v4521_v59 = vsel %vm3930_vm7, %v4489_v18, %v4520_v28  ;;  %v19699_v60 = vpop.f32.mrf.mxu1 }
 0x4f7   : > { %v4537_v4 = vsel %vm3930_vm7, %v4536_v33, %v4501_v45  ;;  %v4539_v21 = vsel %vm3930_vm7, %v4513_v17, %v4538_v0  ;;  %v4529_v11 = vperm.slane %v4521_v59, %v19408_v51  ;;  %v4535_v53 = vperm.slane %v4531_v41, %v19408_v51 }
 0x4f8   : > { %v4543_v50 = vperm.slane %v4537_v4, %v19408_v51  ;;  %v4547_v55 = vperm.slane %v4539_v21, %v19408_v51  ;;  %v4556_v13 = vrot.slane %v4525_v23, 4  ;;  %v4548_v56 = vrot.slane %v4517_v32, 4 }
 0x4f9   : > { %v4560_v14 = vrot.slane %v4529_v11, 4  ;;  %v4564_v57 = vrot.slane %v4535_v53, 4  ;;  %v4571_v15 = vpack.c.bf16 %v19605_v30, %v19605_v30  ;;  %v3913_v0 = vlaneseq }
 0x4fa   : > { %v4554_v24 = vrot.slane %v4543_v50, 4  ;;  %v4558_v27 = vrot.slane %v4547_v55, 4  ;;  %v4557_v44 = vsel %vm3930_vm7, %v4543_v50, %v4556_v13  ;;  %v4549_v5 = vsel %vm3930_vm7, %v4548_v56, %v4505_v19  ;;  %v19701_v19 = vpop.f32.mrf.mxu0 }
 0x4fb   : > { %v4779_v9 = vpack.c.bf16 %v4557_v44, %v4557_v44  ;;  %v4561_v31 = vsel %vm3930_vm7, %v4547_v55, %v4560_v14  ;;  %v4553_v8 = vperm.slane %v4549_v5, %v19408_v51  ;;  %v3914_v32 = vand.u32 127, %v3913_v0 }
 0x4fc   : > { %v4555_v18 = vsel %vm3930_vm7, %v4554_v24, %v4525_v23  ;;  %v4781_v49 = vpack.c.bf16 %v4561_v31, %v4561_v31  ;;  %v4559_v7 = vsel %vm3930_vm7, %v4558_v27, %v4529_v11  ;;  %v18187_v23 = vmov -1e+30  }
 0x4fd   : > { %v4778_v3 = vpack.c.bf16 %v4555_v18, %v4555_v18  ;;  %13741 = vmatmul.msk.bf16.vlgmr.msrb.gmra.mxu3 %vm4578_vm8, %v4571_v15  ;;  %v4808_v30 = vsel %vm4787_vm9, %v4779_v9, 0  ;;  %v4565_v29 = vsel %vm3930_vm7, %v4553_v8, %v4564_v57  ;;  %v4780_v25 = vpack.c.bf16 %v4559_v7, %v4559_v7 }
 0x4fe   : > { %v4562_v63 = vrot.slane %v4553_v8, 4  ;;  %4817 = vmatpush.bf16.msra.mxu1 %v4808_v30  ;;  %v4846_v17 = vsel %vm4787_vm9, %v4781_v49, 0  ;;  %v4783_v16 = vpack.c.bf16 %v4565_v29, %v4565_v29  ;;  %vm3915_vm10 = vcmp.lt.s32.totalorder %v3914_v32, 5 }
 0x4ff   : > { %v4789_v45 = vsel %vm4787_vm9, %v4778_v3, 0  ;;  %4855 = vmatpush.bf16.msra.mxu3 %v4846_v17  ;;  %v4827_v20 = vsel %vm4787_vm9, %v4780_v25, 0  ;;  %v19703_v4 = vsel %vm3915_vm10, 0.0, %v18187_v23 }
 0x500   : > { %4798 = vmatpush.bf16.msra.mxu0 %v4789_v45  ;;  %v4563_v1 = vsel %vm3930_vm7, %v4562_v63, %v4535_v53  ;;  %v4884_v42 = vsel %vm4787_vm9, %v4783_v16, 0  ;;  %4836 = vmatpush.bf16.msrb.mxu2 %v4827_v20 }
 0x501   : > { %v4782_v33 = vpack.c.bf16 %v4563_v1, %v4563_v1 }
 0x502   : > { %4893 = vmatpush.bf16.msrb.mxu1 %v4884_v42 }
 0x503   : > { %v4865_v28 = vsel %vm4787_vm9, %v4782_v33, 0 }
 0x504   : > { %4874 = vmatpush.bf16.msrb.mxu0 %v4865_v28 }
 0x546   : > { %v4651_v41 = vpop.f32.mrf.mxu1 }
 0x547   : > { %v4696_v59 = vmul.f32 0.125, %v4651_v41  ;;  %v4632_v21 = vpop.f32.mrf.mxu0 }
 0x548   : > { %v4695_v11 = vmul.f32 0.125, %v4632_v21 }
 0x549   : > { %v4702_v50 = vadd.f32 %v4696_v59, %v19703_v4 }
 0x54a   : > { %v4701_v24 = vadd.f32 %v4695_v11, %v19703_v4 }
 0x54b   : > { %v4715_v55 = vsel %vm4705_vm11, %v4702_v50, -inf }
 0x54c   : > { %4716 = vmax.xlane.f32.xlu1 %v4715_v55  ;;  %v4712_v57 = vsel %vm4705_vm11, %v4701_v24, -inf }
 0x54e   : > { %v4594_v53 = vpop.f32.mrf.mxu3  ;;  %v4653_v13 = vpop.f32.mrf.mxu1 }
 0x54f   : > { %v4634_v56 = vpop.f32.mrf.mxu0  ;;  %v4693_v14 = vmul.f32 0.125, %v4594_v53 }
 0x551   : > { %v4699_v15 = vadd.f32 %v4693_v14, %v19703_v4 }
 0x553   : > { %v4706_v44 = vsel %vm4705_vm11, %v4699_v15, -inf }
 0x554   : > { %4713 = vmax.xlane.f32.xlu1 %v4712_v57 }
 0x556   : > { %v4596_v27 = vpop.f32.mrf.mxu3 }
 0x55c   : > { %4707 = vmax.xlane.f32.xlu1 %v4706_v44  ;;  %v3631_v44 = vadd.f32 %v19308_v58, %v2415_v40  ;;  %v17502_v58 = vunpack.i.h.bf16 %v19619_v26 }
 0x55e   : > { %v4613_v5 = vpop.f32.mrf.mxu3 }
 0x55f   : > { %v4694_v9 = vmul.f32 0.125, %v4613_v5  ;;  %v3645_v5 = vadd.f32 %v19312_v62, %v3631_v44 }
 0x561   : > { %v4700_v18 = vadd.f32 %v4694_v9, %v19703_v4 }
 0x563   : > { %v4709_v31 = vsel %vm4705_vm11, %v4700_v18, -inf }
 0x564   : > { %4710 = vmax.xlane.f32.xlu2 %v4709_v31  ;;  %v5370_v31 = vrot.slane %v19339_v35, 4 }
 0x566   : > { %v4615_v8 = vpop.f32.mrf.mxu3  ;;  %v5371_v40 = vsel %vm3930_vm7, 0.0, %v5370_v31 }
 0x570   : > { %v4670_v3 = vpop.f32.mrf.mxu3 }
 0x571   : > { %v4697_v49 = vmul.f32 0.125, %v4670_v3  ;;  %v5348_v3 = vrot.slane %v19376_v54, 4 }
 0x573   : > { %v4703_v7 = vadd.f32 %v4697_v49, %v19703_v4  ;;  %v5346_v49 = vrot.slane %v19337_v34, 4  ;;  %v5349_v22 = vsel %vm3930_vm7, %v19337_v34, %v5348_v3 }
 0x575   : > { %v4718_v30 = vsel %vm4705_vm11, %v4703_v7, -inf  ;;  %v5347_v62 = vsel %vm3930_vm7, %v5346_v49, %v19376_v54 }
 0x576   : > { %4719 = vmax.xlane.f32.xlu0 %v4718_v30  ;;  %v5379_v30 = vperm.slane %v5371_v40, %v19386_v12  ;;  %v5353_v34 = vperm.slane %v5347_v62, %v19386_v12 }
 0x578   : > { %v4672_v29 = vpop.f32.mrf.mxu3 }
 0x580   : > { %v4689_v25 = vpop.f32.mrf.mxu3 }
 0x581   : > { %v4698_v63 = vmul.f32 0.125, %v4689_v25  ;;  %v5360_v25 = vrot.slane %v17502_v58, 4 }
 0x583   : > { %v19716_v45 = vadd.f32 %v4698_v63, %v19703_v4 }
 0x585   : > { %v4721_v17 = vsel %vm4705_vm11, %v19716_v45, -inf }
 0x586   : > { %4722 = vmax.xlane.f32.xlu1 %v4721_v17 }
 0x588   : > { %v4691_v16 = vpop.f32.mrf.mxu3 }
 0x58a   : > { %17504 = vrot.lane.b32.xlu0 %v17503_v36, %s18184_s1 }
 0x5bf   : > { %v4717_v20 = vpop.xlane.xlu1 %4716 }
 0x5c0   : > { %v4727_v1 = vsub.f32 %v4702_v50, %v4717_v20 }
 0x5c2   : > { %v4736_v42 = vmul.f32 1.442695, %v4727_v1 }
 0x5c4   : > { %17540 = vpow2.f32 %v4736_v42  ;;  %v5428_v42 = vrot.slane %v5379_v30, 4 }
 0x5c7   : > { %v4714_v33 = vpop.xlane.xlu1 %4713 }
 0x5c8   : > { %v4726_v28 = vsub.f32 %v4701_v24, %v4714_v33 }
 0x5ca   : > { %v19724_v0 = vpop.eup %17540  ;;  %v4734_v32 = vmul.f32 1.442695, %v4726_v28 }
 0x5cb   : > { %v4751_v41 = vsel %vm4705_vm11, %v19724_v0, 0.0 }
 0x5cc   : > { %17542 = vpow2.f32 %v4734_v32  ;;  %4752 = vadd.xlane.f32.xlu1 %v4751_v41 }
 0x5cf   : > { %v4708_v23 = vpop.xlane.xlu1 %4707 }
 0x5d0   : > { %v4724_v59 = vsub.f32 %v4699_v15, %v4708_v23 }
 0x5d2   : > { %v19728_v21 = vpop.eup %17542  ;;  %v4730_v11 = vmul.f32 1.442695, %v4724_v59 }
 0x5d3   : > { %v4748_v36 = vsel %vm4705_vm11, %v19728_v21, 0.0 }
 0x5d4   : > { %17544 = vpow2.f32 %v4730_v11  ;;  %4749 = vadd.xlane.f32.xlu0 %v4748_v36  ;;  %v5392_v11 = vrot.slane %v5353_v34, 4 }
 0x5d7   : > { %v4711_v50 = vpop.xlane.xlu2 %4710 }
 0x5d8   : > { %v4725_v55 = vsub.f32 %v4700_v18, %v4711_v50  ;;  %v19747_v18 = vadd.f32 %v19310_v61, %v3645_v5  ;;  %v5375_v61 = vperm.slane %v19339_v35, %v19386_v12 }
 0x5da   : > { %v19732_v53 = vpop.eup %17544  ;;  %v4732_v13 = vmul.f32 1.442695, %v4725_v55  ;;  %v5416_v16 = vrot.slane %v5375_v61, 4 }
 0x5db   : > { %v4742_v56 = vsel %vm4705_vm11, %v19732_v53, 0.0 }
 0x5dc   : > { %17546 = vpow2.f32 %v4732_v13  ;;  %4743 = vadd.xlane.f32.xlu1 %v4742_v56 }
 0x5e2   : > { %v19736_v24 = vpop.eup %17546 }
 0x5e3   : > { %v4745_v14 = vsel %vm4705_vm11, %v19736_v24, 0.0 }
 0x5e4   : > { %4746 = vadd.xlane.f32.xlu2 %v4745_v14 }
 0x5e9   : > { %v4720_v57 = vpop.xlane.xlu0 %4719 }
 0x5ea   : > { %v4728_v27 = vsub.f32 %v4703_v7, %v4720_v57  ;;  %v5357_v7 = vperm.slane %v5349_v22, %v19386_v12 }
 0x5ec   : > { %v4738_v15 = vmul.f32 1.442695, %v4728_v27  ;;  %v5404_v1 = vrot.slane %v5357_v7, 4 }
 0x5ee   : > { %17548 = vpow2.f32 %v4738_v15 }
 0x5f4   : > { %v19744_v9 = vpop.eup %17548 }
 0x5f5   : > { %v4754_v8 = vsel %vm4705_vm11, %v19744_v9, 0.0  ;;  %5127 = vrot.lane.b32.xlu1 %v19747_v18, %s18184_s1 }
 0x5f6   : > { %4755 = vadd.xlane.f32.xlu0 %v4754_v8 }
 0x5fc   : > { %v17505_v29 = vpop.permute.xlu0 %17504  ;;  %17509 = vrot.lane.b32.xlu2 %v17508_v47, %s18184_s1 }
 0x5fd   : > { %v17507_v63 = vunpack.i.h.bf16 %v17505_v29  ;;  %v17506_v17 = vunpack.i.l.bf16 %v17505_v29 }
 0x5ff   : > { %v5380_v35 = vrot.slane %v17507_v63, 4  ;;  %v5385_v26 = vperm.slane %v17507_v63, %v19386_v12  ;;  %v5358_v54 = vrot.slane %v17506_v17, 4  ;;  %v5361_v20 = vsel %vm3930_vm7, %v17506_v17, %v5360_v25 }
 0x600   : > { %v5369_v33 = vperm.slane %v5361_v20, %v19386_v12 }
 0x601   : > { %v5381_v28 = vsel %vm3930_vm7, 0.0, %v5380_v35  ;;  %v5414_v32 = vrot.slane %v5385_v26, 4  ;;  %v5417_v41 = vsel %vm3930_vm7, %v5385_v26, %v5416_v16  ;;  %v5359_v23 = vsel %vm3930_vm7, %v5358_v54, %v17502_v58 }
 0x602   : > { %v5389_v39 = vperm.slane %v5381_v28, %v19386_v12  ;;  %v5425_v43 = vperm.slane %v5417_v41, %v19408_v51  ;;  %v5365_v47 = vperm.slane %v5359_v23, %v19386_v12  ;;  %v5402_v59 = vrot.slane %v5369_v33, 4 }
 0x603   : > { %v5415_v36 = vsel %vm3930_vm7, %v5414_v32, %v5375_v61  ;;  %v5405_v50 = vsel %vm3930_vm7, %v5369_v33, %v5404_v1 }
 0x604   : > { %v5421_v55 = vperm.slane %v5415_v36, %v19408_v51  ;;  %v5426_v13 = vrot.slane %v5389_v39, 4  ;;  %v5429_v56 = vsel %vm3930_vm7, %v5389_v39, %v5428_v42  ;;  %v5442_v14 = vrot.slane %v5425_v43, 4 }
 0x605   : > { %v5437_v57 = vperm.slane %v5429_v56, %v19408_v51  ;;  %v5390_v27 = vrot.slane %v5365_v47, 4  ;;  %v5393_v15 = vsel %vm3930_vm7, %v5365_v47, %v5392_v11  ;;  %v5403_v44 = vsel %vm3930_vm7, %v5402_v59, %v5357_v7 }
 0x606   : > { %v5427_v5 = vsel %vm3930_vm7, %v5426_v13, %v5379_v30  ;;  %v5438_v31 = vrot.slane %v5421_v55, 4  ;;  %v5401_v8 = vperm.slane %v5393_v15, %v19408_v51  ;;  %v5409_v3 = vperm.slane %v5403_v44, %v19408_v51 }
 0x607   : > { %v5433_v49 = vperm.slane %v5427_v5, %v19408_v51  ;;  %v5450_v22 = vrot.slane %v5437_v57, 4  ;;  %v5391_v40 = vsel %vm3930_vm7, %v5390_v27, %v5353_v34  ;;  %v5413_v58 = vperm.slane %v5405_v50, %v19408_v51 }
 0x608   : > { %v5397_v61 = vperm.slane %v5391_v40, %v19408_v51  ;;  %v5443_v62 = vsel %vm3930_vm7, %v5442_v14, %v5401_v8  ;;  %v5444_v29 = vrot.slane %v5401_v8, 4  ;;  %v5448_v7 = vrot.slane %v5409_v3, 4 }
 0x609   : > { %v5446_v25 = vrot.slane %v5433_v49, 4  ;;  %v5451_v30 = vsel %vm3930_vm7, %v5450_v22, %v5413_v58  ;;  %v5452_v63 = vrot.slane %v5413_v58, 4  ;;  %v5454_v17 = vrot.slane %v5443_v62, 4 }
 0x60a   : > { %v5439_v16 = vsel %vm3930_vm7, %v5438_v31, %v5397_v61  ;;  %v5440_v35 = vrot.slane %v5397_v61, 4  ;;  %v5445_v26 = vsel %vm3930_vm7, %v5425_v43, %v5444_v29  ;;  %v5449_v34 = vsel %vm3930_vm7, %v5433_v49, %v5448_v7 }
 0x60b   : > { %v5447_v54 = vsel %vm3930_vm7, %v5446_v25, %v5409_v3  ;;  %v5453_v20 = vsel %vm3930_vm7, %v5437_v57, %v5452_v63  ;;  %v5456_v1 = vrot.slane %v5439_v16, 4  ;;  %v5466_v42 = vrot.slane %v5445_v26, 4  ;;  %v4723_v3 = vpop.xlane.xlu1 %4722 }
 0x60c   : > { %v5441_v33 = vsel %vm3930_vm7, %v5421_v55, %v5440_v35  ;;  %v5478_v28 = vrot.slane %v5451_v30, 4  ;;  %v5480_v32 = vrot.slane %v5447_v54, 4  ;;  %v5490_v41 = vrot.slane %v5453_v20, 4 }
 0x60d   : > { %v5457_v23 = vsel %vm3930_vm7, %v5443_v62, %v5456_v1  ;;  %v5467_v39 = vsel %vm3930_vm7, %v5466_v42, %v5441_v33  ;;  %v5468_v47 = vrot.slane %v5441_v33, 4  ;;  %v5492_v59 = vrot.slane %v5449_v34, 4 }
 0x60e   : > { %v5455_v43 = vsel %vm3930_vm7, %v5454_v17, %v5439_v16  ;;  %v5473_v11 = vperm.slane %v5467_v39, %v19386_v12  ;;  %v5479_v36 = vsel %vm3930_vm7, %v5478_v28, %v5447_v54  ;;  %v5491_v50 = vsel %vm3930_vm7, %v5490_v41, %v5449_v34 }
 0x60f   : > { %v5469_v13 = vsel %vm3930_vm7, %v5445_v26, %v5468_v47  ;;  %v5461_v55 = vperm.slane %v5455_v43, %v19386_v12  ;;  %v5485_v56 = vperm.slane %v5479_v36, %v19386_v12  ;;  %v5497_v14 = vperm.slane %v5491_v50, %v19386_v12 }
 0x610   : > { %v5477_v57 = vperm.slane %v5469_v13, %v19386_v12  ;;  %v5502_v27 = vrot.slane %v5473_v11, 4  ;;  %v5465_v15 = vperm.slane %v5457_v23, %v19386_v12  ;;  %v5481_v5 = vsel %vm3930_vm7, %v5451_v30, %v5480_v32 }
 0x611   : > { %v5520_v44 = vrot.slane %v5497_v14, 4  ;;  %v5493_v31 = vsel %vm3930_vm7, %v5453_v20, %v5492_v59  ;;  %v5504_v8 = vrot.slane %v5461_v55, 4  ;;  %v5489_v40 = vperm.slane %v5481_v5, %v19386_v12 }
 0x612   : > { %v5514_v49 = vrot.slane %v5477_v57, 4  ;;  %v5503_v22 = vsel %vm3930_vm7, %v5502_v27, %v5461_v55  ;;  %v5501_v58 = vperm.slane %v5493_v31, %v19386_v12  ;;  %v5522_v7 = vrot.slane %v5485_v56, 4 }
 0x613   : > { %v5509_v61 = vperm.slane %v5503_v22, %v19408_v51  ;;  %v5521_v62 = vsel %vm3930_vm7, %v5520_v44, %v5485_v56  ;;  %v5505_v29 = vsel %vm3930_vm7, %v5473_v11, %v5504_v8  ;;  %v4729_v16 = vsub.f32 %v19716_v45, %v4723_v3 }
 0x614   : > { %v5527_v25 = vperm.slane %v5521_v62, %v19408_v51  ;;  %v5515_v30 = vsel %vm3930_vm7, %v5514_v49, %v5465_v15  ;;  %v5532_v63 = vrot.slane %v5501_v58, 4  ;;  %v5513_v17 = vperm.slane %v5505_v29, %v19408_v51 }
 0x615   : > { %v5540_v35 = vrot.slane %v5509_v61, 4  ;;  %v5519_v26 = vperm.slane %v5515_v30, %v19408_v51  ;;  %v5523_v34 = vsel %vm3930_vm7, %v5497_v14, %v5522_v7  ;;  %v4740_v47 = vmul.f32 1.442695, %v4729_v16 }
 0x616   : > { %v5538_v54 = vrot.slane %v5527_v25, 4  ;;  %v5533_v20 = vsel %vm3930_vm7, %v5532_v63, %v5489_v40  ;;  %v5531_v1 = vperm.slane %v5523_v34, %v19408_v51  ;;  %v5544_v42 = vrot.slane %v5513_v17, 4 }
 0x617   : > { %v5541_v33 = vsel %vm3930_vm7, %v5527_v25, %v5540_v35  ;;  %v5537_v28 = vperm.slane %v5533_v20, %v19408_v51  ;;  %v5548_v32 = vrot.slane %v5519_v26, 4  ;;  %17550 = vpow2.f32 %v4740_v47 }
 0x618   : > { %v5539_v41 = vsel %vm3930_vm7, %v5538_v54, %v5509_v61  ;;  %v5773_v23 = vpack.c.bf16 %v5541_v33, %v5541_v33  ;;  %v5542_v45 = vrot.slane %v5531_v1, 4  ;;  %v5545_v39 = vsel %vm3930_vm7, %v5531_v1, %v5544_v42 }
 0x619   : > { %v5772_v59 = vpack.c.bf16 %v5539_v41, %v5539_v41  ;;  %v5549_v43 = vsel %vm3930_vm7, %v5537_v28, %v5548_v32  ;;  %v5546_v11 = vrot.slane %v5537_v28, 4  ;;  %v5775_v30 = vpack.c.bf16 %v5545_v39, %v5545_v39 }
 0x61a   : > { %v5801_v36 = vsel %vm4578_vm8, %v5773_v23, 0  ;;  %v5543_v50 = vsel %vm3930_vm7, %v5542_v45, %v5513_v17  ;;  %v5777_v5 = vpack.c.bf16 %v5549_v43, %v5549_v43  ;;  %v5141_v63 = vperm.slane %v19293_v46, %v19386_v12 }
 0x61b   : > { %v5782_v13 = vsel %vm4578_vm8, %v5772_v59, 0  ;;  %5810 = vmatpush.bf16.xpose.msrb.mxu3 %v5801_v36  ;;  %v5547_v55 = vsel %vm3930_vm7, %v5546_v11, %v5519_v26  ;;  %v5774_v61 = vpack.c.bf16 %v5543_v50, %v5543_v50  ;;  %v5154_v35 = vrot.slane %v19747_v18, 4 }
 0x61c   : > { %5791 = vmatpush.bf16.xpose.msra.mxu2 %v5782_v13  ;;  %v5877_v8 = vsel %vm4578_vm8, %v5777_v5, 0  ;;  %v5776_v52 = vpack.c.bf16 %v5547_v55, %v5547_v55  ;;  %v5159_v34 = vperm.slane %v19747_v18, %v19386_v12  ;;  %v5188_v1 = vrot.slane %v5141_v63, 4 }
 0x61d   : > { %v19839_v56 = vpop.eup %17550 }
 0x61e   : > { %v4757_v14 = vsel %vm4705_vm11, %v19839_v56, 0.0  ;;  %v5200_v18 = vrot.slane %v5159_v34, 4 }
 0x625   : > { %4758 = vadd.xlane.f32.xlu2 %v4757_v14 }
 0x63d   : > { %17514 = vrot.lane.b32.xlu2 %v17513_v6, %s18184_s1  ;;  %v5858_v6 = vsel %vm4578_vm8, %v5776_v52, 0 }
 0x63f   : > { %v4753_v57 = vpop.xlane.xlu1 %4752 }
 0x640   : > { %17552 = vrcp.f32 %v4753_v57 }
 0x646   : > { %v17553_v27 = vpop.eup %17552 }
 0x647   : > { %v4769_v15 = vmul.f32 %v17553_v27, %v19724_v0  ;;  %v4750_v44 = vpop.xlane.xlu0 %4749 }
 0x648   : > { %17554 = vrcp.f32 %v4750_v44 }
 0x649   : > { %v4775_v31 = vpack.c.bf16 %v4769_v15, %v4769_v15 }
 0x64b   : > { %13745 = vmatmul.msk.bf16.vlgmr.msra.gmra.mxu3 %vm4705_vm11, %v4775_v31 }
 0x64c   : > { %5886 = vmatpush.bf16.xpose.msra.mxu3 %v5877_v8 }
 0x64e   : > { %v17555_v3 = vpop.eup %17554 }
 0x64f   : > { %v4768_v49 = vmul.f32 %v17555_v3, %v19728_v21  ;;  %v4744_v22 = vpop.xlane.xlu1 %4743  ;;  %v5820_v21 = vsel %vm4578_vm8, %v5774_v61, 0 }
 0x650   : > { %17556 = vrcp.f32 %v4744_v22 }
 0x651   : > { %v4774_v37 = vpack.c.bf16 %v4768_v49, %v4768_v49 }
 0x653   : > { %13744 = vmatmul.msk.bf16.vlgmr.msrb.gmra.mxu2 %vm4705_vm11, %v4774_v37 }
 0x654   : > { %5867 = vmatpush.bf16.xpose.msrb.mxu2 %v5858_v6 }
 0x656   : > { %v17557_v0 = vpop.eup %17556 }
 0x657   : > { %v4766_v40 = vmul.f32 %v17557_v0, %v19732_v53  ;;  %v4747_v58 = vpop.xlane.xlu2 %4746  ;;  %v5137_v53 = vperm.slane %v19299_v48, %v19386_v12  ;;  %v5155_v48 = vsel %vm3930_vm7, 0.0, %v5154_v35 }
 0x658   : > { %17558 = vrcp.f32 %v4747_v58  ;;  %v5163_v43 = vperm.slane %v5155_v48, %v19386_v12 }
 0x659   : > { %v4772_v62 = vpack.c.bf16 %v4766_v40, %v4766_v40  ;;  %v5176_v33 = vrot.slane %v5137_v53, 4 }
 0x65a   : > { %v5212_v31 = vrot.slane %v5163_v43, 4 }
 0x65b   : > { %13742 = vmatmul.msk.bf16.vlgmr.msra.gmra.mxu0 %vm4705_vm11, %v4772_v62 }
 0x65c   : > { %5829 = vmatpush.bf16.xpose.msra.mxu0 %v5820_v21 }
 0x65e   : > { %v17559_v29 = vpop.eup %17558 }
 0x65f   : > { %v4767_v7 = vmul.f32 %v17559_v29, %v19736_v24  ;;  %v17510_v25 = vpop.permute.xlu2 %17509  ;;  %v5839_v24 = vsel %vm4578_vm8, %v5775_v30, 0 }
 0x660   : > { %v17512_v17 = vunpack.i.h.bf16 %v17510_v25  ;;  %v17511_v16 = vunpack.i.l.bf16 %v17510_v25 }
 0x661   : > { %v4773_v26 = vpack.c.bf16 %v4767_v7, %v4767_v7 }
 0x662   : > { %v5142_v54 = vrot.slane %v17512_v17, 4  ;;  %v5144_v20 = vrot.slane %v17511_v16, 4 }
 0x663   : > { %13743 = vmatmul.msk.bf16.vlgmr.msra.gmra.mxu1 %vm4705_vm11, %v4773_v26 }
 0x664   : > { %v5143_v46 = vsel %vm3930_vm7, %v5142_v54, %v17511_v16  ;;  %v5145_v42 = vsel %vm3930_vm7, %v17512_v17, %v5144_v20  ;;  %5848 = vmatpush.bf16.xpose.msra.mxu1 %v5839_v24 }
 0x665   : > { %v5149_v28 = vperm.slane %v5143_v46, %v19386_v12  ;;  %v5153_v32 = vperm.slane %v5145_v42, %v19386_v12 }
 0x667   : > { %v5174_v41 = vrot.slane %v5149_v28, 4  ;;  %v5177_v23 = vsel %vm3930_vm7, %v5149_v28, %v5176_v33  ;;  %v5186_v45 = vrot.slane %v5153_v32, 4  ;;  %v5189_v39 = vsel %vm3930_vm7, %v5153_v32, %v5188_v1  ;;  %v5128_v59 = vpop.permute.xlu1 %5127 }
 0x668   : > { %v5185_v11 = vperm.slane %v5177_v23, %v19408_v51  ;;  %v5164_v36 = vrot.slane %v5128_v59, 4  ;;  %v5197_v55 = vperm.slane %v5189_v39, %v19408_v51  ;;  %v5169_v14 = vperm.slane %v5128_v59, %v19386_v12 }
 0x669   : > { %v4756_v47 = vpop.xlane.xlu0 %4755  ;;  %v5175_v50 = vsel %vm3930_vm7, %v5174_v41, %v5137_v53  ;;  %v5187_v13 = vsel %vm3930_vm7, %v5186_v45, %v5141_v63 }
 0x66a   : > { %17560 = vrcp.f32 %v4756_v47  ;;  %v5181_v57 = vperm.slane %v5175_v50, %v19408_v51  ;;  %v5193_v27 = vperm.slane %v5187_v13, %v19408_v51  ;;  %v5165_v15 = vsel %vm3930_vm7, 0.0, %v5164_v36 }
 0x66b   : > { %v5198_v44 = vrot.slane %v5169_v14, 4  ;;  %v5201_v5 = vsel %vm3930_vm7, %v5169_v14, %v5200_v18  ;;  %v5173_v8 = vperm.slane %v5165_v15, %v19386_v12  ;;  %v5228_v22 = vrot.slane %v5185_v11, 4 }
 0x66c   : > { %v5209_v3 = vperm.slane %v5201_v5, %v19408_v51  ;;  %v5224_v49 = vrot.slane %v5181_v57, 4  ;;  %v5236_v52 = vrot.slane %v5197_v55, 4  ;;  %v5232_v62 = vrot.slane %v5193_v27, 4 }
 0x66d   : > { %v5199_v37 = vsel %vm3930_vm7, %v5198_v44, %v5159_v34  ;;  %v5210_v40 = vrot.slane %v5173_v8, 4  ;;  %v5213_v58 = vsel %vm3930_vm7, %v5173_v8, %v5212_v31 }
 0x66e   : > { %v5205_v0 = vperm.slane %v5199_v37, %v19408_v51  ;;  %v5226_v61 = vrot.slane %v5209_v3, 4  ;;  %v5221_v29 = vperm.slane %v5213_v58, %v19408_v51  ;;  %v5229_v7 = vsel %vm3930_vm7, %v5209_v3, %v5228_v22 }
 0x66f   : > { %v5211_v25 = vsel %vm3930_vm7, %v5210_v40, %v5163_v43  ;;  %v5250_v54 = vrot.slane %v5229_v7, 4 }
 0x670   : > { %v17561_v6 = vpop.eup %17560  ;;  %v5222_v30 = vrot.slane %v5205_v0, 4  ;;  %v5225_v63 = vsel %vm3930_vm7, %v5205_v0, %v5224_v49  ;;  %v5227_v17 = vsel %vm3930_vm7, %v5226_v61, %v5185_v11  ;;  %v5217_v53 = vperm.slane %v5211_v25, %v19408_v51 }
 0x671   : > { %v4770_v21 = vmul.f32 %v17561_v6, %v19744_v9  ;;  %v5234_v35 = vrot.slane %v5221_v29, 4  ;;  %v5237_v26 = vsel %vm3930_vm7, %v5221_v29, %v5236_v52  ;;  %v5238_v9 = vrot.slane %v5227_v17, 4 }
 0x672   : > { %v5223_v34 = vsel %vm3930_vm7, %v5222_v30, %v5181_v57  ;;  %v5252_v20 = vrot.slane %v5225_v63, 4  ;;  %v5230_v24 = vrot.slane %v5217_v53, 4  ;;  %v5233_v1 = vsel %vm3930_vm7, %v5217_v53, %v5232_v62 }
 0x673   : > { %v4776_v16 = vpack.c.bf16 %v4770_v21, %v4770_v21  ;;  %v5235_v46 = vsel %vm3930_vm7, %v5234_v35, %v5197_v55  ;;  %v5240_v42 = vrot.slane %v5223_v34, 4  ;;  %v5239_v33 = vsel %vm3930_vm7, %v5238_v9, %v5223_v34 }
 0x674   : > { %v5251_v48 = vsel %vm3930_vm7, %v5250_v54, %v5225_v63  ;;  %v5253_v28 = vsel %vm3930_vm7, %v5229_v7, %v5252_v20  ;;  %v5262_v32 = vrot.slane %v5235_v46, 4  ;;  %v5231_v18 = vsel %vm3930_vm7, %v5230_v24, %v5193_v27 }
 0x675   : > { %13746 = vmatmul.msk.bf16.vlgmr.msrb.gmra.mxu0 %vm4705_vm11, %v4776_v16  ;;  %v5241_v41 = vsel %vm3930_vm7, %v5227_v17, %v5240_v42  ;;  %v5245_v23 = vperm.slane %v5239_v33, %v19386_v12  ;;  %v5257_v45 = vperm.slane %v5251_v48, %v19386_v12  ;;  %v5261_v47 = vperm.slane %v5253_v28, %v19386_v12 }
 0x676   : > { %v5249_v39 = vperm.slane %v5241_v41, %v19386_v12  ;;  %v5263_v59 = vsel %vm3930_vm7, %v5262_v32, %v5231_v18  ;;  %v5264_v43 = vrot.slane %v5231_v18, 4  ;;  %v5274_v36 = vrot.slane %v5237_v26, 4 }
 0x677   : > { %v5269_v11 = vperm.slane %v5263_v59, %v19386_v12  ;;  %v5276_v50 = vrot.slane %v5233_v1, 4  ;;  %v5286_v13 = vrot.slane %v5257_v45, 4  ;;  %v5288_v14 = vrot.slane %v5245_v23, 4 }
 0x678   : > { %v5265_v55 = vsel %vm3930_vm7, %v5235_v46, %v5264_v43  ;;  %v5298_v57 = vrot.slane %v5261_v47, 4  ;;  %v5275_v15 = vsel %vm3930_vm7, %v5274_v36, %v5233_v1 }
 0x679   : > { %v5273_v27 = vperm.slane %v5265_v55, %v19386_v12  ;;  %v5277_v44 = vsel %vm3930_vm7, %v5237_v26, %v5276_v50  ;;  %v5306_v5 = vrot.slane %v5269_v11, 4  ;;  %v5281_v31 = vperm.slane %v5275_v15, %v19386_v12 }
 0x67a   : > { %v5285_v8 = vperm.slane %v5277_v44, %v19386_v12  ;;  %v5299_v3 = vsel %vm3930_vm7, %v5298_v57, %v5249_v39  ;;  %v5287_v49 = vsel %vm3930_vm7, %v5286_v13, %v5245_v23  ;;  %v5289_v37 = vsel %vm3930_vm7, %v5257_v45, %v5288_v14  ;;  %v19943_v23 = vpop.f32.mrf.mxu2 }
 0x67b   : > { %v5303_v22 = vperm.slane %v5299_v3, %v19408_v51  ;;  %v5293_v52 = vperm.slane %v5287_v49, %v19408_v51  ;;  %v5304_v6 = vrot.slane %v5281_v31, 4  ;;  %v5297_v40 = vperm.slane %v5289_v37, %v19408_v51 }
 0x67c   : > { %v5316_v0 = vrot.slane %v5285_v8, 4  ;;  %v5307_v58 = vsel %vm3930_vm7, %v5281_v31, %v5306_v5 }
 0x67d   : > { %v5324_v61 = vrot.slane %v5293_v52, 4  ;;  %v5315_v62 = vperm.slane %v5307_v58, %v19408_v51  ;;  %v5332_v21 = vrot.slane %v5303_v22, 4  ;;  %v5305_v7 = vsel %vm3930_vm7, %v5304_v6, %v5269_v11 }
 0x67e   : > { %v5317_v29 = vsel %vm3930_vm7, %v5316_v0, %v5273_v27  ;;  %v5328_v25 = vrot.slane %v5297_v40, 4  ;;  %v5311_v30 = vperm.slane %v5305_v7, %v19408_v51 }
 0x67f   : > { %v5326_v63 = vrot.slane %v5315_v62, 4  ;;  %v5321_v17 = vperm.slane %v5317_v29, %v19408_v51 }
 0x680   : > { %v5329_v16 = vsel %vm3930_vm7, %v5315_v62, %v5328_v25  ;;  %v5325_v53 = vsel %vm3930_vm7, %v5311_v30, %v5324_v61  ;;  %v5322_v35 = vrot.slane %v5311_v30, 4 }
 0x681   : > { %v5327_v26 = vsel %vm3930_vm7, %v5326_v63, %v5297_v40  ;;  %v5333_v34 = vsel %vm3930_vm7, %v5321_v17, %v5332_v21  ;;  %v5767_v9 = vpack.c.bf16 %v5325_v53, %v5325_v53  ;;  %v5330_v20 = vrot.slane %v5321_v17, 4 }
 0x682   : > { %v5768_v54 = vpack.c.bf16 %v5327_v26, %v5327_v26  ;;  %v5323_v24 = vsel %vm3930_vm7, %v5322_v35, %v5293_v52  ;;  %v5771_v42 = vpack.c.bf16 %v5333_v34, %v5333_v34  ;;  %v5769_v41 = vpack.c.bf16 %v5329_v16, %v5329_v16 }
 0x683   : > { %13749 = vmatmul.msk.bf16.vlgmr.msrb.gmra.mxu3 %vm4578_vm8, %v5767_v9  ;;  %v5766_v1 = vpack.c.bf16 %v5323_v24, %v5323_v24  ;;  %v5331_v46 = vsel %vm3930_vm7, %v5330_v20, %v5303_v22 }
 0x684   : > { %v5770_v33 = vpack.c.bf16 %v5331_v46, %v5331_v46 }
 0x685   : > { %13750 = vmatmul.msk.bf16.vlgmr.msra.gmra.mxu0 %vm4578_vm8, %v5768_v54  ;;  %13748 = vmatmul.msk.bf16.vlgmr.msra.gmra.mxu2 %vm4578_vm8, %v5766_v1 }
 0x693   : > { %13753 = vmatmul.msk.bf16.vlgmr.msra.gmra.mxu3 %vm4578_vm8, %v5771_v42 }
 0x695   : > { %13752 = vmatmul.msk.bf16.vlgmr.msrb.gmra.mxu2 %vm4578_vm8, %v5770_v33 }
 0x698   : > { %v4759_v48 = vpop.xlane.xlu2 %4758 }
 0x699   : > { %17562 = vrcp.f32 %v4759_v48 }
 0x69f   : > { %v17563_v28 = vpop.eup %17562 }
 0x6a0   : > { %v4771_v32 = vmul.f32 %v17563_v28, %v19839_v56 }
 0x6a2   : > { %v4777_v18 = vpack.c.bf16 %v4771_v32, %v4771_v32 }
 0x6a4   : > { %13747 = vmatmul.msk.bf16.vlgmr.msrb.gmra.mxu1 %vm4705_vm11, %v4777_v18 }
 0x6b4   : > { %13751 = vmatmul.msk.bf16.vlgmr.msra.gmra.mxu1 %vm4578_vm8, %v5769_v41 }
 0x6ce   : > { %v4857_v45 = vpop.f32.mrf.mxu3 }
 0x6cf   : > { %v4911_v55 = vrot.slane %v4857_v45, 4 }
 0x6d6   : > { %v4838_v39 = vpop.f32.mrf.mxu2  ;;  %v4859_v47 = vpop.f32.mrf.mxu3 }
 0x6d7   : > { %v4899_v59 = vrot.slane %v4838_v39, 4 }
 0x6d8   : > { %v4800_v43 = vpop.f32.mrf.mxu0 }
 0x6d9   : > { %v4900_v11 = vsel %vm3930_vm7, %v4899_v59, %v4800_v43  ;;  %v4901_v36 = vrot.slane %v4800_v43, 4 }
 0x6da   : > { %v4906_v56 = vperm.slane %v4900_v11, %v19386_v12 }
 0x6db   : > { %v4902_v50 = vsel %vm3930_vm7, %v4838_v39, %v4901_v36 }
 0x6dc   : > { %v4910_v14 = vperm.slane %v4902_v50, %v19386_v12  ;;  %v4945_v5 = vrot.slane %v4906_v56, 4 }
 0x6de   : > { %v4840_v13 = vpop.f32.mrf.mxu2  ;;  %v4957_v3 = vrot.slane %v4910_v14, 4 }
 0x6e0   : > { %v4819_v57 = vpop.f32.mrf.mxu1  ;;  %v4802_v27 = vpop.f32.mrf.mxu0 }
 0x6e1   : > { %v4912_v15 = vsel %vm3930_vm7, %v4911_v55, %v4819_v57  ;;  %v4913_v44 = vrot.slane %v4819_v57, 4 }
 0x6e2   : > { %v4918_v31 = vperm.slane %v4912_v15, %v19386_v12 }
 0x6e3   : > { %v4914_v8 = vsel %vm3930_vm7, %v4857_v45, %v4913_v44 }
 0x6e4   : > { %v4922_v49 = vperm.slane %v4914_v8, %v19386_v12  ;;  %v4943_v22 = vrot.slane %v4918_v31, 4  ;;  %v4946_v52 = vsel %vm3930_vm7, %v4918_v31, %v4945_v5 }
 0x6e5   : > { %v4954_v45 = vperm.slane %v4946_v52, %v19408_v51 }
 0x6e6   : > { %v4944_v37 = vsel %vm3930_vm7, %v4943_v22, %v4906_v56  ;;  %v4955_v6 = vrot.slane %v4922_v49, 4  ;;  %v4958_v0 = vsel %vm3930_vm7, %v4922_v49, %v4957_v3 }
 0x6e7   : > { %v4950_v41 = vperm.slane %v4944_v37, %v19408_v51  ;;  %v4966_v43 = vperm.slane %v4958_v0, %v19408_v51  ;;  %v4997_v8 = vrot.slane %v4954_v45, 4 }
 0x6e8   : > { %v4956_v40 = vsel %vm3930_vm7, %v4955_v6, %v4910_v14  ;;  %v4821_v58 = vpop.f32.mrf.mxu1 }
 0x6e9   : > { %v4962_v56 = vperm.slane %v4956_v40, %v19408_v51  ;;  %v4993_v31 = vrot.slane %v4950_v41, 4  ;;  %v5005_v3 = vrot.slane %v4966_v43, 4 }
 0x6eb   : > { %v5001_v0 = vrot.slane %v4962_v56, 4 }
 0x6f2   : > { %v4876_v61 = vpop.f32.mrf.mxu0 }
 0x6f3   : > { %v4923_v24 = vrot.slane %v4876_v61, 4  ;;  %v4928_v48 = vperm.slane %v4876_v61, %v19386_v12 }
 0x6f5   : > { %v4924_v33 = vsel %vm3930_vm7, 0.0, %v4923_v24  ;;  %v4969_v11 = vrot.slane %v4928_v48, 4 }
 0x6f6   : > { %v4932_v39 = vperm.slane %v4924_v33, %v19386_v12 }
 0x6f8   : > { %v4981_v15 = vrot.slane %v4932_v39, 4 }
 0x6fa   : > { %v4878_v62 = vpop.f32.mrf.mxu0 }
 0x702   : > { %v5831_v21 = vpop.f32.mrf.mxu0 }
 0x703   : > { %v5894_v28 = vmul.f32 0.125, %v5831_v21 }
 0x705   : > { %v19984_v13 = vadd.f32 %v5894_v28, %v19703_v4 }
 0x706   : > { %v5812_v29 = vpop.f32.mrf.mxu3 }
 0x707   : > { %v5893_v7 = vmul.f32 0.125, %v5812_v29  ;;  %v5910_v61 = vsel %vm4705_vm11, %v19984_v13, -inf }
 0x708   : > { %v5793_v25 = vpop.f32.mrf.mxu2 }
 0x709   : > { %v5892_v63 = vmul.f32 0.125, %v5793_v25  ;;  %v19958_v17 = vadd.f32 %v5893_v7, %v19703_v4 }
 0x70a   : > { %v5833_v30 = vpop.f32.mrf.mxu0 }
 0x70b   : > { %v5907_v16 = vsel %vm4705_vm11, %v19958_v17, -inf  ;;  %v19963_v53 = vadd.f32 %v5892_v63, %v19703_v4 }
 0x70c   : > { %5908 = vmax.xlane.f32.xlu1 %v5907_v16 }
 0x70d   : > { %v5904_v35 = vsel %vm4705_vm11, %v19963_v53, -inf }
 0x70e   : > { %5905 = vmax.xlane.f32.xlu0 %v5904_v35  ;;  %v5814_v26 = vpop.f32.mrf.mxu3 }
 0x710   : > { %v5795_v34 = vpop.f32.mrf.mxu2 }
 0x716   : > { %v5888_v9 = vpop.f32.mrf.mxu3 }
 0x717   : > { %v5897_v54 = vmul.f32 0.125, %v5888_v9 }
 0x718   : > { %v5869_v20 = vpop.f32.mrf.mxu2 }
 0x719   : > { %v19968_v1 = vadd.f32 %v5897_v54, %v19703_v4  ;;  %v5896_v46 = vmul.f32 0.125, %v5869_v20 }
 0x71b   : > { %v5919_v42 = vsel %vm4705_vm11, %v19968_v1, -inf  ;;  %v19975_v18 = vadd.f32 %v5896_v46, %v19703_v4 }
 0x71c   : > { %5920 = vmax.xlane.f32.xlu0 %v5919_v42 }
 0x71d   : > { %v5916_v27 = vsel %vm4705_vm11, %v19975_v18, -inf }
 0x71e   : > { %v5890_v32 = vpop.f32.mrf.mxu3 }
 0x720   : > { %v5871_v47 = vpop.f32.mrf.mxu2 }
 0x721   : > { %v4895_v59 = vpop.f32.mrf.mxu1 }
 0x722   : > { %v4933_v36 = vrot.slane %v4895_v59, 4  ;;  %v4938_v50 = vperm.slane %v4895_v59, %v19386_v12 }
 0x724   : > { %v4934_v55 = vsel %vm3930_vm7, 0.0, %v4933_v36  ;;  %v4967_v14 = vrot.slane %v4938_v50, 4  ;;  %v4970_v57 = vsel %vm3930_vm7, %v4938_v50, %v4969_v11  ;;  %5917 = vmax.xlane.f32.xlu0 %v5916_v27 }
 0x725   : > { %v4942_v44 = vperm.slane %v4934_v55, %v19386_v12  ;;  %v4978_v5 = vperm.slane %v4970_v57, %v19408_v51 }
 0x726   : > { %v4968_v49 = vsel %vm3930_vm7, %v4967_v14, %v4928_v48 }
 0x727   : > { %v4974_v22 = vperm.slane %v4968_v49, %v19408_v51  ;;  %v4979_v52 = vrot.slane %v4942_v44, 4  ;;  %v4982_v37 = vsel %vm3930_vm7, %v4942_v44, %v4981_v15  ;;  %v4995_v6 = vrot.slane %v4978_v5, 4 }
 0x728   : > { %v4990_v40 = vperm.slane %v4982_v37, %v19408_v51  ;;  %v4998_v58 = vsel %vm3930_vm7, %v4978_v5, %v4997_v8 }
 0x729   : > { %v4980_v62 = vsel %vm3930_vm7, %v4979_v52, %v4932_v39  ;;  %v4991_v21 = vrot.slane %v4974_v22, 4  ;;  %v4994_v29 = vsel %vm3930_vm7, %v4974_v22, %v4993_v31  ;;  %v4996_v7 = vsel %vm3930_vm7, %v4995_v6, %v4954_v45  ;;  %v4897_v25 = vpop.f32.mrf.mxu1 }
 0x72a   : > { %v4986_v30 = vperm.slane %v4980_v62, %v19408_v51  ;;  %v5003_v63 = vrot.slane %v4990_v40, 4  ;;  %v5006_v16 = vsel %vm3930_vm7, %v4990_v40, %v5005_v3  ;;  %v5007_v35 = vrot.slane %v4996_v7, 4 }
 0x72b   : > { %v4992_v26 = vsel %vm3930_vm7, %v4991_v21, %v4950_v41  ;;  %v5019_v34 = vrot.slane %v4998_v58, 4  ;;  %v5021_v9 = vrot.slane %v4994_v29, 4  ;;  %v5043_v54 = vrot.slane %v5006_v16, 4 }
 0x72c   : > { %v4999_v20 = vrot.slane %v4986_v30, 4  ;;  %v5002_v24 = vsel %vm3930_vm7, %v4986_v30, %v5001_v0  ;;  %v5004_v46 = vsel %vm3930_vm7, %v5003_v63, %v4966_v43  ;;  %v5009_v42 = vrot.slane %v4992_v26, 4  ;;  %5911 = vmax.xlane.f32.xlu0 %v5910_v61 }
 0x72d   : > { %v5020_v33 = vsel %vm3930_vm7, %v5019_v34, %v4994_v29  ;;  %v5022_v48 = vsel %vm3930_vm7, %v4998_v58, %v5021_v9  ;;  %v5031_v28 = vrot.slane %v5004_v46, 4  ;;  %v5045_v32 = vrot.slane %v5002_v24, 4 }
 0x72e   : > { %v5010_v45 = vsel %vm3930_vm7, %v4996_v7, %v5009_v42  ;;  %v5026_v41 = vperm.slane %v5020_v33, %v19386_v12  ;;  %v5030_v39 = vperm.slane %v5022_v48, %v19386_v12  ;;  %v5000_v47 = vsel %vm3930_vm7, %v4999_v20, %v4962_v56 }
 0x72f   : > { %v5008_v59 = vsel %vm3930_vm7, %v5007_v35, %v4992_v26  ;;  %v5032_v43 = vsel %vm3930_vm7, %v5031_v28, %v5000_v47  ;;  %v5033_v11 = vrot.slane %v5000_v47, 4  ;;  %v5044_v36 = vsel %vm3930_vm7, %v5043_v54, %v5002_v24 }
 0x730   : > { %v5067_v50 = vrot.slane %v5030_v39, 4  ;;  %v5014_v55 = vperm.slane %v5008_v59, %v19386_v12  ;;  %v5038_v14 = vperm.slane %v5032_v43, %v19386_v12  ;;  %v5050_v57 = vperm.slane %v5044_v36, %v19386_v12 }
 0x731   : > { %v5850_v27 = vpop.f32.mrf.mxu1  ;;  %v5055_v15 = vrot.slane %v5026_v41, 4  ;;  %v5018_v44 = vperm.slane %v5010_v45, %v19386_v12  ;;  %v5034_v56 = vsel %vm3930_vm7, %v5004_v46, %v5033_v11  ;;  %v5046_v5 = vsel %vm3930_vm7, %v5006_v16, %v5045_v32  ;;  %v17640_v45 = vld [vmem:[%s18627_s16 + $0x8] ss:$0 sm:$0xff] }
 0x732   : > { %v5895_v31 = vmul.f32 0.125, %v5850_v27  ;;  %v5073_v8 = vrot.slane %v5050_v57, 4  ;;  %v5042_v3 = vperm.slane %v5034_v56, %v19386_v12  ;;  %v5054_v49 = vperm.slane %v5046_v5, %v19386_v12 }
 0x733   : > { %v5056_v22 = vsel %vm3930_vm7, %v5055_v15, %v5014_v55  ;;  %v5068_v52 = vsel %vm3930_vm7, %v5067_v50, %v5018_v44  ;;  %v5057_v37 = vrot.slane %v5014_v55, 4  ;;  %v5075_v6 = vrot.slane %v5038_v14, 4 }
 0x734   : > { %v20027_v0 = vadd.f32 %v5895_v31, %v19703_v4  ;;  %v5062_v40 = vperm.slane %v5056_v22, %v19408_v51  ;;  %v5074_v58 = vsel %vm3930_vm7, %v5073_v8, %v5038_v14  ;;  %v5072_v61 = vperm.slane %v5068_v52, %v19408_v51 }
 0x735   : > { %v5080_v62 = vperm.slane %v5074_v58, %v19408_v51  ;;  %v5085_v21 = vrot.slane %v5054_v49, 4  ;;  %v5058_v29 = vsel %vm3930_vm7, %v5026_v41, %v5057_v37  ;;  %v5076_v7 = vsel %vm3930_vm7, %v5050_v57, %v5075_v6 }
 0x736   : > { %v5913_v25 = vsel %vm4705_vm11, %v20027_v0, -inf  ;;  %v5093_v30 = vrot.slane %v5062_v40, 4  ;;  %v5101_v63 = vrot.slane %v5072_v61, 4  ;;  %v5066_v4 = vperm.slane %v5058_v29, %v19408_v51 }
 0x737   : > { %5914 = vmax.xlane.f32.xlu0 %v5913_v25  ;;  %v5091_v16 = vrot.slane %v5080_v62, 4  ;;  %v5086_v35 = vsel %vm3930_vm7, %v5085_v21, %v5042_v3  ;;  %v5084_v26 = vperm.slane %v5076_v7, %v19408_v51  ;;  %v3883_v41 = vadd.f32 %v17640_v45, %v19701_v19  ;;  %v17515_v3 = vpop.permute.xlu2 %17514 }
 0x738   : > { %v20041_v34 = vsel %vm3930_vm7, %v5080_v62, %v5093_v30  ;;  %v5090_v9 = vperm.slane %v5086_v35, %v19408_v51  ;;  %v5097_v54 = vrot.slane %v5066_v4, 4  ;;  %v17517_v22 = vunpack.i.h.bf16 %v17515_v3 }
 0x739   : > { %v5852_v20 = vpop.f32.mrf.mxu1  ;;  %v5095_v24 = vrot.slane %v5084_v26, 4  ;;  %v20045_v46 = vsel %vm3930_vm7, %v5091_v16, %v5062_v40  ;;  %v3897_v39 = vadd.f32 %v19699_v60, %v3883_v41  ;;  %v17516_v52 = vunpack.i.l.bf16 %v17515_v3 }
 0x73a   : > { %v5099_v42 = vrot.slane %v5090_v9, 4  ;;  %v20048_v33 = vsel %vm3930_vm7, %v5090_v9, %v5101_v63  ;;  %v20051_v48 = vsel %vm3930_vm7, %v5084_v26, %v5097_v54  ;;  %v5574_v6 = vrot.slane %v17517_v22, 4 }
 0x73b   : > { %v20054_v28 = vsel %vm3930_vm7, %v5095_v24, %v5066_v4  ;;  %v3911_v47 = vadd.f32 %v19943_v23, %v3897_v39  ;;  %v5576_v58 = vrot.slane %v17516_v52, 4  ;;  %v5569_v25 = vperm.slane %v19366_v38, %v19386_v12 }
 0x73c   : > { %v20057_v32 = vsel %vm3930_vm7, %v5099_v42, %v5072_v61  ;;  %v5575_v61 = vsel %vm3930_vm7, %v5574_v6, %v17516_v52  ;;  %v5573_v63 = vperm.slane %v19360_v10, %v19386_v12 }
 0x73d   : > { %v5577_v21 = vsel %vm3930_vm7, %v17517_v22, %v5576_v58  ;;  %v5581_v29 = vperm.slane %v5575_v61, %v19386_v12  ;;  %v5586_v4 = vrot.slane %v3911_v47, 4  ;;  %v5608_v26 = vrot.slane %v5569_v25, 4 }
 0x73e   : > { %v5585_v30 = vperm.slane %v5577_v21, %v19386_v12  ;;  %v5591_v9 = vperm.slane %v3911_v47, %v19386_v12  ;;  %v5620_v20 = vrot.slane %v5573_v63, 4 }
 0x73f   : > { %v5606_v35 = vrot.slane %v5581_v29, 4  ;;  %v5587_v24 = vsel %vm3930_vm7, 0.0, %v5586_v4  ;;  %v5609_v42 = vsel %vm3930_vm7, %v5581_v29, %v5608_v26 }
 0x740   : > { %v5618_v54 = vrot.slane %v5585_v30, 4  ;;  %v5621_v45 = vsel %vm3930_vm7, %v5585_v30, %v5620_v20  ;;  %v5595_v10 = vperm.slane %v5587_v24, %v19386_v12  ;;  %v5632_v41 = vrot.slane %v5591_v9, 4 }
 0x741   : > { %v5607_v38 = vsel %vm3930_vm7, %v5606_v35, %v5569_v25 }
 0x742   : > { %v5619_v39 = vsel %vm3930_vm7, %v5618_v54, %v5573_v63 }
 0x74b   : > { %5559 = vrot.lane.b32.xlu0 %v3911_v47, %s18184_s1  ;;  %v5617_v47 = vperm.slane %v5609_v42, %v19408_v51 }
 0x77f   : > { %v5909_v59 = vpop.xlane.xlu1 %5908 }
 0x780   : > { %v5923_v43 = vsub.f32 %v19958_v17, %v5909_v59 }
 0x781   : > { %v5906_v11 = vpop.xlane.xlu0 %5905 }
 0x782   : > { %v5930_v36 = vmul.f32 1.442695, %v5923_v43  ;;  %v5922_v50 = vsub.f32 %v19963_v53, %v5906_v11  ;;  %v5613_v43 = vperm.slane %v5607_v38, %v19408_v51 }
 0x784   : > { %17564 = vpow2.f32 %v5930_v36  ;;  %v5928_v55 = vmul.f32 1.442695, %v5922_v50  ;;  %v5629_v50 = vperm.slane %v5621_v45, %v19408_v51 }
 0x786   : > { %17566 = vpow2.f32 %v5928_v55  ;;  %v5625_v55 = vperm.slane %v5619_v39, %v19408_v51  ;;  %v5668_v52 = vrot.slane %v5629_v50, 4 }
 0x788   : > { %v5664_v22 = vrot.slane %v5625_v55, 4 }
 0x78a   : > { %v20066_v14 = vpop.eup %17564 }
 0x78b   : > { %v5943_v19 = vsel %vm4705_vm11, %v20066_v14, 0.0 }
 0x78c   : > { %5944 = vadd.xlane.f32.xlu1 %v5943_v19  ;;  %v20070_v23 = vpop.eup %17566 }
 0x78d   : > { %v5940_v57 = vsel %vm4705_vm11, %v20070_v23, 0.0 }
 0x78f   : > { %v5921_v60 = vpop.xlane.xlu0 %5920 }
 0x790   : > { %v5927_v5 = vsub.f32 %v19968_v1, %v5921_v60 }
 0x792   : > { %v5938_v49 = vmul.f32 1.442695, %v5927_v5 }
 0x794   : > { %5941 = vadd.xlane.f32.xlu1 %v5940_v57 }
 0x797   : > { %v5918_v17 = vpop.xlane.xlu0 %5917 }
 0x798   : > { %v5926_v27 = vsub.f32 %v19975_v18, %v5918_v17  ;;  %v5644_v17 = vrot.slane %v5595_v10, 4 }
 0x79a   : > { %v5936_v53 = vmul.f32 1.442695, %v5926_v27 }
 0x79c   : > { %17568 = vpow2.f32 %v5936_v53 }
 0x79f   : > { %v5912_v15 = vpop.xlane.xlu0 %5911 }
 0x7a0   : > { %v5924_v44 = vsub.f32 %v19984_v13, %v5912_v15  ;;  %v5656_v15 = vrot.slane %v5613_v43, 4 }
 0x7a2   : > { %v20076_v56 = vpop.eup %17568  ;;  %v5932_v31 = vmul.f32 1.442695, %v5924_v44  ;;  %v5660_v44 = vrot.slane %v5617_v47, 4 }
 0x7a3   : > { %v5952_v8 = vsel %vm4705_vm11, %v20076_v56, 0.0 }
 0x7a4   : > { %17570 = vpow2.f32 %v5932_v31  ;;  %5953 = vadd.xlane.f32.xlu2 %v5952_v8 }
 0x7a5   : > { %17572 = vpow2.f32 %v5938_v49 }
 0x7aa   : > { %v5915_v18 = vpop.xlane.xlu0 %5914  ;;  %v20081_v37 = vpop.eup %17570 }
 0x7ab   : > { %v5925_v13 = vsub.f32 %v20027_v0, %v5915_v18  ;;  %v5946_v1 = vsel %vm4705_vm11, %v20081_v37, 0.0  ;;  %v20087_v62 = vpop.eup %17572 }
 0x7ac   : > { %5947 = vadd.xlane.f32.xlu1 %v5946_v1  ;;  %v5955_v7 = vsel %vm4705_vm11, %v20087_v62, 0.0 }
 0x7ad   : > { %v5934_v40 = vmul.f32 1.442695, %v5925_v13 }
 0x7af   : > { %17574 = vpow2.f32 %v5934_v40 }
 0x7b4   : > { %5956 = vadd.xlane.f32.xlu1 %v5955_v7 }
 0x7b5   : > { %v20093_v0 = vpop.eup %17574 }
 0x7b6   : > { %v5949_v16 = vsel %vm4705_vm11, %v20093_v0, 0.0 }
 0x7b7   : > { %5950 = vadd.xlane.f32.xlu0 %v5949_v16 }
 0x7bd   : > { %v5560_v59 = vpop.permute.xlu0 %5559 }
 0x7be   : > { %v5596_v11 = vrot.slane %v5560_v59, 4  ;;  %v5601_v36 = vperm.slane %v5560_v59, %v19386_v12 }
 0x7c0   : > { %v5597_v19 = vsel %vm3930_vm7, 0.0, %v5596_v11  ;;  %v5630_v60 = vrot.slane %v5601_v36, 4  ;;  %v5633_v57 = vsel %vm3930_vm7, %v5601_v36, %v5632_v41 }
 0x7c1   : > { %v5605_v27 = vperm.slane %v5597_v19, %v19386_v12  ;;  %v5641_v53 = vperm.slane %v5633_v57, %v19408_v51 }
 0x7c2   : > { %v5631_v5 = vsel %vm3930_vm7, %v5630_v60, %v5591_v9 }
 0x7c3   : > { %v5637_v31 = vperm.slane %v5631_v5, %v19408_v51  ;;  %v5642_v8 = vrot.slane %v5605_v27, 4  ;;  %v5645_v3 = vsel %vm3930_vm7, %v5605_v27, %v5644_v17  ;;  %v5658_v49 = vrot.slane %v5641_v53, 4 }
 0x7c4   : > { %v5653_v18 = vperm.slane %v5645_v3, %v19408_v51  ;;  %v5661_v13 = vsel %vm3930_vm7, %v5641_v53, %v5660_v44 }
 0x7c5   : > { %v5643_v6 = vsel %vm3930_vm7, %v5642_v8, %v5595_v10  ;;  %v5654_v1 = vrot.slane %v5637_v31, 4  ;;  %v5657_v40 = vsel %vm3930_vm7, %v5637_v31, %v5656_v15  ;;  %v5659_v58 = vsel %vm3930_vm7, %v5658_v49, %v5617_v47 }
 0x7c6   : > { %v5649_v61 = vperm.slane %v5643_v6, %v19408_v51  ;;  %v5666_v21 = vrot.slane %v5653_v18, 4  ;;  %v5669_v29 = vsel %vm3930_vm7, %v5653_v18, %v5668_v52  ;;  %v5670_v7 = vrot.slane %v5659_v58, 4 }
 0x7c7   : > { %v5655_v25 = vsel %vm3930_vm7, %v5654_v1, %v5613_v43  ;;  %v5682_v30 = vrot.slane %v5661_v13, 4  ;;  %v5684_v63 = vrot.slane %v5657_v40, 4  ;;  %v5706_v4 = vrot.slane %v5669_v29, 4 }
 0x7c8   : > { %v5662_v16 = vrot.slane %v5649_v61, 4  ;;  %v5665_v35 = vsel %vm3930_vm7, %v5649_v61, %v5664_v22  ;;  %v5667_v26 = vsel %vm3930_vm7, %v5666_v21, %v5629_v50  ;;  %v5671_v9 = vsel %vm3930_vm7, %v5670_v7, %v5655_v25 }
 0x7c9   : > { %v5672_v54 = vrot.slane %v5655_v25, 4  ;;  %v5683_v20 = vsel %vm3930_vm7, %v5682_v30, %v5657_v40  ;;  %v5685_v24 = vsel %vm3930_vm7, %v5661_v13, %v5684_v63  ;;  %v5694_v38 = vrot.slane %v5667_v26, 4 }
 0x7ca   : > { %v5663_v42 = vsel %vm3930_vm7, %v5662_v16, %v5625_v55  ;;  %v5689_v45 = vperm.slane %v5683_v20, %v19386_v12  ;;  %v5693_v10 = vperm.slane %v5685_v24, %v19386_v12  ;;  %v5708_v41 = vrot.slane %v5665_v35, 4 }
 0x7cb   : > { %v5673_v39 = vsel %vm3930_vm7, %v5659_v58, %v5672_v54  ;;  %v5696_v59 = vrot.slane %v5663_v42, 4  ;;  %v5677_v43 = vperm.slane %v5671_v9, %v19386_v12  ;;  %v5695_v47 = vsel %vm3930_vm7, %v5694_v38, %v5663_v42 }
 0x7cc   : > { %v5681_v11 = vperm.slane %v5673_v39, %v19386_v12  ;;  %v5709_v36 = vsel %vm3930_vm7, %v5669_v29, %v5708_v41  ;;  %v5730_v50 = vrot.slane %v5693_v10, 4  ;;  %v5701_v19 = vperm.slane %v5695_v47, %v19386_v12 }
 0x7cd   : > { %v5707_v55 = vsel %vm3930_vm7, %v5706_v4, %v5665_v35  ;;  %v5718_v60 = vrot.slane %v5689_v45, 4  ;;  %v5720_v57 = vrot.slane %v5677_v43, 4  ;;  %v5697_v17 = vsel %vm3930_vm7, %v5667_v26, %v5696_v59 }
 0x7ce   : > { %v5713_v27 = vperm.slane %v5707_v55, %v19386_v12  ;;  %v5738_v53 = vrot.slane %v5701_v19, 4  ;;  %v5717_v15 = vperm.slane %v5709_v36, %v19386_v12  ;;  %v5705_v31 = vperm.slane %v5697_v17, %v19386_v12 }
 0x7cf   : > { %v5719_v44 = vsel %vm3930_vm7, %v5718_v60, %v5677_v43  ;;  %v5721_v5 = vsel %vm3930_vm7, %v5689_v45, %v5720_v57  ;;  %v5731_v8 = vsel %vm3930_vm7, %v5730_v50, %v5681_v11 }
 0x7d0   : > { %v5725_v3 = vperm.slane %v5719_v44, %v19408_v51  ;;  %v5736_v49 = vrot.slane %v5713_v27, 4  ;;  %v5729_v22 = vperm.slane %v5721_v5, %v19408_v51  ;;  %v5739_v52 = vsel %vm3930_vm7, %v5713_v27, %v5738_v53 }
 0x7d1   : > { %v5747_v18 = vperm.slane %v5739_v52, %v19408_v51  ;;  %v5735_v13 = vperm.slane %v5731_v8, %v19408_v51  ;;  %v5748_v6 = vrot.slane %v5717_v15, 4 }
 0x7d2   : > { %v5737_v1 = vsel %vm3930_vm7, %v5736_v49, %v5701_v19  ;;  %v5756_v40 = vrot.slane %v5725_v3, 4  ;;  %v5760_v58 = vrot.slane %v5729_v22, 4 }
 0x7d3   : > { %v5743_v61 = vperm.slane %v5737_v1, %v19408_v51  ;;  %v5749_v21 = vsel %vm3930_vm7, %v5748_v6, %v5705_v31  ;;  %v5764_v29 = vrot.slane %v5735_v13, 4  ;;  %v5758_v7 = vrot.slane %v5747_v18, 4 }
 0x7d4   : > { %v5761_v25 = vsel %vm3930_vm7, %v5747_v18, %v5760_v58  ;;  %v5753_v30 = vperm.slane %v5749_v21, %v19408_v51 }
 0x7d5   : > { %v5757_v63 = vsel %vm3930_vm7, %v5743_v61, %v5756_v40  ;;  %v5754_v4 = vrot.slane %v5743_v61, 4  ;;  %v5979_v16 = vpack.c.bf16 %v5761_v25, %v5761_v25  ;;  %v5759_v35 = vsel %vm3930_vm7, %v5758_v7, %v5729_v22 }
 0x7d6   : > { %v5977_v26 = vpack.c.bf16 %v5757_v63, %v5757_v63  ;;  %v5765_v9 = vsel %vm3930_vm7, %v5753_v30, %v5764_v29  ;;  %v5978_v54 = vpack.c.bf16 %v5759_v35, %v5759_v35  ;;  %v5762_v20 = vrot.slane %v5753_v30, 4 }
 0x7d7   : > { %v5755_v24 = vsel %vm3930_vm7, %v5754_v4, %v5725_v3  ;;  %v6043_v38 = vsel %vm4787_vm9, %v5979_v16, 0  ;;  %v5981_v42 = vpack.c.bf16 %v5765_v9, %v5765_v9 }
 0x7d8   : > { %v6005_v45 = vsel %vm4787_vm9, %v5977_v26, 0  ;;  %v5976_v10 = vpack.c.bf16 %v5755_v24, %v5755_v24  ;;  %6052 = vmatpush.bf16.msrb.mxu3 %v6043_v38  ;;  %v6024_v41 = vsel %vm4787_vm9, %v5978_v54, 0  ;;  %v5763_v39 = vsel %vm3930_vm7, %v5762_v20, %v5735_v13 }
 0x7d9   : > { %6014 = vmatpush.bf16.msrb.mxu1 %v6005_v45  ;;  %v6081_v59 = vsel %vm4787_vm9, %v5981_v42, 0  ;;  %6033 = vmatpush.bf16.msra.mxu2 %v6024_v41  ;;  %v5980_v43 = vpack.c.bf16 %v5763_v39, %v5763_v39 }
 0x7da   : > { %v5986_v47 = vsel %vm4787_vm9, %v5976_v10, 0 }
 0x7db   : > { %5995 = vmatpush.bf16.msrb.mxu0 %v5986_v47  ;;  %v6062_v11 = vsel %vm4787_vm9, %v5980_v43, 0 }
 0x7dd   : > { %6090 = vmatpush.bf16.msra.mxu1 %v6081_v59 }
 0x7df   : > { %6071 = vmatpush.bf16.msra.mxu0 %v6062_v11 }
 0x7ff   : > { %v5945_v36 = vpop.xlane.xlu1 %5944 }
 0x800   : > { %17576 = vrcp.f32 %v5945_v36 }
 0x806   : > { %v17577_v50 = vpop.eup %17576 }
 0x807   : > { %v5965_v19 = vmul.f32 %v17577_v50, %v20066_v14  ;;  %v5942_v55 = vpop.xlane.xlu1 %5941 }
 0x808   : > { %17578 = vrcp.f32 %v5942_v55 }
 0x809   : > { %v5971_v60 = vpack.c.bf16 %v5965_v19, %v5965_v19 }
 0x80b   : > { %13755 = vmatmul.msk.bf16.vlgmr.msrb.gmra.mxu1 %vm4705_vm11, %v5971_v60 }
 0x80e   : > { %v17579_v57 = vpop.eup %17578 }
 0x80f   : > { %v5964_v17 = vmul.f32 %v17579_v57, %v20070_v23 }
 0x811   : > { %v5970_v27 = vpack.c.bf16 %v5964_v17, %v5964_v17 }
 0x813   : > { %13754 = vmatmul.msk.bf16.vlgmr.msrb.gmra.mxu0 %vm4705_vm11, %v5970_v27 }
 0x817   : > { %v5954_v53 = vpop.xlane.xlu2 %5953 }
 0x818   : > { %17580 = vrcp.f32 %v5954_v53 }
 0x81e   : > { %v17581_v15 = vpop.eup %17580 }
 0x81f   : > { %v5968_v44 = vmul.f32 %v17581_v15, %v20076_v56  ;;  %v5948_v5 = vpop.xlane.xlu1 %5947 }
 0x820   : > { %17582 = vrcp.f32 %v5948_v5 }
 0x821   : > { %v5974_v31 = vpack.c.bf16 %v5968_v44, %v5968_v44 }
 0x823   : > { %13758 = vmatmul.msk.bf16.vlgmr.msra.gmra.mxu0 %vm4705_vm11, %v5974_v31 }
 0x826   : > { %v17583_v14 = vpop.eup %17582 }
 0x827   : > { %v5966_v8 = vmul.f32 %v17583_v14, %v20081_v37  ;;  %v5957_v3 = vpop.xlane.xlu1 %5956 }
 0x828   : > { %17584 = vrcp.f32 %v5957_v3 }
 0x829   : > { %v5972_v49 = vpack.c.bf16 %v5966_v8, %v5966_v8 }
 0x82a   : > { %v5951_v23 = vpop.xlane.xlu0 %5950 }
 0x82b   : > { %17586 = vrcp.f32 %v5951_v23  ;;  %13756 = vmatmul.msk.bf16.vlgmr.msra.gmra.mxu2 %vm4705_vm11, %v5972_v49  ;;  %v13846_v23 = vld [vmem:[%s18630_s28 + $0xa8] sm:$0xf] }
 0x82e   : > { %v17585_v22 = vpop.eup %17584 }
 0x82f   : > { %v5969_v52 = vmul.f32 %v17585_v22, %v20087_v62  ;;  %v16715_v22 = vld [vmem:[%s18630_s28 + $0xb0] sm:$0xf0] }
 0x831   : > { %v17587_v18 = vpop.eup %17586  ;;  %v5975_v56 = vpack.c.bf16 %v5969_v52, %v5969_v52 }
 0x832   : > { %v5967_v13 = vmul.f32 %v17587_v18, %v20093_v0 }
 0x833   : > { %13759 = vmatmul.msk.bf16.vlgmr.msra.gmra.mxu1 %vm4705_vm11, %v5975_v56 }
 0x834   : > { %v5973_v6 = vpack.c.bf16 %v5967_v13, %v5967_v13  ;;  %v13847_v13 = vor.u32 %v16715_v22, %v13846_v23 }
 0x836   : > { %13757 = vmatmul.msk.bf16.vlgmr.msrb.gmra.mxu3 %vm4705_vm11, %v5973_v6  ;;  %v13834_v6 = vld [vmem:[%s18630_s28 + $0x90] sm:$0xf]  ;;  %6806 = vmatpush.bf16.msrb.mxu2 %v13847_v13  ;;  %v16703_v13 = vld [vmem:[%s18630_s28 + $0x50] sm:$0xf0] }
 0x888   : > { %v6016_v37 = vpop.f32.mrf.mxu1 }
 0x889   : > { %v6110_v50 = vrot.slane %v6016_v37, 4 }
 0x890   : > { %v5997_v1 = vpop.f32.mrf.mxu0  ;;  %v6018_v40 = vpop.f32.mrf.mxu1 }
 0x891   : > { %v6098_v63 = vrot.slane %v5997_v1, 4 }
 0x898   : > { %v5999_v58 = vpop.f32.mrf.mxu0 }
 0x8a0   : > { %v6073_v61 = vpop.f32.mrf.mxu0 }
 0x8a1   : > { %v6120_v29 = vrot.slane %v6073_v61, 4  ;;  %v6125_v62 = vperm.slane %v6073_v61, %v19386_v12  ;;  %v13822_v61 = vld [vmem:[%s18630_s28 + $0x78] sm:$0xf] }
 0x8a3   : > { %v6121_v7 = vsel %vm3930_vm7, 0.0, %v6120_v29  ;;  %v6166_v16 = vrot.slane %v6125_v62, 4  ;;  %v20221_v29 = vld [vmem:[%s18630_s28 + $0x60] sm:$0xf] }
 0x8a4   : > { %v6129_v0 = vperm.slane %v6121_v7, %v19386_v12 }
 0x8a6   : > { %v6178_v42 = vrot.slane %v6129_v0, 4 }
 0x8a8   : > { %v6075_v21 = vpop.f32.mrf.mxu0 }
 0x8a9   : > { %v16709_v21 = vld [vmem:[%s18630_s28 + $0x80] sm:$0xf0] }
 0x8ae   : > { %v6035_v25 = vpop.f32.mrf.mxu2 }
 0x8af   : > { %v6096_v30 = vrot.slane %v6035_v25, 4  ;;  %v6099_v54 = vsel %vm3930_vm7, %v6035_v25, %v6098_v63  ;;  %v13823_v25 = vor.u32 %v16709_v21, %v13822_v61  ;;  %v16714_v63 = vld [vmem:[%s18630_s28 + $0xac] sm:$0xf] }
 0x8b0   : > { %v6092_v4 = vpop.f32.mrf.mxu1  ;;  %v6107_v41 = vperm.slane %v6099_v54, %v19386_v12 }
 0x8b1   : > { %v6130_v35 = vrot.slane %v6092_v4, 4  ;;  %v6135_v26 = vperm.slane %v6092_v4, %v19386_v12  ;;  %v6097_v9 = vsel %vm3930_vm7, %v6096_v30, %v5997_v1  ;;  %v16712_v1 = vld [vmem:[%s18630_s28 + $0x98] sm:$0xf0]  ;;  %v16706_v30 = vld [vmem:[%s18630_s28 + $0x68] sm:$0xf0] }
 0x8b2   : > { %v6103_v10 = vperm.slane %v6097_v9, %v19386_v12  ;;  %v6154_v17 = vrot.slane %v6107_v41, 4  ;;  %v13835_v58 = vor.u32 %v16712_v1, %v13834_v6 }
 0x8b3   : > { %v6131_v20 = vsel %vm3930_vm7, 0.0, %v6130_v35  ;;  %v6164_v24 = vrot.slane %v6135_v26, 4  ;;  %v6167_v38 = vsel %vm3930_vm7, %v6135_v26, %v6166_v16  ;;  %v13848_v26 = vld [vmem:[%s18630_s28 + $0xb4] sm:$0xf0] }
 0x8b4   : > { %v6139_v45 = vperm.slane %v6131_v20, %v19386_v12  ;;  %v20200_v43 = vperm.slane %v6167_v38, %v19408_v51  ;;  %v6142_v44 = vrot.slane %v6103_v10, 4  ;;  %v13851_v38 = vor.u32 %v16714_v63, %v13848_v26  ;;  %6807 = vmatpush.bf16.msrb.mxu2 %v13835_v58 }
 0x8b5   : > { %v6165_v39 = vsel %vm3930_vm7, %v6164_v24, %v6125_v62  ;;  %v13811_v24 = vor.u32 %v16706_v30, %v20221_v29 }
 0x8b6   : > { %v20197_v59 = vperm.slane %v6165_v39, %v19408_v51  ;;  %v6176_v47 = vrot.slane %v6139_v45, 4  ;;  %v6179_v11 = vsel %vm3930_vm7, %v6139_v45, %v6178_v42  ;;  %v6037_v36 = vpop.f32.mrf.mxu2  ;;  %v6192_v31 = vrot.slane %v20200_v43, 4  ;;  %6848 = vmatpush.bf16.msrb.mxu1 %v13851_v38 }
 0x8b7   : > { %v6187_v19 = vperm.slane %v6179_v11, %v19408_v51 }
 0x8b8   : > { %v6177_v55 = vsel %vm3930_vm7, %v6176_v47, %v6129_v0  ;;  %v6094_v60 = vpop.f32.mrf.mxu1  ;;  %v6188_v5 = vrot.slane %v20197_v59, 4  ;;  %6808 = vmatpush.bf16.msrb.mxu2 %v13823_v25 }
 0x8b9   : > { %v6054_v57 = vpop.f32.mrf.mxu3  ;;  %v6183_v27 = vperm.slane %v6177_v55, %v19408_v51  ;;  %v6200_v3 = vrot.slane %v6187_v19, 4 }
 0x8ba   : > { %v6108_v53 = vrot.slane %v6054_v57, 4  ;;  %v6111_v15 = vsel %vm3930_vm7, %v6054_v57, %v6110_v50 }
 0x8bb   : > { %v6119_v14 = vperm.slane %v6111_v15, %v19386_v12  ;;  %v6196_v8 = vrot.slane %v6183_v27, 4 }
 0x8bc   : > { %v6109_v49 = vsel %vm3930_vm7, %v6108_v53, %v6016_v37  ;;  %6809 = vmatpush.bf16.msrb.mxu2 %v13811_v24 }
 0x8bd   : > { %v6115_v52 = vperm.slane %v6109_v49, %v19386_v12  ;;  %v6152_v18 = vrot.slane %v6119_v14, 4  ;;  %v6155_v56 = vsel %vm3930_vm7, %v6119_v14, %v6154_v17  ;;  %v14038_v49 = vld [vmem:[%s18630_s28 + $0x228] sm:$0xf] }
 0x8be   : > { %v6163_v40 = vperm.slane %v6155_v56, %v19408_v51  ;;  %v13798_v56 = vld [vmem:[%s18630_s28 + $0x48] sm:$0xf] }
 0x8bf   : > { %v6140_v37 = vrot.slane %v6115_v52, 4  ;;  %v6143_v7 = vsel %vm3930_vm7, %v6115_v52, %v6142_v44  ;;  %v6153_v62 = vsel %vm3930_vm7, %v6152_v18, %v6107_v41  ;;  %v16763_v18 = vld [vmem:[%s18630_s28 + $0x230] sm:$0xf0]  ;;  %v13799_v30 = vor.u32 %v16703_v13, %v13798_v56 }
 0x8c0   : > { %v6151_v0 = vperm.slane %v6143_v7, %v19408_v51  ;;  %v6159_v4 = vperm.slane %v6153_v62, %v19408_v51  ;;  %v6201_v16 = vsel %vm3930_vm7, %v6200_v3, %v6163_v40  ;;  %v6202_v35 = vrot.slane %v6163_v40, 4 }
 0x8c1   : > { %v6141_v9 = vsel %vm3930_vm7, %v6140_v37, %v6103_v10  ;;  %v6228_v54 = vrot.slane %v6201_v16, 4  ;;  %v6056_v20 = vpop.f32.mrf.mxu3  ;;  %v14039_v25 = vor.u32 %v16763_v18, %v14038_v49  ;;  %6810 = vmatpush.bf16.msrb.mxu2 %v13799_v30  ;;  %v13930_v49 = vld [vmem:[%s18630_s28 + $0x150] sm:$0xf]  ;;  %v16705_v18 = vld [vmem:[%s18630_s28 + $0x64] sm:$0xf] }
 0x8c2   : > { %v6147_v42 = vperm.slane %v6141_v9, %v19408_v51  ;;  %v6193_v45 = vsel %vm3930_vm7, %v6192_v31, %v6151_v0  ;;  %v6194_v41 = vrot.slane %v6151_v0, 4  ;;  %v6197_v39 = vsel %vm3930_vm7, %v6196_v8, %v6159_v4  ;;  %v13836_v9 = vld [vmem:[%s18630_s28 + $0x9c] sm:$0xf0]  ;;  %v16760_v20 = vld [vmem:[%s18630_s28 + $0x218] sm:$0xf0] }
 0x8c3   : > { %v6198_v47 = vrot.slane %v6159_v4, 4  ;;  %v6203_v11 = vsel %vm3930_vm7, %v6187_v19, %v6202_v35  ;;  %v6204_v36 = vrot.slane %v6193_v45, 4  ;;  %v6230_v50 = vrot.slane %v6197_v39, 4  ;;  %v16711_v35 = vld [vmem:[%s18630_s28 + $0x94] sm:$0xf]  ;;  %6834 = vmatpush.bf16.msrb.mxu0 %v14039_v25 }
 0x8c4   : > { %v6189_v10 = vsel %vm3930_vm7, %v6188_v5, %v6147_v42  ;;  %v6190_v55 = vrot.slane %v6147_v42, 4  ;;  %v6195_v60 = vsel %vm3930_vm7, %v20200_v43, %v6194_v41  ;;  %v6240_v57 = vrot.slane %v6203_v11, 4  ;;  %v16700_v41 = vld [vmem:[%s18630_s28 + $0x38] sm:$0xf0]  ;;  %v13944_v25 = vld [vmem:[%s18630_s28 + $0x174] sm:$0xf0] }
 0x8c5   : > { %v6199_v17 = vsel %vm3930_vm7, %v6183_v27, %v6198_v47  ;;  %v6206_v53 = vrot.slane %v6189_v10, 4  ;;  %v6216_v15 = vrot.slane %v6195_v60, 4  ;;  %v6231_v44 = vsel %vm3930_vm7, %v6201_v16, %v6230_v50 }
 0x8c6   : > { %v6191_v19 = vsel %vm3930_vm7, %v20197_v59, %v6190_v55  ;;  %v6242_v31 = vrot.slane %v6199_v17, 4  ;;  %v6205_v5 = vsel %vm3930_vm7, %v6204_v36, %v6189_v10  ;;  %v6229_v14 = vsel %vm3930_vm7, %v6228_v54, %v6197_v39  ;;  %v14026_v54 = vld [vmem:[%s18630_s28 + $0x210] sm:$0xf]  ;;  %v13942_v39 = vld [vmem:[%s18630_s28 + $0x168] sm:$0xf] }
 0x8c7   : > { %v6218_v8 = vrot.slane %v6191_v19, 4  ;;  %v6211_v43 = vperm.slane %v6205_v5, %v19386_v12  ;;  %v6217_v27 = vsel %vm3930_vm7, %v6216_v15, %v6191_v19  ;;  %v6235_v3 = vperm.slane %v6229_v14, %v19386_v12  ;;  %v16739_v10 = vld [vmem:[%s18630_s28 + $0x170] sm:$0xf0]  ;;  %v16708_v55 = vld [vmem:[%s18630_s28 + $0x7c] sm:$0xf] }
 0x8c8   : > { %v6223_v23 = vperm.slane %v6217_v27, %v19386_v12  ;;  %v6241_v22 = vsel %vm3930_vm7, %v6240_v57, %v6199_v17  ;;  %v6207_v59 = vsel %vm3930_vm7, %v6193_v45, %v6206_v53  ;;  %v6239_v52 = vperm.slane %v6231_v44, %v19386_v12  ;;  %v13786_v45 = vld [vmem:[%s18630_s28 + $0x30] sm:$0xf]  ;;  %v13824_v17 = vld [vmem:[%s18630_s28 + $0x84] sm:$0xf0]  ;;  %v14014_v53 = vld [vmem:[%s18630_s28 + $0x1f8] sm:$0xf] }
 0x8c9   : > { %v6247_v6 = vperm.slane %v6241_v22, %v19386_v12  ;;  %v6215_v1 = vperm.slane %v6207_v59, %v19386_v12  ;;  %v6219_v40 = vsel %vm3930_vm7, %v6195_v60, %v6218_v8  ;;  %v6243_v58 = vsel %vm3930_vm7, %v6203_v11, %v6242_v31  ;;  %v16757_v15 = vld [vmem:[%s18630_s28 + $0x200] sm:$0xf0]  ;;  %v13774_v5 = vld [vmem:[%s18630_s28 + $0x18] sm:$0xf] }
 0x8ca   : > { %v6252_v61 = vrot.slane %v6223_v23, 4  ;;  %v6227_v21 = vperm.slane %v6219_v40, %v19386_v12  ;;  %v6251_v29 = vperm.slane %v6243_v58, %v19386_v12  ;;  %v6254_v37 = vrot.slane %v6211_v43, 4  ;;  %v16697_v14 = vld [vmem:[%s18630_s28 + $0x20] sm:$0xf0]  ;;  %v13762_v40 = vld [vmem:[%s18630_s28] sm:$0xf] }
 0x8cb   : > { %v6270_v7 = vrot.slane %v6247_v6, 4  ;;  %v6272_v62 = vrot.slane %v6235_v3, 4  ;;  %v13839_v60 = vor.u32 %v16711_v35, %v13836_v9  ;;  %v14027_v57 = vor.u32 %v16760_v20, %v14026_v54  ;;  %v16751_v9 = vld [vmem:[%s18630_s28 + $0x1d0] sm:$0xf0] }
 0x8cc   : > { %v6253_v63 = vsel %vm3930_vm7, %v6252_v61, %v6211_v43  ;;  %v6264_v0 = vrot.slane %v6227_v21, 4  ;;  %v6282_v4 = vrot.slane %v6251_v29, 4  ;;  %v6255_v16 = vsel %vm3930_vm7, %v6223_v23, %v6254_v37  ;;  %v16736_v23 = vld [vmem:[%s18630_s28 + $0x158] sm:$0xf0]  ;;  %v16694_v61 = vld [vmem:[%s18630_s28 + $0x8] sm:$0xf0] }
 0x8cd   : > { %v20267_v12 = vperm.slane %v6253_v63, %v19408_v51  ;;  %v6271_v26 = vsel %vm3930_vm7, %v6270_v7, %v6235_v3  ;;  %v20276_v42 = vperm.slane %v6255_v16, %v19408_v51  ;;  %v6273_v50 = vsel %vm3930_vm7, %v6247_v6, %v6272_v62  ;;  %6849 = vmatpush.bf16.msrb.mxu1 %v13839_v60  ;;  %v14002_v6 = vld [vmem:[%s18630_s28 + $0x1e0] sm:$0xf]  ;;  %v13918_v21 = vld [vmem:[%s18630_s28 + $0x138] sm:$0xf]  ;;  %v16733_v29 = vld [vmem:[%s18630_s28 + $0x140] sm:$0xf0] }
 0x8ce   : > { %v6265_v24 = vsel %vm3930_vm7, %v6264_v0, %v6215_v1  ;;  %v6283_v38 = vsel %vm3930_vm7, %v6282_v4, %v6239_v52  ;;  %v20282_v47 = vperm.slane %v6271_v26, %v19408_v51  ;;  %v6281_v43 = vperm.slane %v6273_v50, %v19408_v51  ;;  %6835 = vmatpush.bf16.msrb.mxu0 %v14027_v57  ;;  %v16754_v1 = vld [vmem:[%s18630_s28 + $0x1e8] sm:$0xf0]  ;;  %v13800_v16 = vld [vmem:[%s18630_s28 + $0x54] sm:$0xf0]  ;;  %v13990_v26 = vld [vmem:[%s18630_s28 + $0x1c8] sm:$0xf] }
 0x8cf   : > { %v6290_v11 = vrot.slane %v20267_v12, 4  ;;  %v20286_v36 = vperm.slane %v6265_v24, %v19408_v51  ;;  %v6287_v19 = vperm.slane %v6283_v38, %v19408_v51  ;;  %v6294_v27 = vrot.slane %v20276_v42, 4  ;;  %v13812_v51 = vld [vmem:[%s18630_s28 + $0x6c] sm:$0xf0]  ;;  %v16738_v62 = vld [vmem:[%s18630_s28 + $0x16c] sm:$0xf] }
 0x8d0   : > { %v13787_v3 = vor.u32 %v16700_v41, %v13786_v45  ;;  %v13943_v59 = vor.u32 %v16739_v10, %v13942_v39  ;;  %v13827_v52 = vor.u32 %v16708_v55, %v13824_v17  ;;  %v13775_v13 = vor.u32 %v16697_v14, %v13774_v5  ;;  %v16702_v4 = vld [vmem:[%s18630_s28 + $0x4c] sm:$0xf]  ;;  %v13906_v24 = vld [vmem:[%s18630_s28 + $0x120] sm:$0xf]  ;;  %v16735_v39 = vld [vmem:[%s18630_s28 + $0x154] sm:$0xf] }
 0x8d1   : > { %v6291_v44 = vsel %vm3930_vm7, %v20282_v47, %v6290_v11  ;;  %v6298_v31 = vrot.slane %v20286_v36, 4  ;;  %v13931_v58 = vor.u32 %v16736_v23, %v13930_v49  ;;  %v6288_v37 = vrot.slane %v20282_v47, 4  ;;  %v16730_v41 = vld [vmem:[%s18630_s28 + $0x128] sm:$0xf0]  ;;  %v13932_v47 = vld [vmem:[%s18630_s28 + $0x15c] sm:$0xf0] }
 0x8d2   : > { %v17518_v8 = vpack.i.bf16 %v6291_v44, %v20041_v34  ;;  %v14015_v34 = vor.u32 %v16757_v15, %v14014_v53  ;;  %6811 = vmatpush.bf16.msrb.mxu2 %v13787_v3  ;;  %6820 = vmatpush.bf16.msra.mxu3 %v13943_v59  ;;  %v6296_v7 = vrot.slane %v6287_v19, 4  ;;  %v6292_v30 = vrot.slane %v6281_v43, 4  ;;  %v13788_v55 = vld [vmem:[%s18630_s28 + $0x3c] sm:$0xf0]  ;;  %v13894_v53 = vld [vmem:[%s18630_s28 + $0x108] sm:$0xf] }
 0x8d3   : > { %v6299_v22 = vsel %vm3930_vm7, %v6287_v19, %v6298_v31  ;;  %6850 = vmatpush.bf16.msrb.mxu1 %v13827_v52  ;;  %v6295_v63 = vsel %vm3930_vm7, %v6281_v43, %v6294_v27  ;;  %v14003_v0 = vor.u32 %v16754_v1, %v14002_v6  ;;  %v13763_v35 = vor.u32 %v16694_v61, %v13762_v40  ;;  %v16727_v44 = vld [vmem:[%s18630_s28 + $0x110] sm:$0xf0]  ;;  %v13920_v19 = vld [vmem:[%s18630_s28 + $0x144] sm:$0xf0]  ;;  %v16696_v5 = vld [vmem:[%s18630_s28 + $0x1c] sm:$0xf] }
 0x8d4   : > { %17519 = vrot.lane.b32.xlu1 %v17518_v8, %s18184_s1  ;;  %v17528_v56 = vpack.i.bf16 %v6299_v22, %v20048_v33  ;;  %v13815_v33 = vor.u32 %v16705_v18, %v13812_v51  ;;  %6836 = vmatpush.bf16.msrb.mxu0 %v14015_v34  ;;  %v13919_v54 = vor.u32 %v16733_v29, %v13918_v21  ;;  %v13776_v14 = vld [vmem:[%s18630_s28 + $0x24] sm:$0xf0]  ;;  %v13966_v8 = vld [vmem:[%s18630_s28 + $0x198] sm:$0xf]  ;;  %v16745_v43 = vld [vmem:[%s18630_s28 + $0x1a0] sm:$0xf0] }
 0x8d5   : > { %v13947_v20 = vor.u32 %v16738_v62, %v13944_v25  ;;  %v17523_v38 = vpack.i.bf16 %v6295_v63, %v20051_v48  ;;  %v13803_v45 = vor.u32 %v16702_v4, %v13800_v16  ;;  %v20332_v11 = vsel %vm3930_vm7, %v6288_v37, %v20267_v12  ;;  %v16699_v48 = vld [vmem:[%s18630_s28 + $0x34] sm:$0xf]  ;;  %v13978_v12 = vld [vmem:[%s18630_s28 + $0x1b0] sm:$0xf]  ;;  %v16724_v22 = vld [vmem:[%s18630_s28 + $0xf8] sm:$0xf0] }
 0x8d6   : > { %17529 = vrot.lane.b32.xlu0 %v17528_v56, %s18184_s1  ;;  %6812 = vmatpush.bf16.msrb.mxu2 %v13775_v13  ;;  %v20336_v50 = vsel %vm3930_vm7, %v6296_v7, %v20286_v36  ;;  %v13991_v10 = vor.u32 %v16751_v9, %v13990_v26  ;;  %v20342_v60 = vsel %vm3930_vm7, %v6292_v30, %v20276_v42  ;;  %v16748_v36 = vld [vmem:[%s18630_s28 + $0x1b8] sm:$0xf0]  ;;  %v13882_v49 = vld [vmem:[%s18630_s28 + $0xf0] sm:$0xf]  ;;  %v16729_v59 = vld [vmem:[%s18630_s28 + $0x124] sm:$0xf] }
 0x8d7   : > { %6821 = vmatpush.bf16.msra.mxu3 %v13931_v58  ;;  %6851 = vmatpush.bf16.msrb.mxu1 %v13815_v33  ;;  %v13907_v57 = vor.u32 %v16730_v41, %v13906_v24  ;;  %v13935_v17 = vor.u32 %v16735_v39, %v13932_v47  ;;  %v13791_v15 = vor.u32 %v16699_v48, %v13788_v55  ;;  %v16732_v42 = vld [vmem:[%s18630_s28 + $0x13c] sm:$0xf]  ;;  %v13908_v52 = vld [vmem:[%s18630_s28 + $0x12c] sm:$0xf0]  ;;  %v16693_v18 = vld [vmem:[%s18630_s28 + $0x4] sm:$0xf] }
 0x8d8   : > { %6837 = vmatpush.bf16.msrb.mxu0 %v14003_v0  ;;  %v13979_v31 = vor.u32 %v16748_v36, %v13978_v12  ;;  %v13895_v27 = vor.u32 %v16727_v44, %v13894_v53  ;;  %v13923_v3 = vor.u32 %v16732_v42, %v13920_v19  ;;  %v13779_v23 = vor.u32 %v16696_v5, %v13776_v14  ;;  %v13764_v51 = vld [vmem:[%s18630_s28 + $0xc] sm:$0xf0]  ;;  %v16740_v13 = vld [vmem:[%s18630_s28 + $0x178] sm:$0xf0]  ;;  %v13954_v6 = vld [vmem:[%s18630_s28 + $0x180] sm:$0xf] }
 0x8d9   : > { %v13967_v34 = vor.u32 %v16745_v43, %v13966_v8  ;;  %v13950_v56 = vld [vmem:[%s18630_s28 + $0x170] sm:$0xf]  ;;  %v16742_v1 = vld [vmem:[%s18630_s28 + $0x188] sm:$0xf0]  ;;  %v13883_v40 = vor.u32 %v16724_v22, %v13882_v49  ;;  %v13911_v58 = vor.u32 %v16729_v59, %v13908_v52  ;;  %v16716_v21 = vld [vmem:[%s18630_s28 + $0xb8] sm:$0xf0]  ;;  %v13767_v37 = vor.u32 %v16693_v18, %v13764_v51 }
 0x8da   : > { %6813 = vmatpush.bf16.msrb.mxu2 %v13763_v35  ;;  %v13854_v61 = vld [vmem:[%s18630_s28 + $0xb0] sm:$0xf]  ;;  %v13870_v29 = vld [vmem:[%s18630_s28 + $0xd8] sm:$0xf]  ;;  %v16721_v7 = vld [vmem:[%s18630_s28 + $0xe0] sm:$0xf0]  ;;  %v13951_v25 = vor.u32 %v16740_v13, %v13950_v56  ;;  %v13955_v30 = vor.u32 %v16742_v1, %v13954_v6 }
 0x8db   : > { %6822 = vmatpush.bf16.msra.mxu3 %v13919_v54  ;;  %6852 = vmatpush.bf16.msrb.mxu1 %v13803_v45  ;;  %v16726_v33 = vld [vmem:[%s18630_s28 + $0x10c] sm:$0xf]  ;;  %v13896_v62 = vld [vmem:[%s18630_s28 + $0x114] sm:$0xf0]  ;;  %v13855_v63 = vor.u32 %v16716_v21, %v13854_v61  ;;  %v16737_v4 = vld [vmem:[%s18630_s28 + $0x160] sm:$0xf0]  ;;  %v13871_v16 = vor.u32 %v16721_v7, %v13870_v29 }
 0x8dc   : > { %17524 = vrot.lane.b32.xlu1 %v17523_v38, %s18184_s1  ;;  %6838 = vmatpush.bf16.msrb.mxu0 %v13991_v10  ;;  %v13938_v0 = vld [vmem:[%s18630_s28 + $0x158] sm:$0xf]  ;;  %v13899_v35 = vor.u32 %v16726_v33, %v13896_v62  ;;  %v16713_v9 = vld [vmem:[%s18630_s28 + $0xa0] sm:$0xf0]  ;;  %v13858_v54 = vld [vmem:[%s18630_s28 + $0xc0] sm:$0xf] }
 0x8dd   : > { %v13842_v26 = vld [vmem:[%s18630_s28 + $0x98] sm:$0xf]  ;;  %v16723_v24 = vld [vmem:[%s18630_s28 + $0xf4] sm:$0xf]  ;;  %v13884_v38 = vld [vmem:[%s18630_s28 + $0xfc] sm:$0xf0]  ;;  %v13939_v45 = vor.u32 %v16737_v4, %v13938_v0 }
 0x8de   : > { %6862 = vmatpush.bf16.msra.mxu2 %v13947_v20  ;;  %v16718_v20 = vld [vmem:[%s18630_s28 + $0xc8] sm:$0xf0]  ;;  %v14040_v39 = vld [vmem:[%s18630_s28 + $0x234] sm:$0xf0]  ;;  %v13843_v47 = vor.u32 %v16713_v9, %v13842_v26  ;;  %v13926_v10 = vld [vmem:[%s18630_s28 + $0x140] sm:$0xf]  ;;  %v13887_v12 = vor.u32 %v16723_v24, %v13884_v38 }
 0x8df   : > { %6823 = vmatpush.bf16.msra.mxu3 %v13907_v57  ;;  %6853 = vmatpush.bf16.msrb.mxu1 %v13791_v15  ;;  %v16762_v41 = vld [vmem:[%s18630_s28 + $0x22c] sm:$0xf]  ;;  %v13859_v55 = vor.u32 %v16718_v20, %v13858_v54  ;;  %v16720_v15 = vld [vmem:[%s18630_s28 + $0xdc] sm:$0xf]  ;;  %v13872_v42 = vld [vmem:[%s18630_s28 + $0xe4] sm:$0xf0] }
 0x8e0   : > { %6839 = vmatpush.bf16.msrb.mxu0 %v13979_v31  ;;  %v16734_v48 = vld [vmem:[%s18630_s28 + $0x148] sm:$0xf0]  ;;  %v14043_v36 = vor.u32 %v16762_v41, %v14040_v39  ;;  %v13875_v19 = vor.u32 %v16720_v15, %v13872_v42  ;;  %v16759_v31 = vld [vmem:[%s18630_s28 + $0x214] sm:$0xf]  ;;  %v14028_v5 = vld [vmem:[%s18630_s28 + $0x21c] sm:$0xf0] }
 0x8e1   : > { %v13927_v57 = vor.u32 %v16734_v48, %v13926_v10  ;;  %v16710_v53 = vld [vmem:[%s18630_s28 + $0x88] sm:$0xf0]  ;;  %v13914_v14 = vld [vmem:[%s18630_s28 + $0x128] sm:$0xf]  ;;  %v14031_v8 = vor.u32 %v16759_v31, %v14028_v5  ;;  %v16731_v43 = vld [vmem:[%s18630_s28 + $0x130] sm:$0xf0] }
 0x8e2   : > { %6863 = vmatpush.bf16.msra.mxu2 %v13935_v17  ;;  %v13830_v17 = vld [vmem:[%s18630_s28 + $0x80] sm:$0xf]  ;;  %v13915_v49 = vor.u32 %v16731_v43, %v13914_v14  ;;  %v16717_v22 = vld [vmem:[%s18630_s28 + $0xc4] sm:$0xf]  ;;  %v13860_v59 = vld [vmem:[%s18630_s28 + $0xcc] sm:$0xf0] }
 0x8e3   : > { %6824 = vmatpush.bf16.msra.mxu3 %v13895_v27  ;;  %6854 = vmatpush.bf16.msrb.mxu1 %v13779_v23  ;;  %v13831_v44 = vor.u32 %v16710_v53, %v13830_v17  ;;  %v13818_v27 = vld [vmem:[%s18630_s28 + $0x68] sm:$0xf]  ;;  %v16756_v52 = vld [vmem:[%s18630_s28 + $0x1fc] sm:$0xf]  ;;  %v13902_v51 = vld [vmem:[%s18630_s28 + $0x110] sm:$0xf] }
 0x8e4   : > { %6840 = vmatpush.bf16.msrb.mxu0 %v13967_v34  ;;  %v13863_v34 = vor.u32 %v16717_v22, %v13860_v59  ;;  %v14016_v18 = vld [vmem:[%s18630_s28 + $0x204] sm:$0xf0]  ;;  %v16728_v56 = vld [vmem:[%s18630_s28 + $0x118] sm:$0xf0]  ;;  %v13806_v1 = vld [vmem:[%s18630_s28 + $0x50] sm:$0xf] }
 0x8e5   : > { %v14019_v13 = vor.u32 %v16756_v52, %v14016_v18  ;;  %v13903_v6 = vor.u32 %v16728_v56, %v13902_v51  ;;  %v14004_v21 = vld [vmem:[%s18630_s28 + $0x1ec] sm:$0xf0]  ;;  %v13890_v29 = vld [vmem:[%s18630_s28 + $0xf8] sm:$0xf]  ;;  %v13878_v4 = vld [vmem:[%s18630_s28 + $0xe0] sm:$0xf] }
 0x8e6   : > { %6864 = vmatpush.bf16.msra.mxu2 %v13923_v3  ;;  %v16707_v3 = vld [vmem:[%s18630_s28 + $0x70] sm:$0xf0]  ;;  %v13794_v62 = vld [vmem:[%s18630_s28 + $0x38] sm:$0xf]  ;;  %v13782_v26 = vld [vmem:[%s18630_s28 + $0x20] sm:$0xf] }
 0x8e7   : > { %6825 = vmatpush.bf16.msra.mxu3 %v13883_v40  ;;  %6855 = vmatpush.bf16.msrb.mxu1 %v13767_v37  ;;  %v13819_v23 = vor.u32 %v16707_v3, %v13818_v27  ;;  %v16704_v40 = vld [vmem:[%s18630_s28 + $0x58] sm:$0xf0]  ;;  %v16725_v37 = vld [vmem:[%s18630_s28 + $0x100] sm:$0xf0]  ;;  %v16698_v9 = vld [vmem:[%s18630_s28 + $0x28] sm:$0xf0] }
 0x8e8   : > { %6841 = vmatpush.bf16.msrb.mxu0 %v13955_v30  ;;  %v13807_v61 = vor.u32 %v16704_v40, %v13806_v1  ;;  %v13891_v33 = vor.u32 %v16725_v37, %v13890_v29  ;;  %v16750_v30 = vld [vmem:[%s18630_s28 + $0x1cc] sm:$0xf]  ;;  %v16747_v20 = vld [vmem:[%s18630_s28 + $0x1b4] sm:$0xf]  ;;  %v13980_v24 = vld [vmem:[%s18630_s28 + $0x1bc] sm:$0xf0]  ;;  %v13783_v38 = vor.u32 %v16698_v9, %v13782_v26 }
 0x8e9   : > { %v16719_v41 = vld [vmem:[%s18630_s28 + $0xd0] sm:$0xf0]  ;;  %v13770_v39 = vld [vmem:[%s18630_s28 + $0x8] sm:$0xf]  ;;  %v13983_v10 = vor.u32 %v16747_v20, %v13980_v24  ;;  %v16741_v17 = vld [vmem:[%s18630_s28 + $0x184] sm:$0xf] }
 0x8ea   : > { %6865 = vmatpush.bf16.msra.mxu2 %v13911_v58  ;;  %v16753_v58 = vld [vmem:[%s18630_s28 + $0x1e4] sm:$0xf]  ;;  %v13956_v53 = vld [vmem:[%s18630_s28 + $0x18c] sm:$0xf0]  ;;  %v16764_v42 = vld [vmem:[%s18630_s28 + $0x238] sm:$0xf0] }
 0x8eb   : > { %6904 = vmatpush.bf16.msra.mxu1 %v13951_v25  ;;  %6826 = vmatpush.bf16.msra.mxu3 %v13871_v16  ;;  %v14007_v7 = vor.u32 %v16753_v58, %v14004_v21  ;;  %v16701_v25 = vld [vmem:[%s18630_s28 + $0x40] sm:$0xf0]  ;;  %v16722_v16 = vld [vmem:[%s18630_s28 + $0xe8] sm:$0xf0]  ;;  %v13959_v15 = vor.u32 %v16741_v17, %v13956_v53  ;;  %v14034_v22 = vld [vmem:[%s18630_s28 + $0x218] sm:$0xf] }
 0x8ec   : > { %6890 = vmatpush.bf16.msra.mxu0 %v13855_v63  ;;  %v13992_v63 = vld [vmem:[%s18630_s28 + $0x1d4] sm:$0xf0]  ;;  %v13795_v0 = vor.u32 %v16701_v25, %v13794_v62  ;;  %v13879_v54 = vor.u32 %v16722_v16, %v13878_v4  ;;  %v16761_v59 = vld [vmem:[%s18630_s28 + $0x220] sm:$0xf0]  ;;  %v14022_v51 = vld [vmem:[%s18630_s28 + $0x200] sm:$0xf] }
 0x8ed   : > { %v16758_v56 = vld [vmem:[%s18630_s28 + $0x208] sm:$0xf0]  ;;  %v14010_v58 = vld [vmem:[%s18630_s28 + $0x1e8] sm:$0xf]  ;;  %v13998_v29 = vld [vmem:[%s18630_s28 + $0x1d0] sm:$0xf] }
 0x8ee   : > { %6866 = vmatpush.bf16.msra.mxu2 %v13899_v35  ;;  %v13995_v35 = vor.u32 %v16750_v30, %v13992_v63  ;;  %v14023_v1 = vor.u32 %v16758_v56, %v14022_v51  ;;  %v16752_v37 = vld [vmem:[%s18630_s28 + $0x1d8] sm:$0xf0]  ;;  %v13974_v62 = vld [vmem:[%s18630_s28 + $0x1a0] sm:$0xf]  ;;  %v16746_v25 = vld [vmem:[%s18630_s28 + $0x1a8] sm:$0xf0] }
 0x8ef   : > { %6905 = vmatpush.bf16.msra.mxu1 %v13939_v45  ;;  %6827 = vmatpush.bf16.msra.mxu3 %v13859_v55  ;;  %v13866_v45 = vld [vmem:[%s18630_s28 + $0xc8] sm:$0xf]  ;;  %v16744_v55 = vld [vmem:[%s18630_s28 + $0x19c] sm:$0xf]  ;;  %v13975_v30 = vor.u32 %v16746_v25, %v13974_v62  ;;  %v6411_v24 = vld [vmem:[%s851_s22] sm:$0x7] }
 0x8f0   : > { %6891 = vmatpush.bf16.msra.mxu0 %v13843_v47  ;;  %v16695_v47 = vld [vmem:[%s18630_s28 + $0x10] sm:$0xf0]  ;;  %v13867_v48 = vor.u32 %v16719_v41, %v13866_v45  ;;  %v13962_v63 = vld [vmem:[%s18630_s28 + $0x188] sm:$0xf]  ;;  %v16855_v62 = vld [vmem:[%s18646_s26 + $0x2cc] sm:$0xf0] }
 0x8f1   : > { %v14770_v25 = vld [vmem:[%s18646_s26 + $0x5a0] sm:$0xf] }
 0x8f2   : > { %6867 = vmatpush.bf16.msra.mxu2 %v13887_v12  ;;  %v13968_v12 = vld [vmem:[%s18630_s28 + $0x1a4] sm:$0xf0] }
 0x8f3   : > { %6876 = vmatpush.bf16.msrb.mxu3 %v14043_v36  ;;  %6906 = vmatpush.bf16.msra.mxu1 %v13927_v57  ;;  %v13771_v36 = vor.u32 %v16695_v47, %v13770_v39  ;;  %v13971_v57 = vor.u32 %v16744_v55, %v13968_v12  ;;  %v6417_v39 = vperm.slane %v6411_v24, 1  ;;  %v6416_v47 = vperm.slane %v6411_v24, 0 }
 0x8f4   : > { %6892 = vmatpush.bf16.msra.mxu0 %v13831_v44  ;;  %v14046_v44 = vld [vmem:[%s18630_s28 + $0x230] sm:$0xf]  ;;  %v6418_v12 = vperm.slane %v6411_v24, 2  ;;  %v16843_v24 = vld [vmem:[%s18646_s26 + $0x26c] sm:$0xf0] }
 0x8f6   : > { %6868 = vmatpush.bf16.msra.mxu2 %v13875_v19 }
 0x8f7   : > { %6877 = vmatpush.bf16.msrb.mxu3 %v14031_v8  ;;  %6907 = vmatpush.bf16.msra.mxu1 %v13915_v49  ;;  %v14047_v8 = vor.u32 %v16764_v42, %v14046_v44 }
 0x8f8   : > { %6893 = vmatpush.bf16.msra.mxu0 %v13819_v23 }
 0x8fa   : > { %6869 = vmatpush.bf16.msra.mxu2 %v13863_v34 }
 0x8fb   : > { %6878 = vmatpush.bf16.msrb.mxu3 %v14019_v13  ;;  %6908 = vmatpush.bf16.msra.mxu1 %v13903_v6 }
 0x8fc   : > { %6894 = vmatpush.bf16.msra.mxu0 %v13807_v61  ;;  %v16755_v61 = vld [vmem:[%s18630_s28 + $0x1f0] sm:$0xf0] }
 0x8fd   : > { %v14011_v21 = vor.u32 %v16755_v61, %v14010_v58  ;;  %v17645_v61 = vld [vmem:[#allocation2] sm:$0xff] }
 0x8ff   : > { %6879 = vmatpush.bf16.msrb.mxu3 %v14007_v7  ;;  %6909 = vmatpush.bf16.msra.mxu1 %v13891_v33  ;;  %v13999_v7 = vor.u32 %v16752_v37, %v13998_v29  ;;  %v16749_v33 = vld [vmem:[%s18630_s28 + $0x1c0] sm:$0xf0]  ;;  %v17646_v37 = vld [vmem:[#allocation2 + $0x20] sm:$0xff] }
 0x900   : > { %6895 = vmatpush.bf16.msra.mxu0 %v13795_v0  ;;  %v16743_v0 = vld [vmem:[%s18630_s28 + $0x190] sm:$0xf0] }
 0x901   : > { %v13963_v4 = vor.u32 %v16743_v0, %v13962_v63  ;;  %v16951_v63 = vld [vmem:[%s18646_s26 + $0x5cc] sm:$0xf0]  ;;  %v15154_v0 = vld [vmem:[%s18646_s26 + $0x8a0] sm:$0xf] }
 0x903   : > { %6880 = vmatpush.bf16.msrb.mxu3 %v13995_v35  ;;  %6910 = vmatpush.bf16.msra.mxu1 %v13879_v54 }
 0x904   : > { %6896 = vmatpush.bf16.msra.mxu0 %v13783_v38 }
 0x907   : > { %6881 = vmatpush.bf16.msrb.mxu3 %v13983_v10  ;;  %6911 = vmatpush.bf16.msra.mxu1 %v13867_v48 }
 0x908   : > { %6897 = vmatpush.bf16.msra.mxu0 %v13771_v36 }
 0x90b   : > { %6882 = vmatpush.bf16.msrb.mxu3 %v13971_v57 }
 0x90f   : > { %6883 = vmatpush.bf16.msrb.mxu3 %v13959_v15 }
 0x946   : > { %v17520_v19 = vpop.permute.xlu1 %17519 }
 0x947   : > { %v17522_v31 = vunpack.i.h.bf16 %v17520_v19  ;;  %v17521_v5 = vunpack.i.l.bf16 %v17520_v19 }
 0x948   : > { %v17530_v14 = vpop.permute.xlu0 %17529 }
 0x949   : > { %v5115_v43 = vsel %vm4578_vm8, %v20045_v46, %v17521_v5  ;;  %v6312_v27 = vsel %vm4578_vm8, %v20332_v11, %v17522_v31  ;;  %v17532_v3 = vunpack.i.h.bf16 %v17530_v14  ;;  %v17531_v49 = vunpack.i.l.bf16 %v17530_v14 }
 0x94a   : > { %v6412_v23 = vpack.c.bf16 %v6312_v27, %v5115_v43  ;;  %v14035_v46 = vor.u32 %v16761_v59, %v14034_v22 }
 0x94b   : > { %v5117_v52 = vsel %vm4578_vm8, %v20057_v32, %v17531_v49  ;;  %v6314_v34 = vsel %vm4578_vm8, %v20336_v50, %v17532_v3 }
 0x94c   : > { %v6414_v18 = vpack.c.bf16 %v6314_v34, %v5117_v52  ;;  %6814 = vmatmul.bf16.vlgmr.msrb.gmra.mxu2 %v6412_v23  ;;  %6856 = vmatmul.bf16.vlgmr.msrb.gmra.mxu1 %v6412_v23 }
 0x94d   : > { %6918 = vmatpush.bf16.msrb.mxu2 %v14047_v8  ;;  %v17641_v8 = vld [vmem:[#allocation2 + $0x10] sm:$0xff] }
 0x94e   : > { %6842 = vmatmul.bf16.vlgmr.msrb.gmra.mxu0 %v6414_v18  ;;  %v17525_v11 = vpop.permute.xlu1 %17524 }
 0x94f   : > { %v17527_v13 = vunpack.i.h.bf16 %v17525_v11  ;;  %v17526_v6 = vunpack.i.l.bf16 %v17525_v11  ;;  %v17643_v11 = vld [vmem:[#allocation2 + $0x8] sm:$0xff] }
 0x951   : > { %v6313_v32 = vsel %vm4578_vm8, %v20342_v60, %v17527_v13  ;;  %v5116_v50 = vsel %vm4578_vm8, %v20054_v28, %v17526_v6  ;;  %6919 = vmatpush.bf16.msrb.mxu2 %v14035_v46  ;;  %v13986_v60 = vld [vmem:[%s18630_s28 + $0x1b8] sm:$0xf] }
 0x952   : > { %v6413_v40 = vpack.c.bf16 %v6313_v32, %v5116_v50  ;;  %v13987_v28 = vor.u32 %v16749_v33, %v13986_v60  ;;  %v17644_v50 = vld [vmem:[#allocation2 + $0x18] sm:$0xff] }
 0x954   : > { %6828 = vmatmul.bf16.vlgmr.msra.gmra.mxu3 %v6413_v40 }
 0x955   : > { %6920 = vmatpush.bf16.msrb.mxu2 %v14023_v1 }
 0x959   : > { %6921 = vmatpush.bf16.msrb.mxu2 %v14011_v21 }
 0x95c   : > { %6870 = vmatmul.bf16.vlgmr.msra.gmra.mxu2 %v6413_v40  ;;  %6912 = vmatmul.bf16.vlgmr.msra.gmra.mxu1 %v6413_v40 }
 0x95d   : > { %6922 = vmatpush.bf16.msrb.mxu2 %v13999_v7 }
 0x95e   : > { %6898 = vmatmul.bf16.vlgmr.msra.gmra.mxu0 %v6412_v23  ;;  %v17642_v23 = vld [vmem:[#allocation2 + $0x28] sm:$0xff] }
 0x961   : > { %6923 = vmatpush.bf16.msrb.mxu2 %v13987_v28  ;;  %v14386_v28 = vld [vmem:[%s18646_s26 + $0x2a0] sm:$0xf] }
 0x964   : > { %6884 = vmatmul.bf16.vlgmr.msrb.gmra.mxu3 %v6414_v18 }
 0x965   : > { %6924 = vmatpush.bf16.msrb.mxu2 %v13975_v30  ;;  %v14387_v30 = vor.u32 %v16855_v62, %v14386_v28  ;;  %v14196_v28 = vld [vmem:[%s18646_s26 + $0x150] sm:$0xf0] }
 0x967   : > { %8785 = vmatpush.bf16.msra.mxu3 %v14387_v30 }
 0x969   : > { %6925 = vmatpush.bf16.msrb.mxu2 %v13963_v4  ;;  %v17047_v4 = vld [vmem:[%s18646_s26 + $0x8cc] sm:$0xf0] }
 0x96c   : > { %6926 = vmatmul.bf16.vlgmr.msrb.gmra.mxu2 %v6414_v18 }
 0x9c9   : > { %v6857_v26 = vpop.f32.mrf.mxu1 }
 0x9ca   : > { %v6858_v48 = vadd.f32 %v6857_v26, %v6417_v39  ;;  %v16849_v26 = vld [vmem:[%s18646_s26 + $0x2a4] sm:$0xf] }
 0x9cb   : > { %v6843_v35 = vpop.f32.mrf.mxu0 }
 0x9cf   : > { %v6815_v16 = vpop.f32.mrf.mxu2 }
 0x9d0   : > { %v6816_v55 = vadd.f32 %v6815_v16, %v6416_v47  ;;  %v14771_v16 = vor.u32 %v16951_v63, %v14770_v25 }
 0x9d1   : > { %v6859_v41 = vpop.f32.mrf.mxu1 }
 0x9d2   : > { %v6860_v31 = vadd.f32 %v6859_v41, %v6417_v39  ;;  %8799 = vmatpush.bf16.msrb.mxu0 %v14771_v16 }
 0x9d3   : > { %v6845_v20 = vpop.f32.mrf.mxu0 }
 0x9d7   : > { %v6817_v9 = vpop.f32.mrf.mxu2  ;;  %v6829_v54 = vpop.f32.mrf.mxu3 }
 0x9d8   : > { %v6830_v17 = vadd.f32 %v6829_v54, %v6816_v55  ;;  %v6818_v5 = vadd.f32 %v6817_v9, %v6416_v47  ;;  %v14388_v9 = vld [vmem:[%s18646_s26 + $0x2d0] sm:$0xf0]  ;;  %v14338_v54 = vld [vmem:[%s18646_s26 + $0x240] sm:$0xf] }
 0x9d9   : > { %v6913_v42 = vpop.f32.mrf.mxu1  ;;  %v14339_v41 = vor.u32 %v16843_v24, %v14338_v54  ;;  %v15106_v47 = vld [vmem:[%s18646_s26 + $0x840] sm:$0xf] }
 0x9da   : > { %v6844_v19 = vadd.f32 %v6843_v35, %v6830_v17  ;;  %v15155_v35 = vor.u32 %v17047_v4, %v15154_v0 }
 0x9db   : > { %v6899_v10 = vpop.f32.mrf.mxu0  ;;  %8786 = vmatpush.bf16.msra.mxu3 %v14339_v41 }
 0x9dc   : > { %v6900_v15 = vadd.f32 %v6899_v10, %v6418_v12  ;;  %v20455_v22 = vadd.f32 %v17642_v23, %v6844_v19  ;;  %8813 = vmatpush.bf16.msrb.mxu1 %v15155_v35  ;;  %v17035_v10 = vld [vmem:[%s18646_s26 + $0x86c] sm:$0xf0] }
 0x9dd   : > { %v15107_v55 = vor.u32 %v17035_v10, %v15106_v47  ;;  %v17023_v19 = vld [vmem:[%s18646_s26 + $0x80c] sm:$0xf0] }
 0x9de   : > { %v6914_v27 = vadd.f32 %v6913_v42, %v6900_v15  ;;  %v16927_v15 = vld [vmem:[%s18646_s26 + $0x50c] sm:$0xf0] }
 0x9df   : > { %v6831_v38 = vpop.f32.mrf.mxu3  ;;  %v6871_v45 = vpop.f32.mrf.mxu2 }
 0x9e0   : > { %v6872_v53 = vadd.f32 %v6871_v45, %v6858_v48  ;;  %v6832_v59 = vadd.f32 %v6831_v38, %v6818_v5  ;;  %v14722_v38 = vld [vmem:[%s18646_s26 + $0x540] sm:$0xf]  ;;  %v16939_v45 = vld [vmem:[%s18646_s26 + $0x56c] sm:$0xf0]  ;;  %v16837_v48 = vld [vmem:[%s18646_s26 + $0x244] sm:$0xf]  ;;  %8814 = vmatpush.bf16.msrb.mxu1 %v15107_v55 }
 0x9e1   : > { %v6915_v32 = vpop.f32.mrf.mxu1  ;;  %v14723_v39 = vor.u32 %v16939_v45, %v14722_v38  ;;  %v14292_v5 = vld [vmem:[%s18646_s26 + $0x210] sm:$0xf0] }
 0x9e2   : > { %v6846_v13 = vadd.f32 %v6845_v20, %v6832_v59  ;;  %v14391_v20 = vor.u32 %v16849_v26, %v14388_v9  ;;  %v16915_v59 = vld [vmem:[%s18646_s26 + $0x4ac] sm:$0xf0] }
 0x9e3   : > { %v6901_v14 = vpop.f32.mrf.mxu0  ;;  %8800 = vmatpush.bf16.msrb.mxu0 %v14723_v39 }
 0x9e4   : > { %v6902_v18 = vadd.f32 %v6901_v14, %v6418_v12  ;;  %v20464_v21 = vadd.f32 %v17645_v61, %v6846_v13  ;;  %8827 = vmatpush.bf16.msra.mxu2 %v14391_v20  ;;  %v14340_v12 = vld [vmem:[%s18646_s26 + $0x270] sm:$0xf0]  ;;  %v16807_v13 = vld [vmem:[%s18646_s26 + $0x14c] sm:$0xf0] }
 0x9e5   : > { %v14343_v17 = vor.u32 %v16837_v48, %v14340_v12  ;;  %v16999_v61 = vld [vmem:[%s18646_s26 + $0x74c] sm:$0xf0] }
 0x9e6   : > { %v6916_v40 = vadd.f32 %v6915_v32, %v6902_v18  ;;  %v16813_v18 = vld [vmem:[%s18646_s26 + $0x184] sm:$0xf] }
 0x9e7   : > { %v6873_v36 = vpop.f32.mrf.mxu2  ;;  %v6885_v57 = vpop.f32.mrf.mxu3 }
 0x9e8   : > { %v6886_v44 = vadd.f32 %v6885_v57, %v6872_v53  ;;  %v6874_v52 = vadd.f32 %v6873_v36, %v6860_v31  ;;  %v14290_v36 = vld [vmem:[%s18646_s26 + $0x1e0] sm:$0xf]  ;;  %v16831_v57 = vld [vmem:[%s18646_s26 + $0x20c] sm:$0xf0]  ;;  %v16825_v31 = vld [vmem:[%s18646_s26 + $0x1e4] sm:$0xf]  ;;  %8828 = vmatpush.bf16.msra.mxu2 %v14343_v17 }
 0x9e9   : > { %v14674_v53 = vld [vmem:[%s18646_s26 + $0x4e0] sm:$0xf]  ;;  %v14291_v42 = vor.u32 %v16831_v57, %v14290_v36  ;;  %v14295_v23 = vor.u32 %v16825_v31, %v14292_v5  ;;  %v16795_v57 = vld [vmem:[%s18646_s26 + $0xec] sm:$0xf0]  ;;  %v16789_v5 = vld [vmem:[%s18646_s26 + $0xc4] sm:$0xf] }
 0x9ea   : > { %v20453_v43 = vadd.f32 %v17641_v8, %v6886_v44  ;;  %v15058_v44 = vld [vmem:[%s18646_s26 + $0x7e0] sm:$0xf]  ;;  %v14675_v14 = vor.u32 %v16927_v15, %v14674_v53  ;;  %v16891_v15 = vld [vmem:[%s18646_s26 + $0x3ec] sm:$0xf0] }
 0x9eb   : > { %v15059_v8 = vor.u32 %v17023_v19, %v15058_v44  ;;  %8787 = vmatpush.bf16.msra.mxu3 %v14291_v42  ;;  %v14146_v36 = vld [vmem:[%s18646_s26 + $0xc0] sm:$0xf]  ;;  %v16987_v42 = vld [vmem:[%s18646_s26 + $0x6ec] sm:$0xf0] }
 0x9ec   : > { %v6940_v56 = vadd.f32 %v20453_v43, %v20455_v22  ;;  %8801 = vmatpush.bf16.msrb.mxu0 %v14675_v14  ;;  %8829 = vmatpush.bf16.msra.mxu2 %v14295_v23  ;;  %v14530_v17 = vld [vmem:[%s18646_s26 + $0x3c0] sm:$0xf]  ;;  %v14147_v53 = vor.u32 %v16795_v57, %v14146_v36  ;;  %v14148_v14 = vld [vmem:[%s18646_s26 + $0xf0] sm:$0xf0]  ;;  %v17029_v36 = vld [vmem:[%s18646_s26 + $0x844] sm:$0xf] }
 0x9ed   : > { %8815 = vmatpush.bf16.msrb.mxu1 %v15059_v8  ;;  %v14914_v44 = vld [vmem:[%s18646_s26 + $0x6c0] sm:$0xf]  ;;  %v14531_v19 = vor.u32 %v16891_v15, %v14530_v17  ;;  %v14151_v8 = vor.u32 %v16789_v5, %v14148_v14  ;;  %v15108_v57 = vld [vmem:[%s18646_s26 + $0x870] sm:$0xf0]  ;;  %v14346_v17 = vld [vmem:[%s18646_s26 + $0x248] sm:$0xf] }
 0x9ee   : > { %v14915_v31 = vor.u32 %v16987_v42, %v14914_v44  ;;  %v16844_v15 = vld [vmem:[%s18646_s26 + $0x274] sm:$0xf0]  ;;  %v14730_v44 = vld [vmem:[%s18646_s26 + $0x548] sm:$0xf]  ;;  %v16921_v5 = vld [vmem:[%s18646_s26 + $0x4e4] sm:$0xf] }
 0x9ef   : > { %v6887_v3 = vpop.f32.mrf.mxu3  ;;  %v6927_v49 = vpop.f32.mrf.mxu2  ;;  %v16940_v42 = vld [vmem:[%s18646_s26 + $0x574] sm:$0xf0]  ;;  %v14676_v14 = vld [vmem:[%s18646_s26 + $0x510] sm:$0xf0] }
 0x9f0   : > { %v6928_v34 = vadd.f32 %v6927_v49, %v6914_v27  ;;  %v6888_v46 = vadd.f32 %v6887_v3, %v6874_v52  ;;  %v14242_v27 = vld [vmem:[%s18646_s26 + $0x180] sm:$0xf]  ;;  %v16819_v3 = vld [vmem:[%s18646_s26 + $0x1ac] sm:$0xf0] }
 0x9f1   : > { %v14626_v49 = vld [vmem:[%s18646_s26 + $0x480] sm:$0xf] }
 0x9f2   : > { %v20457_v51 = vadd.f32 %v17643_v11, %v6928_v34  ;;  %v20462_v1 = vadd.f32 %v17644_v50, %v6888_v46  ;;  %v15010_v52 = vld [vmem:[%s18646_s26 + $0x780] sm:$0xf]  ;;  %v17011_v34 = vld [vmem:[%s18646_s26 + $0x7ac] sm:$0xf0]  ;;  %v14244_v46 = vld [vmem:[%s18646_s26 + $0x1b0] sm:$0xf0]  ;;  %v14243_v11 = vor.u32 %v16819_v3, %v14242_v27  ;;  %v14627_v32 = vor.u32 %v16915_v59, %v14626_v49 }
 0x9f3   : > { %v15011_v50 = vor.u32 %v17011_v34, %v15010_v52  ;;  %v14098_v27 = vld [vmem:[%s18646_s26 + $0x60] sm:$0xf]  ;;  %v16783_v3 = vld [vmem:[%s18646_s26 + $0x8c] sm:$0xf0] }
 0x9f4   : > { %v6941_v6 = vadd.f32 %v6940_v56, %v20457_v51  ;;  %v6944_v60 = vadd.f32 %v20462_v1, %v20464_v21  ;;  %v14194_v56 = vld [vmem:[%s18646_s26 + $0x120] sm:$0xf]  ;;  %8788 = vmatpush.bf16.msra.mxu3 %v14243_v11  ;;  %8802 = vmatpush.bf16.msrb.mxu0 %v14627_v32  ;;  %v14099_v23 = vor.u32 %v16783_v3, %v14098_v27  ;;  %v16879_v59 = vld [vmem:[%s18646_s26 + $0x38c] sm:$0xf0]  ;;  %v16777_v11 = vld [vmem:[%s18646_s26 + $0x64] sm:$0xf] }
 0x9f5   : > { %v14195_v62 = vor.u32 %v16807_v13, %v14194_v56  ;;  %8816 = vmatpush.bf16.msrb.mxu1 %v15011_v50  ;;  %v14482_v49 = vld [vmem:[%s18646_s26 + $0x360] sm:$0xf]  ;;  %v16975_v34 = vld [vmem:[%s18646_s26 + $0x68c] sm:$0xf0]  ;;  %v14100_v56 = vld [vmem:[%s18646_s26 + $0x90] sm:$0xf0]  ;;  %v14679_v27 = vor.u32 %v16921_v5, %v14676_v14 }
 0x9f6   : > { %6942 = vadd.xlane.f32.xlu2 %v6941_v6  ;;  %v14578_v6 = vld [vmem:[%s18646_s26 + $0x420] sm:$0xf]  ;;  %v14103_v13 = vor.u32 %v16777_v11, %v14100_v56  ;;  %v16771_v32 = vld [vmem:[%s18646_s26 + $0x2c] sm:$0xf0]  ;;  %v15060_v3 = vld [vmem:[%s18646_s26 + $0x810] sm:$0xf0] }
 0x9f7   : > { %v6929_v58 = vpop.f32.mrf.mxu2  ;;  %v14866_v52 = vld [vmem:[%s18646_s26 + $0x660] sm:$0xf]  ;;  %v16873_v5 = vld [vmem:[%s18646_s26 + $0x364] sm:$0xf]  ;;  %v14484_v14 = vld [vmem:[%s18646_s26 + $0x390] sm:$0xf0] }
 0x9f8   : > { %v6930_v29 = vadd.f32 %v6929_v58, %v6916_v40  ;;  %v16903_v40 = vld [vmem:[%s18646_s26 + $0x44c] sm:$0xf0]  ;;  %v14962_v58 = vld [vmem:[%s18646_s26 + $0x720] sm:$0xf]  ;;  %8789 = vmatpush.bf16.msra.mxu3 %v14195_v62  ;;  %v16945_v62 = vld [vmem:[%s18646_s26 + $0x5a4] sm:$0xf] }
 0x9f9   : > { %v14579_v25 = vor.u32 %v16903_v40, %v14578_v6  ;;  %v14963_v30 = vor.u32 %v16999_v61, %v14962_v58  ;;  %v14050_v6 = vld [vmem:[%s18646_s26] sm:$0xf]  ;;  %v16867_v58 = vld [vmem:[%s18646_s26 + $0x32c] sm:$0xf0] }
 0x9fa   : > { %v20466_v7 = vadd.f32 %v17646_v37, %v6930_v29  ;;  %v14247_v37 = vor.u32 %v16813_v18, %v14244_v46  ;;  %v14483_v18 = vor.u32 %v16879_v59, %v14482_v49  ;;  %v14867_v46 = vor.u32 %v16975_v34, %v14866_v52  ;;  %v14434_v50 = vld [vmem:[%s18646_s26 + $0x300] sm:$0xf]  ;;  %v14298_v49 = vld [vmem:[%s18646_s26 + $0x1e8] sm:$0xf] }
 0x9fb   : > { %8803 = vmatpush.bf16.msrb.mxu0 %v14579_v25  ;;  %8817 = vmatpush.bf16.msrb.mxu1 %v14963_v30  ;;  %v14051_v40 = vor.u32 %v16771_v32, %v14050_v6  ;;  %v14818_v61 = vld [vmem:[%s18646_s26 + $0x600] sm:$0xf]  ;;  %v14772_v30 = vld [vmem:[%s18646_s26 + $0x5d0] sm:$0xf0]  ;;  %v14682_v34 = vld [vmem:[%s18646_s26 + $0x4e8] sm:$0xf] }
 0x9fc   : > { %v6945_v33 = vadd.f32 %v6944_v60, %v20466_v7  ;;  %8830 = vmatpush.bf16.msra.mxu2 %v14247_v37  ;;  %8790 = vmatpush.bf16.msra.mxu3 %v14147_v53  ;;  %v14435_v37 = vor.u32 %v16867_v58, %v14434_v50  ;;  %v15111_v53 = vor.u32 %v17029_v36, %v15108_v57  ;;  %v14628_v6 = vld [vmem:[%s18646_s26 + $0x4b0] sm:$0xf0]  ;;  %v17005_v32 = vld [vmem:[%s18646_s26 + $0x784] sm:$0xf]  ;;  %v14250_v58 = vld [vmem:[%s18646_s26 + $0x188] sm:$0xf] }
 0x9fd   : > { %v16981_v36 = vld [vmem:[%s18646_s26 + $0x6c4] sm:$0xf]  ;;  %v14916_v57 = vld [vmem:[%s18646_s26 + $0x6f0] sm:$0xf0] }
 0x9fe   : > { %6946 = vadd.xlane.f32.xlu1 %v6945_v33  ;;  %v16801_v33 = vld [vmem:[%s18646_s26 + $0x124] sm:$0xf] }
 0x9ff   : > { %v14199_v16 = vor.u32 %v16801_v33, %v14196_v28  ;;  %8804 = vmatpush.bf16.msrb.mxu0 %v14531_v19  ;;  %8818 = vmatpush.bf16.msrb.mxu1 %v14915_v31  ;;  %v16765_v33 = vld [vmem:[%s18646_s26 + $0x4] sm:$0xf]  ;;  %v14052_v28 = vld [vmem:[%s18646_s26 + $0x30] sm:$0xf0]  ;;  %v14347_v19 = vor.u32 %v16844_v15, %v14346_v17  ;;  %v14731_v31 = vor.u32 %v16940_v42, %v14730_v44  ;;  %v16796_v15 = vld [vmem:[%s18646_s26 + $0xf4] sm:$0xf0] }
 0xa00   : > { %8791 = vmatpush.bf16.msra.mxu3 %v14099_v23  ;;  %v14055_v25 = vor.u32 %v16765_v33, %v14052_v28  ;;  %v16832_v23 = vld [vmem:[%s18646_s26 + $0x214] sm:$0xf0]  ;;  %v14634_v33 = vld [vmem:[%s18646_s26 + $0x488] sm:$0xf] }
 0xa01   : > { %8831 = vmatpush.bf16.msra.mxu2 %v14199_v16  ;;  %v17041_v16 = vld [vmem:[%s18646_s26 + $0x8a4] sm:$0xf]  ;;  %v14299_v52 = vor.u32 %v16832_v23, %v14298_v49  ;;  %v16916_v28 = vld [vmem:[%s18646_s26 + $0x4b4] sm:$0xf0]  ;;  %v14538_v44 = vld [vmem:[%s18646_s26 + $0x3c8] sm:$0xf] }
 0xa02   : > { %v16969_v49 = vld [vmem:[%s18646_s26 + $0x664] sm:$0xf]  ;;  %v14868_v23 = vld [vmem:[%s18646_s26 + $0x690] sm:$0xf0] }
 0xa03   : > { %8805 = vmatpush.bf16.msrb.mxu0 %v14483_v18  ;;  %8819 = vmatpush.bf16.msrb.mxu1 %v14867_v46  ;;  %v16928_v18 = vld [vmem:[%s18646_s26 + $0x514] sm:$0xf0] }
 0xa04   : > { %8792 = vmatpush.bf16.msra.mxu3 %v14051_v40  ;;  %v14683_v11 = vor.u32 %v16928_v18, %v14682_v34  ;;  %v15012_v40 = vld [vmem:[%s18646_s26 + $0x7b0] sm:$0xf0]  ;;  %v14106_v34 = vld [vmem:[%s18646_s26 + $0x68] sm:$0xf]  ;;  %v16784_v18 = vld [vmem:[%s18646_s26 + $0x94] sm:$0xf0] }
 0xa05   : > { %8832 = vmatpush.bf16.msra.mxu2 %v14151_v8  ;;  %v17017_v8 = vld [vmem:[%s18646_s26 + $0x7e4] sm:$0xf] }
 0xa06   : > { %v15063_v59 = vor.u32 %v17017_v8, %v15060_v3 }
 0xa07   : > { %8806 = vmatpush.bf16.msrb.mxu0 %v14435_v37  ;;  %v15015_v37 = vor.u32 %v17005_v32, %v15012_v40  ;;  %v16861_v32 = vld [vmem:[%s18646_s26 + $0x304] sm:$0xf]  ;;  %v14436_v40 = vld [vmem:[%s18646_s26 + $0x330] sm:$0xf0] }
 0xa09   : > { %8833 = vmatpush.bf16.msra.mxu2 %v14103_v13  ;;  %v16909_v13 = vld [vmem:[%s18646_s26 + $0x484] sm:$0xf] }
 0xa0a   : > { %v14631_v50 = vor.u32 %v16909_v13, %v14628_v6  ;;  %v14487_v13 = vor.u32 %v16873_v5, %v14484_v14  ;;  %v14871_v6 = vor.u32 %v16969_v49, %v14868_v23 }
 0xa0d   : > { %8834 = vmatpush.bf16.msra.mxu2 %v14055_v25  ;;  %v16897_v25 = vld [vmem:[%s18646_s26 + $0x424] sm:$0xf] }
 0xa69   : > { %v6943_v29 = vpop.xlane.xlu2 %6942 }
 0xa6a   : > { %v6948_v60 = vmul.f32 %v6943_v29, %v18792_v2  ;;  %v16963_v29 = vld [vmem:[%s18646_s26 + $0x62c] sm:$0xf0] }
 0xa6c   : > { %v20513_v63 = vsub.f32 %v20455_v22, %v6948_v60  ;;  %v20516_v0 = vsub.f32 %v20453_v43, %v6948_v60  ;;  %v20519_v4 = vsub.f32 %v20457_v51, %v6948_v60  ;;  %v14819_v60 = vor.u32 %v16963_v29, %v14818_v61  ;;  %v16820_v61 = vld [vmem:[%s18646_s26 + $0x1b4] sm:$0xf0] }
 0xa6e   : > { %v6956_v35 = vmul.f32 %v20513_v63, %v20513_v63  ;;  %v6957_v26 = vmul.f32 %v20516_v0, %v20516_v0  ;;  %v6958_v9 = vmul.f32 %v20519_v4, %v20519_v4  ;;  %8820 = vmatpush.bf16.msrb.mxu1 %v14819_v60  ;;  %v14251_v60 = vor.u32 %v16820_v61, %v14250_v58  ;;  %v16957_v58 = vld [vmem:[%s18646_s26 + $0x604] sm:$0xf]  ;;  %v14820_v61 = vld [vmem:[%s18646_s26 + $0x630] sm:$0xf0] }
 0xa70   : > { %v6962_v54 = vadd.f32 %v6957_v26, %v6956_v35  ;;  %v15156_v35 = vld [vmem:[%s18646_s26 + $0x8d0] sm:$0xf0]  ;;  %v14775_v26 = vor.u32 %v16945_v62, %v14772_v30  ;;  %v14635_v62 = vor.u32 %v16916_v28, %v14634_v33  ;;  %v14058_v33 = vld [vmem:[%s18646_s26 + $0x8] sm:$0xf]  ;;  %v16772_v28 = vld [vmem:[%s18646_s26 + $0x34] sm:$0xf0] }
 0xa71   : > { %v6947_v20 = vpop.xlane.xlu1 %6946  ;;  %v14580_v30 = vld [vmem:[%s18646_s26 + $0x450] sm:$0xf0] }
 0xa72   : > { %v6949_v24 = vmul.f32 %v6947_v20, %v18792_v2  ;;  %v6963_v38 = vadd.f32 %v6962_v54, %v6958_v9  ;;  %v15159_v9 = vor.u32 %v17041_v16, %v15156_v35  ;;  %v14394_v54 = vld [vmem:[%s18646_s26 + $0x2a8] sm:$0xf]  ;;  %v16856_v20 = vld [vmem:[%s18646_s26 + $0x2d4] sm:$0xf0]  ;;  %8841 = vmatpush.bf16.msrb.mxu3 %v14775_v26  ;;  %v16993_v16 = vld [vmem:[%s18646_s26 + $0x724] sm:$0xf]  ;;  %v14583_v35 = vor.u32 %v16897_v25, %v14580_v30 }
 0xa73   : > { %v14964_v26 = vld [vmem:[%s18646_s26 + $0x750] sm:$0xf0]  ;;  %v16868_v25 = vld [vmem:[%s18646_s26 + $0x334] sm:$0xf0] }
 0xa74   : > { %v20529_v45 = vsub.f32 %v20464_v21, %v6949_v24  ;;  %v20532_v41 = vsub.f32 %v20462_v1, %v6949_v24  ;;  %v20535_v39 = vsub.f32 %v20466_v7, %v6949_v24  ;;  %6964 = vadd.xlane.f32.xlu2 %v6963_v38  ;;  %v14778_v24 = vld [vmem:[%s18646_s26 + $0x5a8] sm:$0xf]  ;;  %v14395_v38 = vor.u32 %v16856_v20, %v14394_v54  ;;  %v16808_v54 = vld [vmem:[%s18646_s26 + $0x154] sm:$0xf0] }
 0xa75   : > { %8855 = vmatpush.bf16.msra.mxu0 %v15159_v9  ;;  %v14202_v9 = vld [vmem:[%s18646_s26 + $0x128] sm:$0xf]  ;;  %v14967_v20 = vor.u32 %v16993_v16, %v14964_v26  ;;  %v14439_v16 = vor.u32 %v16861_v32, %v14436_v40  ;;  %v17042_v32 = vld [vmem:[%s18646_s26 + $0x8ac] sm:$0xf] }
 0xa76   : > { %v6959_v47 = vmul.f32 %v20529_v45, %v20529_v45  ;;  %v6960_v10 = vmul.f32 %v20532_v41, %v20532_v41  ;;  %v6961_v48 = vmul.f32 %v20535_v39, %v20535_v39  ;;  %8869 = vmatpush.bf16.msra.mxu1 %v14395_v38  ;;  %v14586_v38 = vld [vmem:[%s18646_s26 + $0x428] sm:$0xf] }
 0xa78   : > { %v6966_v55 = vadd.f32 %v6960_v10, %v6959_v47  ;;  %v16952_v47 = vld [vmem:[%s18646_s26 + $0x5d4] sm:$0xf0]  ;;  %v16933_v10 = vld [vmem:[%s18646_s26 + $0x544] sm:$0xf] }
 0xa79   : > { %8856 = vmatpush.bf16.msra.mxu0 %v15111_v53  ;;  %v14154_v53 = vld [vmem:[%s18646_s26 + $0xc8] sm:$0xf] }
 0xa7a   : > { %v6967_v12 = vadd.f32 %v6966_v55, %v6961_v48  ;;  %v14724_v48 = vld [vmem:[%s18646_s26 + $0x570] sm:$0xf0]  ;;  %v14779_v55 = vor.u32 %v16952_v47, %v14778_v24  ;;  %8870 = vmatpush.bf16.msra.mxu1 %v14347_v19  ;;  %v14203_v24 = vor.u32 %v16808_v54, %v14202_v9  ;;  %v16904_v47 = vld [vmem:[%s18646_s26 + $0x454] sm:$0xf0]  ;;  %v14919_v19 = vor.u32 %v16981_v36, %v14916_v57 }
 0xa7b   : > { %v14155_v3 = vor.u32 %v16796_v15, %v14154_v53  ;;  %v14059_v9 = vor.u32 %v16772_v28, %v14058_v33  ;;  %v6939_v36 = vld [vmem:[%s871_s17] sm:$0x7]  ;;  %v15114_v33 = vld [vmem:[%s18646_s26 + $0x848] sm:$0xf] }
 0xa7c   : > { %6968 = vadd.xlane.f32.xlu2 %v6967_v12  ;;  %v14727_v12 = vor.u32 %v16933_v10, %v14724_v48  ;;  %8883 = vmatpush.bf16.msrb.mxu2 %v14779_v55  ;;  %v16885_v10 = vld [vmem:[%s18646_s26 + $0x3c4] sm:$0xf]  ;;  %v14587_v55 = vor.u32 %v16904_v47, %v14586_v38  ;;  %v6938_v38 = vld [vmem:[%s861_s25] sm:$0x7] }
 0xa7d   : > { %8857 = vmatpush.bf16.msra.mxu0 %v15063_v59  ;;  %v17036_v28 = vld [vmem:[%s18646_s26 + $0x874] sm:$0xf0] }
 0xa7e   : > { %8842 = vmatpush.bf16.msrb.mxu3 %v14727_v12  ;;  %8871 = vmatpush.bf16.msra.mxu1 %v14299_v52  ;;  %v14532_v12 = vld [vmem:[%s18646_s26 + $0x3f0] sm:$0xf0] }
 0xa7f   : > { %v14535_v42 = vor.u32 %v16885_v10, %v14532_v12  ;;  %v7002_v12 = vperm.slane %v6938_v38, 1 }
 0xa80   : > { %8884 = vmatpush.bf16.msrb.mxu2 %v14731_v31  ;;  %v16892_v31 = vld [vmem:[%s18646_s26 + $0x3f4] sm:$0xf0] }
 0xa81   : > { %8858 = vmatpush.bf16.msra.mxu0 %v15015_v37  ;;  %v14539_v52 = vor.u32 %v16892_v31, %v14538_v44  ;;  %v7016_v31 = vperm.slane %v6939_v36, 2 }
 0xa82   : > { %8843 = vmatpush.bf16.msrb.mxu3 %v14679_v27  ;;  %8872 = vmatpush.bf16.msra.mxu1 %v14251_v60 }
 0xa84   : > { %8885 = vmatpush.bf16.msrb.mxu2 %v14683_v11  ;;  %v16880_v11 = vld [vmem:[%s18646_s26 + $0x394] sm:$0xf0] }
 0xa85   : > { %8859 = vmatpush.bf16.msra.mxu0 %v14967_v20 }
 0xa86   : > { %8844 = vmatpush.bf16.msrb.mxu3 %v14631_v50  ;;  %8873 = vmatpush.bf16.msra.mxu1 %v14203_v24  ;;  %v14107_v50 = vor.u32 %v16784_v18, %v14106_v34 }
 0xa88   : > { %8886 = vmatpush.bf16.msrb.mxu2 %v14635_v62  ;;  %v14442_v62 = vld [vmem:[%s18646_s26 + $0x308] sm:$0xf] }
 0xa89   : > { %8860 = vmatpush.bf16.msra.mxu0 %v14919_v19  ;;  %v14443_v24 = vor.u32 %v16868_v25, %v14442_v62  ;;  %v7015_v19 = vperm.slane %v6939_v36, 1 }
 0xa8a   : > { %8845 = vmatpush.bf16.msrb.mxu3 %v14583_v35  ;;  %8874 = vmatpush.bf16.msra.mxu1 %v14155_v3  ;;  %v14823_v35 = vor.u32 %v16957_v58, %v14820_v61 }
 0xa8c   : > { %8887 = vmatpush.bf16.msrb.mxu2 %v14587_v55  ;;  %v7001_v55 = vperm.slane %v6938_v38, 0 }
 0xa8d   : > { %8861 = vmatpush.bf16.msra.mxu0 %v14871_v6  ;;  %v14780_v6 = vld [vmem:[%s18646_s26 + $0x5d8] sm:$0xf0] }
 0xa8e   : > { %8846 = vmatpush.bf16.msrb.mxu3 %v14535_v42  ;;  %8875 = vmatpush.bf16.msra.mxu1 %v14107_v50  ;;  %v7014_v42 = vperm.slane %v6939_v36, 0  ;;  %v15164_v50 = vld [vmem:[%s18646_s26 + $0x8d8] sm:$0xf0]  ;;  %v16922_v36 = vld [vmem:[%s18646_s26 + $0x4ec] sm:$0xf] }
 0xa8f   : > { %v15167_v25 = vor.u32 %v17042_v32, %v15164_v50 }
 0xa90   : > { %8888 = vmatpush.bf16.msrb.mxu2 %v14539_v52  ;;  %v17048_v52 = vld [vmem:[%s18646_s26 + $0x8d4] sm:$0xf0] }
 0xa91   : > { %8862 = vmatpush.bf16.msra.mxu0 %v14823_v35  ;;  %v16934_v35 = vld [vmem:[%s18646_s26 + $0x54c] sm:$0xf] }
 0xa92   : > { %8847 = vmatpush.bf16.msrb.mxu3 %v14487_v13  ;;  %8876 = vmatpush.bf16.msra.mxu1 %v14059_v9  ;;  %v17030_v9 = vld [vmem:[%s18646_s26 + $0x84c] sm:$0xf] }
 0xa96   : > { %8848 = vmatpush.bf16.msrb.mxu3 %v14439_v16  ;;  %v14348_v16 = vld [vmem:[%s18646_s26 + $0x278] sm:$0xf0] }
 0xae7   : > { %v6965_v46 = vpop.xlane.xlu2 %6964 }
 0xae8   : > { %v6970_v56 = vmul.f32 %v6965_v46, %v18792_v2  ;;  %v14490_v46 = vld [vmem:[%s18646_s26 + $0x368] sm:$0xf] }
 0xae9   : > { %v14491_v60 = vor.u32 %v16880_v11, %v14490_v46  ;;  %v16850_v46 = vld [vmem:[%s18646_s26 + $0x2ac] sm:$0xf]  ;;  %v14396_v11 = vld [vmem:[%s18646_s26 + $0x2d8] sm:$0xf0] }
 0xaea   : > { %v20598_v29 = vadd.f32 1e-06, %v6970_v56 }
 0xaeb   : > { %8889 = vmatpush.bf16.msrb.mxu2 %v14491_v60  ;;  %v14399_v60 = vor.u32 %v16850_v46, %v14396_v11  ;;  %v16898_v46 = vld [vmem:[%s18646_s26 + $0x42c] sm:$0xf]  ;;  %v14588_v11 = vld [vmem:[%s18646_s26 + $0x458] sm:$0xf0] }
 0xaec   : > { %17588 = vrsqrt.f32 %v20598_v29  ;;  %vm6980_vm13 = vweird.f32 %v20598_v29  ;;  %v14591_v32 = vor.u32 %v16898_v46, %v14588_v11  ;;  %v14354_v46 = vld [vmem:[%s18646_s26 + $0x250] sm:$0xf]  ;;  %v16845_v11 = vld [vmem:[%s18646_s26 + $0x27c] sm:$0xf0] }
 0xaef   : > { %v6969_v48 = vpop.xlane.xlu2 %6968  ;;  %8890 = vmatpush.bf16.msrb.mxu2 %v14443_v24 }
 0xaf0   : > { %v6971_v17 = vmul.f32 %v6969_v48, %v18792_v2 }
 0xaf2   : > { %v17589_v8 = vpop.eup %17588  ;;  %v20622_v27 = vadd.f32 1e-06, %v6971_v17 }
 0xaf3   : > { %v6975_v59 = vmul.f32 %v17589_v8, %v20598_v29  ;;  %vm6981_vm12 = vweird.f32 %v17589_v8  ;;  %v7003_v29 = vperm.slane %v6938_v38, 2  ;;  %v15066_v38 = vld [vmem:[%s18646_s26 + $0x7e8] sm:$0xf] }
 0xaf4   : > { %17590 = vrsqrt.f32 %v20622_v27  ;;  %vm6982_vm14 = vmor %vm6980_vm13, %vm6981_vm12  ;;  %vm6990_vm0 = vweird.f32 %v20622_v27 }
 0xaf5   : > { %v6976_v56 = vmul.f32 %v17589_v8, %v6975_v59  ;;  %v15162_v59 = vld [vmem:[%s18646_s26 + $0x8a8] sm:$0xf] }
 0xaf6   : > { %v15163_v40 = vor.u32 %v17048_v52, %v15162_v59 }
 0xaf7   : > { %v6977_v37 = vmul.f32 0.5, %v6976_v56  ;;  %v16946_v56 = vld [vmem:[%s18646_s26 + $0x5ac] sm:$0xf] }
 0xaf8   : > { %v14783_v62 = vor.u32 %v16946_v56, %v14780_v6  ;;  %v16994_v56 = vld [vmem:[%s18646_s26 + $0x72c] sm:$0xf]  ;;  %v16988_v6 = vld [vmem:[%s18646_s26 + $0x6f4] sm:$0xf0] }
 0xaf9   : > { %v6978_v30 = vsub.f32 1.5, %v6977_v37 }
 0xafa   : > { %v17591_v26 = vpop.eup %17590 }
 0xafb   : > { %v6979_v54 = vmul.f32 %v17589_v8, %v6978_v30  ;;  %v6985_v20 = vmul.f32 %v17591_v26, %v20622_v27  ;;  %vm6991_vm15 = vweird.f32 %v17591_v26  ;;  %v16838_v30 = vld [vmem:[%s18646_s26 + $0x24c] sm:$0xf] }
 0xafc   : > { %vm6992_vm1 = vmor %vm6990_vm0, %vm6991_vm15  ;;  %v14351_v24 = vor.u32 %v16838_v30, %v14348_v16 }
 0xafd   : > { %v6986_v47 = vmul.f32 %v17591_v26, %v6985_v20  ;;  %v6983_v10 = vsel %vm6982_vm14, %v17589_v8, %v6979_v54  ;;  %v15116_v54 = vld [vmem:[%s18646_s26 + $0x878] sm:$0xf0]  ;;  %v15115_v20 = vor.u32 %v17036_v28, %v15114_v33  ;;  %v16886_v33 = vld [vmem:[%s18646_s26 + $0x3cc] sm:$0xf] }
 0xafe   : > { %v6994_v57 = vmul.f32 %v6983_v10, %v20513_v63  ;;  %v6995_v17 = vmul.f32 %v6983_v10, %v20516_v0  ;;  %v6996_v15 = vmul.f32 %v6983_v10, %v20519_v4  ;;  %v14540_v28 = vld [vmem:[%s18646_s26 + $0x3f8] sm:$0xf0] }
 0xaff   : > { %v6987_v48 = vmul.f32 0.5, %v6986_v47  ;;  %v17024_v47 = vld [vmem:[%s18646_s26 + $0x814] sm:$0xf0] }
 0xb00   : > { %v7007_v5 = vmul.f32 %v7001_v55, %v6994_v57  ;;  %v7008_v63 = vmul.f32 %v7002_v12, %v6995_v17  ;;  %v7009_v14 = vmul.f32 %v7003_v29, %v6996_v15  ;;  %v14684_v57 = vld [vmem:[%s18646_s26 + $0x518] sm:$0xf0]  ;;  %v17018_v17 = vld [vmem:[%s18646_s26 + $0x7ec] sm:$0xf] }
 0xb01   : > { %v6988_v53 = vsub.f32 1.5, %v6987_v48  ;;  %v15119_v48 = vor.u32 %v17030_v9, %v15116_v54  ;;  %v14543_v9 = vor.u32 %v16886_v33, %v14540_v28  ;;  %v14306_v33 = vld [vmem:[%s18646_s26 + $0x1f0] sm:$0xf]  ;;  %v16833_v28 = vld [vmem:[%s18646_s26 + $0x21c] sm:$0xf0] }
 0xb02   : > { %v7020_v34 = vadd.f32 %v7014_v42, %v7007_v5  ;;  %v7021_v18 = vadd.f32 %v7015_v19, %v7008_v63  ;;  %v16814_v5 = vld [vmem:[%s18646_s26 + $0x18c] sm:$0xf]  ;;  %v14252_v63 = vld [vmem:[%s18646_s26 + $0x1b8] sm:$0xf0] }
 0xb03   : > { %v6989_v44 = vmul.f32 %v17591_v26, %v6988_v53  ;;  %v15068_v53 = vld [vmem:[%s18646_s26 + $0x818] sm:$0xf0] }
 0xb05   : > { %v6993_v0 = vsel %vm6992_vm1, %v17591_v26, %v6989_v44  ;;  %v14732_v26 = vld [vmem:[%s18646_s26 + $0x578] sm:$0xf0]  ;;  %v15018_v44 = vld [vmem:[%s18646_s26 + $0x788] sm:$0xf] }
 0xb06   : > { %v6997_v8 = vmul.f32 %v6993_v0, %v20529_v45  ;;  %v6998_v4 = vmul.f32 %v6993_v0, %v20532_v41  ;;  %v6999_v3 = vmul.f32 %v6993_v0, %v20535_v39  ;;  %v7022_v45 = vadd.f32 %v7016_v31, %v7009_v14  ;;  %v16910_v0 = vld [vmem:[%s18646_s26 + $0x48c] sm:$0xf]  ;;  %v14636_v14 = vld [vmem:[%s18646_s26 + $0x4b8] sm:$0xf0] }
 0xb07   : > { %v14735_v10 = vor.u32 %v16934_v35, %v14732_v26  ;;  %v14639_v59 = vor.u32 %v16910_v0, %v14636_v14  ;;  %v14874_v35 = vld [vmem:[%s18646_s26 + $0x668] sm:$0xf]  ;;  %v16976_v26 = vld [vmem:[%s18646_s26 + $0x694] sm:$0xf0]  ;;  %v14786_v0 = vld [vmem:[%s18646_s26 + $0x5b0] sm:$0xf] }
 0xb08   : > { %v7010_v27 = vmul.f32 %v7001_v55, %v6997_v8  ;;  %v7011_v49 = vmul.f32 %v7002_v12, %v6998_v4  ;;  %v7012_v23 = vmul.f32 %v7003_v29, %v6999_v3  ;;  %v16826_v55 = vld [vmem:[%s18646_s26 + $0x1ec] sm:$0xf]  ;;  %v14300_v12 = vld [vmem:[%s18646_s26 + $0x218] sm:$0xf0]  ;;  %v15067_v29 = vor.u32 %v17024_v47, %v15066_v38  ;;  %v16953_v14 = vld [vmem:[%s18646_s26 + $0x5dc] sm:$0xf0] }
 0xb09   : > { %v14303_v15 = vor.u32 %v16826_v55, %v14300_v12  ;;  %v17006_v8 = vld [vmem:[%s18646_s26 + $0x78c] sm:$0xf]  ;;  %v15020_v4 = vld [vmem:[%s18646_s26 + $0x7b8] sm:$0xf0]  ;;  %v14826_v55 = vld [vmem:[%s18646_s26 + $0x608] sm:$0xf]  ;;  %v14875_v12 = vor.u32 %v16976_v26, %v14874_v35 }
 0xb0a   : > { %v7023_v41 = vadd.f32 %v7014_v42, %v7010_v27  ;;  %v7024_v13 = vadd.f32 %v7015_v19, %v7011_v49  ;;  %v7025_v39 = vadd.f32 %v7016_v31, %v7012_v23  ;;  %v17012_v42 = vld [vmem:[%s18646_s26 + $0x7b4] sm:$0xf0]  ;;  %v14687_v19 = vor.u32 %v16922_v36, %v14684_v57  ;;  %v14970_v49 = vld [vmem:[%s18646_s26 + $0x728] sm:$0xf]  ;;  %v16874_v38 = vld [vmem:[%s18646_s26 + $0x36c] sm:$0xf] }
 0xb0b   : > { %v15071_v31 = vor.u32 %v17018_v17, %v15068_v53  ;;  %v15019_v3 = vor.u32 %v17012_v42, %v15018_v44  ;;  %v14255_v27 = vor.u32 %v16814_v5, %v14252_v63  ;;  %v17000_v23 = vld [vmem:[%s18646_s26 + $0x754] sm:$0xf0]  ;;  %v15023_v52 = vor.u32 %v17006_v8, %v15020_v4  ;;  %v14492_v47 = vld [vmem:[%s18646_s26 + $0x398] sm:$0xf0]  ;;  %v16766_v17 = vld [vmem:[%s18646_s26 + $0xc] sm:$0xf] }
 0xb0c   : > { %v20661_v58 = vpack.c.bf16 %v7023_v41, %v7020_v34  ;;  %v20663_v61 = vpack.c.bf16 %v7024_v13, %v7021_v18  ;;  %v20665_v37 = vpack.c.bf16 %v7025_v39, %v7022_v45  ;;  %v16802_v34 = vld [vmem:[%s18646_s26 + $0x12c] sm:$0xf]  ;;  %v14204_v18 = vld [vmem:[%s18646_s26 + $0x158] sm:$0xf0]  ;;  %v14971_v41 = vor.u32 %v17000_v23, %v14970_v49  ;;  %v14922_v39 = vld [vmem:[%s18646_s26 + $0x6c8] sm:$0xf] }
 0xb0d   : > { %v14972_v45 = vld [vmem:[%s18646_s26 + $0x758] sm:$0xf0]  ;;  %v14207_v13 = vor.u32 %v16802_v34, %v14204_v18  ;;  %v14923_v30 = vor.u32 %v16988_v6, %v14922_v39  ;;  %v16964_v57 = vld [vmem:[%s18646_s26 + $0x634] sm:$0xf0]  ;;  %v16862_v44 = vld [vmem:[%s18646_s26 + $0x30c] sm:$0xf]  ;;  %v14787_v18 = vor.u32 %v16953_v14, %v14786_v0 }
 0xb0e   : > { %8793 = vmatmul.bf16.vlgmr.msra.gmra.mxu3 %v20661_v58  ;;  %8807 = vmatmul.bf16.vlgmr.msrb.gmra.mxu0 %v20663_v61  ;;  %v14975_v50 = vor.u32 %v16994_v56, %v14972_v45  ;;  %v14060_v53 = vld [vmem:[%s18646_s26 + $0x38] sm:$0xf0]  ;;  %v14402_v5 = vld [vmem:[%s18646_s26 + $0x2b0] sm:$0xf]  ;;  %v16857_v63 = vld [vmem:[%s18646_s26 + $0x2dc] sm:$0xf0]  ;;  %v14827_v4 = vor.u32 %v16964_v57, %v14826_v55 }
 0xb0f   : > { %8821 = vmatmul.bf16.vlgmr.msrb.gmra.mxu1 %v20665_v37  ;;  %8835 = vmatmul.bf16.vlgmr.msra.gmra.mxu2 %v20661_v58  ;;  %v14444_v42 = vld [vmem:[%s18646_s26 + $0x338] sm:$0xf0]  ;;  %v15170_v8 = vld [vmem:[%s18646_s26 + $0x8b0] sm:$0xf]  ;;  %v16851_v49 = vld [vmem:[%s18646_s26 + $0x2b4] sm:$0xf]  ;;  %v14403_v34 = vor.u32 %v16857_v63, %v14402_v5 }
 0xb10   : > { %8897 = vmatpush.bf16.msra.mxu3 %v15163_v40  ;;  %8911 = vmatpush.bf16.msrb.mxu0 %v14399_v60  ;;  %v16790_v40 = vld [vmem:[%s18646_s26 + $0xcc] sm:$0xf]  ;;  %v14156_v60 = vld [vmem:[%s18646_s26 + $0xf8] sm:$0xf0]  ;;  %v14404_v23 = vld [vmem:[%s18646_s26 + $0x2e0] sm:$0xf0] }
 0xb11   : > { %8925 = vmatpush.bf16.msrb.mxu1 %v14783_v62  ;;  %8939 = vmatpush.bf16.msra.mxu2 %v15167_v25  ;;  %v16982_v62 = vld [vmem:[%s18646_s26 + $0x6cc] sm:$0xf]  ;;  %v14924_v25 = vld [vmem:[%s18646_s26 + $0x6f8] sm:$0xf0]  ;;  %v14159_v16 = vor.u32 %v16790_v40, %v14156_v60  ;;  %v14407_v45 = vor.u32 %v16851_v49, %v14404_v23  ;;  %v15122_v39 = vld [vmem:[%s18646_s26 + $0x850] sm:$0xf]  ;;  %v14355_v40 = vor.u32 %v16845_v11, %v14354_v46 }
 0xb12   : > { %v14927_v54 = vor.u32 %v16982_v62, %v14924_v25  ;;  %v17037_v6 = vld [vmem:[%s18646_s26 + $0x87c] sm:$0xf0]  ;;  %v15074_v35 = vld [vmem:[%s18646_s26 + $0x7f0] sm:$0xf] }
 0xb13   : > { %v15123_v62 = vor.u32 %v17037_v6, %v15122_v39  ;;  %v17025_v26 = vld [vmem:[%s18646_s26 + $0x81c] sm:$0xf0]  ;;  %v14642_v55 = vld [vmem:[%s18646_s26 + $0x490] sm:$0xf] }
 0xb14   : > { %8898 = vmatpush.bf16.msra.mxu3 %v15115_v20  ;;  %8912 = vmatpush.bf16.msrb.mxu0 %v14351_v24  ;;  %v16778_v20 = vld [vmem:[%s18646_s26 + $0x6c] sm:$0xf]  ;;  %v14108_v24 = vld [vmem:[%s18646_s26 + $0x98] sm:$0xf0]  ;;  %v17013_v57 = vld [vmem:[%s18646_s26 + $0x7bc] sm:$0xf0] }
 0xb15   : > { %8926 = vmatpush.bf16.msrb.mxu1 %v14735_v10  ;;  %8940 = vmatpush.bf16.msra.mxu2 %v15119_v48  ;;  %v16970_v10 = vld [vmem:[%s18646_s26 + $0x66c] sm:$0xf]  ;;  %v14876_v48 = vld [vmem:[%s18646_s26 + $0x698] sm:$0xf0]  ;;  %v14111_v36 = vor.u32 %v16778_v20, %v14108_v24  ;;  %v14307_v20 = vor.u32 %v16833_v28, %v14306_v33  ;;  %v14594_v5 = vld [vmem:[%s18646_s26 + $0x430] sm:$0xf] }
 0xb16   : > { %v16905_v63 = vld [vmem:[%s18646_s26 + $0x45c] sm:$0xf0]  ;;  %v14978_v0 = vld [vmem:[%s18646_s26 + $0x730] sm:$0xf] }
 0xb17   : > { %v17001_v14 = vld [vmem:[%s18646_s26 + $0x75c] sm:$0xf0]  ;;  %v14162_v49 = vld [vmem:[%s18646_s26 + $0xd0] sm:$0xf] }
 0xb18   : > { %8899 = vmatpush.bf16.msra.mxu3 %v15067_v29  ;;  %8913 = vmatpush.bf16.msrb.mxu0 %v14303_v15  ;;  %v14495_v29 = vor.u32 %v16874_v38, %v14492_v47  ;;  %v14879_v15 = vor.u32 %v16970_v10, %v14876_v48  ;;  %v14258_v38 = vld [vmem:[%s18646_s26 + $0x190] sm:$0xf]  ;;  %v16821_v47 = vld [vmem:[%s18646_s26 + $0x1bc] sm:$0xf0]  ;;  %v15075_v10 = vor.u32 %v17025_v26, %v15074_v35 }
 0xb19   : > { %8927 = vmatpush.bf16.msrb.mxu1 %v14687_v19  ;;  %8941 = vmatpush.bf16.msra.mxu2 %v15071_v31  ;;  %v16958_v19 = vld [vmem:[%s18646_s26 + $0x60c] sm:$0xf]  ;;  %v14828_v31 = vld [vmem:[%s18646_s26 + $0x638] sm:$0xf0]  ;;  %v16797_v23 = vld [vmem:[%s18646_s26 + $0xfc] sm:$0xf0] }
 0xb1a   : > { %v14930_v46 = vld [vmem:[%s18646_s26 + $0x6d0] sm:$0xf]  ;;  %v16989_v11 = vld [vmem:[%s18646_s26 + $0x6fc] sm:$0xf0] }
 0xb1b   : > { %v14114_v39 = vld [vmem:[%s18646_s26 + $0x70] sm:$0xf]  ;;  %v16785_v6 = vld [vmem:[%s18646_s26 + $0x9c] sm:$0xf0] }
 0xb1c   : > { %8900 = vmatpush.bf16.msra.mxu3 %v15019_v3  ;;  %8914 = vmatpush.bf16.msrb.mxu0 %v14255_v27  ;;  %v14063_v3 = vor.u32 %v16766_v17, %v14060_v53  ;;  %v17049_v27 = vld [vmem:[%s18646_s26 + $0x8dc] sm:$0xf0]  ;;  %v16815_v17 = vld [vmem:[%s18646_s26 + $0x194] sm:$0xf]  ;;  %v14260_v53 = vld [vmem:[%s18646_s26 + $0x1c0] sm:$0xf0] }
 0xb1d   : > { %8928 = vmatpush.bf16.msrb.mxu1 %v14639_v59  ;;  %8942 = vmatpush.bf16.msra.mxu2 %v15023_v52  ;;  %v14447_v59 = vor.u32 %v16862_v44, %v14444_v42  ;;  %v14831_v52 = vor.u32 %v16958_v19, %v14828_v31  ;;  %v15171_v56 = vor.u32 %v17049_v27, %v15170_v8  ;;  %v14210_v44 = vld [vmem:[%s18646_s26 + $0x130] sm:$0xf]  ;;  %v16809_v42 = vld [vmem:[%s18646_s26 + $0x15c] sm:$0xf0]  ;;  %v16803_v8 = vld [vmem:[%s18646_s26 + $0x134] sm:$0xf] }
 0xb1e   : > { %8849 = vmatmul.bf16.vlgmr.msrb.gmra.mxu3 %v20663_v61  ;;  %8863 = vmatmul.bf16.vlgmr.msra.gmra.mxu0 %v20665_v37  ;;  %v14263_v31 = vor.u32 %v16815_v17, %v14260_v53  ;;  %v14595_v27 = vor.u32 %v16905_v63, %v14594_v5  ;;  %v14882_v33 = vld [vmem:[%s18646_s26 + $0x670] sm:$0xf]  ;;  %v16977_v28 = vld [vmem:[%s18646_s26 + $0x69c] sm:$0xf0]  ;;  %v14410_v17 = vld [vmem:[%s18646_s26 + $0x2b8] sm:$0xf] }
 0xb1f   : > { %8877 = vmatmul.bf16.vlgmr.msra.gmra.mxu1 %v20661_v58  ;;  %8891 = vmatmul.bf16.vlgmr.msrb.gmra.mxu2 %v20663_v61  ;;  %v16773_v26 = vld [vmem:[%s18646_s26 + $0x3c] sm:$0xf0] }
 0xb20   : > { %8901 = vmatpush.bf16.msra.mxu3 %v14971_v41  ;;  %8915 = vmatpush.bf16.msrb.mxu0 %v14207_v13  ;;  %v14738_v41 = vld [vmem:[%s18646_s26 + $0x550] sm:$0xf]  ;;  %v16941_v13 = vld [vmem:[%s18646_s26 + $0x57c] sm:$0xf0] }
 0xb21   : > { %8929 = vmatpush.bf16.msrb.mxu1 %v14591_v32  ;;  %8943 = vmatpush.bf16.msra.mxu2 %v14975_v50  ;;  %v16839_v32 = vld [vmem:[%s18646_s26 + $0x254] sm:$0xf]  ;;  %v14356_v50 = vld [vmem:[%s18646_s26 + $0x280] sm:$0xf0]  ;;  %v14739_v60 = vor.u32 %v16941_v13, %v14738_v41  ;;  %v14163_v41 = vor.u32 %v16797_v23, %v14162_v49  ;;  %v14362_v49 = vld [vmem:[%s18646_s26 + $0x258] sm:$0xf] }
 0xb22   : > { %v14359_v25 = vor.u32 %v16839_v32, %v14356_v50  ;;  %v14931_v32 = vor.u32 %v16989_v11, %v14930_v46  ;;  %v16846_v23 = vld [vmem:[%s18646_s26 + $0x284] sm:$0xf0]  ;;  %v16923_v46 = vld [vmem:[%s18646_s26 + $0x4f4] sm:$0xf]  ;;  %v14692_v11 = vld [vmem:[%s18646_s26 + $0x520] sm:$0xf0] }
 0xb24   : > { %8902 = vmatpush.bf16.msra.mxu3 %v14923_v30  ;;  %8916 = vmatpush.bf16.msrb.mxu0 %v14159_v16  ;;  %v14690_v30 = vld [vmem:[%s18646_s26 + $0x4f0] sm:$0xf]  ;;  %v16929_v16 = vld [vmem:[%s18646_s26 + $0x51c] sm:$0xf0] }
 0xb25   : > { %8930 = vmatpush.bf16.msrb.mxu1 %v14543_v9  ;;  %8944 = vmatpush.bf16.msra.mxu2 %v14927_v54  ;;  %v16827_v9 = vld [vmem:[%s18646_s26 + $0x1f4] sm:$0xf]  ;;  %v14308_v54 = vld [vmem:[%s18646_s26 + $0x220] sm:$0xf0]  ;;  %v14691_v24 = vor.u32 %v16929_v16, %v14690_v30  ;;  %v14066_v30 = vld [vmem:[%s18646_s26 + $0x10] sm:$0xf]  ;;  %v14115_v16 = vor.u32 %v16785_v6, %v14114_v39 }
 0xb26   : > { %v14311_v48 = vor.u32 %v16827_v9, %v14308_v54  ;;  %v14450_v9 = vld [vmem:[%s18646_s26 + $0x310] sm:$0xf]  ;;  %v16869_v54 = vld [vmem:[%s18646_s26 + $0x33c] sm:$0xf0]  ;;  %v14067_v53 = vor.u32 %v16773_v26, %v14066_v30  ;;  %v14314_v39 = vld [vmem:[%s18646_s26 + $0x1f8] sm:$0xf] }
 0xb27   : > { %v16834_v6 = vld [vmem:[%s18646_s26 + $0x224] sm:$0xf0]  ;;  %v17007_v30 = vld [vmem:[%s18646_s26 + $0x794] sm:$0xf] }
 0xb28   : > { %8903 = vmatpush.bf16.msra.mxu3 %v14875_v12  ;;  %8917 = vmatpush.bf16.msrb.mxu0 %v14111_v36  ;;  %v16917_v12 = vld [vmem:[%s18646_s26 + $0x4bc] sm:$0xf0]  ;;  %v15026_v36 = vld [vmem:[%s18646_s26 + $0x790] sm:$0xf]  ;;  %v16822_v26 = vld [vmem:[%s18646_s26 + $0x1c4] sm:$0xf0] }
 0xb29   : > { %8931 = vmatpush.bf16.msrb.mxu1 %v14495_v29  ;;  %8945 = vmatpush.bf16.msra.mxu2 %v14879_v15  ;;  %v14259_v29 = vor.u32 %v16821_v47, %v14258_v38  ;;  %v14643_v15 = vor.u32 %v16917_v12, %v14642_v55  ;;  %v15027_v19 = vor.u32 %v17013_v57, %v15026_v36  ;;  %v14834_v38 = vld [vmem:[%s18646_s26 + $0x610] sm:$0xf]  ;;  %v16965_v47 = vld [vmem:[%s18646_s26 + $0x63c] sm:$0xf0]  ;;  %v16947_v55 = vld [vmem:[%s18646_s26 + $0x5b4] sm:$0xf] }
 0xb2a   : > { %v14788_v12 = vld [vmem:[%s18646_s26 + $0x5e0] sm:$0xf0]  ;;  %v17043_v36 = vld [vmem:[%s18646_s26 + $0x8b4] sm:$0xf] }
 0xb2b   : > { %v15172_v57 = vld [vmem:[%s18646_s26 + $0x8e0] sm:$0xf0]  ;;  %v14791_v5 = vor.u32 %v16947_v55, %v14788_v12  ;;  %v16995_v55 = vld [vmem:[%s18646_s26 + $0x734] sm:$0xf] }
 0xb2c   : > { %8904 = vmatpush.bf16.msra.mxu3 %v14827_v4  ;;  %8918 = vmatpush.bf16.msrb.mxu0 %v14063_v3  ;;  %v14212_v4 = vld [vmem:[%s18646_s26 + $0x160] sm:$0xf0]  ;;  %v14211_v3 = vor.u32 %v16809_v42, %v14210_v44  ;;  %v14794_v44 = vld [vmem:[%s18646_s26 + $0x5b8] sm:$0xf]  ;;  %v16954_v42 = vld [vmem:[%s18646_s26 + $0x5e4] sm:$0xf0]  ;;  %v15175_v63 = vor.u32 %v17043_v36, %v15172_v57 }
 0xb2d   : > { %8932 = vmatpush.bf16.msrb.mxu1 %v14447_v59  ;;  %8946 = vmatpush.bf16.msra.mxu2 %v14831_v52  ;;  %v14979_v59 = vor.u32 %v17001_v14, %v14978_v0  ;;  %v14215_v52 = vor.u32 %v16803_v8, %v14212_v4  ;;  %v16935_v0 = vld [vmem:[%s18646_s26 + $0x554] sm:$0xf]  ;;  %v14740_v14 = vld [vmem:[%s18646_s26 + $0x580] sm:$0xf0]  ;;  %v14795_v4 = vor.u32 %v16954_v42, %v14794_v44  ;;  %v14218_v36 = vld [vmem:[%s18646_s26 + $0x138] sm:$0xf] }
 0xb2e   : > { %v14980_v12 = vld [vmem:[%s18646_s26 + $0x760] sm:$0xf0]  ;;  %v16810_v57 = vld [vmem:[%s18646_s26 + $0x164] sm:$0xf0]  ;;  %v16887_v44 = vld [vmem:[%s18646_s26 + $0x3d4] sm:$0xf] }
 0xb2f   : > { %8905 = vmatmul.bf16.vlgmr.msra.gmra.mxu3 %v20665_v37  ;;  %8919 = vmatmul.bf16.vlgmr.msrb.gmra.mxu0 %v20661_v58  ;;  %v14548_v42 = vld [vmem:[%s18646_s26 + $0x400] sm:$0xf0] }
 0xb30   : > { %8953 = vmatpush.bf16.msrb.mxu3 %v14403_v34  ;;  %8967 = vmatpush.bf16.msra.mxu0 %v14787_v18  ;;  %v14546_v34 = vld [vmem:[%s18646_s26 + $0x3d0] sm:$0xf]  ;;  %v16893_v18 = vld [vmem:[%s18646_s26 + $0x3fc] sm:$0xf0] }
 0xb31   : > { %8981 = vmatpush.bf16.msra.mxu1 %v15171_v56  ;;  %8995 = vmatpush.bf16.msrb.mxu2 %v14407_v45  ;;  %v16791_v56 = vld [vmem:[%s18646_s26 + $0xd4] sm:$0xf]  ;;  %v14164_v45 = vld [vmem:[%s18646_s26 + $0x100] sm:$0xf0]  ;;  %v14547_v13 = vor.u32 %v16893_v18, %v14546_v34  ;;  %v14743_v34 = vor.u32 %v16935_v0, %v14740_v14  ;;  %v14170_v0 = vld [vmem:[%s18646_s26 + $0xd8] sm:$0xf] }
 0xb32   : > { %8933 = vmatmul.bf16.vlgmr.msrb.gmra.mxu1 %v20663_v61  ;;  %8947 = vmatmul.bf16.vlgmr.msra.gmra.mxu2 %v20665_v37  ;;  %v14167_v50 = vor.u32 %v16791_v56, %v14164_v45  ;;  %v14363_v56 = vor.u32 %v16846_v23, %v14362_v49  ;;  %v16798_v14 = vld [vmem:[%s18646_s26 + $0x104] sm:$0xf0]  ;;  %v16875_v49 = vld [vmem:[%s18646_s26 + $0x374] sm:$0xf]  ;;  %v14500_v23 = vld [vmem:[%s18646_s26 + $0x3a0] sm:$0xf0] }
 0xb34   : > { %8954 = vmatpush.bf16.msrb.mxu3 %v14355_v40  ;;  %8968 = vmatpush.bf16.msra.mxu0 %v14739_v60  ;;  %v14498_v40 = vld [vmem:[%s18646_s26 + $0x370] sm:$0xf]  ;;  %v16881_v60 = vld [vmem:[%s18646_s26 + $0x39c] sm:$0xf0] }
 0xb35   : > { %8982 = vmatpush.bf16.msra.mxu1 %v15123_v62  ;;  %8996 = vmatpush.bf16.msrb.mxu2 %v14359_v25  ;;  %v16779_v62 = vld [vmem:[%s18646_s26 + $0x74] sm:$0xf]  ;;  %v14116_v25 = vld [vmem:[%s18646_s26 + $0xa0] sm:$0xf0]  ;;  %v14499_v35 = vor.u32 %v16881_v60, %v14498_v40  ;;  %v14695_v40 = vor.u32 %v16923_v46, %v14692_v11  ;;  %v14122_v46 = vld [vmem:[%s18646_s26 + $0x78] sm:$0xf] }
 0xb36   : > { %v16786_v11 = vld [vmem:[%s18646_s26 + $0xa4] sm:$0xf0] }
 0xb38   : > { %8955 = vmatpush.bf16.msrb.mxu3 %v14307_v20  ;;  %8969 = vmatpush.bf16.msra.mxu0 %v14691_v24  ;;  %v14883_v20 = vor.u32 %v16977_v28, %v14882_v33  ;;  %v14119_v24 = vor.u32 %v16779_v62, %v14116_v25  ;;  %v16911_v33 = vld [vmem:[%s18646_s26 + $0x494] sm:$0xf]  ;;  %v14644_v28 = vld [vmem:[%s18646_s26 + $0x4c0] sm:$0xf0]  ;;  %v14315_v62 = vor.u32 %v16834_v6, %v14314_v39 }
 0xb39   : > { %8983 = vmatpush.bf16.msra.mxu1 %v15075_v10  ;;  %8997 = vmatpush.bf16.msrb.mxu2 %v14311_v48  ;;  %v16767_v10 = vld [vmem:[%s18646_s26 + $0x14] sm:$0xf]  ;;  %v14068_v48 = vld [vmem:[%s18646_s26 + $0x40] sm:$0xf0] }
 0xb3a   : > { %v14452_v6 = vld [vmem:[%s18646_s26 + $0x340] sm:$0xf0] }
 0xb3c   : > { %8956 = vmatpush.bf16.msrb.mxu3 %v14259_v29  ;;  %8970 = vmatpush.bf16.msra.mxu0 %v14643_v15  ;;  %v14451_v29 = vor.u32 %v16869_v54, %v14450_v9  ;;  %v16858_v15 = vld [vmem:[%s18646_s26 + $0x2e4] sm:$0xf0]  ;;  %v14650_v9 = vld [vmem:[%s18646_s26 + $0x498] sm:$0xf] }
 0xb3d   : > { %8984 = vmatpush.bf16.msra.mxu1 %v15027_v19  ;;  %8998 = vmatpush.bf16.msrb.mxu2 %v14263_v31  ;;  %v14835_v19 = vor.u32 %v16965_v47, %v14834_v38  ;;  %v14071_v31 = vor.u32 %v16767_v10, %v14068_v48  ;;  %v14411_v8 = vor.u32 %v16858_v15, %v14410_v17  ;;  %v16918_v54 = vld [vmem:[%s18646_s26 + $0x4c4] sm:$0xf0]  ;;  %v16899_v38 = vld [vmem:[%s18646_s26 + $0x434] sm:$0xf]  ;;  %v14596_v47 = vld [vmem:[%s18646_s26 + $0x460] sm:$0xf0] }
 0xb3e   : > { %v14651_v48 = vor.u32 %v16918_v54, %v14650_v9  ;;  %v14602_v17 = vld [vmem:[%s18646_s26 + $0x438] sm:$0xf]  ;;  %v14983_v15 = vor.u32 %v16995_v55, %v14980_v12  ;;  %v16948_v9 = vld [vmem:[%s18646_s26 + $0x5bc] sm:$0xf] }
 0xb40   : > { %8957 = vmatpush.bf16.msrb.mxu3 %v14211_v3  ;;  %8971 = vmatpush.bf16.msra.mxu0 %v14595_v27  ;;  %v17031_v3 = vld [vmem:[%s18646_s26 + $0x854] sm:$0xf]  ;;  %v15124_v27 = vld [vmem:[%s18646_s26 + $0x880] sm:$0xf0] }
 0xb41   : > { %8985 = vmatpush.bf16.msra.mxu1 %v14979_v59  ;;  %8999 = vmatpush.bf16.msrb.mxu2 %v14215_v52  ;;  %v14746_v59 = vld [vmem:[%s18646_s26 + $0x558] sm:$0xf]  ;;  %v16942_v52 = vld [vmem:[%s18646_s26 + $0x584] sm:$0xf0]  ;;  %v15127_v18 = vor.u32 %v17031_v3, %v15124_v27  ;;  %v14551_v3 = vor.u32 %v16887_v44, %v14548_v42  ;;  %v16936_v44 = vld [vmem:[%s18646_s26 + $0x55c] sm:$0xf] }
 0xb42   : > { %v14747_v45 = vor.u32 %v16942_v52, %v14746_v59  ;;  %v14171_v59 = vor.u32 %v16798_v14, %v14170_v0  ;;  %v14748_v42 = vld [vmem:[%s18646_s26 + $0x588] sm:$0xf0]  ;;  %v15082_v0 = vld [vmem:[%s18646_s26 + $0x7f8] sm:$0xf]  ;;  %v17026_v14 = vld [vmem:[%s18646_s26 + $0x824] sm:$0xf0] }
 0xb44   : > { %8958 = vmatpush.bf16.msrb.mxu3 %v14163_v41  ;;  %8972 = vmatpush.bf16.msra.mxu0 %v14547_v13  ;;  %v17019_v41 = vld [vmem:[%s18646_s26 + $0x7f4] sm:$0xf]  ;;  %v15076_v13 = vld [vmem:[%s18646_s26 + $0x820] sm:$0xf0] }
 0xb45   : > { %8986 = vmatpush.bf16.msra.mxu1 %v14931_v32  ;;  %9000 = vmatpush.bf16.msrb.mxu2 %v14167_v50  ;;  %v14698_v32 = vld [vmem:[%s18646_s26 + $0x4f8] sm:$0xf]  ;;  %v16930_v50 = vld [vmem:[%s18646_s26 + $0x524] sm:$0xf0]  ;;  %v15079_v60 = vor.u32 %v17019_v41, %v15076_v13  ;;  %v16863_v41 = vld [vmem:[%s18646_s26 + $0x314] sm:$0xf]  ;;  %v14503_v13 = vor.u32 %v16875_v49, %v14500_v23 }
 0xb46   : > { %v14699_v25 = vor.u32 %v16930_v50, %v14698_v32  ;;  %v16959_v32 = vld [vmem:[%s18646_s26 + $0x614] sm:$0xf]  ;;  %v14836_v50 = vld [vmem:[%s18646_s26 + $0x640] sm:$0xf0]  ;;  %v14455_v54 = vor.u32 %v16863_v41, %v14452_v6  ;;  %v16924_v49 = vld [vmem:[%s18646_s26 + $0x4fc] sm:$0xf] }
 0xb47   : > { %v14700_v23 = vld [vmem:[%s18646_s26 + $0x528] sm:$0xf0]  ;;  %v16816_v41 = vld [vmem:[%s18646_s26 + $0x19c] sm:$0xf] }
 0xb48   : > { %8959 = vmatpush.bf16.msrb.mxu3 %v14115_v16  ;;  %8973 = vmatpush.bf16.msra.mxu0 %v14499_v35  ;;  %v15028_v16 = vld [vmem:[%s18646_s26 + $0x7c0] sm:$0xf0]  ;;  %v14266_v35 = vld [vmem:[%s18646_s26 + $0x198] sm:$0xf]  ;;  %v14652_v6 = vld [vmem:[%s18646_s26 + $0x4c8] sm:$0xf0] }
 0xb49   : > { %8987 = vmatpush.bf16.msra.mxu1 %v14883_v20  ;;  %9001 = vmatpush.bf16.msrb.mxu2 %v14119_v24  ;;  %v14647_v20 = vor.u32 %v16911_v33, %v14644_v28  ;;  %v15031_v24 = vor.u32 %v17007_v30, %v15028_v16  ;;  %v14267_v10 = vor.u32 %v16822_v26, %v14266_v35  ;;  %v14074_v33 = vld [vmem:[%s18646_s26 + $0x18] sm:$0xf]  ;;  %v16774_v28 = vld [vmem:[%s18646_s26 + $0x44] sm:$0xf0]  ;;  %v16852_v35 = vld [vmem:[%s18646_s26 + $0x2bc] sm:$0xf] }
 0xb4a   : > { %v15178_v30 = vld [vmem:[%s18646_s26 + $0x8b8] sm:$0xf]  ;;  %v17050_v16 = vld [vmem:[%s18646_s26 + $0x8e4] sm:$0xf0]  ;;  %v14412_v26 = vld [vmem:[%s18646_s26 + $0x2e8] sm:$0xf0] }
 0xb4b   : > { %v15179_v55 = vor.u32 %v17050_v16, %v15178_v30  ;;  %v14415_v12 = vor.u32 %v16852_v35, %v14412_v26  ;;  %v16804_v30 = vld [vmem:[%s18646_s26 + $0x13c] sm:$0xf]  ;;  %v14220_v16 = vld [vmem:[%s18646_s26 + $0x168] sm:$0xf0] }
 0xb4c   : > { %8960 = vmatpush.bf16.msrb.mxu3 %v14067_v53  ;;  %8974 = vmatpush.bf16.msra.mxu0 %v14451_v29  ;;  %v16906_v53 = vld [vmem:[%s18646_s26 + $0x464] sm:$0xf0]  ;;  %v14599_v29 = vor.u32 %v16899_v38, %v14596_v47  ;;  %v17044_v38 = vld [vmem:[%s18646_s26 + $0x8bc] sm:$0xf]  ;;  %v15180_v47 = vld [vmem:[%s18646_s26 + $0x8e8] sm:$0xf0] }
 0xb4d   : > { %8988 = vmatpush.bf16.msra.mxu1 %v14835_v19  ;;  %9002 = vmatpush.bf16.msrb.mxu2 %v14071_v31  ;;  %v14219_v19 = vor.u32 %v16810_v57, %v14218_v36  ;;  %v14603_v31 = vor.u32 %v16906_v53, %v14602_v17  ;;  %v15130_v36 = vld [vmem:[%s18646_s26 + $0x858] sm:$0xf]  ;;  %v17038_v57 = vld [vmem:[%s18646_s26 + $0x884] sm:$0xf0]  ;;  %v15183_v53 = vor.u32 %v17044_v38, %v15180_v47  ;;  %v16900_v35 = vld [vmem:[%s18646_s26 + $0x43c] sm:$0xf] }
 0xb4e   : > { %v14604_v26 = vld [vmem:[%s18646_s26 + $0x468] sm:$0xf0]  ;;  %v14938_v38 = vld [vmem:[%s18646_s26 + $0x6d8] sm:$0xf]  ;;  %v16990_v47 = vld [vmem:[%s18646_s26 + $0x704] sm:$0xf0] }
 0xb4f   : > { %8961 = vmatmul.bf16.vlgmr.msrb.gmra.mxu3 %v20661_v58  ;;  %8975 = vmatmul.bf16.vlgmr.msra.gmra.mxu0 %v20663_v61 }
 0xb50   : > { %9009 = vmatpush.bf16.msra.mxu3 %v14791_v5  ;;  %9023 = vmatpush.bf16.msrb.mxu0 %v15175_v63  ;;  %v16983_v5 = vld [vmem:[%s18646_s26 + $0x6d4] sm:$0xf]  ;;  %v14932_v63 = vld [vmem:[%s18646_s26 + $0x700] sm:$0xf0] }
 0xb51   : > { %9037 = vmatpush.bf16.msrb.mxu1 %v14411_v8  ;;  %9051 = vmatpush.bf16.msra.mxu2 %v14795_v4  ;;  %v14554_v8 = vld [vmem:[%s18646_s26 + $0x3d8] sm:$0xf]  ;;  %v16894_v4 = vld [vmem:[%s18646_s26 + $0x404] sm:$0xf0]  ;;  %v14935_v27 = vor.u32 %v16983_v5, %v14932_v63  ;;  %v15131_v5 = vor.u32 %v17038_v57, %v15130_v36  ;;  %v16888_v36 = vld [vmem:[%s18646_s26 + $0x3dc] sm:$0xf] }
 0xb52   : > { %8989 = vmatmul.bf16.vlgmr.msra.gmra.mxu1 %v20665_v37  ;;  %9003 = vmatmul.bf16.vlgmr.msrb.gmra.mxu2 %v20661_v58  ;;  %v14555_v52 = vor.u32 %v16894_v4, %v14554_v8  ;;  %v14751_v8 = vor.u32 %v16936_v44, %v14748_v42  ;;  %v14556_v57 = vld [vmem:[%s18646_s26 + $0x408] sm:$0xf0]  ;;  %v14890_v44 = vld [vmem:[%s18646_s26 + $0x678] sm:$0xf]  ;;  %v16978_v42 = vld [vmem:[%s18646_s26 + $0x6a4] sm:$0xf0] }
 0xb54   : > { %9010 = vmatpush.bf16.msra.mxu3 %v14743_v34  ;;  %9024 = vmatpush.bf16.msrb.mxu0 %v15127_v18  ;;  %v16971_v34 = vld [vmem:[%s18646_s26 + $0x674] sm:$0xf]  ;;  %v14884_v18 = vld [vmem:[%s18646_s26 + $0x6a0] sm:$0xf0] }
 0xb55   : > { %9038 = vmatpush.bf16.msrb.mxu1 %v14363_v56  ;;  %9052 = vmatpush.bf16.msra.mxu2 %v14747_v45  ;;  %v14506_v56 = vld [vmem:[%s18646_s26 + $0x378] sm:$0xf]  ;;  %v16882_v45 = vld [vmem:[%s18646_s26 + $0x3a4] sm:$0xf0]  ;;  %v14887_v39 = vor.u32 %v16971_v34, %v14884_v18  ;;  %v15083_v34 = vor.u32 %v17026_v14, %v15082_v0  ;;  %v16876_v0 = vld [vmem:[%s18646_s26 + $0x37c] sm:$0xf] }
 0xb56   : > { %v14508_v14 = vld [vmem:[%s18646_s26 + $0x3a8] sm:$0xf0] }
 0xb58   : > { %9011 = vmatpush.bf16.msra.mxu3 %v14695_v40  ;;  %9025 = vmatpush.bf16.msrb.mxu0 %v15079_v60  ;;  %v14123_v40 = vor.u32 %v16786_v11, %v14122_v46  ;;  %v14507_v60 = vor.u32 %v16882_v45, %v14506_v56  ;;  %v15034_v46 = vld [vmem:[%s18646_s26 + $0x798] sm:$0xf]  ;;  %v17014_v11 = vld [vmem:[%s18646_s26 + $0x7c4] sm:$0xf0]  ;;  %v14703_v56 = vor.u32 %v16924_v49, %v14700_v23 }
 0xb59   : > { %9039 = vmatpush.bf16.msrb.mxu1 %v14315_v62  ;;  %9053 = vmatpush.bf16.msra.mxu2 %v14699_v25  ;;  %v14458_v62 = vld [vmem:[%s18646_s26 + $0x318] sm:$0xf]  ;;  %v16870_v25 = vld [vmem:[%s18646_s26 + $0x344] sm:$0xf0] }
 0xb5a   : > { %v16966_v23 = vld [vmem:[%s18646_s26 + $0x644] sm:$0xf0] }
 0xb5c   : > { %9012 = vmatpush.bf16.msra.mxu3 %v14647_v20  ;;  %9026 = vmatpush.bf16.msrb.mxu0 %v15031_v24  ;;  %v14839_v20 = vor.u32 %v16959_v32, %v14836_v50  ;;  %v14796_v24 = vld [vmem:[%s18646_s26 + $0x5e8] sm:$0xf0]  ;;  %v17008_v32 = vld [vmem:[%s18646_s26 + $0x79c] sm:$0xf] }
 0xb5d   : > { %9040 = vmatpush.bf16.msrb.mxu1 %v14267_v10  ;;  %9054 = vmatpush.bf16.msra.mxu2 %v14651_v48  ;;  %v14075_v10 = vor.u32 %v16774_v28, %v14074_v33  ;;  %v14459_v48 = vor.u32 %v16870_v25, %v14458_v62  ;;  %v14799_v17 = vor.u32 %v16948_v9, %v14796_v24  ;;  %v15036_v50 = vld [vmem:[%s18646_s26 + $0x7c8] sm:$0xf0]  ;;  %v14986_v33 = vld [vmem:[%s18646_s26 + $0x738] sm:$0xf]  ;;  %v17002_v28 = vld [vmem:[%s18646_s26 + $0x764] sm:$0xf0] }
 0xb5e   : > { %v15039_v25 = vor.u32 %v17008_v32, %v15036_v50  ;;  %v16996_v9 = vld [vmem:[%s18646_s26 + $0x73c] sm:$0xf]  ;;  %v14223_v24 = vor.u32 %v16804_v30, %v14220_v16  ;;  %v15186_v32 = vld [vmem:[%s18646_s26 + $0x8c0] sm:$0xf] }
 0xb60   : > { %9013 = vmatpush.bf16.msra.mxu3 %v14599_v29  ;;  %9027 = vmatpush.bf16.msrb.mxu0 %v14983_v15  ;;  %v16840_v29 = vld [vmem:[%s18646_s26 + $0x25c] sm:$0xf]  ;;  %v14364_v15 = vld [vmem:[%s18646_s26 + $0x288] sm:$0xf0] }
 0xb61   : > { %9041 = vmatpush.bf16.msrb.mxu1 %v14219_v19  ;;  %9055 = vmatpush.bf16.msra.mxu2 %v14603_v31  ;;  %v17032_v19 = vld [vmem:[%s18646_s26 + $0x85c] sm:$0xf]  ;;  %v15132_v31 = vld [vmem:[%s18646_s26 + $0x888] sm:$0xf0]  ;;  %v14367_v63 = vor.u32 %v16840_v29, %v14364_v15  ;;  %v14939_v29 = vor.u32 %v16990_v47, %v14938_v38  ;;  %v15138_v38 = vld [vmem:[%s18646_s26 + $0x860] sm:$0xf] }
 0xb62   : > { %v15135_v4 = vor.u32 %v17032_v19, %v15132_v31  ;;  %v14559_v19 = vor.u32 %v16888_v36, %v14556_v57  ;;  %v17039_v47 = vld [vmem:[%s18646_s26 + $0x88c] sm:$0xf0]  ;;  %v14322_v36 = vld [vmem:[%s18646_s26 + $0x200] sm:$0xf] }
 0xb63   : > { %v16835_v57 = vld [vmem:[%s18646_s26 + $0x22c] sm:$0xf0] }
 0xb64   : > { %9014 = vmatpush.bf16.msra.mxu3 %v14551_v3  ;;  %9028 = vmatpush.bf16.msrb.mxu0 %v14935_v27  ;;  %v16828_v3 = vld [vmem:[%s18646_s26 + $0x1fc] sm:$0xf]  ;;  %v14316_v27 = vld [vmem:[%s18646_s26 + $0x228] sm:$0xf0] }
 0xb65   : > { %9042 = vmatpush.bf16.msrb.mxu1 %v14171_v59  ;;  %9056 = vmatpush.bf16.msra.mxu2 %v14555_v52  ;;  %v17020_v59 = vld [vmem:[%s18646_s26 + $0x7fc] sm:$0xf]  ;;  %v15084_v52 = vld [vmem:[%s18646_s26 + $0x828] sm:$0xf0]  ;;  %v14319_v18 = vor.u32 %v16828_v3, %v14316_v27  ;;  %v14842_v3 = vld [vmem:[%s18646_s26 + $0x618] sm:$0xf]  ;;  %v14891_v27 = vor.u32 %v16978_v42, %v14890_v44 }
 0xb66   : > { %v15087_v45 = vor.u32 %v17020_v59, %v15084_v52  ;;  %v16768_v59 = vld [vmem:[%s18646_s26 + $0x1c] sm:$0xf]  ;;  %v14076_v52 = vld [vmem:[%s18646_s26 + $0x48] sm:$0xf0]  ;;  %v14843_v50 = vor.u32 %v16966_v23, %v14842_v3  ;;  %v15090_v44 = vld [vmem:[%s18646_s26 + $0x800] sm:$0xf] }
 0xb67   : > { %v17027_v42 = vld [vmem:[%s18646_s26 + $0x82c] sm:$0xf0]  ;;  %v14658_v3 = vld [vmem:[%s18646_s26 + $0x4a0] sm:$0xf] }
 0xb68   : > { %9015 = vmatpush.bf16.msra.mxu3 %v14503_v13  ;;  %9029 = vmatpush.bf16.msrb.mxu0 %v14887_v39  ;;  %v14268_v13 = vld [vmem:[%s18646_s26 + $0x1c8] sm:$0xf0]  ;;  %v16912_v39 = vld [vmem:[%s18646_s26 + $0x49c] sm:$0xf]  ;;  %v17015_v23 = vld [vmem:[%s18646_s26 + $0x7cc] sm:$0xf0] }
 0xb69   : > { %9043 = vmatpush.bf16.msrb.mxu1 %v14123_v40  ;;  %9057 = vmatpush.bf16.msra.mxu2 %v14507_v60  ;;  %v15035_v40 = vor.u32 %v17014_v11, %v15034_v46  ;;  %v14271_v60 = vor.u32 %v16816_v41, %v14268_v13  ;;  %v14655_v62 = vor.u32 %v16912_v39, %v14652_v6  ;;  %v16864_v46 = vld [vmem:[%s18646_s26 + $0x31c] sm:$0xf]  ;;  %v14460_v11 = vld [vmem:[%s18646_s26 + $0x348] sm:$0xf0]  ;;  %v14418_v41 = vld [vmem:[%s18646_s26 + $0x2c0] sm:$0xf] }
 0xb6a   : > { %v16859_v13 = vld [vmem:[%s18646_s26 + $0x2ec] sm:$0xf0]  ;;  %v14802_v39 = vld [vmem:[%s18646_s26 + $0x5c0] sm:$0xf] }
 0xb6b   : > { %v16955_v6 = vld [vmem:[%s18646_s26 + $0x5ec] sm:$0xf0]  ;;  %v14419_v30 = vor.u32 %v16859_v13, %v14418_v41  ;;  %v14610_v13 = vld [vmem:[%s18646_s26 + $0x440] sm:$0xf] }
 0xb6c   : > { %9016 = vmatpush.bf16.msra.mxu3 %v14455_v54  ;;  %9030 = vmatpush.bf16.msrb.mxu0 %v14839_v20  ;;  %v14988_v54 = vld [vmem:[%s18646_s26 + $0x768] sm:$0xf0]  ;;  %v14987_v20 = vor.u32 %v17002_v28, %v14986_v33  ;;  %v16853_v33 = vld [vmem:[%s18646_s26 + $0x2c4] sm:$0xf]  ;;  %v14420_v28 = vld [vmem:[%s18646_s26 + $0x2f0] sm:$0xf0]  ;;  %v14803_v16 = vor.u32 %v16955_v6, %v14802_v39 }
 0xb6d   : > { %9044 = vmatpush.bf16.msrb.mxu1 %v14075_v10  ;;  %9058 = vmatpush.bf16.msra.mxu2 %v14459_v48  ;;  %v14607_v10 = vor.u32 %v16900_v35, %v14604_v26  ;;  %v14991_v48 = vor.u32 %v16996_v9, %v14988_v54  ;;  %v14370_v35 = vld [vmem:[%s18646_s26 + $0x260] sm:$0xf]  ;;  %v16847_v26 = vld [vmem:[%s18646_s26 + $0x28c] sm:$0xf0]  ;;  %v14423_v54 = vor.u32 %v16853_v33, %v14420_v28 }
 0xb6e   : > { %v16907_v39 = vld [vmem:[%s18646_s26 + $0x46c] sm:$0xf0]  ;;  %v14994_v6 = vld [vmem:[%s18646_s26 + $0x740] sm:$0xf] }
 0xb6f   : > { %9017 = vmatmul.bf16.vlgmr.msra.gmra.mxu3 %v20663_v61  ;;  %9031 = vmatmul.bf16.vlgmr.msrb.gmra.mxu0 %v20665_v37  ;;  %v14611_v33 = vor.u32 %v16907_v39, %v14610_v13  ;;  %v14178_v28 = vld [vmem:[%s18646_s26 + $0xe0] sm:$0xf] }
 0xb70   : > { %9065 = vmatpush.bf16.msrb.mxu3 %v15179_v55  ;;  %9079 = vmatpush.bf16.msra.mxu0 %v14415_v12  ;;  %v16792_v55 = vld [vmem:[%s18646_s26 + $0xdc] sm:$0xf]  ;;  %v14172_v12 = vld [vmem:[%s18646_s26 + $0x108] sm:$0xf0] }
 0xb71   : > { %9093 = vmatpush.bf16.msra.mxu1 %v14799_v17  ;;  %9107 = vmatpush.bf16.msrb.mxu2 %v15183_v53  ;;  %v16984_v17 = vld [vmem:[%s18646_s26 + $0x6dc] sm:$0xf]  ;;  %v14940_v53 = vld [vmem:[%s18646_s26 + $0x708] sm:$0xf0]  ;;  %v14175_v15 = vor.u32 %v16792_v55, %v14172_v12  ;;  %v14371_v55 = vor.u32 %v16847_v26, %v14370_v35  ;;  %v14562_v35 = vld [vmem:[%s18646_s26 + $0x3e0] sm:$0xf] }
 0xb72   : > { %9045 = vmatmul.bf16.vlgmr.msrb.gmra.mxu1 %v20661_v58  ;;  %9059 = vmatmul.bf16.vlgmr.msra.gmra.mxu2 %v20663_v61  ;;  %v14943_v31 = vor.u32 %v16984_v17, %v14940_v53  ;;  %v15139_v17 = vor.u32 %v17039_v47, %v15138_v38  ;;  %v16895_v26 = vld [vmem:[%s18646_s26 + $0x40c] sm:$0xf0]  ;;  %v16793_v38 = vld [vmem:[%s18646_s26 + $0xe4] sm:$0xf]  ;;  %v14180_v47 = vld [vmem:[%s18646_s26 + $0x110] sm:$0xf0] }
 0xb74   : > { %9066 = vmatpush.bf16.msrb.mxu3 %v15131_v5  ;;  %9080 = vmatpush.bf16.msra.mxu0 %v14367_v63  ;;  %v16780_v5 = vld [vmem:[%s18646_s26 + $0x7c] sm:$0xf]  ;;  %v14124_v63 = vld [vmem:[%s18646_s26 + $0xa8] sm:$0xf0] }
 0xb75   : > { %9094 = vmatpush.bf16.msra.mxu1 %v14751_v8  ;;  %9108 = vmatpush.bf16.msrb.mxu2 %v15135_v4  ;;  %v16972_v8 = vld [vmem:[%s18646_s26 + $0x67c] sm:$0xf]  ;;  %v14892_v4 = vld [vmem:[%s18646_s26 + $0x6a8] sm:$0xf0]  ;;  %v14127_v49 = vor.u32 %v16780_v5, %v14124_v63  ;;  %v14323_v5 = vor.u32 %v16835_v57, %v14322_v36  ;;  %v14183_v57 = vor.u32 %v16793_v38, %v14180_v47  ;;  %v15140_v38 = vld [vmem:[%s18646_s26 + $0x890] sm:$0xf0] }
 0xb76   : > { %v14378_v47 = vld [vmem:[%s18646_s26 + $0x268] sm:$0xf] }
 0xb78   : > { %9067 = vmatpush.bf16.msrb.mxu3 %v15083_v34  ;;  %9081 = vmatpush.bf16.msra.mxu0 %v14319_v18  ;;  %v14511_v34 = vor.u32 %v16876_v0, %v14508_v14  ;;  %v14895_v18 = vor.u32 %v16972_v8, %v14892_v4  ;;  %v14274_v0 = vld [vmem:[%s18646_s26 + $0x1a0] sm:$0xf]  ;;  %v16823_v14 = vld [vmem:[%s18646_s26 + $0x1cc] sm:$0xf0]  ;;  %v15091_v8 = vor.u32 %v17027_v42, %v15090_v44  ;;  %v16781_v42 = vld [vmem:[%s18646_s26 + $0x84] sm:$0xf] }
 0xb79   : > { %9095 = vmatpush.bf16.msra.mxu1 %v14703_v56  ;;  %9109 = vmatpush.bf16.msrb.mxu2 %v15087_v45  ;;  %v16960_v56 = vld [vmem:[%s18646_s26 + $0x61c] sm:$0xf]  ;;  %v14844_v45 = vld [vmem:[%s18646_s26 + $0x648] sm:$0xf0]  ;;  %v16979_v44 = vld [vmem:[%s18646_s26 + $0x6ac] sm:$0xf0] }
 0xb7c   : > { %9068 = vmatpush.bf16.msrb.mxu3 %v15035_v40  ;;  %9082 = vmatpush.bf16.msra.mxu0 %v14271_v60  ;;  %v14079_v40 = vor.u32 %v16768_v59, %v14076_v52  ;;  %v17051_v60 = vld [vmem:[%s18646_s26 + $0x8ec] sm:$0xf0]  ;;  %v16817_v59 = vld [vmem:[%s18646_s26 + $0x1a4] sm:$0xf]  ;;  %v14276_v52 = vld [vmem:[%s18646_s26 + $0x1d0] sm:$0xf0] }
 0xb7d   : > { %9096 = vmatpush.bf16.msra.mxu1 %v14655_v62  ;;  %9110 = vmatpush.bf16.msrb.mxu2 %v15039_v25  ;;  %v14463_v62 = vor.u32 %v16864_v46, %v14460_v11  ;;  %v14847_v25 = vor.u32 %v16960_v56, %v14844_v45  ;;  %v15187_v9 = vor.u32 %v17051_v60, %v15186_v32  ;;  %v14226_v11 = vld [vmem:[%s18646_s26 + $0x140] sm:$0xf]  ;;  %v16811_v56 = vld [vmem:[%s18646_s26 + $0x16c] sm:$0xf0] }
 0xb7e   : > { %v14279_v41 = vor.u32 %v16817_v59, %v14276_v52  ;;  %v17003_v32 = vld [vmem:[%s18646_s26 + $0x76c] sm:$0xf0]  ;;  %v14227_v60 = vor.u32 %v16811_v56, %v14226_v11  ;;  %v14084_v59 = vld [vmem:[%s18646_s26 + $0x50] sm:$0xf0]  ;;  %v16949_v52 = vld [vmem:[%s18646_s26 + $0x5c4] sm:$0xf] }
 0xb7f   : > { %v17045_v11 = vld [vmem:[%s18646_s26 + $0x8c4] sm:$0xf]  ;;  %v15188_v56 = vld [vmem:[%s18646_s26 + $0x8f0] sm:$0xf0] }
 0xb80   : > { %9069 = vmatpush.bf16.msrb.mxu3 %v14987_v20  ;;  %9083 = vmatpush.bf16.msra.mxu0 %v14223_v24  ;;  %v14754_v20 = vld [vmem:[%s18646_s26 + $0x560] sm:$0xf]  ;;  %v16943_v24 = vld [vmem:[%s18646_s26 + $0x58c] sm:$0xf0] }
 0xb81   : > { %9097 = vmatpush.bf16.msra.mxu1 %v14607_v10  ;;  %9111 = vmatpush.bf16.msrb.mxu2 %v14991_v48  ;;  %v16841_v10 = vld [vmem:[%s18646_s26 + $0x264] sm:$0xf]  ;;  %v14372_v48 = vld [vmem:[%s18646_s26 + $0x290] sm:$0xf0]  ;;  %v14755_v12 = vor.u32 %v16943_v24, %v14754_v20  ;;  %v16991_v24 = vld [vmem:[%s18646_s26 + $0x70c] sm:$0xf0] }
 0xb82   : > { %v14375_v53 = vor.u32 %v16841_v10, %v14372_v48  ;;  %v14563_v48 = vor.u32 %v16895_v26, %v14562_v35  ;;  %v14756_v35 = vld [vmem:[%s18646_s26 + $0x590] sm:$0xf0] }
 0xb84   : > { %9070 = vmatpush.bf16.msrb.mxu3 %v14939_v29  ;;  %9084 = vmatpush.bf16.msra.mxu0 %v14175_v15  ;;  %v14706_v29 = vld [vmem:[%s18646_s26 + $0x500] sm:$0xf]  ;;  %v16931_v15 = vld [vmem:[%s18646_s26 + $0x52c] sm:$0xf0] }
 0xb85   : > { %9098 = vmatpush.bf16.msra.mxu1 %v14559_v19  ;;  %9112 = vmatpush.bf16.msrb.mxu2 %v14943_v31  ;;  %v16829_v19 = vld [vmem:[%s18646_s26 + $0x204] sm:$0xf]  ;;  %v14324_v31 = vld [vmem:[%s18646_s26 + $0x230] sm:$0xf0]  ;;  %v14707_v63 = vor.u32 %v16931_v15, %v14706_v29  ;;  %v14898_v29 = vld [vmem:[%s18646_s26 + $0x680] sm:$0xf] }
 0xb86   : > { %v14327_v4 = vor.u32 %v16829_v19, %v14324_v31  ;;  %v14132_v19 = vld [vmem:[%s18646_s26 + $0xb0] sm:$0xf0]  ;;  %v14082_v31 = vld [vmem:[%s18646_s26 + $0x20] sm:$0xf] }
 0xb88   : > { %9071 = vmatpush.bf16.msrb.mxu3 %v14891_v27  ;;  %9085 = vmatpush.bf16.msra.mxu0 %v14127_v49  ;;  %v16919_v27 = vld [vmem:[%s18646_s26 + $0x4cc] sm:$0xf0]  ;;  %v15042_v49 = vld [vmem:[%s18646_s26 + $0x7a0] sm:$0xf] }
 0xb89   : > { %9099 = vmatpush.bf16.msra.mxu1 %v14511_v34  ;;  %9113 = vmatpush.bf16.msrb.mxu2 %v14895_v18  ;;  %v14275_v18 = vor.u32 %v16823_v14, %v14274_v0  ;;  %v14659_v46 = vor.u32 %v16919_v27, %v14658_v3  ;;  %v15043_v45 = vor.u32 %v17015_v23, %v15042_v49  ;;  %v16775_v0 = vld [vmem:[%s18646_s26 + $0x4c] sm:$0xf0]  ;;  %v14466_v14 = vld [vmem:[%s18646_s26 + $0x320] sm:$0xf]  ;;  %v16769_v23 = vld [vmem:[%s18646_s26 + $0x24] sm:$0xf] }
 0xb8a   : > { %v14135_v3 = vor.u32 %v16781_v42, %v14132_v19  ;;  %v14850_v27 = vld [vmem:[%s18646_s26 + $0x620] sm:$0xf]  ;;  %v16967_v49 = vld [vmem:[%s18646_s26 + $0x64c] sm:$0xf0]  ;;  %v14083_v39 = vor.u32 %v16775_v0, %v14082_v31  ;;  %v17021_v19 = vld [vmem:[%s18646_s26 + $0x804] sm:$0xf] }
 0xb8b   : > { %v20971_v34 = vpop.f32.mrf.mxu0  ;;  %v15092_v31 = vld [vmem:[%s18646_s26 + $0x830] sm:$0xf0]  ;;  %v14714_v0 = vld [vmem:[%s18646_s26 + $0x508] sm:$0xf] }
 0xb8c   : > { %9072 = vmatpush.bf16.msrb.mxu3 %v14843_v50  ;;  %9086 = vmatpush.bf16.msra.mxu0 %v14079_v40  ;;  %v16805_v50 = vld [vmem:[%s18646_s26 + $0x144] sm:$0xf]  ;;  %v14228_v40 = vld [vmem:[%s18646_s26 + $0x170] sm:$0xf0] }
 0xb8d   : > { %9100 = vmatpush.bf16.msra.mxu1 %v14463_v62  ;;  %9114 = vmatpush.bf16.msrb.mxu2 %v14847_v25  ;;  %v16799_v62 = vld [vmem:[%s18646_s26 + $0x10c] sm:$0xf0]  ;;  %v20983_v25 = vpop.f32.mrf.mxu1 }
 0xb8e   : > { %v14179_v10 = vor.u32 %v16799_v62, %v14178_v28  ;;  %v21028_v28 = vld [vmem:[%s18653_s0] sm:$0xff] }
 0xb8f   : > { %9073 = vmatmul.bf16.vlgmr.msrb.gmra.mxu3 %v20665_v37  ;;  %9087 = vmatmul.bf16.vlgmr.msra.gmra.mxu0 %v20661_v58 }
 0xb90   : > { %9121 = vmatpush.bf16.msra.mxu3 %v14419_v30  ;;  %9135 = vmatpush.bf16.msrb.mxu0 %v14803_v16  ;;  %v14995_v30 = vor.u32 %v17003_v32, %v14994_v6  ;;  %v14231_v16 = vor.u32 %v16805_v50, %v14228_v40  ;;  %v16860_v32 = vld [vmem:[%s18646_s26 + $0x2f4] sm:$0xf0]  ;;  %v14810_v50 = vld [vmem:[%s18646_s26 + $0x5c8] sm:$0xf] }
 0xb91   : > { %9149 = vmatpush.bf16.msrb.mxu1 %v15187_v9  ;;  %9163 = vmatpush.bf16.msra.mxu2 %v14423_v54  ;;  %v14946_v9 = vld [vmem:[%s18646_s26 + $0x6e0] sm:$0xf]  ;;  %v20988_v54 = vpop.f32.mrf.mxu3  ;;  %v16956_v40 = vld [vmem:[%s18646_s26 + $0x5f4] sm:$0xf0] }
 0xb92   : > { %9101 = vmatmul.bf16.vlgmr.msra.gmra.mxu1 %v20663_v61  ;;  %9115 = vmatmul.bf16.vlgmr.msrb.gmra.mxu2 %v20665_v37  ;;  %v20990_v20 = vpop.f32.mrf.mxu2  ;;  %v14947_v36 = vor.u32 %v16991_v24, %v14946_v9  ;;  %v14811_v9 = vor.u32 %v16956_v40, %v14810_v50  ;;  %v17033_v24 = vld [vmem:[%s18646_s26 + $0x864] sm:$0xf]  ;;  %v7322_v40 = vperm.slane %v21028_v28, 1 }
 0xb93   : > { %v21000_v15 = vpop.f32.mrf.mxu0 }
 0xb94   : > { %9122 = vmatpush.bf16.msra.mxu3 %v14371_v55  ;;  %9136 = vmatpush.bf16.msrb.mxu0 %v14755_v12  ;;  %v14130_v55 = vld [vmem:[%s18646_s26 + $0x80] sm:$0xf]  ;;  %v16787_v12 = vld [vmem:[%s18646_s26 + $0xac] sm:$0xf0] }
 0xb95   : > { %9150 = vmatpush.bf16.msrb.mxu1 %v15139_v17  ;;  %9164 = vmatpush.bf16.msra.mxu2 %v14375_v53  ;;  %v14514_v17 = vld [vmem:[%s18646_s26 + $0x380] sm:$0xf]  ;;  %v16883_v53 = vld [vmem:[%s18646_s26 + $0x3ac] sm:$0xf0] }
 0xb98   : > { %9123 = vmatpush.bf16.msra.mxu3 %v14323_v5  ;;  %9137 = vmatpush.bf16.msrb.mxu0 %v14707_v63  ;;  %v14131_v5 = vor.u32 %v16787_v12, %v14130_v55  ;;  %v14515_v63 = vor.u32 %v16883_v53, %v14514_v17  ;;  %v14762_v55 = vld [vmem:[%s18646_s26 + $0x568] sm:$0xf]  ;;  %v16944_v12 = vld [vmem:[%s18646_s26 + $0x594] sm:$0xf0]  ;;  %v15143_v17 = vor.u32 %v17033_v24, %v15140_v38  ;;  %v16925_v53 = vld [vmem:[%s18646_s26 + $0x504] sm:$0xf] }
 0xb99   : > { %9151 = vmatpush.bf16.msrb.mxu1 %v15091_v8  ;;  %9165 = vmatpush.bf16.msra.mxu2 %v14327_v4  ;;  %v16871_v8 = vld [vmem:[%s18646_s26 + $0x34c] sm:$0xf0]  ;;  %v14899_v4 = vor.u32 %v16979_v44, %v14898_v29  ;;  %v14708_v29 = vld [vmem:[%s18646_s26 + $0x530] sm:$0xf0]  ;;  %v14763_v42 = vor.u32 %v16944_v12, %v14762_v55  ;;  %v14234_v38 = vld [vmem:[%s18646_s26 + $0x148] sm:$0xf]  ;;  %v8837_v12 = vadd.f32 %v20990_v20, %v7322_v40 }
 0xb9a   : > { %v21022_v13 = vpop.f32.mrf.mxu2  ;;  %v14467_v6 = vor.u32 %v16871_v8, %v14466_v14  ;;  %v16932_v14 = vld [vmem:[%s18646_s26 + $0x534] sm:$0xf0]  ;;  %v14996_v24 = vld [vmem:[%s18646_s26 + $0x770] sm:$0xf0] }
 0xb9b   : > { %v14948_v20 = vld [vmem:[%s18646_s26 + $0x710] sm:$0xf0] }
 0xb9c   : > { %9124 = vmatpush.bf16.msra.mxu3 %v14275_v18  ;;  %9138 = vmatpush.bf16.msrb.mxu0 %v14659_v46  ;;  %v14804_v18 = vld [vmem:[%s18646_s26 + $0x5f0] sm:$0xf0]  ;;  %v21015_v46 = vpop.f32.mrf.mxu1 }
 0xb9d   : > { %9152 = vmatpush.bf16.msrb.mxu1 %v15043_v45  ;;  %9166 = vmatpush.bf16.msra.mxu2 %v14279_v41  ;;  %v14426_v45 = vld [vmem:[%s18646_s26 + $0x2c8] sm:$0xf]  ;;  %v21020_v41 = vpop.f32.mrf.mxu3  ;;  %v14807_v62 = vor.u32 %v16949_v52, %v14804_v18  ;;  %v14715_v18 = vor.u32 %v16932_v14, %v14714_v0  ;;  %v16800_v0 = vld [vmem:[%s18646_s26 + $0x114] sm:$0xf0] }
 0xb9e   : > { %v14427_v26 = vor.u32 %v16860_v32, %v14426_v45  ;;  %v14282_v45 = vld [vmem:[%s18646_s26 + $0x1a8] sm:$0xf]  ;;  %v16920_v32 = vld [vmem:[%s18646_s26 + $0x4d4] sm:$0xf0] }
 0xb9f   : > { %v14570_v14 = vld [vmem:[%s18646_s26 + $0x3e8] sm:$0xf] }
 0xba0   : > { %9125 = vmatpush.bf16.msra.mxu3 %v14227_v60  ;;  %9139 = vmatpush.bf16.msrb.mxu0 %v14611_v33  ;;  %v14851_v60 = vor.u32 %v16967_v49, %v14850_v27  ;;  %v14087_v33 = vor.u32 %v16769_v23, %v14084_v59  ;;  %v14711_v49 = vor.u32 %v16925_v53, %v14708_v29  ;;  %v14660_v59 = vld [vmem:[%s18646_s26 + $0x4d0] sm:$0xf0]  ;;  %v16889_v53 = vld [vmem:[%s18646_s26 + $0x3e4] sm:$0xf] }
 0xba1   : > { %9153 = vmatpush.bf16.msrb.mxu1 %v14995_v30  ;;  %9167 = vmatpush.bf16.msra.mxu2 %v14231_v16  ;;  %v15191_v30 = vor.u32 %v17045_v11, %v15188_v56  ;;  %v16937_v16 = vld [vmem:[%s18646_s26 + $0x564] sm:$0xf]  ;;  %v15095_v23 = vor.u32 %v17021_v19, %v15092_v31  ;;  %v15044_v56 = vld [vmem:[%s18646_s26 + $0x7d0] sm:$0xf0] }
 0xba2   : > { %v21056_v27 = vpop.f32.mrf.mxu2  ;;  %v17009_v11 = vld [vmem:[%s18646_s26 + $0x7a4] sm:$0xf]  ;;  %v14564_v29 = vld [vmem:[%s18646_s26 + $0x410] sm:$0xf0] }
 0xba3   : > { %v16985_v19 = vld [vmem:[%s18646_s26 + $0x6e4] sm:$0xf] }
 0xba4   : > { %9126 = vmatpush.bf16.msra.mxu3 %v14179_v10  ;;  %9140 = vmatpush.bf16.msrb.mxu0 %v14563_v48  ;;  %v21035_v10 = vpop.f32.mrf.mxu0  ;;  %v16848_v48 = vld [vmem:[%s18646_s26 + $0x294] sm:$0xf0] }
 0xba5   : > { %9154 = vmatpush.bf16.msrb.mxu1 %v14947_v36  ;;  %9168 = vmatpush.bf16.msra.mxu2 %v14183_v57  ;;  %v7321_v36 = vperm.slane %v21028_v28, 0  ;;  %v14759_v57 = vor.u32 %v16937_v16, %v14756_v35  ;;  %v14379_v44 = vor.u32 %v16848_v48, %v14378_v47  ;;  %v16901_v16 = vld [vmem:[%s18646_s26 + $0x444] sm:$0xf]  ;;  %v14612_v35 = vld [vmem:[%s18646_s26 + $0x470] sm:$0xf0] }
 0xba6   : > { %v14618_v47 = vld [vmem:[%s18646_s26 + $0x448] sm:$0xf]  ;;  %v16908_v48 = vld [vmem:[%s18646_s26 + $0x474] sm:$0xf0] }
 0xba7   : > { %v8795_v8 = vadd.f32 %v20988_v54, %v7321_v36  ;;  %v16913_v54 = vld [vmem:[%s18646_s26 + $0x4a4] sm:$0xf] }
 0xba8   : > { %9127 = vmatpush.bf16.msra.mxu3 %v14131_v5  ;;  %9141 = vmatpush.bf16.msrb.mxu0 %v14515_v63  ;;  %v14330_v5 = vld [vmem:[%s18646_s26 + $0x208] sm:$0xf]  ;;  %v16836_v63 = vld [vmem:[%s18646_s26 + $0x234] sm:$0xf0] }
 0xba9   : > { %9155 = vmatpush.bf16.msrb.mxu1 %v14899_v4  ;;  %9169 = vmatpush.bf16.msra.mxu2 %v14135_v3  ;;  %v21052_v4 = vpop.f32.mrf.mxu1  ;;  %v8850_v3 = vpop.f32.mrf.mxu3  ;;  %v14331_v52 = vor.u32 %v16836_v63, %v14330_v5  ;;  %v8809_v50 = vadd.f32 %v20971_v34, %v8795_v8  ;;  %v16896_v8 = vld [vmem:[%s18646_s26 + $0x414] sm:$0xf0] }
 0xbaa   : > { %v8851_v31 = vadd.f32 %v8850_v3, %v8837_v12  ;;  %v21091_v63 = vpop.f32.mrf.mxu2  ;;  %v14567_v3 = vor.u32 %v16889_v53, %v14564_v29  ;;  %v14090_v12 = vld [vmem:[%s18646_s26 + $0x28] sm:$0xf]  ;;  %v16872_v53 = vld [vmem:[%s18646_s26 + $0x354] sm:$0xf0] }
 0xbab   : > { %v21080_v55 = vadd.f32 %v20983_v25, %v8809_v50  ;;  %v16788_v50 = vld [vmem:[%s18646_s26 + $0xb4] sm:$0xf0]  ;;  %v15194_v29 = vld [vmem:[%s18646_s26 + $0x8c8] sm:$0xf] }
 0xbac   : > { %9128 = vmatpush.bf16.msra.mxu3 %v14083_v39  ;;  %9142 = vmatpush.bf16.msrb.mxu0 %v14467_v6  ;;  %v16824_v39 = vld [vmem:[%s18646_s26 + $0x1d4] sm:$0xf0]  ;;  %v14666_v6 = vld [vmem:[%s18646_s26 + $0x4a8] sm:$0xf] }
 0xbad   : > { %9156 = vmatpush.bf16.msrb.mxu1 %v14851_v60  ;;  %9170 = vmatpush.bf16.msra.mxu2 %v14087_v33  ;;  %v8797_v60 = vadd.f32 %v21020_v41, %v7321_v36  ;;  %v21069_v33 = vpop.f32.mrf.mxu0  ;;  %v14283_v34 = vor.u32 %v16824_v39, %v14282_v45  ;;  %v16812_v41 = vld [vmem:[%s18646_s26 + $0x174] sm:$0xf0]  ;;  %v14571_v45 = vor.u32 %v16896_v8, %v14570_v14  ;;  %v16973_v39 = vld [vmem:[%s18646_s26 + $0x684] sm:$0xf]  ;;  %v14812_v8 = vld [vmem:[%s18646_s26 + $0x5f8] sm:$0xf0] }
 0xbae   : > { %v14235_v25 = vor.u32 %v16812_v41, %v14234_v38  ;;  %v14852_v38 = vld [vmem:[%s18646_s26 + $0x650] sm:$0xf0] }
 0xbaf   : > { %9129 = vmatmul.bf16.vlgmr.msra.gmra.mxu3 %v20661_v58  ;;  %9143 = vmatmul.bf16.vlgmr.msrb.gmra.mxu0 %v20663_v61  ;;  %v8811_v36 = vadd.f32 %v21000_v15, %v8797_v60  ;;  %v14186_v15 = vld [vmem:[%s18646_s26 + $0xe8] sm:$0xf]  ;;  %v16884_v60 = vld [vmem:[%s18646_s26 + $0x3b4] sm:$0xf0] }
 0xbb0   : > { %9177 = vmatpush.bf16.msrb.mxu3 %v14807_v62  ;;  %9191 = vmatpush.bf16.msra.mxu0 %v15191_v30  ;;  %v14663_v62 = vor.u32 %v16913_v54, %v14660_v59  ;;  %v15047_v30 = vor.u32 %v17009_v11, %v15044_v56  ;;  %v14951_v59 = vor.u32 %v16985_v19, %v14948_v20  ;;  %v16854_v19 = vld [vmem:[%s18646_s26 + $0x2cc] sm:$0xf] }
 0xbb1   : > { %9205 = vmatpush.bf16.msra.mxu1 %v14427_v26  ;;  %9219 = vmatpush.bf16.msrb.mxu2 %v14811_v9  ;;  %v14667_v26 = vor.u32 %v16920_v32, %v14666_v6  ;;  %v16997_v9 = vld [vmem:[%s18646_s26 + $0x744] sm:$0xf]  ;;  %v8852_v5 = vpop.f32.mrf.mxu3  ;;  %v21100_v54 = vadd.f32 %v21015_v46, %v8811_v36  ;;  %v14187_v56 = vor.u32 %v16800_v0, %v14186_v15  ;;  %v14138_v46 = vld [vmem:[%s18646_s26 + $0x88] sm:$0xf]  ;;  %v16776_v36 = vld [vmem:[%s18646_s26 + $0x54] sm:$0xf0] }
 0xbb2   : > { %9157 = vmatmul.bf16.vlgmr.msrb.gmra.mxu1 %v20665_v37  ;;  %9171 = vmatmul.bf16.vlgmr.msra.gmra.mxu2 %v20661_v58  ;;  %v21108_v6 = vadd.f32 %v21035_v10, %v8851_v31  ;;  %v16950_v20 = vld [vmem:[%s18646_s26 + $0x5cc] sm:$0xf] }
 0xbb4   : > { %9178 = vmatpush.bf16.msrb.mxu3 %v14759_v57  ;;  %9192 = vmatpush.bf16.msra.mxu0 %v15143_v17  ;;  %v14615_v57 = vor.u32 %v16901_v16, %v14612_v35  ;;  %v14999_v17 = vor.u32 %v16997_v9, %v14996_v24  ;;  %v7324_v16 = vperm.slane %v21028_v28, 3  ;;  %v16865_v35 = vld [vmem:[%s18646_s26 + $0x324] sm:$0xf]  ;;  %v14468_v9 = vld [vmem:[%s18646_s26 + $0x350] sm:$0xf0] }
 0xbb5   : > { %9206 = vmatpush.bf16.msra.mxu1 %v14379_v44  ;;  %9220 = vmatpush.bf16.msrb.mxu2 %v14763_v42  ;;  %v21086_v44 = vpop.f32.mrf.mxu1  ;;  %v14619_v42 = vor.u32 %v16908_v48, %v14618_v47  ;;  %v8920_v32 = vpop.f32.mrf.mxu0  ;;  %v16961_v24 = vld [vmem:[%s18646_s26 + $0x624] sm:$0xf]  ;;  %v14139_v47 = vor.u32 %v16788_v50, %v14138_v46  ;;  %v14471_v0 = vor.u32 %v16865_v35, %v14468_v9  ;;  %v16938_v35 = vld [vmem:[%s18646_s26 + $0x56c] sm:$0xf] }
 0xbb6   : > { %v14855_v14 = vor.u32 %v16961_v24, %v14852_v38  ;;  %v14815_v50 = vor.u32 %v16950_v20, %v14812_v8  ;;  %v17034_v9 = vld [vmem:[%s18646_s26 + $0x86c] sm:$0xf]  ;;  %v15148_v24 = vld [vmem:[%s18646_s26 + $0x898] sm:$0xf0] }
 0xbb7   : > { %v16926_v20 = vld [vmem:[%s18646_s26 + $0x50c] sm:$0xf] }
 0xbb8   : > { %9179 = vmatpush.bf16.msrb.mxu3 %v14711_v49  ;;  %9193 = vmatpush.bf16.msra.mxu0 %v15095_v23  ;;  %v9289_v49 = vmul.f32 %v21080_v55, %v21080_v55  ;;  %v8839_v23 = vadd.f32 %v21022_v13, %v7322_v40  ;;  %v14900_v13 = vld [vmem:[%s18646_s26 + $0x6b0] sm:$0xf0]  ;;  %v14522_v40 = vld [vmem:[%s18646_s26 + $0x388] sm:$0xf] }
 0xbb9   : > { %9207 = vmatpush.bf16.msra.mxu1 %v14331_v52  ;;  %9221 = vmatpush.bf16.msrb.mxu2 %v14715_v18  ;;  %v16877_v52 = vld [vmem:[%s18646_s26 + $0x384] sm:$0xf]  ;;  %v14516_v18 = vld [vmem:[%s18646_s26 + $0x3b0] sm:$0xf0]  ;;  %v14523_v48 = vor.u32 %v16884_v60, %v14522_v40  ;;  %v21137_v31 = vpop.f32.mrf.mxu3  ;;  %v16842_v60 = vld [vmem:[%s18646_s26 + $0x26c] sm:$0xf] }
 0xbba   : > { %v8853_v11 = vadd.f32 %v8852_v5, %v8839_v23  ;;  %v14519_v10 = vor.u32 %v16877_v52, %v14516_v18  ;;  %v21139_v5 = vpop.f32.mrf.mxu2  ;;  %v15196_v23 = vld [vmem:[%s18646_s26 + $0x8f8] sm:$0xf0]  ;;  %v14091_v52 = vor.u32 %v16776_v36, %v14090_v12 }
 0xbbc   : > { %9180 = vmatpush.bf16.msrb.mxu3 %v14663_v62  ;;  %9194 = vmatpush.bf16.msra.mxu0 %v15047_v30  ;;  %v9313_v62 = vmul.f32 %v9289_v49, %v21080_v55  ;;  %v7323_v30 = vperm.slane %v21028_v28, 2  ;;  %v21123_v41 = vadd.f32 %v21069_v33, %v8853_v11  ;;  %v14428_v33 = vld [vmem:[%s18646_s26 + $0x2f8] sm:$0xf0]  ;;  %v17046_v49 = vld [vmem:[%s18646_s26 + $0x8cc] sm:$0xf] }
 0xbbd   : > { %9208 = vmatpush.bf16.msra.mxu1 %v14283_v34  ;;  %9222 = vmatpush.bf16.msrb.mxu2 %v14667_v26  ;;  %v9301_v34 = vmul.f32 %v21100_v54, %v21100_v54  ;;  %v14903_v26 = vor.u32 %v16973_v39, %v14900_v13  ;;  %v15146_v39 = vld [vmem:[%s18646_s26 + $0x868] sm:$0xf]  ;;  %v17040_v13 = vld [vmem:[%s18646_s26 + $0x894] sm:$0xf0]  ;;  %v15199_v40 = vor.u32 %v17046_v49, %v15196_v23 }
 0xbbe   : > { %v8879_v46 = vadd.f32 %v21052_v4, %v7323_v30  ;;  %v8881_v12 = vadd.f32 %v21086_v44, %v7323_v30  ;;  %v15147_v36 = vor.u32 %v17040_v13, %v15146_v39  ;;  %v14716_v30 = vld [vmem:[%s18646_s26 + $0x538] sm:$0xf0]  ;;  %v16818_v13 = vld [vmem:[%s18646_s26 + $0x1ac] sm:$0xf] }
 0xbbf   : > { %v9325_v15 = vmul.f32 %v9301_v34, %v21100_v54  ;;  %v8921_v34 = vadd.f32 %v8920_v32, %v7324_v16 }
 0xbc0   : > { %9181 = vmatpush.bf16.msrb.mxu3 %v14615_v57  ;;  %9195 = vmatpush.bf16.msra.mxu0 %v14999_v17  ;;  %v14474_v57 = vld [vmem:[%s18646_s26 + $0x328] sm:$0xf]  ;;  %v9290_v17 = vmul.f32 %v21108_v6, %v21108_v6  ;;  %v8893_v4 = vadd.f32 %v21056_v27, %v8879_v46  ;;  %v8895_v8 = vadd.f32 %v21091_v63, %v8881_v12  ;;  %v16914_v46 = vld [vmem:[%s18646_s26 + $0x4ac] sm:$0xf] }
 0xbc1   : > { %9209 = vmatpush.bf16.msra.mxu1 %v14235_v25  ;;  %9223 = vmatpush.bf16.msrb.mxu2 %v14619_v42  ;;  %v17052_v25 = vld [vmem:[%s18646_s26 + $0x8f4] sm:$0xf0]  ;;  %v8934_v42 = vpop.f32.mrf.mxu1  ;;  %v14475_v18 = vor.u32 %v16872_v53, %v14474_v57  ;;  %v15098_v27 = vld [vmem:[%s18646_s26 + $0x808] sm:$0xf] }
 0xbc2   : > { %v9314_v11 = vmul.f32 %v9290_v17, %v21108_v6  ;;  %v17028_v17 = vld [vmem:[%s18646_s26 + $0x834] sm:$0xf0]  ;;  %v8935_v44 = vadd.f32 %v8934_v42, %v8921_v34  ;;  %v21181_v49 = vadd.f32 %v21137_v31, %v8893_v4  ;;  %v15002_v4 = vld [vmem:[%s18646_s26 + $0x748] sm:$0xf] }
 0xbc3   : > { %v15099_v63 = vor.u32 %v17028_v17, %v15098_v27  ;;  %v16902_v27 = vld [vmem:[%s18646_s26 + $0x44c] sm:$0xf]  ;;  %v14620_v17 = vld [vmem:[%s18646_s26 + $0x478] sm:$0xf0] }
 0xbc4   : > { %9182 = vmatpush.bf16.msrb.mxu3 %v14567_v3  ;;  %9196 = vmatpush.bf16.msra.mxu0 %v14951_v59  ;;  %v9337_v3 = vmul.f32 0.044715, %v9313_v62  ;;  %v9302_v59 = vmul.f32 %v21123_v41, %v21123_v41  ;;  %v14380_v62 = vld [vmem:[%s18646_s26 + $0x298] sm:$0xf0]  ;;  %v9338_v32 = vmul.f32 0.044715, %v9314_v11  ;;  %v9291_v34 = vmul.f32 %v21181_v49, %v21181_v49 }
 0xbc5   : > { %9210 = vmatpush.bf16.msra.mxu1 %v14187_v56  ;;  %9224 = vmatpush.bf16.msrb.mxu2 %v14571_v45  ;;  %v15195_v56 = vor.u32 %v17052_v25, %v15194_v29  ;;  %v14431_v45 = vor.u32 %v16854_v19, %v14428_v33  ;;  %v14383_v57 = vor.u32 %v16842_v60, %v14380_v62  ;;  %v16830_v19 = vld [vmem:[%s18646_s26 + $0x20c] sm:$0xf]  ;;  %v14332_v33 = vld [vmem:[%s18646_s26 + $0x238] sm:$0xf0]  ;;  %v17016_v11 = vld [vmem:[%s18646_s26 + $0x7d4] sm:$0xf0] }
 0xbc6   : > { %v9361_v38 = vadd.f32 %v9337_v3, %v21080_v55  ;;  %v15151_v25 = vor.u32 %v17034_v9, %v15148_v24  ;;  %v21188_v3 = vadd.f32 %v21139_v5, %v8935_v44  ;;  %v14335_v31 = vor.u32 %v16830_v19, %v14332_v33  ;;  %v14284_v5 = vld [vmem:[%s18646_s26 + $0x1d8] sm:$0xf0]  ;;  %v17010_v60 = vld [vmem:[%s18646_s26 + $0x7ac] sm:$0xf] }
 0xbc7   : > { %v15052_v62 = vld [vmem:[%s18646_s26 + $0x7d8] sm:$0xf0]  ;;  %v9315_v19 = vmul.f32 %v9291_v34, %v21181_v49 }
 0xbc8   : > { %9183 = vmatpush.bf16.msrb.mxu3 %v14519_v10  ;;  %9197 = vmatpush.bf16.msra.mxu0 %v14903_v26  ;;  %v8922_v10 = vpop.f32.mrf.mxu0  ;;  %v14764_v26 = vld [vmem:[%s18646_s26 + $0x598] sm:$0xf0]  ;;  %v21185_v42 = vmul.f32 0.7978846, %v9361_v38  ;;  %v9292_v24 = vmul.f32 %v21188_v3, %v21188_v3  ;;  %v15055_v12 = vor.u32 %v17010_v60, %v15052_v62  ;;  %v16980_v60 = vld [vmem:[%s18646_s26 + $0x6b4] sm:$0xf0] }
 0xbc9   : > { %9211 = vmatpush.bf16.msra.mxu1 %v14139_v47  ;;  %9225 = vmatpush.bf16.msrb.mxu2 %v14523_v48  ;;  %v9349_v47 = vmul.f32 0.044715, %v9325_v15  ;;  %v9326_v48 = vmul.f32 %v9302_v59, %v21123_v41  ;;  %v8923_v53 = vadd.f32 %v8922_v10, %v7324_v16  ;;  %v14767_v29 = vor.u32 %v16938_v35, %v14764_v26  ;;  %v17022_v15 = vld [vmem:[%s18646_s26 + $0x80c] sm:$0xf]  ;;  %v8936_v23 = vpop.f32.mrf.mxu1  ;;  %v8908_v59 = vpop.f32.mrf.mxu3 }
 0xbca   : > { %v21202_v10 = vadd.f32 %v8908_v59, %v8895_v8  ;;  %v14623_v8 = vor.u32 %v16902_v27, %v14620_v17  ;;  %v16794_v59 = vld [vmem:[%s18646_s26 + $0xec] sm:$0xf]  ;;  %17592 = vtanh.f32 %v21185_v42  ;;  %v16968_v17 = vld [vmem:[%s18646_s26 + $0x654] sm:$0xf0] }
 0xbcb   : > { %v9350_v16 = vmul.f32 0.044715, %v9326_v48  ;;  %v17004_v48 = vld [vmem:[%s18646_s26 + $0x774] sm:$0xf0]  ;;  %v16782_v42 = vld [vmem:[%s18646_s26 + $0x8c] sm:$0xf] }
 0xbcc   : > { %9184 = vmatpush.bf16.msrb.mxu3 %v14471_v0  ;;  %9198 = vmatpush.bf16.msra.mxu0 %v14855_v14  ;;  %v15100_v0 = vld [vmem:[%s18646_s26 + $0x838] sm:$0xf0]  ;;  %v9373_v14 = vadd.f32 %v9349_v47, %v21100_v54  ;;  %v14287_v47 = vor.u32 %v16818_v13, %v14284_v5  ;;  %v9303_v33 = vmul.f32 %v21202_v10, %v21202_v10  ;;  %v7325_v13 = vperm.slane %v21028_v28, 4 }
 0xbcd   : > { %9212 = vmatpush.bf16.msra.mxu1 %v14091_v52  ;;  %9226 = vmatpush.bf16.msrb.mxu2 %v14475_v18  ;;  %v8950_v52 = vpop.f32.mrf.mxu2  ;;  %v15050_v18 = vld [vmem:[%s18646_s26 + $0x7a8] sm:$0xf]  ;;  %v15103_v39 = vor.u32 %v17022_v15, %v15100_v0  ;;  %v9374_v35 = vadd.f32 %v9350_v16, %v21123_v41  ;;  %v15003_v15 = vor.u32 %v17004_v48, %v15002_v4  ;;  %v16992_v16 = vld [vmem:[%s18646_s26 + $0x714] sm:$0xf0]  ;;  %v16974_v4 = vld [vmem:[%s18646_s26 + $0x68c] sm:$0xf] }
 0xbce   : > { %v21206_v9 = vmul.f32 0.7978846, %v9373_v14  ;;  %v15051_v38 = vor.u32 %v17016_v11, %v15050_v18  ;;  %v14954_v14 = vld [vmem:[%s18646_s26 + $0x6e8] sm:$0xf]  ;;  %v16986_v18 = vld [vmem:[%s18646_s26 + $0x6ec] sm:$0xf] }
 0xbcf   : > { %9185 = vmatmul.bf16.vlgmr.msrb.gmra.mxu3 %v20663_v61  ;;  %9199 = vmatmul.bf16.vlgmr.msra.gmra.mxu0 %v20665_v37  ;;  %v21225_v44 = vmul.f32 0.7978846, %v9374_v35  ;;  %v14956_v11 = vld [vmem:[%s18646_s26 + $0x718] sm:$0xf0] }
 0xbd0   : > { %9233 = vmatpush.bf16.msra.mxu3 %v15195_v56  ;;  %9247 = vmatpush.bf16.msrb.mxu0 %v14431_v45  ;;  %v8937_v56 = vadd.f32 %v8936_v23, %v8923_v53  ;;  %v14719_v45 = vor.u32 %v16926_v20, %v14716_v30  ;;  %v16998_v53 = vld [vmem:[%s18646_s26 + $0x74c] sm:$0xf]  ;;  %v9316_v30 = vmul.f32 %v9292_v24, %v21188_v3  ;;  %v14140_v24 = vld [vmem:[%s18646_s26 + $0xb8] sm:$0xf0]  ;;  %17594 = vtanh.f32 %v21206_v9 }
 0xbd1   : > { %9261 = vmatpush.bf16.msrb.mxu1 %v14815_v50  ;;  %9275 = vmatpush.bf16.msra.mxu2 %v15199_v40  ;;  %v9362_v50 = vadd.f32 %v9338_v32, %v21108_v6  ;;  %v14668_v40 = vld [vmem:[%s18646_s26 + $0x4d8] sm:$0xf0]  ;;  %v14959_v34 = vor.u32 %v16986_v18, %v14956_v11  ;;  %v14143_v27 = vor.u32 %v16782_v42, %v14140_v24  ;;  %v15274_v24 = vld [vmem:[%s18656_s14 + $0x90] sm:$0xf] }
 0xbd2   : > { %9213 = vmatmul.bf16.vlgmr.msra.gmra.mxu1 %v20661_v58  ;;  %9227 = vmatmul.bf16.vlgmr.msrb.gmra.mxu2 %v20663_v61  ;;  %v21204_v26 = vadd.f32 %v8950_v52, %v8937_v56  ;;  %v14671_v32 = vor.u32 %v16914_v46, %v14668_v40  ;;  %v14188_v52 = vld [vmem:[%s18646_s26 + $0x118] sm:$0xf0]  ;;  %v9339_v56 = vmul.f32 0.044715, %v9315_v19  ;;  %v9340_v5 = vmul.f32 0.044715, %v9316_v30  ;;  %v8962_v62 = vpop.f32.mrf.mxu3 }
 0xbd3   : > { %v14955_v46 = vor.u32 %v16992_v16, %v14954_v14  ;;  %v14906_v40 = vld [vmem:[%s18646_s26 + $0x688] sm:$0xf]  ;;  %v14908_v48 = vld [vmem:[%s18646_s26 + $0x6b8] sm:$0xf0]  ;;  %v15286_v16 = vld [vmem:[%s18656_s14 + $0xa8] sm:$0xf] }
 0xbd4   : > { %9234 = vmatpush.bf16.msra.mxu3 %v15147_v36  ;;  %9248 = vmatpush.bf16.msrb.mxu0 %v14383_v57  ;;  %v16806_v36 = vld [vmem:[%s18646_s26 + $0x14c] sm:$0xf]  ;;  %v14236_v57 = vld [vmem:[%s18646_s26 + $0x178] sm:$0xf0]  ;;  %v9304_v20 = vmul.f32 %v21204_v26, %v21204_v26  ;;  %v9364_v18 = vadd.f32 %v9340_v5, %v21188_v3 }
 0xbd5   : > { %9262 = vmatpush.bf16.msrb.mxu1 %v14767_v29  ;;  %9276 = vmatpush.bf16.msra.mxu2 %v15151_v25  ;;  %v15004_v29 = vld [vmem:[%s18646_s26 + $0x778] sm:$0xf0]  ;;  %v21218_v25 = vmul.f32 0.7978846, %v9362_v50  ;;  %v14239_v0 = vor.u32 %v16806_v36, %v14236_v57  ;;  %v14191_v50 = vor.u32 %v16794_v59, %v14188_v52  ;;  %v14858_v36 = vld [vmem:[%s18646_s26 + $0x628] sm:$0xf]  ;;  %v14907_v57 = vor.u32 %v16980_v60, %v14906_v40  ;;  %v8976_v59 = vpop.f32.mrf.mxu0 }
 0xbd6   : > { %v15007_v23 = vor.u32 %v16998_v53, %v15004_v29  ;;  %v16770_v53 = vld [vmem:[%s18646_s26 + $0x2c] sm:$0xf]  ;;  %v14092_v29 = vld [vmem:[%s18646_s26 + $0x58] sm:$0xf0]  ;;  %v15382_v52 = vld [vmem:[%s18656_s14 + $0x168] sm:$0xf]  ;;  %v14859_v11 = vor.u32 %v16968_v17, %v14858_v36 }
 0xbd7   : > { %v14476_v30 = vld [vmem:[%s18646_s26 + $0x358] sm:$0xf0]  ;;  %17596 = vtanh.f32 %v21218_v25  ;;  %v15370_v36 = vld [vmem:[%s18656_s14 + $0x150] sm:$0xf]  ;;  %v17144_v17 = vld [vmem:[%s18656_s14 + $0x2d8] sm:$0xf0] }
 0xbd8   : > { %9235 = vmatpush.bf16.msra.mxu3 %v15099_v63  ;;  %9249 = vmatpush.bf16.msrb.mxu0 %v14335_v31  ;;  %v16890_v63 = vld [vmem:[%s18646_s26 + $0x3ec] sm:$0xf]  ;;  %v14572_v31 = vld [vmem:[%s18646_s26 + $0x418] sm:$0xf0]  ;;  %17598 = vtanh.f32 %v21225_v44 }
 0xbd9   : > { %9263 = vmatpush.bf16.msrb.mxu1 %v14719_v45  ;;  %9277 = vmatpush.bf16.msra.mxu2 %v15103_v39  ;;  %v9327_v45 = vmul.f32 %v9303_v33, %v21202_v10  ;;  %v9328_v39 = vmul.f32 %v9304_v20, %v21204_v26  ;;  %v14575_v35 = vor.u32 %v16890_v63, %v14572_v31  ;;  %v16866_v20 = vld [vmem:[%s18646_s26 + $0x32c] sm:$0xf]  ;;  %v14860_v14 = vld [vmem:[%s18646_s26 + $0x658] sm:$0xf0]  ;;  %v15478_v31 = vld [vmem:[%s18656_s14 + $0x228] sm:$0xf] }
 0xbda   : > { %v14911_v33 = vor.u32 %v16974_v4, %v14908_v48  ;;  %v17099_v63 = vld [vmem:[%s18656_s14 + $0x170] sm:$0xf0]  ;;  %v14479_v9 = vor.u32 %v16866_v20, %v14476_v30  ;;  %v8964_v4 = vpop.f32.mrf.mxu3 }
 0xbdb   : > { %v15383_v42 = vor.u32 %v17099_v63, %v15382_v52  ;;  %v8965_v44 = vadd.f32 %v8964_v4, %v7325_v13  ;;  %v17093_v52 = vld [vmem:[%s18656_s14 + $0x140] sm:$0xf0]  ;;  %v15454_v63 = vld [vmem:[%s18656_s14 + $0x1f8] sm:$0xf] }
 0xbdc   : > { %9236 = vmatpush.bf16.msra.mxu3 %v15051_v38  ;;  %9250 = vmatpush.bf16.msrb.mxu0 %v14287_v47  ;;  %v16878_v38 = vld [vmem:[%s18646_s26 + $0x38c] sm:$0xf]  ;;  %v14524_v47 = vld [vmem:[%s18646_s26 + $0x3b8] sm:$0xf0] }
 0xbdd   : > { %9264 = vmatpush.bf16.msrb.mxu1 %v14671_v32  ;;  %9278 = vmatpush.bf16.msra.mxu2 %v15055_v12  ;;  %v9351_v32 = vmul.f32 0.044715, %v9327_v45  ;;  %v9352_v12 = vmul.f32 0.044715, %v9328_v39  ;;  %v14527_v19 = vor.u32 %v16878_v38, %v14524_v47  ;;  %v14095_v45 = vor.u32 %v16770_v53, %v14092_v29  ;;  %v17123_v39 = vld [vmem:[%s18656_s14 + $0x230] sm:$0xf0]  ;;  %v8990_v47 = vpop.f32.mrf.mxu1 }
 0xbde   : > { %v17072_v38 = vld [vmem:[%s18656_s14 + $0x98] sm:$0xf0]  ;;  %v15479_v48 = vor.u32 %v17123_v39, %v15478_v31  ;;  %v9388_v29 = vmul.f32 0.7978846, %v9364_v18  ;;  %v17141_v31 = vld [vmem:[%s18656_s14 + $0x2c0] sm:$0xf0]  ;;  %v8978_v39 = vpop.f32.mrf.mxu0 }
 0xbdf   : > { %v9376_v5 = vadd.f32 %v9352_v12, %v21204_v26  ;;  %v15562_v12 = vld [vmem:[%s18656_s14 + $0x2d0] sm:$0xf]  ;;  %v15275_v25 = vor.u32 %v17072_v38, %v15274_v24  ;;  %v17114_v24 = vld [vmem:[%s18656_s14 + $0x1e8] sm:$0xf0]  ;;  %v15538_v38 = vld [vmem:[%s18656_s14 + $0x2a0] sm:$0xf] }
 0xbe0   : > { %9237 = vmatpush.bf16.msra.mxu3 %v15003_v15  ;;  %9251 = vmatpush.bf16.msrb.mxu0 %v14239_v0  ;;  %v16962_v15 = vld [vmem:[%s18646_s26 + $0x62c] sm:$0xf]  ;;  %v17593_v0 = vpop.eup %17592 }
 0xbe1   : > { %9265 = vmatpush.bf16.msrb.mxu1 %v14623_v8  ;;  %9279 = vmatpush.bf16.msra.mxu2 %v15007_v23  ;;  %v17075_v8 = vld [vmem:[%s18656_s14 + $0xb0] sm:$0xf0]  ;;  %v9363_v23 = vadd.f32 %v9339_v56, %v21181_v49  ;;  %v9433_v40 = vadd.f32 1.0, %v17593_v0  ;;  %v9375_v56 = vadd.f32 %v9351_v32, %v21202_v10  ;;  %v14863_v60 = vor.u32 %v16962_v15, %v14860_v14  ;;  %v15262_v0 = vld [vmem:[%s18656_s14 + $0x78] sm:$0xf] }
 0xbe2   : > { %v9400_v20 = vmul.f32 0.7978846, %v9376_v5  ;;  %v17069_v14 = vld [vmem:[%s18656_s14 + $0x80] sm:$0xf0]  ;;  %v15346_v5 = vld [vmem:[%s18656_s14 + $0x120] sm:$0xf] }
 0xbe3   : > { %v9387_v53 = vmul.f32 0.7978846, %v9363_v23  ;;  %v15358_v23 = vld [vmem:[%s18656_s14 + $0x138] sm:$0xf] }
 0xbe4   : > { %9238 = vmatpush.bf16.msra.mxu3 %v14955_v46  ;;  %9252 = vmatpush.bf16.msrb.mxu0 %v14191_v50  ;;  %v15574_v46 = vld [vmem:[%s18656_s14 + $0x2e8] sm:$0xf]  ;;  %v17147_v50 = vld [vmem:[%s18656_s14 + $0x2f0] sm:$0xf0] }
 0xbe5   : > { %9266 = vmatpush.bf16.msrb.mxu1 %v14575_v35  ;;  %9280 = vmatpush.bf16.msra.mxu2 %v14959_v34  ;;  %v8963_v35 = vadd.f32 %v8962_v62, %v7325_v13  ;;  %v15287_v34 = vor.u32 %v17075_v8, %v15286_v16  ;;  %v15575_v32 = vor.u32 %v17147_v50, %v15574_v46  ;;  %v17120_v62 = vld [vmem:[%s18656_s14 + $0x218] sm:$0xf0]  ;;  %v15550_v13 = vld [vmem:[%s18656_s14 + $0x2b8] sm:$0xf]  ;;  %17600 = vtanh.f32 %v9387_v53  ;;  %v15238_v53 = vld [vmem:[%s18656_s14 + $0x48] sm:$0xf] }
 0xbe6   : > { %v15563_v8 = vor.u32 %v17144_v17, %v15562_v12  ;;  %v15263_v46 = vor.u32 %v17069_v14, %v15262_v0  ;;  %17602 = vtanh.f32 %v9388_v29  ;;  %v17063_v29 = vld [vmem:[%s18656_s14 + $0x50] sm:$0xf0]  ;;  %v15526_v14 = vld [vmem:[%s18656_s14 + $0x288] sm:$0xf] }
 0xbe7   : > { %v8977_v30 = vadd.f32 %v8976_v59, %v8963_v35  ;;  %v17117_v59 = vld [vmem:[%s18656_s14 + $0x200] sm:$0xf0]  ;;  %v17090_v35 = vld [vmem:[%s18656_s14 + $0x128] sm:$0xf0]  ;;  %v17111_v0 = vld [vmem:[%s18656_s14 + $0x1d0] sm:$0xf0] }
 0xbe8   : > { %9239 = vmatpush.bf16.msra.mxu3 %v14907_v57  ;;  %9253 = vmatpush.bf16.msrb.mxu0 %v14143_v27  ;;  %v17096_v57 = vld [vmem:[%s18656_s14 + $0x158] sm:$0xf0]  ;;  %v15466_v27 = vld [vmem:[%s18656_s14 + $0x210] sm:$0xf]  ;;  %v15347_v17 = vor.u32 %v17090_v35, %v15346_v5 }
 0xbe9   : > { %9267 = vmatpush.bf16.msrb.mxu1 %v14527_v19  ;;  %9281 = vmatpush.bf16.msra.mxu2 %v14911_v33  ;;  %v9399_v19 = vmul.f32 0.7978846, %v9375_v56  ;;  %v17595_v33 = vpop.eup %17594  ;;  %v15371_v15 = vor.u32 %v17096_v57, %v15370_v36  ;;  %v15467_v16 = vor.u32 %v17120_v62, %v15466_v27  ;;  %v8979_v56 = vadd.f32 %v8978_v39, %v8965_v44  ;;  %v8992_v36 = vpop.f32.mrf.mxu1  ;;  %v15430_v44 = vld [vmem:[%s18656_s14 + $0x1c8] sm:$0xf]  ;;  %v15418_v5 = vld [vmem:[%s18656_s14 + $0x1b0] sm:$0xf] }
 0xbea   : > { %v17597_v18 = vpop.eup %17596 }
 0xbeb   : > { %v17599_v50 = vpop.eup %17598  ;;  %17604 = vtanh.f32 %v9399_v19  ;;  %v9434_v4 = vadd.f32 1.0, %v17597_v18  ;;  %v21312_v12 = vadd.f32 %v8992_v36, %v8979_v56 }
 0xbec   : > { %9240 = vmatpush.bf16.msra.mxu3 %v14859_v11  ;;  %9254 = vmatpush.bf16.msrb.mxu0 %v14095_v45  ;;  %v21293_v11 = vmul.f32 0.5, %v9433_v40  ;;  %v9445_v45 = vadd.f32 1.0, %v17595_v33  ;;  %v15359_v40 = vor.u32 %v17093_v52, %v15358_v23  ;;  %17606 = vtanh.f32 %v9400_v20  ;;  %v17601_v19 = vpop.eup %17600  ;;  %v15334_v20 = vld [vmem:[%s18656_s14 + $0x108] sm:$0xf]  ;;  %v9032_v56 = vpop.f32.mrf.mxu0 }
 0xbed   : > { %9268 = vmatpush.bf16.msrb.mxu1 %v14479_v9  ;;  %9282 = vmatpush.bf16.msra.mxu2 %v14863_v60  ;;  %v15250_v9 = vld [vmem:[%s18656_s14 + $0x60] sm:$0xf]  ;;  %v17066_v60 = vld [vmem:[%s18656_s14 + $0x68] sm:$0xf0]  ;;  %v21322_v23 = vmul.f32 0.5, %v9434_v4 }
 0xbee   : > { %v15251_v57 = vor.u32 %v17066_v60, %v15250_v9  ;;  %v21308_v27 = vmul.f32 0.5, %v9445_v45  ;;  %v9305_v45 = vmul.f32 %v21312_v12, %v21312_v12 }
 0xbef   : > { %9241 = vmatmul.bf16.vlgmr.msra.gmra.mxu3 %v20665_v37  ;;  %9255 = vmatmul.bf16.vlgmr.msrb.gmra.mxu0 %v20661_v58  ;;  %v21297_v58 = vadd.f32 %v8990_v47, %v8977_v30  ;;  %v17138_v47 = vld [vmem:[%s18656_s14 + $0x2a8] sm:$0xf0]  ;;  %v17087_v30 = vld [vmem:[%s18656_s14 + $0x110] sm:$0xf0] }
 0xbf0   : > { %11445 = vmatpush.bf16.msrb.mxu3 %v15287_v34  ;;  %11459 = vmatpush.bf16.msra.mxu0 %v15383_v42  ;;  %v15442_v34 = vld [vmem:[%s18656_s14 + $0x1e0] sm:$0xf]  ;;  %v9004_v42 = vpop.f32.mrf.mxu2  ;;  %v15539_v33 = vor.u32 %v17138_v47, %v15538_v38  ;;  %v15335_v39 = vor.u32 %v17087_v30, %v15334_v20  ;;  %v15310_v20 = vld [vmem:[%s18656_s14 + $0xd8] sm:$0xf]  ;;  %v17081_v30 = vld [vmem:[%s18656_s14 + $0xe0] sm:$0xf0] }
 0xbf1   : > { %11473 = vmatpush.bf16.msra.mxu1 %v15479_v48  ;;  %11487 = vmatpush.bf16.msrb.mxu2 %v15575_v32  ;;  %v9446_v48 = vadd.f32 1.0, %v17599_v50  ;;  %v7326_v32 = vperm.slane %v21028_v28, 5  ;;  %v9293_v62 = vmul.f32 %v21297_v58, %v21297_v58  ;;  %v17060_v50 = vld [vmem:[%s18656_s14 + $0x38] sm:$0xf0] }
 0xbf2   : > { %9269 = vmatmul.bf16.vlgmr.msrb.gmra.mxu1 %v20663_v61  ;;  %9283 = vmatmul.bf16.vlgmr.msra.gmra.mxu2 %v20665_v37  ;;  %v15455_v61 = vor.u32 %v17117_v59, %v15454_v63  ;;  %v15551_v37 = vor.u32 %v17141_v31, %v15550_v13  ;;  %v15239_v59 = vor.u32 %v17063_v29, %v15238_v53  ;;  %v9435_v31 = vadd.f32 1.0, %v17601_v19  ;;  %v9018_v60 = vpop.f32.mrf.mxu3  ;;  %v15214_v29 = vld [vmem:[%s18656_s14 + $0x18] sm:$0xf]  ;;  %v17057_v19 = vld [vmem:[%s18656_s14 + $0x20] sm:$0xf0] }
 0xbf3   : > { %v21324_v52 = vmul.f32 0.5, %v9446_v48  ;;  %v9005_v63 = vadd.f32 %v9004_v42, %v7326_v32  ;;  %v9317_v18 = vmul.f32 %v9293_v62, %v21297_v58  ;;  %v15514_v42 = vld [vmem:[%s18656_s14 + $0x270] sm:$0xf] }
 0xbf4   : > { %11446 = vmatpush.bf16.msrb.mxu3 %v15275_v25  ;;  %11460 = vmatpush.bf16.msra.mxu0 %v15371_v15  ;;  %v15443_v25 = vor.u32 %v17114_v24, %v15442_v34  ;;  %v17603_v15 = vpop.eup %17602  ;;  %v17108_v34 = vld [vmem:[%s18656_s14 + $0x1b8] sm:$0xf0] }
 0xbf5   : > { %11474 = vmatpush.bf16.msra.mxu1 %v15467_v16  ;;  %11488 = vmatpush.bf16.msrb.mxu2 %v15563_v8  ;;  %v17135_v16 = vld [vmem:[%s18656_s14 + $0x290] sm:$0xf0]  ;;  %v17605_v8 = vpop.eup %17604  ;;  %v9019_v35 = vadd.f32 %v9018_v60, %v9005_v63  ;;  %v17132_v24 = vld [vmem:[%s18656_s14 + $0x278] sm:$0xf0]  ;;  %v9436_v38 = vadd.f32 1.0, %v17603_v15 }
 0xbf6   : > { %v17607_v13 = vpop.eup %17606  ;;  %v15527_v9 = vor.u32 %v17135_v16, %v15526_v14  ;;  %v9447_v47 = vadd.f32 1.0, %v17605_v8  ;;  %v9341_v36 = vmul.f32 0.044715, %v9317_v18  ;;  %v17105_v15 = vld [vmem:[%s18656_s14 + $0x1a0] sm:$0xf0]  ;;  %v9459_v16 = vmul.f32 0.5, %v9435_v31 }
 0xbf7   : > { %v9448_v4 = vadd.f32 1.0, %v17607_v13  ;;  %v17129_v14 = vld [vmem:[%s18656_s14 + $0x260] sm:$0xf0]  ;;  %v21356_v13 = vld [vmem:[%s18656_s14 + $0x8] sm:$0xf0] }
 0xbf8   : > { %11447 = vmatpush.bf16.msrb.mxu3 %v15263_v46  ;;  %11461 = vmatpush.bf16.msra.mxu0 %v15359_v40  ;;  %v15226_v46 = vld [vmem:[%s18656_s14 + $0x30] sm:$0xf]  ;;  %v15431_v40 = vor.u32 %v17111_v0, %v15430_v44  ;;  %v9006_v62 = vpop.f32.mrf.mxu2  ;;  %v15406_v44 = vld [vmem:[%s18656_s14 + $0x198] sm:$0xf]  ;;  %v9471_v8 = vmul.f32 0.5, %v9447_v47 }
 0xbf9   : > { %11475 = vmatpush.bf16.msra.mxu1 %v15455_v61  ;;  %11489 = vmatpush.bf16.msrb.mxu2 %v15551_v37  ;;  %v15322_v61 = vld [vmem:[%s18656_s14 + $0xf0] sm:$0xf]  ;;  %v17084_v37 = vld [vmem:[%s18656_s14 + $0xf8] sm:$0xf0]  ;;  %v15227_v48 = vor.u32 %v17060_v50, %v15226_v46  ;;  %v15502_v0 = vld [vmem:[%s18656_s14 + $0x258] sm:$0xf]  ;;  %v9007_v63 = vadd.f32 %v9006_v62, %v7326_v32  ;;  %v15311_v46 = vor.u32 %v17081_v30, %v15310_v20 }
 0xbfa   : > { %v15323_v53 = vor.u32 %v17084_v37, %v15322_v61  ;;  %v15298_v31 = vld [vmem:[%s18656_s14 + $0xc0] sm:$0xf]  ;;  %v17078_v50 = vld [vmem:[%s18656_s14 + $0xc8] sm:$0xf0]  ;;  %v9472_v28 = vmul.f32 0.5, %v9448_v4  ;;  %v9365_v32 = vadd.f32 %v9341_v36, %v21297_v58  ;;  %v9481_v37 = vmul.f32 %v21293_v11, %v21080_v55  ;;  %v9034_v36 = vpop.f32.mrf.mxu0 }
 0xbfb   : > { %v15394_v60 = vld [vmem:[%s18656_s14 + $0x180] sm:$0xf]  ;;  %v17102_v61 = vld [vmem:[%s18656_s14 + $0x188] sm:$0xf0]  ;;  %v15670_v47 = vld [vmem:[%s18656_s14 + $0x3a8] sm:$0xf]  ;;  %v9482_v4 = vmul.f32 %v21322_v23, %v21108_v6  ;;  %v15299_v55 = vor.u32 %v17078_v50, %v15298_v31 }
 0xbfc   : > { %11448 = vmatpush.bf16.msrb.mxu3 %v15251_v57  ;;  %11462 = vmatpush.bf16.msra.mxu0 %v15347_v17  ;;  %v9329_v57 = vmul.f32 %v9305_v45, %v21312_v12  ;;  %v21340_v17 = vadd.f32 %v9032_v56, %v9019_v35  ;;  %v15407_v56 = vor.u32 %v17105_v15, %v15406_v44  ;;  %v21369_v35 = vpop.f32.mrf.mxu1  ;;  %v17171_v11 = vld [vmem:[%s18656_s14 + $0x3b0] sm:$0xf0]  ;;  %v9460_v62 = vmul.f32 0.5, %v9436_v38 }
 0xbfd   : > { %11476 = vmatpush.bf16.msra.mxu1 %v15443_v25  ;;  %11490 = vmatpush.bf16.msrb.mxu2 %v15539_v33  ;;  %v15419_v25 = vor.u32 %v17108_v34, %v15418_v5  ;;  %v15515_v33 = vor.u32 %v17132_v24, %v15514_v42  ;;  %v9493_v5 = vmul.f32 %v21308_v27, %v21100_v54  ;;  %v15490_v42 = vld [vmem:[%s18656_s14 + $0x240] sm:$0xf]  ;;  %v17126_v24 = vld [vmem:[%s18656_s14 + $0x248] sm:$0xf0]  ;;  %v15766_v54 = vld [vmem:[%s18656_s14 + $0x468] sm:$0xf] }
 0xbfe   : > { %v9353_v18 = vmul.f32 0.044715, %v9329_v57  ;;  %v9294_v45 = vmul.f32 %v21340_v17, %v21340_v17  ;;  %v17195_v27 = vld [vmem:[%s18656_s14 + $0x470] sm:$0xf0]  ;;  %v9389_v23 = vmul.f32 0.7978846, %v9365_v32  ;;  %v15491_v38 = vor.u32 %v17126_v24, %v15490_v42 }
 0xbff   : > { %v15671_v44 = vor.u32 %v17171_v11, %v15670_v47  ;;  %v15767_v15 = vor.u32 %v17195_v27, %v15766_v54  ;;  %v15850_v32 = vld [vmem:[%s18656_s14 + $0x510] sm:$0xf]  ;;  %v17189_v42 = vld [vmem:[%s18656_s14 + $0x440] sm:$0xf0]  ;;  %v15838_v11 = vld [vmem:[%s18656_s14 + $0x4f8] sm:$0xf] }
 0xc00   : > { %11449 = vmatpush.bf16.msrb.mxu3 %v15239_v59  ;;  %11463 = vmatpush.bf16.msra.mxu0 %v15335_v39  ;;  %v21353_v59 = vld [vmem:[%s18656_s14] sm:$0xf]  ;;  %v15215_v39 = vor.u32 %v17057_v19, %v15214_v29  ;;  %v9318_v29 = vmul.f32 %v9294_v45, %v21340_v17  ;;  %v15658_v19 = vld [vmem:[%s18656_s14 + $0x390] sm:$0xf]  ;;  %v21391_v20 = vpop.f32.mrf.mxu2  ;;  %v9484_v45 = vmul.f32 %v9460_v62, %v21188_v3  ;;  %v17216_v3 = vld [vmem:[%s18656_s14 + $0x518] sm:$0xf0]  ;;  %17608 = vtanh.f32 %v9389_v23 }
 0xc01   : > { %11477 = vmatpush.bf16.msra.mxu1 %v15431_v40  ;;  %11491 = vmatpush.bf16.msrb.mxu2 %v15527_v9  ;;  %v15503_v40 = vor.u32 %v17129_v14, %v15502_v0  ;;  %v9020_v9 = vpop.f32.mrf.mxu3  ;;  %v15203_v57 = vor.u32 %v21356_v13, %v21353_v59  ;;  %v15958_v0 = vld [vmem:[%s18656_s14 + $0x5e8] sm:$0xf]  ;;  %v17243_v14 = vld [vmem:[%s18656_s14 + $0x5f0] sm:$0xf0]  ;;  %v17168_v13 = vld [vmem:[%s18656_s14 + $0x398] sm:$0xf0] }
 0xc02   : > { %v9021_v34 = vadd.f32 %v9020_v9, %v9007_v63  ;;  %v21399_v63 = vpack.c.bf16 %v9493_v5, %v9481_v37  ;;  %v15659_v9 = vor.u32 %v17168_v13, %v15658_v19  ;;  %v17240_v37 = vld [vmem:[%s18656_s14 + $0x5d8] sm:$0xf0]  ;;  %v17165_v5 = vld [vmem:[%s18656_s14 + $0x380] sm:$0xf0]  ;;  %v21435_v23 = vld [vmem:[%s18653_s0] sm:$0xff] }
 0xc03   : > { %v17213_v54 = vld [vmem:[%s18656_s14 + $0x500] sm:$0xf0]  ;;  %v17186_v19 = vld [vmem:[%s18656_s14 + $0x428] sm:$0xf0] }
 0xc04   : > { %11450 = vmatpush.bf16.msrb.mxu3 %v15227_v48  ;;  %11464 = vmatpush.bf16.msra.mxu0 %v15323_v53  ;;  %v9494_v48 = vmul.f32 %v21324_v52, %v21123_v41  ;;  %v9377_v53 = vadd.f32 %v9353_v18, %v21312_v12  ;;  %v21385_v6 = vadd.f32 %v9034_v36, %v9021_v34  ;;  %v17192_v18 = vld [vmem:[%s18656_s14 + $0x458] sm:$0xf0]  ;;  %v15742_v34 = vld [vmem:[%s18656_s14 + $0x438] sm:$0xf]  ;;  %v21423_v47 = vpop.f32.mrf.mxu1  ;;  %v17162_v36 = vld [vmem:[%s18656_s14 + $0x368] sm:$0xf0] }
 0xc05   : > { %11478 = vmatpush.bf16.msra.mxu1 %v15419_v25  ;;  %11492 = vmatpush.bf16.msrb.mxu2 %v15515_v33  ;;  %v9495_v41 = vmul.f32 %v9471_v8, %v21202_v10  ;;  %v15395_v52 = vor.u32 %v17102_v61, %v15394_v60  ;;  %v15862_v25 = vld [vmem:[%s18656_s14 + $0x528] sm:$0xf]  ;;  %v9496_v33 = vmul.f32 %v9472_v28, %v21204_v26  ;;  %v17219_v10 = vld [vmem:[%s18656_s14 + $0x530] sm:$0xf0]  ;;  %v15754_v26 = vld [vmem:[%s18656_s14 + $0x450] sm:$0xf] }
 0xc06   : > { %v9306_v30 = vmul.f32 %v21385_v6, %v21385_v6  ;;  %v9483_v8 = vmul.f32 %v9459_v16, %v21181_v49  ;;  %v21401_v59 = vpack.c.bf16 %v9494_v48, %v9482_v4  ;;  %v15646_v16 = vld [vmem:[%s18656_s14 + $0x378] sm:$0xf]  ;;  %v15863_v50 = vor.u32 %v17219_v10, %v15862_v25  ;;  %v15946_v61 = vld [vmem:[%s18656_s14 + $0x5d0] sm:$0xf]  ;;  %v15634_v48 = vld [vmem:[%s18656_s14 + $0x360] sm:$0xf] }
 0xc07   : > { %v15959_v28 = vor.u32 %v17243_v14, %v15958_v0  ;;  %v15755_v60 = vor.u32 %v17192_v18, %v15754_v26  ;;  %v15647_v62 = vor.u32 %v17165_v5, %v15646_v16  ;;  %v7327_v25 = vperm.slane %v21435_v23, 6  ;;  %v15622_v10 = vld [vmem:[%s18656_s14 + $0x348] sm:$0xf]  ;;  %v17159_v16 = vld [vmem:[%s18656_s14 + $0x350] sm:$0xf0] }
 0xc08   : > { %11451 = vmatpush.bf16.msrb.mxu3 %v15215_v39  ;;  %11465 = vmatpush.bf16.msra.mxu0 %v15311_v46  ;;  %v9401_v39 = vmul.f32 0.7978846, %v9377_v53  ;;  %v9342_v46 = vmul.f32 0.044715, %v9318_v29  ;;  %v9330_v31 = vmul.f32 %v9306_v30, %v21385_v6  ;;  %v21408_v49 = vpack.c.bf16 %v9495_v41, %v9483_v8  ;;  %v15934_v29 = vld [vmem:[%s18656_s14 + $0x5b8] sm:$0xf]  ;;  %v21441_v30 = vpop.f32.mrf.mxu2 }
 0xc09   : > { %11479 = vmatpush.bf16.msra.mxu1 %v15407_v56  ;;  %11493 = vmatpush.bf16.msrb.mxu2 %v15503_v40  ;;  %v21413_v56 = vpack.c.bf16 %v9496_v33, %v9484_v45  ;;  %v15743_v53 = vor.u32 %v17189_v42, %v15742_v34  ;;  %v17237_v41 = vld [vmem:[%s18656_s14 + $0x5c0] sm:$0xf0]  ;;  %v15839_v0 = vor.u32 %v17213_v54, %v15838_v11  ;;  %v15826_v8 = vld [vmem:[%s18656_s14 + $0x4e0] sm:$0xf]  ;;  %v17210_v45 = vld [vmem:[%s18656_s14 + $0x4e8] sm:$0xf0] }
 0xc0a   : > { %v9354_v40 = vmul.f32 0.044715, %v9330_v31  ;;  %17610 = vtanh.f32 %v9401_v39  ;;  %v9366_v24 = vadd.f32 %v9342_v46, %v21340_v17  ;;  %v15935_v14 = vor.u32 %v17237_v41, %v15934_v29  ;;  %v15922_v39 = vld [vmem:[%s18656_s14 + $0x5a0] sm:$0xf]  ;;  %v17234_v46 = vld [vmem:[%s18656_s14 + $0x5a8] sm:$0xf0] }
 0xc0b   : > { %v15635_v26 = vor.u32 %v17162_v36, %v15634_v48  ;;  %v15814_v5 = vld [vmem:[%s18656_s14 + $0x4c8] sm:$0xf]  ;;  %v17231_v48 = vld [vmem:[%s18656_s14 + $0x590] sm:$0xf0]  ;;  %v15706_v11 = vld [vmem:[%s18656_s14 + $0x3f0] sm:$0xf] }
 0xc0c   : > { %11452 = vmatpush.bf16.msrb.mxu3 %v15203_v57  ;;  %11466 = vmatpush.bf16.msra.mxu0 %v15299_v55  ;;  %v9378_v4 = vadd.f32 %v9354_v40, %v21385_v6  ;;  %v15851_v57 = vor.u32 %v17216_v3, %v15850_v32  ;;  %v15947_v55 = vor.u32 %v17240_v37, %v15946_v61  ;;  %v9390_v33 = vmul.f32 0.7978846, %v9366_v24  ;;  %v17207_v24 = vld [vmem:[%s18656_s14 + $0x4d0] sm:$0xf0]  ;;  %v17180_v54 = vld [vmem:[%s18656_s14 + $0x3f8] sm:$0xf0] }
 0xc0d   : > { %11480 = vmatpush.bf16.msra.mxu1 %v15395_v52  ;;  %11494 = vmatpush.bf16.msrb.mxu2 %v15491_v38  ;;  %v7328_v52 = vperm.slane %v21435_v23, 7  ;;  %v15730_v38 = vld [vmem:[%s18656_s14 + $0x420] sm:$0xf]  ;;  %v9047_v3 = vadd.f32 %v21369_v35, %v7327_v25  ;;  %v15827_v61 = vor.u32 %v17210_v45, %v15826_v8  ;;  %v15923_v37 = vor.u32 %v17234_v46, %v15922_v39  ;;  %v15790_v23 = vld [vmem:[%s18656_s14 + $0x498] sm:$0xf] }
 0xc0e   : > { %v9402_v27 = vmul.f32 0.7978846, %v9378_v4  ;;  %v15731_v18 = vor.u32 %v17186_v19, %v15730_v38  ;;  %v15623_v35 = vor.u32 %v17159_v16, %v15622_v10  ;;  %v15910_v4 = vld [vmem:[%s18656_s14 + $0x588] sm:$0xf]  ;;  %v21472_v38 = vld [vmem:[%s18656_s14 + $0x318] sm:$0xf]  ;;  %v15707_v8 = vor.u32 %v17180_v54, %v15706_v11 }
 0xc0f   : > { %11453 = vmatmul.bf16.vlgmr.msrb.gmra.mxu3 %v21399_v63  ;;  %11467 = vmatmul.bf16.vlgmr.msra.gmra.mxu0 %v21401_v59  ;;  %v9102_v40 = vpop.f32.mrf.mxu1  ;;  %v9061_v34 = vadd.f32 %v21391_v20, %v9047_v3  ;;  %v21475_v19 = vld [vmem:[%s18656_s14 + $0x320] sm:$0xf0]  ;;  %v15694_v16 = vld [vmem:[%s18656_s14 + $0x3d8] sm:$0xf] }
 0xc10   : > { %11501 = vmatpush.bf16.msra.mxu3 %v15671_v44  ;;  %11515 = vmatpush.bf16.msrb.mxu0 %v15767_v15  ;;  %v17609_v44 = vpop.eup %17608  ;;  %v9088_v15 = vpop.f32.mrf.mxu0  ;;  %17612 = vtanh.f32 %v9402_v27 }
 0xc11   : > { %11481 = vmatmul.bf16.vlgmr.msra.gmra.mxu1 %v21408_v49  ;;  %11495 = vmatmul.bf16.vlgmr.msrb.gmra.mxu2 %v21413_v56  ;;  %v17611_v13 = vpop.eup %17610  ;;  %v9089_v31 = vadd.f32 %v9088_v15, %v7328_v52  ;;  %v9437_v32 = vadd.f32 1.0, %v17609_v44  ;;  %17614 = vtanh.f32 %v9390_v33  ;;  %v15815_v33 = vor.u32 %v17207_v24, %v15814_v5  ;;  %v15802_v15 = vld [vmem:[%s18656_s14 + $0x4b0] sm:$0xf]  ;;  %v21507_v5 = vld [vmem:[%s18656_s14 + $0x6a8] sm:$0xf] }
 0xc12   : > { %11529 = vmatpush.bf16.msrb.mxu1 %v15863_v50  ;;  %11543 = vmatpush.bf16.msra.mxu2 %v15959_v28  ;;  %v15718_v50 = vld [vmem:[%s18656_s14 + $0x408] sm:$0xf]  ;;  %v17183_v28 = vld [vmem:[%s18656_s14 + $0x410] sm:$0xf0]  ;;  %v15911_v44 = vor.u32 %v17231_v48, %v15910_v4  ;;  %v15599_v24 = vor.u32 %v21475_v19, %v21472_v38  ;;  %v15886_v48 = vld [vmem:[%s18656_s14 + $0x558] sm:$0xf] }
 0xc13   : > { %v15719_v42 = vor.u32 %v17183_v28, %v15718_v50  ;;  %v9103_v36 = vadd.f32 %v9102_v40, %v9089_v31  ;;  %v17177_v50 = vld [vmem:[%s18656_s14 + $0x3e0] sm:$0xf0]  ;;  %v21496_v40 = vld [vmem:[%s18656_s14 + $0x300] sm:$0xf]  ;;  %v16042_v19 = vld [vmem:[%s18656_s14 + $0x690] sm:$0xf] }
 0xc14   : > { %11502 = vmatpush.bf16.msra.mxu3 %v15659_v9  ;;  %11516 = vmatpush.bf16.msrb.mxu0 %v15755_v60  ;;  %v9449_v9 = vadd.f32 1.0, %v17611_v13  ;;  %v21457_v60 = vld [vmem:[%s18656_s14 + $0x330] sm:$0xf]  ;;  %v17204_v13 = vld [vmem:[%s18656_s14 + $0x4b8] sm:$0xf0]  ;;  %v15695_v4 = vor.u32 %v17177_v50, %v15694_v16 }
 0xc15   : > { %v9116_v20 = vpop.f32.mrf.mxu2 }
 0xc16   : > { %11530 = vmatpush.bf16.msrb.mxu1 %v15851_v57  ;;  %11544 = vmatpush.bf16.msra.mxu2 %v15947_v55  ;;  %v9074_v57 = vpop.f32.mrf.mxu3  ;;  %v17156_v55 = vld [vmem:[%s18656_s14 + $0x338] sm:$0xf0]  ;;  %v17613_v27 = vpop.eup %17612  ;;  %v21469_v29 = vadd.f32 %v9116_v20, %v9103_v36  ;;  %v9473_v45 = vmul.f32 0.5, %v9449_v9  ;;  %v21499_v9 = vld [vmem:[%s18656_s14 + $0x308] sm:$0xf0] }
 0xc17   : > { %v17615_v10 = vpop.eup %17614  ;;  %v9450_v39 = vadd.f32 1.0, %v17613_v27  ;;  %v17225_v36 = vld [vmem:[%s18656_s14 + $0x560] sm:$0xf0]  ;;  %v15587_v38 = vor.u32 %v21499_v9, %v21496_v40 }
 0xc18   : > { %11503 = vmatpush.bf16.msra.mxu3 %v15647_v62  ;;  %11517 = vmatpush.bf16.msrb.mxu0 %v15743_v53  ;;  %v9461_v62 = vmul.f32 0.5, %v9437_v32  ;;  %v21467_v53 = vadd.f32 %v9074_v57, %v9061_v34  ;;  %v9090_v41 = vpop.f32.mrf.mxu0  ;;  %v9296_v46 = vmul.f32 %v21469_v29, %v21469_v29  ;;  %v9049_v32 = vadd.f32 %v21423_v47, %v7327_v25  ;;  %v17201_v25 = vld [vmem:[%s18656_s14 + $0x4a0] sm:$0xf0] }
 0xc19   : > { %v9091_v31 = vadd.f32 %v9090_v41, %v7328_v52  ;;  %v21503_v52 = vld [vmem:[%s18656_s14 + $0x3c0] sm:$0xf]  ;;  %v9497_v57 = vmul.f32 %v9473_v45, %v21312_v12 }
 0xc1a   : > { %11531 = vmatpush.bf16.msrb.mxu1 %v15839_v0  ;;  %11545 = vmatpush.bf16.msra.mxu2 %v15935_v14  ;;  %v9295_v0 = vmul.f32 %v21467_v53, %v21467_v53  ;;  %v15611_v14 = vor.u32 %v17156_v55, %v21457_v60  ;;  %v9485_v28 = vmul.f32 %v9461_v62, %v21297_v58  ;;  %v9438_v60 = vadd.f32 1.0, %v17615_v10 }
 0xc1b   : > { %v15803_v58 = vor.u32 %v17204_v13, %v15802_v15  ;;  %v9063_v34 = vadd.f32 %v21441_v30, %v9049_v32  ;;  %v9474_v55 = vmul.f32 0.5, %v9450_v39  ;;  %v17267_v30 = vld [vmem:[%s18656_s14 + $0x6b0] sm:$0xf0]  ;;  %v16150_v39 = vld [vmem:[%s18656_s14 + $0x768] sm:$0xf] }
 0xc1c   : > { %11504 = vmatpush.bf16.msra.mxu3 %v15635_v26  ;;  %11518 = vmatpush.bf16.msrb.mxu0 %v15731_v18  ;;  %v15898_v26 = vld [vmem:[%s18656_s14 + $0x570] sm:$0xf]  ;;  %v17228_v18 = vld [vmem:[%s18656_s14 + $0x578] sm:$0xf0]  ;;  %v9319_v3 = vmul.f32 %v9295_v0, %v21467_v53  ;;  %v9462_v12 = vmul.f32 0.5, %v9438_v60  ;;  %v15887_v0 = vor.u32 %v17225_v36, %v15886_v48  ;;  %v16055_v45 = vor.u32 %v17267_v30, %v21507_v5 }
 0xc1d   : > { %v15899_v47 = vor.u32 %v17228_v18, %v15898_v26  ;;  %v9118_v41 = vpop.f32.mrf.mxu2  ;;  %v15874_v32 = vld [vmem:[%s18656_s14 + $0x540] sm:$0xf]  ;;  %v21542_v60 = vpack.c.bf16 %v9497_v57, %v9485_v28  ;;  %v16126_v48 = vld [vmem:[%s18656_s14 + $0x738] sm:$0xf]  ;;  %v17285_v36 = vld [vmem:[%s18656_s14 + $0x740] sm:$0xf0] }
 0xc1e   : > { %11532 = vmatpush.bf16.msrb.mxu1 %v15827_v61  ;;  %11546 = vmatpush.bf16.msra.mxu2 %v15923_v37  ;;  %v9320_v61 = vmul.f32 %v9296_v46, %v21469_v29  ;;  %v17174_v37 = vld [vmem:[%s18656_s14 + $0x3c8] sm:$0xf0]  ;;  %v9076_v27 = vpop.f32.mrf.mxu3  ;;  %v17291_v46 = vld [vmem:[%s18656_s14 + $0x770] sm:$0xf0] }
 0xc1f   : > { %v21519_v20 = vadd.f32 %v9076_v27, %v9063_v34  ;;  %v15683_v18 = vor.u32 %v17174_v37, %v21503_v52  ;;  %v16151_v40 = vor.u32 %v17291_v46, %v16150_v39  ;;  %v16018_v27 = vld [vmem:[%s18656_s14 + $0x660] sm:$0xf]  ;;  %v17258_v30 = vld [vmem:[%s18656_s14 + $0x668] sm:$0xf0] }
 0xc20   : > { %11505 = vmatpush.bf16.msra.mxu3 %v15623_v35  ;;  %11519 = vmatpush.bf16.msrb.mxu0 %v15719_v42  ;;  %v9343_v35 = vmul.f32 0.044715, %v9319_v3  ;;  %v9104_v42 = vpop.f32.mrf.mxu1  ;;  %v9344_v11 = vmul.f32 0.044715, %v9320_v61  ;;  %v17222_v3 = vld [vmem:[%s18656_s14 + $0x548] sm:$0xf0]  ;;  %v9486_v61 = vmul.f32 %v9462_v12, %v21340_v17 }
 0xc21   : > { %v9105_v54 = vadd.f32 %v9104_v42, %v9091_v31  ;;  %v9307_v26 = vmul.f32 %v21519_v20, %v21519_v20  ;;  %v9498_v31 = vmul.f32 %v9474_v55, %v21385_v6  ;;  %v17261_v42 = vld [vmem:[%s18656_s14 + $0x680] sm:$0xf0] }
 0xc22   : > { %11533 = vmatpush.bf16.msrb.mxu1 %v15815_v33  ;;  %11547 = vmatpush.bf16.msra.mxu2 %v15911_v44  ;;  %v9367_v62 = vadd.f32 %v9343_v35, %v21467_v53  ;;  %v17264_v33 = vld [vmem:[%s18656_s14 + $0x698] sm:$0xf0]  ;;  %v15791_v44 = vor.u32 %v17201_v25, %v15790_v23  ;;  %v9368_v15 = vadd.f32 %v9344_v11, %v21469_v29  ;;  %v16030_v35 = vld [vmem:[%s18656_s14 + $0x678] sm:$0xf] }
 0xc23   : > { %v21526_v10 = vadd.f32 %v9118_v41, %v9105_v54  ;;  %v9331_v9 = vmul.f32 %v9307_v26, %v21519_v20  ;;  %v16043_v37 = vor.u32 %v17264_v33, %v16042_v19  ;;  %v17288_v23 = vld [vmem:[%s18656_s14 + $0x758] sm:$0xf0]  ;;  %v21548_v17 = vpack.c.bf16 %v9498_v31, %v9486_v61  ;;  %v16114_v41 = vld [vmem:[%s18656_s14 + $0x720] sm:$0xf]  ;;  %v16102_v26 = vld [vmem:[%s18656_s14 + $0x708] sm:$0xf] }
 0xc24   : > { %11506 = vmatpush.bf16.msra.mxu3 %v15611_v14  ;;  %11520 = vmatpush.bf16.msrb.mxu0 %v15707_v8  ;;  %v15778_v14 = vld [vmem:[%s18656_s14 + $0x480] sm:$0xf]  ;;  %v17198_v8 = vld [vmem:[%s18656_s14 + $0x488] sm:$0xf0]  ;;  %v9391_v13 = vmul.f32 0.7978846, %v9367_v62  ;;  %v16031_v55 = vor.u32 %v17261_v42, %v16030_v35  ;;  %v16127_v11 = vor.u32 %v17285_v36, %v16126_v48  ;;  %v16019_v33 = vor.u32 %v17258_v30, %v16018_v27 }
 0xc25   : > { %v9392_v16 = vmul.f32 0.7978846, %v9368_v15  ;;  %v9308_v50 = vmul.f32 %v21526_v10, %v21526_v10  ;;  %v9355_v6 = vmul.f32 0.044715, %v9331_v9  ;;  %v15779_v5 = vor.u32 %v17198_v8, %v15778_v14  ;;  %v17255_v14 = vld [vmem:[%s18656_s14 + $0x650] sm:$0xf0] }
 0xc26   : > { %11534 = vmatpush.bf16.msrb.mxu1 %v15803_v58  ;;  %11548 = vmatpush.bf16.msra.mxu2 %v15899_v47  ;;  %17616 = vtanh.f32 %v9391_v13  ;;  %v15875_v58 = vor.u32 %v17222_v3, %v15874_v32  ;;  %v16138_v47 = vld [vmem:[%s18656_s14 + $0x750] sm:$0xf]  ;;  %v17074_v27 = vld [vmem:[%s18656_s14 + $0xac] sm:$0xf]  ;;  %v15288_v30 = vld [vmem:[%s18656_s14 + $0xb4] sm:$0xf0] }
 0xc27   : > { %v9332_v52 = vmul.f32 %v9308_v50, %v21526_v10  ;;  %17618 = vtanh.f32 %v9392_v16  ;;  %v16139_v25 = vor.u32 %v17288_v23, %v16138_v47  ;;  %v9379_v34 = vadd.f32 %v9355_v6, %v21519_v20  ;;  %v15994_v3 = vld [vmem:[%s18656_s14 + $0x630] sm:$0xf] }
 0xc28   : > { %11507 = vmatpush.bf16.msra.mxu3 %v15599_v24  ;;  %11521 = vmatpush.bf16.msrb.mxu0 %v15695_v4 }
 0xc29   : > { %v9356_v28 = vmul.f32 0.044715, %v9332_v52  ;;  %v9403_v4 = vmul.f32 0.7978846, %v9379_v34 }
 0xc2a   : > { %11535 = vmatpush.bf16.msrb.mxu1 %v15791_v44  ;;  %11549 = vmatpush.bf16.msra.mxu2 %v15887_v0  ;;  %v21563_v44 = vld [vmem:[%s18653_s0 + $0x8] sm:$0xf]  ;;  %v16006_v0 = vld [vmem:[%s18656_s14 + $0x648] sm:$0xf] }
 0xc2b   : > { %v9380_v24 = vadd.f32 %v9356_v28, %v21526_v10  ;;  %17620 = vtanh.f32 %v9403_v4  ;;  %v7329_v13 = vperm.slane %v21563_v44, 0  ;;  %v16007_v31 = vor.u32 %v17255_v14, %v16006_v0  ;;  %v17249_v4 = vld [vmem:[%s18656_s14 + $0x620] sm:$0xf0]  ;;  %v17339_v14 = vld [vmem:[%s18656_s14 + $0x8f0] sm:$0xf0] }
 0xc2c   : > { %11508 = vmatpush.bf16.msra.mxu3 %v15587_v38  ;;  %11522 = vmatpush.bf16.msrb.mxu0 %v15683_v18  ;;  %v17617_v54 = vpop.eup %17616  ;;  %v17282_v38 = vld [vmem:[%s18656_s14 + $0x728] sm:$0xf0]  ;;  %v17279_v18 = vld [vmem:[%s18656_s14 + $0x710] sm:$0xf0]  ;;  %v9144_v61 = vpop.f32.mrf.mxu0 }
 0xc2d   : > { %v9404_v57 = vmul.f32 0.7978846, %v9380_v24  ;;  %v17619_v62 = vpop.eup %17618  ;;  %v9439_v19 = vadd.f32 1.0, %v17617_v54  ;;  %v16115_v12 = vor.u32 %v17282_v38, %v16114_v41  ;;  %v16103_v16 = vor.u32 %v17279_v18, %v16102_v26  ;;  %v15982_v24 = vld [vmem:[%s18656_s14 + $0x618] sm:$0xf] }
 0xc2e   : > { %11536 = vmatpush.bf16.msrb.mxu1 %v15779_v5  ;;  %11550 = vmatpush.bf16.msra.mxu2 %v15875_v58  ;;  %v9440_v15 = vadd.f32 1.0, %v17619_v62  ;;  %v16090_v5 = vld [vmem:[%s18656_s14 + $0x6f0] sm:$0xf]  ;;  %v17276_v58 = vld [vmem:[%s18656_s14 + $0x6f8] sm:$0xf0] }
 0xc2f   : > { %11509 = vmatmul.bf16.vlgmr.msra.gmra.mxu3 %v21542_v60  ;;  %11523 = vmatmul.bf16.vlgmr.msrb.gmra.mxu0 %v21548_v17  ;;  %17622 = vtanh.f32 %v9404_v57  ;;  %v9463_v39 = vmul.f32 0.5, %v9439_v19  ;;  %v9158_v28 = vpop.f32.mrf.mxu1  ;;  %v16091_v48 = vor.u32 %v17276_v58, %v16090_v5  ;;  %v16078_v57 = vld [vmem:[%s18656_s14 + $0x6d8] sm:$0xf]  ;;  %v17246_v54 = vld [vmem:[%s18656_s14 + $0x608] sm:$0xf0] }
 0xc30   : > { %11557 = vmatpush.bf16.msrb.mxu3 %v16055_v45  ;;  %11571 = vmatpush.bf16.msra.mxu0 %v16151_v40  ;;  %v9464_v50 = vmul.f32 0.5, %v9440_v15  ;;  %v17252_v40 = vld [vmem:[%s18656_s14 + $0x638] sm:$0xf0]  ;;  %v16246_v38 = vld [vmem:[%s18656_s14 + $0x828] sm:$0xf] }
 0xc31   : > { %v17621_v8 = vpop.eup %17620  ;;  %v9487_v47 = vmul.f32 %v9463_v39, %v21467_v53  ;;  %v17315_v19 = vld [vmem:[%s18656_s14 + $0x830] sm:$0xf0]  ;;  %v16066_v39 = vld [vmem:[%s18656_s14 + $0x6c0] sm:$0xf] }
 0xc32   : > { %v9451_v46 = vadd.f32 1.0, %v17621_v8  ;;  %v9130_v52 = vpop.f32.mrf.mxu3  ;;  %v9488_v34 = vmul.f32 %v9464_v50, %v21469_v29  ;;  %v17273_v29 = vld [vmem:[%s18656_s14 + $0x6e0] sm:$0xf0]  ;;  %v16247_v0 = vor.u32 %v17315_v19, %v16246_v38  ;;  %v17071_v18 = vld [vmem:[%s18656_s14 + $0x94] sm:$0xf] }
 0xc33   : > { %v9131_v6 = vadd.f32 %v9130_v52, %v7329_v13  ;;  %v16079_v62 = vor.u32 %v17273_v29, %v16078_v57  ;;  %v16234_v52 = vld [vmem:[%s18656_s14 + $0x810] sm:$0xf]  ;;  %v16222_v29 = vld [vmem:[%s18656_s14 + $0x7f8] sm:$0xf] }
 0xc34   : > { %11558 = vmatpush.bf16.msrb.mxu3 %v16043_v37  ;;  %11572 = vmatpush.bf16.msra.mxu0 %v16139_v25  ;;  %v9475_v9 = vmul.f32 0.5, %v9451_v46  ;;  %v15995_v25 = vor.u32 %v17252_v40, %v15994_v3  ;;  %v9146_v8 = vpop.f32.mrf.mxu0  ;;  %v17270_v46 = vld [vmem:[%s18656_s14 + $0x6c8] sm:$0xf0]  ;;  %v15276_v3 = vld [vmem:[%s18656_s14 + $0x9c] sm:$0xf0] }
 0xc35   : > { %v17623_v45 = vpop.eup %17622  ;;  %v9145_v42 = vadd.f32 %v9144_v61, %v9131_v6  ;;  %11585 = vmatpush.bf16.msra.mxu1 %v16247_v0  ;;  %v15384_v40 = vld [vmem:[%s18656_s14 + $0x174] sm:$0xf0]  ;;  %v16330_v6 = vld [vmem:[%s18656_s14 + $0x8d0] sm:$0xf]  ;;  %v16210_v0 = vld [vmem:[%s18656_s14 + $0x7e0] sm:$0xf] }
 0xc36   : > { %v9452_v32 = vadd.f32 1.0, %v17623_v45  ;;  %v9499_v23 = vmul.f32 %v9475_v9, %v21519_v20 }
 0xc37   : > { %v21584_v20 = vadd.f32 %v9158_v28, %v9145_v42  ;;  %v9160_v9 = vpop.f32.mrf.mxu1  ;;  %v17068_v28 = vld [vmem:[%s18656_s14 + $0x7c] sm:$0xf] }
 0xc38   : > { %11559 = vmatpush.bf16.msrb.mxu3 %v16031_v55  ;;  %11573 = vmatpush.bf16.msra.mxu0 %v16127_v11  ;;  %v9476_v37 = vmul.f32 0.5, %v9452_v32  ;;  %v21580_v53 = vpack.c.bf16 %v9499_v23, %v9487_v47  ;;  %v15970_v55 = vld [vmem:[%s18656_s14 + $0x600] sm:$0xf]  ;;  %v15291_v32 = vor.u32 %v17074_v27, %v15288_v30  ;;  %v17336_v23 = vld [vmem:[%s18656_s14 + $0x8d8] sm:$0xf0] }
 0xc39   : > { %v9297_v11 = vmul.f32 %v21584_v20, %v21584_v20  ;;  %v15971_v26 = vor.u32 %v17246_v54, %v15970_v55  ;;  %v16318_v55 = vld [vmem:[%s18656_s14 + $0x8b8] sm:$0xf]  ;;  %v17333_v27 = vld [vmem:[%s18656_s14 + $0x8c0] sm:$0xf0] }
 0xc3a   : > { %v9500_v35 = vmul.f32 %v9476_v37, %v21526_v10  ;;  %11537 = vmatmul.bf16.vlgmr.msrb.gmra.mxu1 %v21580_v53  ;;  %v15983_v10 = vor.u32 %v17249_v4, %v15982_v24  ;;  %v9132_v41 = vpop.f32.mrf.mxu3  ;;  %v17312_v37 = vld [vmem:[%s18656_s14 + $0x818] sm:$0xf0]  ;;  %v15279_v24 = vor.u32 %v17071_v18, %v15276_v3  ;;  %v15264_v4 = vld [vmem:[%s18656_s14 + $0x84] sm:$0xf0]  ;;  %v16319_v30 = vor.u32 %v17333_v27, %v16318_v55 }
 0xc3b   : > { %v9133_v15 = vadd.f32 %v9132_v41, %v7329_v13  ;;  %v16067_v13 = vor.u32 %v17270_v46, %v16066_v39  ;;  %v16235_v47 = vor.u32 %v17312_v37, %v16234_v52  ;;  %v15360_v41 = vld [vmem:[%s18656_s14 + $0x144] sm:$0xf0]  ;;  %v15267_v19 = vor.u32 %v17068_v28, %v15264_v4  ;;  %v17089_v46 = vld [vmem:[%s18656_s14 + $0x124] sm:$0xf]  ;;  %v17303_v52 = vld [vmem:[%s18656_s14 + $0x7d0] sm:$0xf0] }
 0xc3c   : > { %11560 = vmatpush.bf16.msrb.mxu3 %v16019_v33  ;;  %11574 = vmatpush.bf16.msra.mxu0 %v16115_v12  ;;  %v21582_v36 = vpack.c.bf16 %v9500_v35, %v9488_v34  ;;  %v16342_v33 = vld [vmem:[%s18656_s14 + $0x8e8] sm:$0xf]  ;;  %v9321_v12 = vmul.f32 %v9297_v11, %v21584_v20  ;;  %v17095_v34 = vld [vmem:[%s18656_s14 + $0x154] sm:$0xf]  ;;  %v7330_v37 = vperm.slane %v21563_v44, 1 }
 0xc3d   : > { %v16343_v45 = vor.u32 %v17339_v14, %v16342_v33  ;;  %v9147_v50 = vadd.f32 %v9146_v8, %v9133_v15  ;;  %11586 = vmatpush.bf16.msra.mxu1 %v16235_v47  ;;  %v17065_v33 = vld [vmem:[%s18656_s14 + $0x64] sm:$0xf]  ;;  %v17306_v14 = vld [vmem:[%s18656_s14 + $0x7e8] sm:$0xf0]  ;;  %v16306_v8 = vld [vmem:[%s18656_s14 + $0x8a0] sm:$0xf] }
 0xc3e   : > { %11551 = vmatmul.bf16.vlgmr.msra.gmra.mxu2 %v21582_v36  ;;  %v16211_v18 = vor.u32 %v17306_v14, %v16210_v0  ;;  %v17327_v47 = vld [vmem:[%s18656_s14 + $0x890] sm:$0xf0] }
 0xc3f   : > { %11599 = vmatpush.bf16.msrb.mxu2 %v16343_v45  ;;  %v21611_v58 = vadd.f32 %v9160_v9, %v9147_v50  ;;  %v17330_v45 = vld [vmem:[%s18656_s14 + $0x8a8] sm:$0xf0] }
 0xc40   : > { %11561 = vmatpush.bf16.msrb.mxu3 %v16007_v31  ;;  %11575 = vmatpush.bf16.msra.mxu0 %v16103_v16  ;;  %v17098_v31 = vld [vmem:[%s18656_s14 + $0x16c] sm:$0xf]  ;;  %v9345_v16 = vmul.f32 0.044715, %v9321_v12  ;;  %v15252_v12 = vld [vmem:[%s18656_s14 + $0x6c] sm:$0xf0]  ;;  %v16307_v39 = vor.u32 %v17330_v45, %v16306_v8 }
 0xc41   : > { %v15387_v61 = vor.u32 %v17098_v31, %v15384_v40  ;;  %v9309_v42 = vmul.f32 %v21611_v58, %v21611_v58  ;;  %v15348_v31 = vld [vmem:[%s18656_s14 + $0x12c] sm:$0xf0]  ;;  %v15255_v50 = vor.u32 %v17065_v33, %v15252_v12  ;;  %v15240_v40 = vld [vmem:[%s18656_s14 + $0x54] sm:$0xf0]  ;;  %v17056_v12 = vld [vmem:[%s18656_s14 + $0x1c] sm:$0xf] }
 0xc42   : > { %v9369_v5 = vadd.f32 %v9345_v16, %v21584_v20  ;;  %v15351_v9 = vor.u32 %v17089_v46, %v15348_v31  ;;  %v16270_v46 = vld [vmem:[%s18656_s14 + $0x858] sm:$0xf]  ;;  %v17321_v31 = vld [vmem:[%s18656_s14 + $0x860] sm:$0xf0] }
 0xc43   : > { %v9333_v11 = vmul.f32 %v9309_v42, %v21611_v58  ;;  %v15228_v42 = vld [vmem:[%s18656_s14 + $0x3c] sm:$0xf0] }
 0xc44   : > { %11562 = vmatpush.bf16.msrb.mxu3 %v15995_v25  ;;  %11576 = vmatpush.bf16.msra.mxu0 %v16091_v48  ;;  %v16331_v25 = vor.u32 %v17336_v23, %v16330_v6  ;;  %v9393_v35 = vmul.f32 0.7978846, %v9369_v5  ;;  %v15372_v48 = vld [vmem:[%s18656_s14 + $0x15c] sm:$0xf0]  ;;  %v16294_v5 = vld [vmem:[%s18656_s14 + $0x888] sm:$0xf] }
 0xc45   : > { %v15375_v57 = vor.u32 %v17095_v34, %v15372_v48  ;;  %v9357_v38 = vmul.f32 0.044715, %v9333_v11  ;;  %v17059_v23 = vld [vmem:[%s18656_s14 + $0x34] sm:$0xf]  ;;  %v16295_v28 = vor.u32 %v17327_v47, %v16294_v5  ;;  %v16186_v48 = vld [vmem:[%s18656_s14 + $0x7b0] sm:$0xf] }
 0xc46   : > { %11600 = vmatpush.bf16.msrb.mxu2 %v16331_v25  ;;  %17624 = vtanh.f32 %v9393_v35  ;;  %v17086_v25 = vld [vmem:[%s18656_s14 + $0x10c] sm:$0xf]  ;;  %v17324_v11 = vld [vmem:[%s18656_s14 + $0x878] sm:$0xf0]  ;;  %v15231_v33 = vor.u32 %v17059_v23, %v15228_v42  ;;  %v15312_v5 = vld [vmem:[%s18656_s14 + $0xe4] sm:$0xf0] }
 0xc48   : > { %11563 = vmatpush.bf16.msrb.mxu3 %v15983_v10  ;;  %11577 = vmatpush.bf16.msra.mxu0 %v16079_v62  ;;  %v17309_v10 = vld [vmem:[%s18656_s14 + $0x800] sm:$0xf0]  ;;  %v17092_v62 = vld [vmem:[%s18656_s14 + $0x13c] sm:$0xf] }
 0xc49   : > { %v16223_v54 = vor.u32 %v17309_v10, %v16222_v29  ;;  %v15363_v15 = vor.u32 %v17092_v62, %v15360_v41  ;;  %v16282_v29 = vld [vmem:[%s18656_s14 + $0x870] sm:$0xf]  ;;  %v17083_v62 = vld [vmem:[%s18656_s14 + $0xf4] sm:$0xf]  ;;  %v15324_v41 = vld [vmem:[%s18656_s14 + $0xfc] sm:$0xf0] }
 0xc4a   : > { %11601 = vmatpush.bf16.msrb.mxu2 %v16319_v30  ;;  %v16283_v30 = vor.u32 %v17324_v11, %v16282_v29  ;;  %v15327_v8 = vor.u32 %v17083_v62, %v15324_v41  ;;  %v17146_v11 = vld [vmem:[%s18656_s14 + $0x2ec] sm:$0xf] }
 0xc4b   : > { %11587 = vmatpush.bf16.msra.mxu1 %v16223_v54 }
 0xc4c   : > { %11564 = vmatpush.bf16.msrb.mxu3 %v15971_v26  ;;  %11578 = vmatpush.bf16.msra.mxu0 %v16067_v13  ;;  %v9381_v26 = vadd.f32 %v9357_v38, %v21611_v58  ;;  %v17625_v3 = vpop.eup %17624  ;;  %v9172_v13 = vpop.f32.mrf.mxu2 }
 0xc4d   : > { %v9441_v34 = vadd.f32 1.0, %v17625_v3  ;;  %v9173_v10 = vadd.f32 %v9172_v13, %v7330_v37  ;;  %v9200_v54 = vpop.f32.mrf.mxu0  ;;  %v15204_v3 = vld [vmem:[%s18656_s14 + $0xc] sm:$0xf0]  ;;  %v16271_v13 = vor.u32 %v17321_v31, %v16270_v46  ;;  %v17143_v46 = vld [vmem:[%s18656_s14 + $0x2d4] sm:$0xf] }
 0xc4e   : > { %v9405_v16 = vmul.f32 0.7978846, %v9381_v26  ;;  %11602 = vmatpush.bf16.msrb.mxu2 %v16307_v39  ;;  %v16174_v26 = vld [vmem:[%s18656_s14 + $0x798] sm:$0xf] }
 0xc4f   : > { %11588 = vmatpush.bf16.msra.mxu1 %v16211_v18  ;;  %v9465_v0 = vmul.f32 0.5, %v9441_v34  ;;  %v17297_v18 = vld [vmem:[%s18656_s14 + $0x7a0] sm:$0xf0]  ;;  %v17294_v34 = vld [vmem:[%s18656_s14 + $0x788] sm:$0xf0] }
 0xc50   : > { %11613 = vmatpush.bf16.msra.mxu3 %v15291_v32  ;;  %11627 = vmatpush.bf16.msrb.mxu0 %v15387_v61  ;;  %v17062_v32 = vld [vmem:[%s18656_s14 + $0x4c] sm:$0xf]  ;;  %v16198_v61 = vld [vmem:[%s18656_s14 + $0x7c8] sm:$0xf]  ;;  %17626 = vtanh.f32 %v9405_v16  ;;  %v16175_v39 = vor.u32 %v17297_v18, %v16174_v26  ;;  %v17119_v18 = vld [vmem:[%s18656_s14 + $0x214] sm:$0xf] }
 0xc51   : > { %v16199_v6 = vor.u32 %v17303_v52, %v16198_v61  ;;  %v15243_v35 = vor.u32 %v17062_v32, %v15240_v40  ;;  %v17053_v32 = vld [vmem:[%s18656_s14 + $0x4] sm:$0xf]  ;;  %v17080_v40 = vld [vmem:[%s18656_s14 + $0xdc] sm:$0xf]  ;;  %v17170_v52 = vld [vmem:[%s18656_s14 + $0x3ac] sm:$0xf]  ;;  %v9489_v47 = vmul.f32 %v9465_v0, %v21584_v20 }
 0xc52   : > { %11603 = vmatpush.bf16.msrb.mxu2 %v16295_v28  ;;  %v9186_v27 = vpop.f32.mrf.mxu3  ;;  %v15315_v28 = vor.u32 %v17080_v40, %v15312_v5  ;;  %v17122_v20 = vld [vmem:[%s18656_s14 + $0x22c] sm:$0xf]  ;;  %v15207_v62 = vor.u32 %v17053_v32, %v15204_v3  ;;  %v15300_v0 = vld [vmem:[%s18656_s14 + $0xcc] sm:$0xf0]  ;;  %v15456_v5 = vld [vmem:[%s18656_s14 + $0x204] sm:$0xf0] }
 0xc53   : > { %11589 = vmatpush.bf16.msra.mxu1 %v16199_v6  ;;  %v15672_v6 = vld [vmem:[%s18656_s14 + $0x3b4] sm:$0xf0] }
 0xc54   : > { %11614 = vmatpush.bf16.msra.mxu3 %v15279_v24  ;;  %11628 = vmatpush.bf16.msrb.mxu0 %v15375_v57  ;;  %v15336_v24 = vld [vmem:[%s18656_s14 + $0x114] sm:$0xf0]  ;;  %v17300_v57 = vld [vmem:[%s18656_s14 + $0x7b8] sm:$0xf0] }
 0xc55   : > { %v15339_v4 = vor.u32 %v17086_v25, %v15336_v24  ;;  %v16187_v55 = vor.u32 %v17300_v57, %v16186_v48  ;;  %v16162_v25 = vld [vmem:[%s18656_s14 + $0x780] sm:$0xf]  ;;  %v17318_v48 = vld [vmem:[%s18656_s14 + $0x848] sm:$0xf0]  ;;  %v15480_v57 = vld [vmem:[%s18656_s14 + $0x234] sm:$0xf0] }
 0xc56   : > { %v17627_v38 = vpop.eup %17626  ;;  %11604 = vmatpush.bf16.msrb.mxu2 %v16283_v30 }
 0xc57   : > { %v9453_v14 = vadd.f32 1.0, %v17627_v38  ;;  %11590 = vmatpush.bf16.msra.mxu1 %v16187_v55  ;;  %v15483_v55 = vor.u32 %v17122_v20, %v15480_v57  ;;  %v17077_v38 = vld [vmem:[%s18656_s14 + $0xc4] sm:$0xf]  ;;  %v15444_v57 = vld [vmem:[%s18656_s14 + $0x1ec] sm:$0xf0] }
 0xc58   : > { %11615 = vmatpush.bf16.msra.mxu3 %v15267_v19  ;;  %11629 = vmatpush.bf16.msrb.mxu0 %v15363_v15  ;;  %v9187_v19 = vadd.f32 %v9186_v27, %v9173_v10  ;;  %v15216_v15 = vld [vmem:[%s18656_s14 + $0x24] sm:$0xf0]  ;;  %v21686_v27 = vpop.f32.mrf.mxu1  ;;  %v15303_v26 = vor.u32 %v17077_v38, %v15300_v0  ;;  %v17113_v20 = vld [vmem:[%s18656_s14 + $0x1e4] sm:$0xf]  ;;  %v15624_v38 = vld [vmem:[%s18656_s14 + $0x354] sm:$0xf0] }
 0xc59   : > { %v9477_v16 = vmul.f32 0.5, %v9453_v14  ;;  %v15219_v61 = vor.u32 %v17056_v12, %v15216_v15  ;;  %v17167_v12 = vld [vmem:[%s18656_s14 + $0x394] sm:$0xf]  ;;  %v15660_v15 = vld [vmem:[%s18656_s14 + $0x39c] sm:$0xf0] }
 0xc5a   : > { %v21659_v45 = vadd.f32 %v9200_v54, %v9187_v19  ;;  %11605 = vmatpush.bf16.msrb.mxu2 %v16271_v13  ;;  %v15576_v54 = vld [vmem:[%s18656_s14 + $0x2f4] sm:$0xf0]  ;;  %v9202_v19 = vpop.f32.mrf.mxu0  ;;  %v15663_v40 = vor.u32 %v17167_v12, %v15660_v15  ;;  %v17110_v12 = vld [vmem:[%s18656_s14 + $0x1cc] sm:$0xf] }
 0xc5b   : > { %v9501_v23 = vmul.f32 %v9477_v16, %v21611_v58  ;;  %11591 = vmatpush.bf16.msra.mxu1 %v16175_v39  ;;  %v9188_v58 = vpop.f32.mrf.mxu3  ;;  %v15579_v41 = vor.u32 %v17146_v11, %v15576_v54  ;;  %v15468_v39 = vld [vmem:[%s18656_s14 + $0x21c] sm:$0xf0]  ;;  %v15432_v15 = vld [vmem:[%s18656_s14 + $0x1d4] sm:$0xf0]  ;;  %v17134_v0 = vld [vmem:[%s18656_s14 + $0x28c] sm:$0xf] }
 0xc5c   : > { %11616 = vmatpush.bf16.msra.mxu3 %v15255_v50  ;;  %11630 = vmatpush.bf16.msrb.mxu0 %v15351_v9  ;;  %v9174_v50 = vpop.f32.mrf.mxu2  ;;  %v9298_v9 = vmul.f32 %v21659_v45, %v21659_v45  ;;  %v15471_v31 = vor.u32 %v17119_v18, %v15468_v39  ;;  %v15564_v16 = vld [vmem:[%s18656_s14 + $0x2dc] sm:$0xf0]  ;;  %v15528_v18 = vld [vmem:[%s18656_s14 + $0x294] sm:$0xf0] }
 0xc5d   : > { %v9175_v42 = vadd.f32 %v9174_v50, %v7330_v37  ;;  %v21682_v29 = vpack.c.bf16 %v9501_v23, %v9489_v47  ;;  %v15567_v13 = vor.u32 %v17143_v46, %v15564_v16  ;;  %v17140_v47 = vld [vmem:[%s18656_s14 + $0x2bc] sm:$0xf]  ;;  %v15531_v39 = vor.u32 %v17134_v0, %v15528_v18  ;;  %v17149_v0 = vld [vmem:[%s18656_s14 + $0x304] sm:$0xf] }
 0xc5e   : > { %v9322_v24 = vmul.f32 %v9298_v9, %v21659_v45  ;;  %v17164_v9 = vld [vmem:[%s18656_s14 + $0x37c] sm:$0xf] }
 0xc5f   : > { %v9189_v30 = vadd.f32 %v9188_v58, %v9175_v42  ;;  %11565 = vmatmul.bf16.vlgmr.msrb.gmra.mxu3 %v21682_v29  ;;  %v17161_v42 = vld [vmem:[%s18656_s14 + $0x364] sm:$0xf] }
 0xc60   : > { %11617 = vmatpush.bf16.msra.mxu3 %v15243_v35  ;;  %11631 = vmatpush.bf16.msrb.mxu0 %v15339_v4  ;;  %v16258_v35 = vld [vmem:[%s18656_s14 + $0x840] sm:$0xf]  ;;  %v16163_v4 = vor.u32 %v17294_v34, %v16162_v25  ;;  %v9346_v37 = vmul.f32 0.044715, %v9322_v24  ;;  %v15636_v24 = vld [vmem:[%s18656_s14 + $0x36c] sm:$0xf0] }
 0xc61   : > { %v16259_v10 = vor.u32 %v17318_v48, %v16258_v35  ;;  %v17137_v58 = vld [vmem:[%s18656_s14 + $0x2a4] sm:$0xf] }
 0xc62   : > { %v9370_v14 = vadd.f32 %v9346_v37, %v21659_v45  ;;  %11592 = vmatpush.bf16.msra.mxu1 %v16163_v4  ;;  %v21713_v4 = vpop.f32.mrf.mxu1  ;;  %v7331_v37 = vperm.slane %v21563_v44, 2 }
 0xc63   : > { %11606 = vmatpush.bf16.msrb.mxu2 %v16259_v10  ;;  %v15447_v10 = vor.u32 %v17113_v20, %v15444_v57  ;;  %v17194_v20 = vld [vmem:[%s18656_s14 + $0x46c] sm:$0xf] }
 0xc64   : > { %11618 = vmatpush.bf16.msra.mxu3 %v15231_v33  ;;  %11632 = vmatpush.bf16.msrb.mxu0 %v15327_v8  ;;  %v15675_v33 = vor.u32 %v17170_v52, %v15672_v6  ;;  %v21694_v8 = vadd.f32 %v9202_v19, %v9189_v30  ;;  %v9394_v50 = vmul.f32 0.7978846, %v9370_v14  ;;  %v21700_v32 = vpop.f32.mrf.mxu2  ;;  %v17116_v6 = vld [vmem:[%s18656_s14 + $0x1fc] sm:$0xf]  ;;  %v7332_v30 = vperm.slane %v21563_v44, 3 }
 0xc65   : > { %v15459_v23 = vor.u32 %v17116_v6, %v15456_v5  ;;  %v15516_v5 = vld [vmem:[%s18656_s14 + $0x27c] sm:$0xf0] }
 0xc66   : > { %11641 = vmatpush.bf16.msrb.mxu1 %v15483_v55  ;;  %v9310_v3 = vmul.f32 %v21694_v8, %v21694_v8  ;;  %17628 = vtanh.f32 %v9394_v50  ;;  %v15540_v55 = vld [vmem:[%s18656_s14 + $0x2ac] sm:$0xf0]  ;;  %v17155_v50 = vld [vmem:[%s18656_s14 + $0x334] sm:$0xf] }
 0xc67   : > { %11655 = vmatpush.bf16.msra.mxu2 %v15579_v41  ;;  %v15543_v54 = vor.u32 %v17137_v58, %v15540_v55  ;;  %v17158_v41 = vld [vmem:[%s18656_s14 + $0x34c] sm:$0xf]  ;;  %v17104_v55 = vld [vmem:[%s18656_s14 + $0x19c] sm:$0xf] }
 0xc68   : > { %11619 = vmatpush.bf16.msra.mxu3 %v15219_v61  ;;  %11633 = vmatpush.bf16.msrb.mxu0 %v15315_v28  ;;  %v15648_v61 = vld [vmem:[%s18656_s14 + $0x384] sm:$0xf0]  ;;  %v9334_v52 = vmul.f32 %v9310_v3, %v21694_v8  ;;  %v15627_v16 = vor.u32 %v17158_v41, %v15624_v38  ;;  %v15612_v3 = vld [vmem:[%s18656_s14 + $0x33c] sm:$0xf0]  ;;  %v17128_v38 = vld [vmem:[%s18656_s14 + $0x25c] sm:$0xf] }
 0xc69   : > { %v15552_v28 = vld [vmem:[%s18656_s14 + $0x2c4] sm:$0xf0]  ;;  %v15651_v35 = vor.u32 %v17164_v9, %v15648_v61  ;;  %v17107_v9 = vld [vmem:[%s18656_s14 + $0x1b4] sm:$0xf]  ;;  %v15420_v61 = vld [vmem:[%s18656_s14 + $0x1bc] sm:$0xf0] }
 0xc6a   : > { %11642 = vmatpush.bf16.msrb.mxu1 %v15471_v31  ;;  %v9358_v25 = vmul.f32 0.044715, %v9334_v52  ;;  %v15555_v34 = vor.u32 %v17140_v47, %v15552_v28  ;;  %v17131_v52 = vld [vmem:[%s18656_s14 + $0x274] sm:$0xf]  ;;  %v15423_v6 = vor.u32 %v17107_v9, %v15420_v61  ;;  %v17152_v28 = vld [vmem:[%s18656_s14 + $0x31c] sm:$0xf] }
 0xc6b   : > { %11656 = vmatpush.bf16.msra.mxu2 %v15567_v13  ;;  %v9215_v13 = vadd.f32 %v21686_v27, %v7331_v37  ;;  %v15519_v27 = vor.u32 %v17131_v52, %v15516_v5  ;;  %v17125_v9 = vld [vmem:[%s18656_s14 + $0x244] sm:$0xf]  ;;  %v15492_v61 = vld [vmem:[%s18656_s14 + $0x24c] sm:$0xf0]  ;;  %v17191_v5 = vld [vmem:[%s18656_s14 + $0x454] sm:$0xf] }
 0xc6c   : > { %11620 = vmatpush.bf16.msra.mxu3 %v15207_v62  ;;  %11634 = vmatpush.bf16.msrb.mxu0 %v15303_v26  ;;  %v9382_v48 = vadd.f32 %v9358_v25, %v21694_v8  ;;  %v15639_v62 = vor.u32 %v17161_v42, %v15636_v24  ;;  %v17629_v19 = vpop.eup %17628  ;;  %v9256_v14 = vpop.f32.mrf.mxu0  ;;  %v15435_v26 = vor.u32 %v17110_v12, %v15432_v15 }
 0xc6d   : > { %v9442_v46 = vadd.f32 1.0, %v17629_v19  ;;  %v9257_v31 = vadd.f32 %v9256_v14, %v7332_v30  ;;  %v15615_v24 = vor.u32 %v17155_v50, %v15612_v3  ;;  %v15504_v19 = vld [vmem:[%s18656_s14 + $0x264] sm:$0xf0]  ;;  %v15396_v50 = vld [vmem:[%s18656_s14 + $0x18c] sm:$0xf0]  ;;  %v9217_v3 = vadd.f32 %v21713_v4, %v7331_v37 }
 0xc6e   : > { %11643 = vmatpush.bf16.msrb.mxu1 %v15459_v23  ;;  %v9406_v11 = vmul.f32 0.7978846, %v9382_v48  ;;  %v9229_v23 = vadd.f32 %v21700_v32, %v9215_v13  ;;  %v15600_v48 = vld [vmem:[%s18656_s14 + $0x324] sm:$0xf0]  ;;  %v15507_v14 = vor.u32 %v17128_v38, %v15504_v19  ;;  %v17266_v13 = vld [vmem:[%s18656_s14 + $0x6ac] sm:$0xf] }
 0xc6f   : > { %11657 = vmatpush.bf16.msra.mxu2 %v15555_v34  ;;  %11621 = vmatmul.bf16.vlgmr.msra.gmra.mxu3 %v21399_v63  ;;  %v9466_v25 = vmul.f32 0.5, %v9442_v46  ;;  %v15603_v15 = vor.u32 %v17152_v28, %v15600_v48 }
 0xc70   : > { %11669 = vmatpush.bf16.msrb.mxu3 %v15675_v33  ;;  %17630 = vtanh.f32 %v9406_v11  ;;  %v21724_v33 = vpop.f32.mrf.mxu2  ;;  %v15408_v11 = vld [vmem:[%s18656_s14 + $0x1a4] sm:$0xf0] }
 0xc71   : > { %v15411_v41 = vor.u32 %v17104_v55, %v15408_v11  ;;  %v9231_v44 = vadd.f32 %v21724_v33, %v9217_v3  ;;  %v16044_v55 = vld [vmem:[%s18656_s14 + $0x69c] sm:$0xf0]  ;;  %v17188_v11 = vld [vmem:[%s18656_s14 + $0x43c] sm:$0xf] }
 0xc72   : > { %11644 = vmatpush.bf16.msrb.mxu1 %v15447_v10  ;;  %v9242_v42 = vpop.f32.mrf.mxu3  ;;  %v15768_v10 = vld [vmem:[%s18656_s14 + $0x474] sm:$0xf0] }
 0xc73   : > { %11658 = vmatpush.bf16.msra.mxu2 %v15543_v54  ;;  %v21746_v57 = vadd.f32 %v9242_v42, %v9229_v23  ;;  %v15495_v23 = vor.u32 %v17125_v9, %v15492_v61  ;;  %v17182_v9 = vld [vmem:[%s18656_s14 + $0x40c] sm:$0xf]  ;;  %v15720_v61 = vld [vmem:[%s18656_s14 + $0x414] sm:$0xf0] }
 0xc74   : > { %11670 = vmatpush.bf16.msrb.mxu3 %v15663_v40  ;;  %v9270_v40 = vpop.f32.mrf.mxu1 }
 0xc75   : > { %v9299_v12 = vmul.f32 %v21746_v57, %v21746_v57 }
 0xc76   : > { %11645 = vmatpush.bf16.msrb.mxu1 %v15435_v26  ;;  %v17631_v47 = vpop.eup %17630  ;;  %v9490_v26 = vmul.f32 %v9466_v25, %v21659_v45 }
 0xc77   : > { %11659 = vmatpush.bf16.msra.mxu2 %v15531_v39  ;;  %v9454_v34 = vadd.f32 1.0, %v17631_v47  ;;  %v9323_v45 = vmul.f32 %v9299_v12, %v21746_v57  ;;  %v15756_v47 = vld [vmem:[%s18656_s14 + $0x45c] sm:$0xf0] }
 0xc78   : > { %11671 = vmatpush.bf16.msrb.mxu3 %v15651_v35  ;;  %v9271_v35 = vadd.f32 %v9270_v40, %v9257_v31  ;;  %v9284_v58 = vpop.f32.mrf.mxu2  ;;  %v15588_v31 = vld [vmem:[%s18656_s14 + $0x30c] sm:$0xf0]  ;;  %v15759_v33 = vor.u32 %v17191_v5, %v15756_v47 }
 0xc79   : > { %v9478_v32 = vmul.f32 0.5, %v9454_v34  ;;  %v9347_v4 = vmul.f32 0.044715, %v9323_v45  ;;  %v15591_v34 = vor.u32 %v17149_v0, %v15588_v31 }
 0xc7a   : > { %v21751_v54 = vadd.f32 %v9284_v58, %v9271_v35  ;;  %11646 = vmatpush.bf16.msrb.mxu1 %v15423_v6  ;;  %v9244_v25 = vpop.f32.mrf.mxu3 }
 0xc7b   : > { %11660 = vmatpush.bf16.msra.mxu2 %v15519_v27  ;;  %v9502_v18 = vmul.f32 %v9478_v32, %v21694_v8  ;;  %v15771_v8 = vor.u32 %v17194_v20, %v15768_v10  ;;  %v9371_v35 = vadd.f32 %v9347_v4, %v21746_v57  ;;  %v21783_v42 = vadd.f32 %v9244_v25, %v9231_v44  ;;  %v17263_v20 = vld [vmem:[%s18656_s14 + $0x694] sm:$0xf]  ;;  %v15744_v32 = vld [vmem:[%s18656_s14 + $0x444] sm:$0xf0]  ;;  %v17254_v44 = vld [vmem:[%s18656_s14 + $0x64c] sm:$0xf] }
 0xc7c   : > { %11672 = vmatpush.bf16.msrb.mxu3 %v15639_v62  ;;  %v9258_v62 = vpop.f32.mrf.mxu0  ;;  %v9300_v39 = vmul.f32 %v21751_v54, %v21751_v54  ;;  %v9272_v37 = vpop.f32.mrf.mxu1  ;;  %v15747_v0 = vor.u32 %v17188_v11, %v15744_v32 }
 0xc7d   : > { %v9259_v46 = vadd.f32 %v9258_v62, %v7332_v30  ;;  %v21775_v6 = vpack.c.bf16 %v9502_v18, %v9490_v26  ;;  %v16056_v30 = vld [vmem:[%s18656_s14 + $0x6b4] sm:$0xf0]  ;;  %v9395_v62 = vmul.f32 0.7978846, %v9371_v35  ;;  %v16032_v18 = vld [vmem:[%s18656_s14 + $0x684] sm:$0xf0] }
 0xc7e   : > { %v9324_v52 = vmul.f32 %v9300_v39, %v21751_v54  ;;  %11647 = vmatpush.bf16.msrb.mxu1 %v15411_v41  ;;  %v16059_v48 = vor.u32 %v17266_v13, %v16056_v30  ;;  %v9311_v41 = vmul.f32 %v21783_v42, %v21783_v42  ;;  %v17185_v39 = vld [vmem:[%s18656_s14 + $0x424] sm:$0xf] }
 0xc7f   : > { %11661 = vmatpush.bf16.msra.mxu2 %v15507_v14  ;;  %v9273_v27 = vadd.f32 %v9272_v37, %v9259_v46  ;;  %11579 = vmatmul.bf16.vlgmr.msra.gmra.mxu0 %v21775_v6  ;;  %v17260_v14 = vld [vmem:[%s18656_s14 + $0x67c] sm:$0xf]  ;;  %v15732_v46 = vld [vmem:[%s18656_s14 + $0x42c] sm:$0xf0]  ;;  %17632 = vtanh.f32 %v9395_v62  ;;  %v16008_v37 = vld [vmem:[%s18656_s14 + $0x654] sm:$0xf0] }
 0xc80   : > { %11673 = vmatpush.bf16.msrb.mxu3 %v15627_v16  ;;  %v17101_v16 = vld [vmem:[%s18656_s14 + $0x184] sm:$0xf]  ;;  %v9348_v28 = vmul.f32 0.044715, %v9324_v52  ;;  %11683 = vmatpush.bf16.msra.mxu0 %v15771_v8  ;;  %v9335_v12 = vmul.f32 %v9311_v41, %v21783_v42  ;;  %v16035_v3 = vor.u32 %v17260_v14, %v16032_v18  ;;  %v15735_v45 = vor.u32 %v17185_v39, %v15732_v46  ;;  %v15960_v18 = vld [vmem:[%s18656_s14 + $0x5f4] sm:$0xf0] }
 0xc81   : > { %v15399_v40 = vor.u32 %v17101_v16, %v15396_v50  ;;  %v17257_v8 = vld [vmem:[%s18656_s14 + $0x664] sm:$0xf]  ;;  %v16011_v35 = vor.u32 %v17254_v44, %v16008_v37  ;;  %v17248_v46 = vld [vmem:[%s18656_s14 + $0x61c] sm:$0xf] }
 0xc82   : > { %v9372_v58 = vadd.f32 %v9348_v28, %v21751_v54  ;;  %v9359_v31 = vmul.f32 0.044715, %v9335_v12  ;;  %v17179_v28 = vld [vmem:[%s18656_s14 + $0x3f4] sm:$0xf]  ;;  %v17245_v44 = vld [vmem:[%s18656_s14 + $0x604] sm:$0xf] }
 0xc83   : > { %11648 = vmatpush.bf16.msrb.mxu1 %v15399_v40  ;;  %11662 = vmatpush.bf16.msra.mxu2 %v15495_v23  ;;  %v16020_v40 = vld [vmem:[%s18656_s14 + $0x66c] sm:$0xf0]  ;;  %v15723_v23 = vor.u32 %v17182_v9, %v15720_v61  ;;  %v17290_v9 = vld [vmem:[%s18656_s14 + $0x76c] sm:$0xf]  ;;  %v16152_v61 = vld [vmem:[%s18656_s14 + $0x774] sm:$0xf0] }
 0xc84   : > { %11674 = vmatpush.bf16.msrb.mxu3 %v15615_v24  ;;  %v9286_v24 = vpop.f32.mrf.mxu2  ;;  %v9396_v38 = vmul.f32 0.7978846, %v9372_v58  ;;  %11684 = vmatpush.bf16.msra.mxu0 %v15759_v33  ;;  %v9383_v50 = vadd.f32 %v9359_v31, %v21783_v42  ;;  %v16023_v47 = vor.u32 %v17257_v8, %v16020_v40  ;;  %v15996_v33 = vld [vmem:[%s18656_s14 + $0x63c] sm:$0xf0]  ;;  %v15696_v58 = vld [vmem:[%s18656_s14 + $0x3e4] sm:$0xf0]  ;;  %v16155_v37 = vor.u32 %v17290_v9, %v16152_v61 }
 0xc85   : > { %v21787_v10 = vadd.f32 %v9286_v24, %v9273_v27  ;;  %v17633_v5 = vpop.eup %17632  ;;  %v15708_v27 = vld [vmem:[%s18656_s14 + $0x3fc] sm:$0xf0]  ;;  %v15984_v31 = vld [vmem:[%s18656_s14 + $0x624] sm:$0xf0]  ;;  %v17230_v61 = vld [vmem:[%s18656_s14 + $0x58c] sm:$0xf] }
 0xc86   : > { %17634 = vtanh.f32 %v9396_v38  ;;  %v9407_v52 = vmul.f32 0.7978846, %v9383_v50  ;;  %v9443_v25 = vadd.f32 1.0, %v17633_v5  ;;  %v15711_v24 = vor.u32 %v17179_v28, %v15708_v27  ;;  %v15852_v5 = vld [vmem:[%s18656_s14 + $0x51c] sm:$0xf0] }
 0xc87   : > { %v9312_v19 = vmul.f32 %v21787_v10, %v21787_v10  ;;  %v15294_v28 = vld [vmem:[%s18656_s14 + $0xb0] sm:$0xf]  ;;  %v17076_v27 = vld [vmem:[%s18656_s14 + $0xb8] sm:$0xf0] }
 0xc88   : > { %11675 = vmatpush.bf16.msrb.mxu3 %v15603_v15  ;;  %v16047_v15 = vor.u32 %v17263_v20, %v16044_v55  ;;  %11685 = vmatpush.bf16.msra.mxu0 %v15747_v0  ;;  %17636 = vtanh.f32 %v9407_v52  ;;  %v17176_v20 = vld [vmem:[%s18656_s14 + $0x3dc] sm:$0xf]  ;;  %v9467_v32 = vmul.f32 0.5, %v9443_v25  ;;  %v15864_v0 = vld [vmem:[%s18656_s14 + $0x534] sm:$0xf0] }
 0xc89   : > { %v9336_v26 = vmul.f32 %v9312_v19, %v21787_v10  ;;  %v15699_v12 = vor.u32 %v17176_v20, %v15696_v58  ;;  %v15840_v20 = vld [vmem:[%s18656_s14 + $0x504] sm:$0xf0]  ;;  %v15295_v58 = vor.u32 %v17076_v27, %v15294_v28  ;;  %v17227_v27 = vld [vmem:[%s18656_s14 + $0x574] sm:$0xf] }
 0xc8b   : > { %v9360_v16 = vmul.f32 0.044715, %v9336_v26  ;;  %v17242_v26 = vld [vmem:[%s18656_s14 + $0x5ec] sm:$0xf] }
 0xc8c   : > { %11676 = vmatpush.bf16.msrb.mxu3 %v15591_v34  ;;  %11686 = vmatpush.bf16.msra.mxu0 %v15735_v45  ;;  %v17635_v4 = vpop.eup %17634  ;;  %v15684_v45 = vld [vmem:[%s18656_s14 + $0x3cc] sm:$0xf0]  ;;  %v15963_v52 = vor.u32 %v17242_v26, %v15960_v18  ;;  %v17233_v18 = vld [vmem:[%s18656_s14 + $0x5a4] sm:$0xf] }
 0xc8d   : > { %v9384_v13 = vadd.f32 %v9360_v16, %v21787_v10  ;;  %v9444_v34 = vadd.f32 1.0, %v17635_v4  ;;  %v9491_v16 = vmul.f32 %v9467_v32, %v21746_v57  ;;  %v15972_v4 = vld [vmem:[%s18656_s14 + $0x60c] sm:$0xf0] }
 0xc8e   : > { %v17637_v55 = vpop.eup %17636 }
 0xc8f   : > { %11677 = vmatmul.bf16.vlgmr.msrb.gmra.mxu3 %v21542_v60  ;;  %v9408_v30 = vmul.f32 0.7978846, %v9384_v13  ;;  %11635 = vmatmul.bf16.vlgmr.msrb.gmra.mxu0 %v21401_v59  ;;  %v9455_v62 = vadd.f32 1.0, %v17637_v55  ;;  %v9468_v41 = vmul.f32 0.5, %v9444_v34  ;;  %v17287_v34 = vld [vmem:[%s18656_s14 + $0x754] sm:$0xf] }
 0xc90   : > { %11725 = vmatpush.bf16.msra.mxu3 %v16059_v48  ;;  %11687 = vmatpush.bf16.msra.mxu0 %v15723_v23  ;;  %v17251_v48 = vld [vmem:[%s18656_s14 + $0x634] sm:$0xf]  ;;  %v15948_v23 = vld [vmem:[%s18656_s14 + $0x5dc] sm:$0xf0]  ;;  %v17236_v55 = vld [vmem:[%s18656_s14 + $0x5bc] sm:$0xf] }
 0xc91   : > { %17638 = vtanh.f32 %v9408_v30  ;;  %v15999_v19 = vor.u32 %v17251_v48, %v15996_v33  ;;  %v9479_v14 = vmul.f32 0.5, %v9455_v62  ;;  %v9492_v8 = vmul.f32 %v9468_v41, %v21751_v54  ;;  %v17215_v30 = vld [vmem:[%s18656_s14 + $0x514] sm:$0xf]  ;;  %v17212_v33 = vld [vmem:[%s18656_s14 + $0x4fc] sm:$0xf] }
 0xc92   : > { %v17239_v54 = vld [vmem:[%s18656_s14 + $0x5d4] sm:$0xf]  ;;  %v15855_v25 = vor.u32 %v17215_v30, %v15852_v5  ;;  %v15975_v48 = vor.u32 %v17245_v44, %v15972_v4  ;;  %v15282_v62 = vld [vmem:[%s18656_s14 + $0x98] sm:$0xf]  ;;  %v17073_v41 = vld [vmem:[%s18656_s14 + $0xa0] sm:$0xf0] }
 0xc93   : > { %v9503_v50 = vmul.f32 %v9479_v14, %v21783_v42  ;;  %v15987_v42 = vor.u32 %v17248_v46, %v15984_v31  ;;  %v15828_v14 = vld [vmem:[%s18656_s14 + $0x4ec] sm:$0xf0]  ;;  %v15283_v26 = vor.u32 %v17073_v41, %v15282_v62  ;;  %v15270_v31 = vld [vmem:[%s18656_s14 + $0x80] sm:$0xf]  ;;  %v15258_v30 = vld [vmem:[%s18656_s14 + $0x68] sm:$0xf] }
 0xc94   : > { %11726 = vmatpush.bf16.msra.mxu3 %v16047_v15  ;;  %11688 = vmatpush.bf16.msra.mxu0 %v15711_v24  ;;  %v17218_v15 = vld [vmem:[%s18656_s14 + $0x52c] sm:$0xf]  ;;  %v15951_v24 = vor.u32 %v17239_v54, %v15948_v23  ;;  %v17067_v5 = vld [vmem:[%s18656_s14 + $0x70] sm:$0xf0]  ;;  %v16104_v23 = vld [vmem:[%s18656_s14 + $0x714] sm:$0xf0] }
 0xc95   : > { %v15867_v40 = vor.u32 %v17218_v15, %v15864_v0  ;;  %v21832_v57 = vpack.c.bf16 %v9503_v50, %v9491_v16  ;;  %v17209_v0 = vld [vmem:[%s18656_s14 + $0x4e4] sm:$0xf]  ;;  %v17070_v16 = vld [vmem:[%s18656_s14 + $0x88] sm:$0xf0]  ;;  %v17203_v4 = vld [vmem:[%s18656_s14 + $0x4b4] sm:$0xf]  ;;  %v15259_v28 = vor.u32 %v17067_v5, %v15258_v30 }
 0xc96   : > { %v15831_v50 = vor.u32 %v17209_v0, %v15828_v14  ;;  %v15271_v9 = vor.u32 %v17070_v16, %v15270_v31  ;;  %v17224_v62 = vld [vmem:[%s18656_s14 + $0x55c] sm:$0xf]  ;;  %v15888_v41 = vld [vmem:[%s18656_s14 + $0x564] sm:$0xf0]  ;;  %v15876_v31 = vld [vmem:[%s18656_s14 + $0x54c] sm:$0xf0] }
 0xc97   : > { %v17639_v11 = vpop.eup %17638  ;;  %11593 = vmatmul.bf16.vlgmr.msra.gmra.mxu1 %v21832_v57  ;;  %v17272_v0 = vld [vmem:[%s18656_s14 + $0x6dc] sm:$0xf]  ;;  %v16080_v14 = vld [vmem:[%s18656_s14 + $0x6e4] sm:$0xf0] }
 0xc98   : > { %11727 = vmatpush.bf16.msra.mxu3 %v16035_v3  ;;  %v9456_v38 = vadd.f32 1.0, %v17639_v11  ;;  %v17173_v3 = vld [vmem:[%s18656_s14 + $0x3c4] sm:$0xf]  ;;  %11689 = vmatpush.bf16.msra.mxu0 %v15699_v12  ;;  %v15936_v11 = vld [vmem:[%s18656_s14 + $0x5c4] sm:$0xf0] }
 0xc99   : > { %11697 = vmatpush.bf16.msra.mxu1 %v15867_v40  ;;  %v16128_v12 = vld [vmem:[%s18656_s14 + $0x744] sm:$0xf0]  ;;  %v15939_v15 = vor.u32 %v17236_v55, %v15936_v11  ;;  %v15816_v40 = vld [vmem:[%s18656_s14 + $0x4d4] sm:$0xf0]  ;;  %v17200_v55 = vld [vmem:[%s18656_s14 + $0x49c] sm:$0xf] }
 0xc9a   : > { %v9480_v39 = vmul.f32 0.5, %v9456_v38  ;;  %v15843_v38 = vor.u32 %v17212_v33, %v15840_v20  ;;  %v17275_v33 = vld [vmem:[%s18656_s14 + $0x6f4] sm:$0xf]  ;;  %v16092_v20 = vld [vmem:[%s18656_s14 + $0x6fc] sm:$0xf0] }
 0xc9b   : > { %v15792_v11 = vld [vmem:[%s18656_s14 + $0x4a4] sm:$0xf0] }
 0xc9c   : > { %11728 = vmatpush.bf16.msra.mxu3 %v16023_v47  ;;  %v9504_v13 = vmul.f32 %v9480_v39, %v21787_v10  ;;  %v15687_v10 = vor.u32 %v17173_v3, %v15684_v45  ;;  %v15924_v39 = vld [vmem:[%s18656_s14 + $0x5ac] sm:$0xf0]  ;;  %v17281_v3 = vld [vmem:[%s18656_s14 + $0x724] sm:$0xf] }
 0xc9d   : > { %11698 = vmatpush.bf16.msra.mxu1 %v15855_v25  ;;  %v16116_v45 = vld [vmem:[%s18656_s14 + $0x72c] sm:$0xf0]  ;;  %v15900_v25 = vld [vmem:[%s18656_s14 + $0x57c] sm:$0xf0] }
 0xc9e   : > { %v21837_v47 = vpack.c.bf16 %v9504_v13, %v9492_v8  ;;  %11690 = vmatpush.bf16.msra.mxu0 %v15687_v10  ;;  %v15927_v8 = vor.u32 %v17233_v18, %v15924_v39  ;;  %v17206_v13 = vld [vmem:[%s18656_s14 + $0x4cc] sm:$0xf]  ;;  %v15891_v18 = vor.u32 %v17224_v62, %v15888_v41  ;;  %v15780_v39 = vld [vmem:[%s18656_s14 + $0x48c] sm:$0xf0]  ;;  %v16224_v62 = vld [vmem:[%s18656_s14 + $0x804] sm:$0xf0] }
 0xc9f   : > { %v15819_v54 = vor.u32 %v17206_v13, %v15816_v40  ;;  %v17278_v10 = vld [vmem:[%s18656_s14 + $0x70c] sm:$0xf]  ;;  %v16344_v13 = vld [vmem:[%s18656_s14 + $0x8f4] sm:$0xf0]  ;;  %v15222_v40 = vld [vmem:[%s18656_s14 + $0x20] sm:$0xf] }
 0xca0   : > { %11729 = vmatpush.bf16.msra.mxu3 %v16011_v35  ;;  %11607 = vmatmul.bf16.vlgmr.msrb.gmra.mxu2 %v21837_v47  ;;  %v16140_v35 = vld [vmem:[%s18656_s14 + $0x75c] sm:$0xf0] }
 0xca1   : > { %11711 = vmatpush.bf16.msrb.mxu2 %v15963_v52  ;;  %v16143_v32 = vor.u32 %v17287_v34, %v16140_v35  ;;  %11691 = vmatmul.bf16.vlgmr.msra.gmra.mxu0 %v21548_v17  ;;  %v15912_v52 = vld [vmem:[%s18656_s14 + $0x594] sm:$0xf0]  ;;  %v16107_v34 = vor.u32 %v17278_v10, %v16104_v23  ;;  %v15246_v35 = vld [vmem:[%s18656_s14 + $0x50] sm:$0xf]  ;;  %v17100_v10 = vld [vmem:[%s18656_s14 + $0x178] sm:$0xf0] }
 0xca2   : > { %11739 = vmatpush.bf16.msrb.mxu0 %v16155_v37  ;;  %11699 = vmatpush.bf16.msra.mxu1 %v15843_v38  ;;  %v15915_v44 = vor.u32 %v17230_v61, %v15912_v52  ;;  %v15804_v37 = vld [vmem:[%s18656_s14 + $0x4bc] sm:$0xf0]  ;;  %v16095_v38 = vor.u32 %v17275_v33, %v16092_v20  ;;  %v17269_v52 = vld [vmem:[%s18656_s14 + $0x6c4] sm:$0xf]  ;;  %v17172_v20 = vld [vmem:[%s18656_s14 + $0x3b8] sm:$0xf0] }
 0xca4   : > { %11730 = vmatpush.bf16.msra.mxu3 %v15999_v19  ;;  %v17284_v19 = vld [vmem:[%s18656_s14 + $0x73c] sm:$0xf] }
 0xca5   : > { %11712 = vmatpush.bf16.msrb.mxu2 %v15951_v24  ;;  %v16131_v46 = vor.u32 %v17284_v19, %v16128_v12  ;;  %v17064_v24 = vld [vmem:[%s18656_s14 + $0x58] sm:$0xf0]  ;;  %v15234_v19 = vld [vmem:[%s18656_s14 + $0x38] sm:$0xf]  ;;  %v17061_v12 = vld [vmem:[%s18656_s14 + $0x40] sm:$0xf0] }
 0xca6   : > { %11740 = vmatpush.bf16.msrb.mxu0 %v16143_v32  ;;  %11700 = vmatpush.bf16.msra.mxu1 %v15831_v50  ;;  %v15247_v32 = vor.u32 %v17064_v24, %v15246_v35  ;;  %v15235_v16 = vor.u32 %v17061_v12, %v15234_v19  ;;  %v17314_v50 = vld [vmem:[%s18656_s14 + $0x82c] sm:$0xf]  ;;  %v15210_v35 = vld [vmem:[%s18656_s14 + $0x8] sm:$0xf]  ;;  %v17055_v24 = vld [vmem:[%s18656_s14 + $0x10] sm:$0xf0] }
 0xca7   : > { %11649 = vmatmul.bf16.vlgmr.msrb.gmra.mxu1 %v21408_v49  ;;  %v15211_v41 = vor.u32 %v17055_v24, %v15210_v35  ;;  %v16320_v19 = vld [vmem:[%s18656_s14 + $0x8c4] sm:$0xf0]  ;;  %v16188_v35 = vld [vmem:[%s18656_s14 + $0x7bc] sm:$0xf0]  ;;  %v17323_v24 = vld [vmem:[%s18656_s14 + $0x874] sm:$0xf] }
 0xca8   : > { %11731 = vmatpush.bf16.msra.mxu3 %v15987_v42  ;;  %v16119_v42 = vor.u32 %v17281_v3, %v16116_v45  ;;  %v16248_v3 = vld [vmem:[%s18656_s14 + $0x834] sm:$0xf0]  ;;  %v17338_v45 = vld [vmem:[%s18656_s14 + $0x8ec] sm:$0xf] }
 0xca9   : > { %11713 = vmatpush.bf16.msrb.mxu2 %v15939_v15  ;;  %v15795_v15 = vor.u32 %v17200_v55, %v15792_v11  ;;  %v16251_v5 = vor.u32 %v17314_v50, %v16248_v3  ;;  %v16347_v23 = vor.u32 %v17338_v45, %v16344_v13  ;;  %v17097_v55 = vld [vmem:[%s18656_s14 + $0x160] sm:$0xf0]  ;;  %v16308_v3 = vld [vmem:[%s18656_s14 + $0x8ac] sm:$0xf0]  ;;  %v15654_v13 = vld [vmem:[%s18656_s14 + $0x380] sm:$0xf] }
 0xcaa   : > { %11741 = vmatpush.bf16.msrb.mxu0 %v16131_v46  ;;  %11701 = vmatpush.bf16.msra.mxu1 %v15819_v54  ;;  %v17221_v46 = vld [vmem:[%s18656_s14 + $0x544] sm:$0xf]  ;;  %v15390_v54 = vld [vmem:[%s18656_s14 + $0x170] sm:$0xf] }
 0xcab   : > { %v15879_v30 = vor.u32 %v17221_v46, %v15876_v31  ;;  %v17305_v31 = vld [vmem:[%s18656_s14 + $0x7e4] sm:$0xf] }
 0xcac   : > { %11732 = vmatpush.bf16.msra.mxu3 %v15975_v48  ;;  %v15807_v48 = vor.u32 %v17203_v4, %v15804_v37  ;;  %v17311_v4 = vld [vmem:[%s18656_s14 + $0x814] sm:$0xf]  ;;  %v16236_v37 = vld [vmem:[%s18656_s14 + $0x81c] sm:$0xf0]  ;;  %v17329_v50 = vld [vmem:[%s18656_s14 + $0x8a4] sm:$0xf] }
 0xcad   : > { %11714 = vmatpush.bf16.msrb.mxu2 %v15927_v8  ;;  %v16083_v8 = vor.u32 %v17272_v0, %v16080_v14  ;;  %v16239_v33 = vor.u32 %v17311_v4, %v16236_v37  ;;  %v15666_v0 = vld [vmem:[%s18656_s14 + $0x398] sm:$0xf]  ;;  %v15642_v4 = vld [vmem:[%s18656_s14 + $0x368] sm:$0xf] }
 0xcae   : > { %11742 = vmatpush.bf16.msrb.mxu0 %v16119_v42  ;;  %11702 = vmatpush.bf16.msra.mxu1 %v15807_v48  ;;  %v16068_v42 = vld [vmem:[%s18656_s14 + $0x6cc] sm:$0xf0] }
 0xcaf   : > { %11733 = vmatmul.bf16.vlgmr.msra.gmra.mxu3 %v21682_v29  ;;  %v15678_v48 = vld [vmem:[%s18656_s14 + $0x3b0] sm:$0xf] }
 0xcb0   : > { %11781 = vmatpush.bf16.msrb.mxu3 %v15295_v58  ;;  %11663 = vmatmul.bf16.vlgmr.msra.gmra.mxu2 %v21413_v56  ;;  %v15903_v58 = vor.u32 %v17227_v27, %v15900_v25  ;;  %v17335_v27 = vld [vmem:[%s18656_s14 + $0x8d4] sm:$0xf]  ;;  %v16332_v25 = vld [vmem:[%s18656_s14 + $0x8dc] sm:$0xf0]  ;;  %v15679_v12 = vor.u32 %v17172_v20, %v15678_v48 }
 0xcb1   : > { %11715 = vmatpush.bf16.msrb.mxu2 %v15915_v44  ;;  %v16335_v11 = vor.u32 %v17335_v27, %v16332_v25  ;;  %v17088_v27 = vld [vmem:[%s18656_s14 + $0x118] sm:$0xf0]  ;;  %v16284_v48 = vld [vmem:[%s18656_s14 + $0x87c] sm:$0xf0] }
 0xcb2   : > { %11743 = vmatpush.bf16.msrb.mxu0 %v16107_v34  ;;  %11703 = vmatpush.bf16.msra.mxu1 %v15795_v15  ;;  %v15391_v34 = vor.u32 %v17100_v10, %v15390_v54  ;;  %v17326_v54 = vld [vmem:[%s18656_s14 + $0x88c] sm:$0xf]  ;;  %v16296_v10 = vld [vmem:[%s18656_s14 + $0x894] sm:$0xf0] }
 0xcb3   : > { %v16299_v25 = vor.u32 %v17326_v54, %v16296_v10  ;;  %v17154_v54 = vld [vmem:[%s18656_s14 + $0x328] sm:$0xf0]  ;;  %v15306_v10 = vld [vmem:[%s18656_s14 + $0xc8] sm:$0xf] }
 0xcb4   : > { %11782 = vmatpush.bf16.msrb.mxu3 %v15283_v26  ;;  %v17197_v26 = vld [vmem:[%s18656_s14 + $0x484] sm:$0xf] }
 0xcb5   : > { %11716 = vmatpush.bf16.msrb.mxu2 %v15903_v58  ;;  %v15783_v61 = vor.u32 %v17197_v26, %v15780_v39  ;;  %v15378_v58 = vld [vmem:[%s18656_s14 + $0x158] sm:$0xf]  ;;  %v17169_v26 = vld [vmem:[%s18656_s14 + $0x3a0] sm:$0xf0]  ;;  %v17094_v39 = vld [vmem:[%s18656_s14 + $0x148] sm:$0xf0] }
 0xcb6   : > { %11744 = vmatpush.bf16.msrb.mxu0 %v16095_v38  ;;  %v17332_v38 = vld [vmem:[%s18656_s14 + $0x8bc] sm:$0xf]  ;;  %v15379_v15 = vor.u32 %v17097_v55, %v15378_v58  ;;  %v15667_v45 = vor.u32 %v17169_v26, %v15666_v0  ;;  %v15630_v58 = vld [vmem:[%s18656_s14 + $0x350] sm:$0xf]  ;;  %v15618_v26 = vld [vmem:[%s18656_s14 + $0x338] sm:$0xf] }
 0xcb7   : > { %11704 = vmatpush.bf16.msra.mxu1 %v15783_v61  ;;  %v16323_v46 = vor.u32 %v17332_v38, %v16320_v19  ;;  %v15354_v61 = vld [vmem:[%s18656_s14 + $0x128] sm:$0xf]  ;;  %v17296_v38 = vld [vmem:[%s18656_s14 + $0x79c] sm:$0xf] }
 0xcb8   : > { %11783 = vmatpush.bf16.msrb.mxu3 %v15271_v9  ;;  %v17058_v9 = vld [vmem:[%s18656_s14 + $0x28] sm:$0xf0]  ;;  %v16176_v19 = vld [vmem:[%s18656_s14 + $0x7a4] sm:$0xf0] }
 0xcb9   : > { %11717 = vmatpush.bf16.msrb.mxu2 %v15891_v18  ;;  %v15223_v44 = vor.u32 %v17058_v9, %v15222_v40  ;;  %v15366_v18 = vld [vmem:[%s18656_s14 + $0x140] sm:$0xf]  ;;  %v17166_v9 = vld [vmem:[%s18656_s14 + $0x388] sm:$0xf0] }
 0xcba   : > { %11745 = vmatpush.bf16.msrb.mxu0 %v16083_v8  ;;  %11705 = vmatmul.bf16.vlgmr.msra.gmra.mxu1 %v21580_v53  ;;  %v15367_v8 = vor.u32 %v17094_v39, %v15366_v18  ;;  %v16179_v18 = vor.u32 %v17296_v38, %v16176_v19  ;;  %v17157_v39 = vld [vmem:[%s18656_s14 + $0x340] sm:$0xf0]  ;;  %v15462_v19 = vld [vmem:[%s18656_s14 + $0x200] sm:$0xf] }
 0xcbb   : > { %11753 = vmatpush.bf16.msrb.mxu1 %v16251_v5  ;;  %v16200_v5 = vld [vmem:[%s18656_s14 + $0x7d4] sm:$0xf0]  ;;  %v17193_v38 = vld [vmem:[%s18656_s14 + $0x460] sm:$0xf0] }
 0xcbc   : > { %11784 = vmatpush.bf16.msrb.mxu3 %v15259_v28  ;;  %v16071_v28 = vor.u32 %v17269_v52, %v16068_v42  ;;  %v17091_v52 = vld [vmem:[%s18656_s14 + $0x130] sm:$0xf0]  ;;  %v16311_v42 = vor.u32 %v17329_v50, %v16308_v3  ;;  %v17293_v50 = vld [vmem:[%s18656_s14 + $0x784] sm:$0xf]  ;;  %v16164_v3 = vld [vmem:[%s18656_s14 + $0x78c] sm:$0xf0] }
 0xcbd   : > { %11718 = vmatpush.bf16.msrb.mxu2 %v15879_v30  ;;  %v17302_v30 = vld [vmem:[%s18656_s14 + $0x7cc] sm:$0xf] }
 0xcbe   : > { %11746 = vmatpush.bf16.msrb.mxu0 %v16071_v28  ;;  %v16203_v37 = vor.u32 %v17302_v30, %v16200_v5  ;;  %v15342_v28 = vld [vmem:[%s18656_s14 + $0x110] sm:$0xf]  ;;  %v15606_v30 = vld [vmem:[%s18656_s14 + $0x320] sm:$0xf]  ;;  %v16167_v5 = vor.u32 %v17293_v50, %v16164_v3  ;;  %v17190_v3 = vld [vmem:[%s18656_s14 + $0x448] sm:$0xf0] }
 0xcbf   : > { %11754 = vmatpush.bf16.msrb.mxu1 %v16239_v33  ;;  %v15343_v20 = vor.u32 %v17088_v27, %v15342_v28  ;;  %v17196_v28 = vld [vmem:[%s18656_s14 + $0x478] sm:$0xf0]  ;;  %v15474_v27 = vld [vmem:[%s18656_s14 + $0x218] sm:$0xf] }
 0xcc0   : > { %11785 = vmatpush.bf16.msrb.mxu3 %v15247_v32  ;;  %v17308_v32 = vld [vmem:[%s18656_s14 + $0x7fc] sm:$0xf]  ;;  %11719 = vmatmul.bf16.vlgmr.msrb.gmra.mxu2 %v21582_v36 }
 0xcc1   : > { %11767 = vmatpush.bf16.msra.mxu2 %v16347_v23  ;;  %v16227_v14 = vor.u32 %v17308_v32, %v16224_v62  ;;  %11747 = vmatmul.bf16.vlgmr.msrb.gmra.mxu0 %v21775_v6  ;;  %v15655_v23 = vor.u32 %v17166_v9, %v15654_v13  ;;  %v15330_v32 = vld [vmem:[%s18656_s14 + $0xf8] sm:$0xf]  ;;  %v17085_v62 = vld [vmem:[%s18656_s14 + $0x100] sm:$0xf0]  ;;  %v15486_v13 = vld [vmem:[%s18656_s14 + $0x230] sm:$0xf]  ;;  %v15619_v9 = vor.u32 %v17157_v39, %v15618_v26 }
 0xcc2   : > { %11795 = vmatpush.bf16.msra.mxu0 %v15391_v34  ;;  %v17299_v34 = vld [vmem:[%s18656_s14 + $0x7b4] sm:$0xf] }
 0xcc3   : > { %11755 = vmatpush.bf16.msrb.mxu1 %v16227_v14  ;;  %v16191_v55 = vor.u32 %v17299_v34, %v16188_v35  ;;  %v15331_v14 = vor.u32 %v17085_v62, %v15330_v32  ;;  %v15607_v34 = vor.u32 %v17154_v54, %v15606_v30  ;;  %v17268_v32 = vld [vmem:[%s18656_s14 + $0x6b8] sm:$0xf0]  ;;  %v15762_v62 = vld [vmem:[%s18656_s14 + $0x458] sm:$0xf]  ;;  %v15738_v30 = vld [vmem:[%s18656_s14 + $0x428] sm:$0xf] }
 0xcc4   : > { %11786 = vmatpush.bf16.msrb.mxu3 %v15235_v16  ;;  %v16212_v16 = vld [vmem:[%s18656_s14 + $0x7ec] sm:$0xf0]  ;;  %v17187_v54 = vld [vmem:[%s18656_s14 + $0x430] sm:$0xf0] }
 0xcc5   : > { %11768 = vmatpush.bf16.msra.mxu2 %v16335_v11  ;;  %v16215_v40 = vor.u32 %v17305_v31, %v16212_v16  ;;  %v17160_v11 = vld [vmem:[%s18656_s14 + $0x358] sm:$0xf0]  ;;  %v17082_v31 = vld [vmem:[%s18656_s14 + $0xe8] sm:$0xf0] }
 0xcc6   : > { %11796 = vmatpush.bf16.msra.mxu0 %v15379_v15  ;;  %v16272_v15 = vld [vmem:[%s18656_s14 + $0x864] sm:$0xf0]  ;;  %v15631_v0 = vor.u32 %v17160_v11, %v15630_v58  ;;  %v16062_v11 = vld [vmem:[%s18656_s14 + $0x6b0] sm:$0xf] }
 0xcc7   : > { %11756 = vmatpush.bf16.msrb.mxu1 %v16215_v40  ;;  %v17124_v40 = vld [vmem:[%s18656_s14 + $0x238] sm:$0xf0]  ;;  %v16063_v26 = vor.u32 %v17268_v32, %v16062_v11  ;;  %v16014_v32 = vld [vmem:[%s18656_s14 + $0x650] sm:$0xf] }
 0xcc8   : > { %11787 = vmatpush.bf16.msrb.mxu3 %v15223_v44  ;;  %v15355_v44 = vor.u32 %v17091_v52, %v15354_v61  ;;  %v15582_v52 = vld [vmem:[%s18656_s14 + $0x2f0] sm:$0xf] }
 0xcc9   : > { %11769 = vmatpush.bf16.msra.mxu2 %v16323_v46  ;;  %v15318_v46 = vld [vmem:[%s18656_s14 + $0xe0] sm:$0xf] }
 0xcca   : > { %11797 = vmatpush.bf16.msra.mxu0 %v15367_v8  ;;  %v16260_v8 = vld [vmem:[%s18656_s14 + $0x84c] sm:$0xf0]  ;;  %v15319_v61 = vor.u32 %v17082_v31, %v15318_v46  ;;  %v16050_v46 = vld [vmem:[%s18656_s14 + $0x698] sm:$0xf]  ;;  %v17265_v31 = vld [vmem:[%s18656_s14 + $0x6a0] sm:$0xf0] }
 0xccb   : > { %11757 = vmatpush.bf16.msrb.mxu1 %v16203_v37  ;;  %v15774_v37 = vld [vmem:[%s18656_s14 + $0x470] sm:$0xf] }
 0xccc   : > { %11788 = vmatpush.bf16.msrb.mxu3 %v15211_v41  ;;  %v16287_v41 = vor.u32 %v17323_v24, %v16284_v48  ;;  %v15570_v24 = vld [vmem:[%s18656_s14 + $0x2d8] sm:$0xf]  ;;  %v17145_v48 = vld [vmem:[%s18656_s14 + $0x2e0] sm:$0xf0]  ;;  %v15775_v58 = vor.u32 %v17196_v28, %v15774_v37 }
 0xccd   : > { %11770 = vmatpush.bf16.msra.mxu2 %v16311_v42  ;;  %v17148_v42 = vld [vmem:[%s18656_s14 + $0x2f8] sm:$0xf0] }
 0xcce   : > { %11798 = vmatpush.bf16.msra.mxu0 %v15355_v44 }
 0xccf   : > { %11789 = vmatmul.bf16.vlgmr.msrb.gmra.mxu3 %v21399_v63  ;;  %v17163_v63 = vld [vmem:[%s18656_s14 + $0x370] sm:$0xf0]  ;;  %11758 = vmatpush.bf16.msrb.mxu1 %v16191_v55 }
 0xcd0   : > { %11837 = vmatpush.bf16.msra.mxu3 %v15679_v12  ;;  %v15643_v33 = vor.u32 %v17163_v63, %v15642_v4  ;;  %v17320_v12 = vld [vmem:[%s18656_s14 + $0x85c] sm:$0xf]  ;;  %v15487_v4 = vor.u32 %v17124_v40, %v15486_v13  ;;  %v15583_v63 = vor.u32 %v17148_v42, %v15582_v52  ;;  %v15546_v13 = vld [vmem:[%s18656_s14 + $0x2a8] sm:$0xf]  ;;  %v17139_v40 = vld [vmem:[%s18656_s14 + $0x2b0] sm:$0xf0] }
 0xcd1   : > { %11771 = vmatpush.bf16.msra.mxu2 %v16299_v25  ;;  %v16275_v16 = vor.u32 %v17320_v12, %v16272_v15  ;;  %v17121_v25 = vld [vmem:[%s18656_s14 + $0x220] sm:$0xf0]  ;;  %v17118_v12 = vld [vmem:[%s18656_s14 + $0x208] sm:$0xf0]  ;;  %v16038_v52 = vld [vmem:[%s18656_s14 + $0x680] sm:$0xf] }
 0xcd2   : > { %11799 = vmatpush.bf16.msra.mxu0 %v15343_v20  ;;  %v17151_v20 = vld [vmem:[%s18656_s14 + $0x310] sm:$0xf0]  ;;  %v15475_v55 = vor.u32 %v17121_v25, %v15474_v27  ;;  %v15463_v39 = vor.u32 %v17118_v12, %v15462_v19  ;;  %v17262_v42 = vld [vmem:[%s18656_s14 + $0x688] sm:$0xf0]  ;;  %v15726_v25 = vld [vmem:[%s18656_s14 + $0x410] sm:$0xf] }
 0xcd3   : > { %11759 = vmatpush.bf16.msrb.mxu1 %v16179_v18  ;;  %v15763_v18 = vor.u32 %v17193_v38, %v15762_v62  ;;  %v16039_v37 = vor.u32 %v17262_v42, %v16038_v52  ;;  %v17259_v27 = vld [vmem:[%s18656_s14 + $0x670] sm:$0xf0]  ;;  %v17256_v62 = vld [vmem:[%s18656_s14 + $0x658] sm:$0xf0]  ;;  %v17181_v19 = vld [vmem:[%s18656_s14 + $0x400] sm:$0xf0] }
 0xcd4   : > { %11838 = vmatpush.bf16.msra.mxu3 %v15667_v45  ;;  %v17317_v45 = vld [vmem:[%s18656_s14 + $0x844] sm:$0xf]  ;;  %v15414_v12 = vld [vmem:[%s18656_s14 + $0x1a0] sm:$0xf]  ;;  %v15966_v52 = vld [vmem:[%s18656_s14 + $0x5f0] sm:$0xf] }
 0xcd5   : > { %11772 = vmatpush.bf16.msra.mxu2 %v16287_v41  ;;  %v16263_v44 = vor.u32 %v17317_v45, %v16260_v8  ;;  %v15571_v41 = vor.u32 %v17145_v48, %v15570_v24  ;;  %v15450_v45 = vld [vmem:[%s18656_s14 + $0x1e8] sm:$0xf]  ;;  %v17115_v8 = vld [vmem:[%s18656_s14 + $0x1f0] sm:$0xf0]  ;;  %v15426_v24 = vld [vmem:[%s18656_s14 + $0x1b8] sm:$0xf] }
 0xcd6   : > { %11800 = vmatpush.bf16.msra.mxu0 %v15331_v14  ;;  %v17142_v14 = vld [vmem:[%s18656_s14 + $0x2c8] sm:$0xf0]  ;;  %v17109_v48 = vld [vmem:[%s18656_s14 + $0x1c0] sm:$0xf0]  ;;  %v17244_v42 = vld [vmem:[%s18656_s14 + $0x5f8] sm:$0xf0] }
 0xcd7   : > { %11760 = vmatpush.bf16.msrb.mxu1 %v16167_v5  ;;  %v15547_v5 = vor.u32 %v17139_v40, %v15546_v13  ;;  %v15427_v11 = vor.u32 %v17109_v48, %v15426_v24  ;;  %v15498_v13 = vld [vmem:[%s18656_s14 + $0x248] sm:$0xf]  ;;  %v17127_v40 = vld [vmem:[%s18656_s14 + $0x250] sm:$0xf0]  ;;  %v17241_v24 = vld [vmem:[%s18656_s14 + $0x5e0] sm:$0xf0]  ;;  %v22046_v48 = vpop.f32.mrf.mxu3 }
 0xcd8   : > { %11839 = vmatpush.bf16.msra.mxu3 %v15655_v23  ;;  %v17079_v23 = vld [vmem:[%s18656_s14 + $0xd0] sm:$0xf0] }
 0xcd9   : > { %11773 = vmatpush.bf16.msra.mxu2 %v16275_v16  ;;  %v15307_v35 = vor.u32 %v17079_v23, %v15306_v10  ;;  %v15750_v16 = vld [vmem:[%s18656_s14 + $0x440] sm:$0xf]  ;;  %v15438_v10 = vld [vmem:[%s18656_s14 + $0x1d0] sm:$0xf]  ;;  %v17112_v23 = vld [vmem:[%s18656_s14 + $0x1d8] sm:$0xf0] }
 0xcda   : > { %11801 = vmatpush.bf16.msra.mxu0 %v15319_v61  ;;  %11761 = vmatmul.bf16.vlgmr.msrb.gmra.mxu1 %v21832_v57  ;;  %v15451_v61 = vor.u32 %v17115_v8, %v15450_v45  ;;  %v15439_v28 = vor.u32 %v17112_v23, %v15438_v10  ;;  %v15402_v45 = vld [vmem:[%s18656_s14 + $0x188] sm:$0xf]  ;;  %v17103_v8 = vld [vmem:[%s18656_s14 + $0x190] sm:$0xf0]  ;;  %v17250_v10 = vld [vmem:[%s18656_s14 + $0x628] sm:$0xf0]  ;;  %v15499_v23 = vor.u32 %v17127_v40, %v15498_v13 }
 0xcdb   : > { %11809 = vmatpush.bf16.msra.mxu1 %v15487_v4  ;;  %v17136_v4 = vld [vmem:[%s18656_s14 + $0x298] sm:$0xf0] }
 0xcdc   : > { %11840 = vmatpush.bf16.msra.mxu3 %v15643_v33  ;;  %v15594_v33 = vld [vmem:[%s18656_s14 + $0x308] sm:$0xf] }
 0xcdd   : > { %11774 = vmatpush.bf16.msra.mxu2 %v16263_v44  ;;  %v15595_v15 = vor.u32 %v17151_v20, %v15594_v33  ;;  %v15534_v44 = vld [vmem:[%s18656_s14 + $0x290] sm:$0xf]  ;;  %v15522_v33 = vld [vmem:[%s18656_s14 + $0x278] sm:$0xf]  ;;  %v17133_v20 = vld [vmem:[%s18656_s14 + $0x280] sm:$0xf0] }
 0xcde   : > { %11802 = vmatpush.bf16.msra.mxu0 %v15307_v35  ;;  %v17184_v35 = vld [vmem:[%s18656_s14 + $0x418] sm:$0xf0]  ;;  %v15523_v38 = vor.u32 %v17133_v20, %v15522_v33  ;;  %v15978_v20 = vld [vmem:[%s18656_s14 + $0x608] sm:$0xf] }
 0xcdf   : > { %11810 = vmatpush.bf16.msra.mxu1 %v15475_v55  ;;  %v15727_v55 = vor.u32 %v17184_v35, %v15726_v25  ;;  %v17217_v25 = vld [vmem:[%s18656_s14 + $0x520] sm:$0xf0]  ;;  %v15954_v35 = vld [vmem:[%s18656_s14 + $0x5d8] sm:$0xf] }
 0xce0   : > { %11841 = vmatpush.bf16.msra.mxu3 %v15631_v0  ;;  %v15558_v0 = vld [vmem:[%s18656_s14 + $0x2c0] sm:$0xf]  ;;  %11775 = vmatmul.bf16.vlgmr.msra.gmra.mxu2 %v21837_v47 }
 0xce1   : > { %11823 = vmatpush.bf16.msrb.mxu2 %v15583_v63  ;;  %11803 = vmatmul.bf16.vlgmr.msra.gmra.mxu0 %v21401_v59  ;;  %v15559_v50 = vor.u32 %v17142_v14, %v15558_v0  ;;  %v15751_v59 = vor.u32 %v17190_v3, %v15750_v16  ;;  %v15739_v63 = vor.u32 %v17187_v54, %v15738_v30  ;;  %v15510_v0 = vld [vmem:[%s18656_s14 + $0x260] sm:$0xf]  ;;  %v17130_v14 = vld [vmem:[%s18656_s14 + $0x268] sm:$0xf0] }
 0xce2   : > { %11851 = vmatpush.bf16.msrb.mxu0 %v15775_v58  ;;  %v15702_v16 = vld [vmem:[%s18656_s14 + $0x3e0] sm:$0xf]  ;;  %v15511_v3 = vor.u32 %v17130_v14, %v15510_v0  ;;  %v17238_v14 = vld [vmem:[%s18656_s14 + $0x5c8] sm:$0xf0] }
 0xce3   : > { %11811 = vmatpush.bf16.msra.mxu1 %v15463_v39  ;;  %v15990_v54 = vld [vmem:[%s18656_s14 + $0x620] sm:$0xf] }
 0xce4   : > { %11842 = vmatpush.bf16.msra.mxu3 %v15619_v9  ;;  %v16051_v9 = vor.u32 %v17265_v31, %v16050_v46  ;;  %v17253_v31 = vld [vmem:[%s18656_s14 + $0x640] sm:$0xf0]  ;;  %v15942_v0 = vld [vmem:[%s18656_s14 + $0x5c0] sm:$0xf] }
 0xce5   : > { %11824 = vmatpush.bf16.msrb.mxu2 %v15571_v41  ;;  %v15714_v41 = vld [vmem:[%s18656_s14 + $0x3f8] sm:$0xf] }
 0xce6   : > { %11852 = vmatpush.bf16.msrb.mxu0 %v15763_v18  ;;  %v16002_v18 = vld [vmem:[%s18656_s14 + $0x638] sm:$0xf]  ;;  %v15715_v39 = vor.u32 %v17181_v19, %v15714_v41  ;;  %v15955_v41 = vor.u32 %v17241_v24, %v15954_v35  ;;  %v15846_v19 = vld [vmem:[%s18656_s14 + $0x500] sm:$0xf] }
 0xce7   : > { %11812 = vmatpush.bf16.msra.mxu1 %v15451_v61  ;;  %v16003_v61 = vor.u32 %v17253_v31, %v16002_v18  ;;  %v17286_v31 = vld [vmem:[%s18656_s14 + $0x748] sm:$0xf0] }
 0xce8   : > { %11843 = vmatpush.bf16.msra.mxu3 %v15607_v34  ;;  %v15535_v34 = vor.u32 %v17136_v4, %v15534_v44  ;;  %v15690_v4 = vld [vmem:[%s18656_s14 + $0x3c8] sm:$0xf] }
 0xce9   : > { %11825 = vmatpush.bf16.msrb.mxu2 %v15559_v50  ;;  %v17178_v50 = vld [vmem:[%s18656_s14 + $0x3e8] sm:$0xf0] }
 0xcea   : > { %11853 = vmatpush.bf16.msrb.mxu0 %v15751_v59  ;;  %v17220_v59 = vld [vmem:[%s18656_s14 + $0x538] sm:$0xf0]  ;;  %v15703_v30 = vor.u32 %v17178_v50, %v15702_v16  ;;  %v15834_v16 = vld [vmem:[%s18656_s14 + $0x4e8] sm:$0xf]  ;;  %v17211_v50 = vld [vmem:[%s18656_s14 + $0x4f0] sm:$0xf0] }
 0xceb   : > { %11813 = vmatpush.bf16.msra.mxu1 %v15439_v28  ;;  %v15967_v28 = vor.u32 %v17244_v42, %v15966_v52  ;;  %v15835_v40 = vor.u32 %v17211_v50, %v15834_v16  ;;  %v15822_v52 = vld [vmem:[%s18656_s14 + $0x4d0] sm:$0xf]  ;;  %v17208_v42 = vld [vmem:[%s18656_s14 + $0x4d8] sm:$0xf0]  ;;  %v15882_v16 = vld [vmem:[%s18656_s14 + $0x548] sm:$0xf] }
 0xcec   : > { %11844 = vmatpush.bf16.msra.mxu3 %v15595_v15  ;;  %v17106_v15 = vld [vmem:[%s18656_s14 + $0x1a8] sm:$0xf0]  ;;  %v17223_v50 = vld [vmem:[%s18656_s14 + $0x550] sm:$0xf0] }
 0xced   : > { %11826 = vmatpush.bf16.msrb.mxu2 %v15547_v5  ;;  %v15415_v46 = vor.u32 %v17106_v15, %v15414_v12  ;;  %v15403_v5 = vor.u32 %v17103_v8, %v15402_v45  ;;  %v17214_v12 = vld [vmem:[%s18656_s14 + $0x508] sm:$0xf0]  ;;  %v22071_v45 = vld [vmem:[%s911_s18] sm:$0x7]  ;;  %v22073_v8 = vpop.f32.mrf.mxu2 }
 0xcee   : > { %11854 = vmatpush.bf16.msrb.mxu0 %v15739_v63  ;;  %v16158_v63 = vld [vmem:[%s18656_s14 + $0x770] sm:$0xf] }
 0xcef   : > { %11845 = vmatmul.bf16.vlgmr.msra.gmra.mxu3 %v21542_v60  ;;  %v16026_v60 = vld [vmem:[%s18656_s14 + $0x668] sm:$0xf]  ;;  %11814 = vmatpush.bf16.msra.mxu1 %v15427_v11 }
 0xcf0   : > { %11893 = vmatpush.bf16.msrb.mxu3 %v16063_v26  ;;  %v16027_v58 = vor.u32 %v17259_v27, %v16026_v60  ;;  %v16015_v26 = vor.u32 %v17256_v62, %v16014_v32  ;;  %v17292_v60 = vld [vmem:[%s18656_s14 + $0x778] sm:$0xf0]  ;;  %v15858_v27 = vld [vmem:[%s18656_s14 + $0x518] sm:$0xf]  ;;  %v22051_v62 = vpop.f32.mrf.mxu0 }
 0xcf1   : > { %11827 = vmatpush.bf16.msrb.mxu2 %v15535_v34  ;;  %v15991_v34 = vor.u32 %v17250_v10, %v15990_v54  ;;  %v15859_v11 = vor.u32 %v17217_v25, %v15858_v27  ;;  %v16146_v32 = vld [vmem:[%s18656_s14 + $0x758] sm:$0xf]  ;;  %v9903_v54 = vperm.slane %v22071_v45, 0  ;;  %v17229_v25 = vld [vmem:[%s18656_s14 + $0x580] sm:$0xf0] }
 0xcf2   : > { %11855 = vmatpush.bf16.msrb.mxu0 %v15727_v55  ;;  %v16159_v55 = vor.u32 %v17292_v60, %v16158_v63  ;;  %v17280_v63 = vld [vmem:[%s18656_s14 + $0x718] sm:$0xf0]  ;;  %v17205_v60 = vld [vmem:[%s18656_s14 + $0x4c0] sm:$0xf0]  ;;  %v15906_v27 = vld [vmem:[%s18656_s14 + $0x578] sm:$0xf] }
 0xcf3   : > { %11815 = vmatpush.bf16.msra.mxu1 %v15415_v46  ;;  %v16134_v46 = vld [vmem:[%s18656_s14 + $0x740] sm:$0xf] }
 0xcf4   : > { %11894 = vmatpush.bf16.msrb.mxu3 %v16051_v9  ;;  %v15870_v9 = vld [vmem:[%s18656_s14 + $0x530] sm:$0xf]  ;;  %v16135_v13 = vor.u32 %v17286_v31, %v16134_v46  ;;  %v17199_v31 = vld [vmem:[%s18656_s14 + $0x490] sm:$0xf0] }
 0xcf5   : > { %11828 = vmatpush.bf16.msrb.mxu2 %v15523_v38  ;;  %v15871_v44 = vor.u32 %v17220_v59, %v15870_v9  ;;  %v17289_v38 = vld [vmem:[%s18656_s14 + $0x760] sm:$0xf0]  ;;  %v16122_v9 = vld [vmem:[%s18656_s14 + $0x728] sm:$0xf]  ;;  %v11456_v59 = vpop.f32.mrf.mxu3 }
 0xcf6   : > { %11856 = vmatpush.bf16.msrb.mxu0 %v15715_v39  ;;  %v16147_v18 = vor.u32 %v17289_v38, %v16146_v32  ;;  %v15847_v39 = vor.u32 %v17214_v12, %v15846_v19  ;;  %v17202_v32 = vld [vmem:[%s18656_s14 + $0x4a8] sm:$0xf0]  ;;  %v15894_v38 = vld [vmem:[%s18656_s14 + $0x560] sm:$0xf] }
 0xcf7   : > { %11816 = vmatpush.bf16.msra.mxu1 %v15403_v5  ;;  %v17232_v5 = vld [vmem:[%s18656_s14 + $0x598] sm:$0xf0] }
 0xcf8   : > { %11895 = vmatpush.bf16.msrb.mxu3 %v16039_v37  ;;  %v17175_v37 = vld [vmem:[%s18656_s14 + $0x3d0] sm:$0xf0]  ;;  %v22083_v10 = vpop.f32.mrf.mxu0 }
 0xcf9   : > { %11829 = vmatpush.bf16.msrb.mxu2 %v15511_v3  ;;  %v15691_v33 = vor.u32 %v17175_v37, %v15690_v4  ;;  %v15930_v3 = vld [vmem:[%s18656_s14 + $0x5a8] sm:$0xf] }
 0xcfa   : > { %11857 = vmatpush.bf16.msrb.mxu0 %v15703_v30  ;;  %11817 = vmatmul.bf16.vlgmr.msra.gmra.mxu1 %v21408_v49  ;;  %v15943_v49 = vor.u32 %v17238_v14, %v15942_v0  ;;  %v15918_v30 = vld [vmem:[%s18656_s14 + $0x590] sm:$0xf]  ;;  %v16086_v14 = vld [vmem:[%s18656_s14 + $0x6e0] sm:$0xf] }
 0xcfb   : > { %11865 = vmatpush.bf16.msrb.mxu1 %v15871_v44  ;;  %v16110_v44 = vld [vmem:[%s18656_s14 + $0x710] sm:$0xf]  ;;  %v15919_v37 = vor.u32 %v17232_v5, %v15918_v30  ;;  %v16074_v30 = vld [vmem:[%s18656_s14 + $0x6c8] sm:$0xf]  ;;  %v17271_v5 = vld [vmem:[%s18656_s14 + $0x6d0] sm:$0xf0] }
 0xcfc   : > { %11896 = vmatpush.bf16.msrb.mxu3 %v16027_v58  ;;  %v17247_v58 = vld [vmem:[%s18656_s14 + $0x610] sm:$0xf0]  ;;  %v16111_v35 = vor.u32 %v17280_v63, %v16110_v44  ;;  %v16242_v44 = vld [vmem:[%s18656_s14 + $0x818] sm:$0xf]  ;;  %v17337_v63 = vld [vmem:[%s18656_s14 + $0x8e0] sm:$0xf0] }
 0xcfd   : > { %11830 = vmatpush.bf16.msrb.mxu2 %v15499_v23  ;;  %v15979_v15 = vor.u32 %v17247_v58, %v15978_v20  ;;  %v11510_v20 = vpop.f32.mrf.mxu3  ;;  %v15907_v58 = vor.u32 %v17229_v25, %v15906_v27 }
 0xcfe   : > { %11858 = vmatpush.bf16.msrb.mxu0 %v15691_v33  ;;  %v16098_v33 = vld [vmem:[%s18656_s14 + $0x6f8] sm:$0xf] }
 0xcff   : > { %11866 = vmatpush.bf16.msrb.mxu1 %v15859_v11  ;;  %v15798_v11 = vld [vmem:[%s18656_s14 + $0x4a0] sm:$0xf] }
 0xd00   : > { %11897 = vmatpush.bf16.msrb.mxu3 %v16015_v26  ;;  %v22059_v26 = vpop.f32.mrf.mxu1  ;;  %11831 = vmatmul.bf16.vlgmr.msrb.gmra.mxu2 %v21413_v56  ;;  %v17235_v56 = vld [vmem:[%s18656_s14 + $0x5b0] sm:$0xf0]  ;;  %v11524_v12 = vpop.f32.mrf.mxu0  ;;  %v15799_v0 = vor.u32 %v17202_v32, %v15798_v11 }
 0xd01   : > { %11879 = vmatpush.bf16.msra.mxu2 %v15967_v28  ;;  %11859 = vmatmul.bf16.vlgmr.msrb.gmra.mxu0 %v21548_v17  ;;  %v15931_v17 = vor.u32 %v17235_v56, %v15930_v3  ;;  %v15810_v28 = vld [vmem:[%s18656_s14 + $0x4b8] sm:$0xf]  ;;  %v17316_v3 = vld [vmem:[%s18656_s14 + $0x838] sm:$0xf0] }
 0xd02   : > { %11907 = vmatpush.bf16.msra.mxu0 %v16159_v55  ;;  %v15811_v24 = vor.u32 %v17205_v60, %v15810_v28  ;;  %v17277_v55 = vld [vmem:[%s18656_s14 + $0x700] sm:$0xf0]  ;;  %v16075_v60 = vor.u32 %v17271_v5, %v16074_v30 }
 0xd03   : > { %11867 = vmatpush.bf16.msrb.mxu1 %v15847_v39 }
 0xd04   : > { %11898 = vmatpush.bf16.msrb.mxu3 %v16003_v61  ;;  %v17283_v61 = vld [vmem:[%s18656_s14 + $0x730] sm:$0xf0] }
 0xd05   : > { %11880 = vmatpush.bf16.msra.mxu2 %v15955_v41  ;;  %v16123_v23 = vor.u32 %v17283_v61, %v16122_v9  ;;  %v22098_v41 = vpop.f32.mrf.mxu2  ;;  %v11457_v9 = vadd.f32 %v11456_v59, %v9903_v54  ;;  %v11512_v59 = vpop.f32.mrf.mxu3 }
 0xd06   : > { %11908 = vmatpush.bf16.msra.mxu0 %v16147_v18  ;;  %v17274_v18 = vld [vmem:[%s18656_s14 + $0x6e8] sm:$0xf0] }
 0xd07   : > { %11868 = vmatpush.bf16.msrb.mxu1 %v15835_v40  ;;  %v17340_v40 = vld [vmem:[%s18656_s14 + $0x8f8] sm:$0xf0]  ;;  %v11471_v28 = vadd.f32 %v22083_v10, %v11457_v9  ;;  %v16326_v10 = vld [vmem:[%s18656_s14 + $0x8c0] sm:$0xf]  ;;  %v17301_v9 = vld [vmem:[%s18656_s14 + $0x7c0] sm:$0xf0] }
 0xd08   : > { %11899 = vmatpush.bf16.msrb.mxu3 %v15991_v34  ;;  %v22086_v4 = vpop.f32.mrf.mxu1  ;;  %v11455_v34 = vadd.f32 %v22046_v48, %v9903_v54  ;;  %v17226_v48 = vld [vmem:[%s18656_s14 + $0x568] sm:$0xf0]  ;;  %v16338_v54 = vld [vmem:[%s18656_s14 + $0x8d8] sm:$0xf]  ;;  %v11526_v25 = vpop.f32.mrf.mxu0 }
 0xd09   : > { %11881 = vmatpush.bf16.msra.mxu2 %v15943_v49  ;;  %v15895_v46 = vor.u32 %v17226_v48, %v15894_v38  ;;  %v15786_v49 = vld [vmem:[%s18656_s14 + $0x488] sm:$0xf]  ;;  %v17307_v48 = vld [vmem:[%s18656_s14 + $0x7f0] sm:$0xf0] }
 0xd0a   : > { %11909 = vmatpush.bf16.msra.mxu0 %v16135_v13  ;;  %v11469_v19 = vadd.f32 %v22051_v62, %v11455_v34  ;;  %v16254_v62 = vld [vmem:[%s18656_s14 + $0x830] sm:$0xf]  ;;  %v15787_v61 = vor.u32 %v17199_v31, %v15786_v49  ;;  %v16218_v38 = vld [vmem:[%s18656_s14 + $0x7e8] sm:$0xf] }
 0xd0b   : > { %v16350_v13 = vld [vmem:[%s18656_s14 + $0x8f0] sm:$0xf] }
 0xd0c   : > { %11900 = vmatpush.bf16.msrb.mxu3 %v15979_v15  ;;  %v16099_v15 = vor.u32 %v17277_v55, %v16098_v33  ;;  %v11483_v56 = vadd.f32 %v22059_v26, %v11469_v19  ;;  %v11485_v55 = vadd.f32 %v22086_v4, %v11471_v28  ;;  %v17331_v4 = vld [vmem:[%s18656_s14 + $0x8b0] sm:$0xf0]  ;;  %v16278_v28 = vld [vmem:[%s18656_s14 + $0x860] sm:$0xf] }
 0xd0d   : > { %11882 = vmatpush.bf16.msra.mxu2 %v15931_v17  ;;  %v16087_v17 = vor.u32 %v17274_v18, %v16086_v14  ;;  %v16219_v18 = vor.u32 %v17307_v48, %v16218_v38 }
 0xd0e   : > { %11910 = vmatpush.bf16.msra.mxu0 %v16123_v23  ;;  %v11552_v23 = vpop.f32.mrf.mxu2  ;;  %v11497_v26 = vadd.f32 %v22073_v8, %v11483_v56  ;;  %v16230_v8 = vld [vmem:[%s18656_s14 + $0x800] sm:$0xf] }
 0xd0f   : > { %11901 = vmatmul.bf16.vlgmr.msrb.gmra.mxu3 %v21682_v29  ;;  %v15823_v29 = vor.u32 %v17208_v42, %v15822_v52  ;;  %v15883_v52 = vor.u32 %v17223_v50, %v15882_v16  ;;  %v16255_v42 = vor.u32 %v17316_v3, %v16254_v62  ;;  %v16302_v50 = vld [vmem:[%s18656_s14 + $0x890] sm:$0xf]  ;;  %v17328_v62 = vld [vmem:[%s18656_s14 + $0x898] sm:$0xf0] }
 0xd10   : > { %v11538_v39 = vpop.f32.mrf.mxu1  ;;  %v11511_v27 = vadd.f32 %v11510_v20, %v11497_v26  ;;  %v11580_v14 = vpop.f32.mrf.mxu0  ;;  %v16182_v26 = vld [vmem:[%s18656_s14 + $0x7a0] sm:$0xf] }
 0xd11   : > { %11869 = vmatpush.bf16.msrb.mxu1 %v15823_v29  ;;  %11883 = vmatpush.bf16.msra.mxu2 %v15919_v37  ;;  %v16351_v29 = vor.u32 %v17340_v40, %v16350_v13  ;;  %v17313_v37 = vld [vmem:[%s18656_s14 + $0x820] sm:$0xf0]  ;;  %v16303_v13 = vor.u32 %v17328_v62, %v16302_v50  ;;  %v16194_v40 = vld [vmem:[%s18656_s14 + $0x7b8] sm:$0xf] }
 0xd12   : > { %11911 = vmatpush.bf16.msra.mxu0 %v16111_v35  ;;  %v16243_v34 = vor.u32 %v17313_v37, %v16242_v44  ;;  %v16339_v35 = vor.u32 %v17337_v63, %v16338_v54  ;;  %v11525_v20 = vadd.f32 %v11524_v12, %v11511_v27 }
 0xd14   : > { %v11539_v19 = vadd.f32 %v11538_v39, %v11525_v20  ;;  %v16206_v39 = vld [vmem:[%s18656_s14 + $0x7d0] sm:$0xf] }
 0xd15   : > { %11870 = vmatpush.bf16.msrb.mxu1 %v15811_v24  ;;  %11884 = vmatpush.bf16.msra.mxu2 %v15907_v58  ;;  %v17310_v24 = vld [vmem:[%s18656_s14 + $0x808] sm:$0xf0] }
 0xd16   : > { %11912 = vmatpush.bf16.msra.mxu0 %v16099_v15  ;;  %v17334_v58 = vld [vmem:[%s18656_s14 + $0x8c8] sm:$0xf0]  ;;  %v16231_v11 = vor.u32 %v17310_v24, %v16230_v8  ;;  %v16314_v15 = vld [vmem:[%s18656_s14 + $0x8a8] sm:$0xf]  ;;  %v11553_v12 = vadd.f32 %v11552_v23, %v11539_v19 }
 0xd17   : > { %v16327_v32 = vor.u32 %v17334_v58, %v16326_v10  ;;  %v16315_v49 = vor.u32 %v17331_v4, %v16314_v15  ;;  %v16170_v24 = vld [vmem:[%s18656_s14 + $0x788] sm:$0xf]  ;;  %v17319_v58 = vld [vmem:[%s18656_s14 + $0x850] sm:$0xf0] }
 0xd18   : > { %v11540_v33 = vpop.f32.mrf.mxu1  ;;  %v11582_v54 = vpop.f32.mrf.mxu0  ;;  %v16266_v10 = vld [vmem:[%s18656_s14 + $0x848] sm:$0xf] }
 0xd19   : > { %11871 = vmatpush.bf16.msrb.mxu1 %v15799_v0  ;;  %11885 = vmatpush.bf16.msra.mxu2 %v15895_v46  ;;  %v11499_v0 = vadd.f32 %v22098_v41, %v11485_v55 }
 0xd1a   : > { %11913 = vmatpush.bf16.msra.mxu0 %v16087_v17 }
 0xd1b   : > { %v11513_v46 = vadd.f32 %v11512_v59, %v11499_v0  ;;  %v17298_v59 = vld [vmem:[%s18656_s14 + $0x7a8] sm:$0xf0] }
 0xd1d   : > { %11872 = vmatpush.bf16.msrb.mxu1 %v15787_v61  ;;  %11886 = vmatpush.bf16.msra.mxu2 %v15883_v52  ;;  %v11527_v56 = vadd.f32 %v11526_v25, %v11513_v46  ;;  %v16290_v61 = vld [vmem:[%s18656_s14 + $0x878] sm:$0xf]  ;;  %v17325_v52 = vld [vmem:[%s18656_s14 + $0x880] sm:$0xf0] }
 0xd1e   : > { %11914 = vmatpush.bf16.msra.mxu0 %v16075_v60  ;;  %v16291_v37 = vor.u32 %v17325_v52, %v16290_v61  ;;  %v17322_v60 = vld [vmem:[%s18656_s14 + $0x868] sm:$0xf0] }
 0xd1f   : > { %v16279_v8 = vor.u32 %v17322_v60, %v16278_v28 }
 0xd20   : > { %11873 = vmatmul.bf16.vlgmr.msrb.gmra.mxu1 %v21580_v53  ;;  %11887 = vmatmul.bf16.vlgmr.msra.gmra.mxu2 %v21582_v36  ;;  %v11566_v53 = vpop.f32.mrf.mxu3  ;;  %v11554_v36 = vpop.f32.mrf.mxu2 }
 0xd21   : > { %11921 = vmatpush.bf16.msra.mxu1 %v16255_v42  ;;  %11935 = vmatpush.bf16.msrb.mxu2 %v16351_v29  ;;  %v11567_v31 = vadd.f32 %v11566_v53, %v11553_v12  ;;  %v11594_v16 = vpop.f32.mrf.mxu1  ;;  %v11541_v42 = vadd.f32 %v11540_v33, %v11527_v56  ;;  %v16195_v29 = vor.u32 %v17301_v9, %v16194_v40  ;;  %v17295_v33 = vld [vmem:[%s18656_s14 + $0x790] sm:$0xf0]  ;;  %v11636_v19 = vpop.f32.mrf.mxu0  ;;  %v9904_v12 = vperm.slane %v22071_v45, 1 }
 0xd22   : > { %11915 = vmatmul.bf16.vlgmr.msra.gmra.mxu0 %v21775_v6  ;;  %v17304_v6 = vld [vmem:[%s18656_s14 + $0x7d8] sm:$0xf0] }
 0xd23   : > { %v11581_v3 = vadd.f32 %v11580_v14, %v11567_v31  ;;  %v16207_v41 = vor.u32 %v17304_v6, %v16206_v39  ;;  %v11555_v44 = vadd.f32 %v11554_v36, %v11541_v42 }
 0xd25   : > { %11922 = vmatpush.bf16.msra.mxu1 %v16243_v34  ;;  %11936 = vmatpush.bf16.msrb.mxu2 %v16339_v35  ;;  %v11595_v17 = vadd.f32 %v11594_v16, %v11581_v3  ;;  %v16183_v34 = vor.u32 %v17298_v59, %v16182_v26 }
 0xd28   : > { %v11608_v30 = vpop.f32.mrf.mxu2  ;;  %v11568_v5 = vpop.f32.mrf.mxu3 }
 0xd29   : > { %11923 = vmatpush.bf16.msra.mxu1 %v16231_v11  ;;  %11937 = vmatpush.bf16.msrb.mxu2 %v16327_v32  ;;  %v11609_v23 = vadd.f32 %v11608_v30, %v11595_v17  ;;  %v11569_v27 = vadd.f32 %v11568_v5, %v11555_v44  ;;  %v11596_v25 = vpop.f32.mrf.mxu1  ;;  %v16171_v11 = vor.u32 %v17295_v33, %v16170_v24  ;;  %v11638_v0 = vpop.f32.mrf.mxu0 }
 0xd2b   : > { %v11949_v63 = vadd.f32 %v11609_v23, %v20455_v22  ;;  %v11583_v35 = vadd.f32 %v11582_v54, %v11569_v27  ;;  %v16267_v22 = vor.u32 %v17319_v58, %v16266_v10 }
 0xd2d   : > { %11924 = vmatpush.bf16.msra.mxu1 %v16219_v18  ;;  %11938 = vmatpush.bf16.msrb.mxu2 %v16315_v49  ;;  %11955 = vst [vmem:[#allocation2 + $0x28] sm:$0xff] %v11949_v63  ;;  %v11597_v55 = vadd.f32 %v11596_v25, %v11583_v35 }
 0xd30   : > { %v11610_v20 = vpop.f32.mrf.mxu2  ;;  %v11622_v48 = vpop.f32.mrf.mxu3 }
 0xd31   : > { %11925 = vmatpush.bf16.msra.mxu1 %v16207_v41  ;;  %11939 = vmatpush.bf16.msrb.mxu2 %v16303_v13  ;;  %v11611_v32 = vadd.f32 %v11610_v20, %v11597_v55  ;;  %v11650_v53 = vpop.f32.mrf.mxu1  ;;  %v11623_v14 = vadd.f32 %v11622_v48, %v9904_v12  ;;  %v11692_v39 = vpop.f32.mrf.mxu0 }
 0xd33   : > { %v11952_v38 = vadd.f32 %v11611_v32, %v20464_v21  ;;  %v11637_v21 = vadd.f32 %v11636_v19, %v11623_v14 }
 0xd35   : > { %11926 = vmatpush.bf16.msra.mxu1 %v16195_v29  ;;  %11940 = vmatpush.bf16.msrb.mxu2 %v16291_v37  ;;  %11958 = vst [vmem:[#allocation2] sm:$0xff] %v11952_v38  ;;  %v11651_v49 = vadd.f32 %v11650_v53, %v11637_v21 }
 0xd38   : > { %v11624_v15 = vpop.f32.mrf.mxu3  ;;  %v11664_v4 = vpop.f32.mrf.mxu2 }
 0xd39   : > { %11927 = vmatpush.bf16.msra.mxu1 %v16183_v34  ;;  %11941 = vmatpush.bf16.msrb.mxu2 %v16279_v8  ;;  %v11652_v36 = vpop.f32.mrf.mxu1  ;;  %v11665_v31 = vadd.f32 %v11664_v4, %v11651_v49  ;;  %v11625_v16 = vadd.f32 %v11624_v15, %v9904_v12  ;;  %v11694_v13 = vpop.f32.mrf.mxu0 }
 0xd3d   : > { %11928 = vmatpush.bf16.msra.mxu1 %v16171_v11  ;;  %11942 = vmatpush.bf16.msrb.mxu2 %v16267_v22  ;;  %v9905_v22 = vperm.slane %v22071_v45, 2 }
 0xd40   : > { %11929 = vmatmul.bf16.vlgmr.msra.gmra.mxu1 %v21832_v57  ;;  %11943 = vmatmul.bf16.vlgmr.msrb.gmra.mxu2 %v21837_v47  ;;  %v11678_v18 = vpop.f32.mrf.mxu3  ;;  %v11666_v46 = vpop.f32.mrf.mxu2  ;;  %v11639_v57 = vadd.f32 %v11638_v0, %v11625_v16 }
 0xd41   : > { %v11706_v6 = vpop.f32.mrf.mxu1  ;;  %v11679_v50 = vadd.f32 %v11678_v18, %v11665_v31  ;;  %v11748_v23 = vpop.f32.mrf.mxu0 }
 0xd42   : > { %v11653_v47 = vadd.f32 %v11652_v36, %v11639_v57 }
 0xd43   : > { %v11693_v56 = vadd.f32 %v11692_v39, %v11679_v50 }
 0xd44   : > { %v11667_v41 = vadd.f32 %v11666_v46, %v11653_v47 }
 0xd45   : > { %v11707_v9 = vadd.f32 %v11706_v6, %v11693_v56 }
 0xd48   : > { %v11680_v62 = vpop.f32.mrf.mxu3  ;;  %v11720_v3 = vpop.f32.mrf.mxu2 }
 0xd49   : > { %v11708_v40 = vpop.f32.mrf.mxu1  ;;  %v11681_v17 = vadd.f32 %v11680_v62, %v11667_v41  ;;  %v11721_v61 = vadd.f32 %v11720_v3, %v11707_v9  ;;  %v11750_v25 = vpop.f32.mrf.mxu0 }
 0xd4b   : > { %v11695_v5 = vadd.f32 %v11694_v13, %v11681_v17 }
 0xd4d   : > { %v11709_v44 = vadd.f32 %v11708_v40, %v11695_v5 }
 0xd50   : > { %v11734_v52 = vpop.f32.mrf.mxu3  ;;  %v11722_v42 = vpop.f32.mrf.mxu2 }
 0xd51   : > { %v11735_v30 = vadd.f32 %v11734_v52, %v11721_v61  ;;  %v11723_v37 = vadd.f32 %v11722_v42, %v11709_v44 }
 0xd53   : > { %v11749_v26 = vadd.f32 %v11748_v23, %v11735_v30 }
 0xd57   : > { %v11762_v29 = vpop.f32.mrf.mxu1 }
 0xd58   : > { %v11763_v59 = vadd.f32 %v11762_v29, %v11749_v26  ;;  %v11736_v54 = vpop.f32.mrf.mxu3 }
 0xd59   : > { %v11737_v28 = vadd.f32 %v11736_v54, %v11723_v37 }
 0xd5b   : > { %v11751_v35 = vadd.f32 %v11750_v25, %v11737_v28 }
 0xd5e   : > { %v11804_v55 = vpop.f32.mrf.mxu0 }
 0xd5f   : > { %v11764_v34 = vpop.f32.mrf.mxu1 }
 0xd60   : > { %v11765_v8 = vadd.f32 %v11764_v34, %v11751_v35  ;;  %v11790_v58 = vpop.f32.mrf.mxu3 }
 0xd63   : > { %v11776_v63 = vpop.f32.mrf.mxu2 }
 0xd64   : > { %v11777_v60 = vadd.f32 %v11776_v63, %v11763_v59 }
 0xd66   : > { %v11950_v27 = vadd.f32 %v11777_v60, %v20453_v43  ;;  %v11806_v38 = vpop.f32.mrf.mxu0  ;;  %v11791_v43 = vadd.f32 %v11790_v58, %v9905_v22 }
 0xd68   : > { %11956 = vst [vmem:[#allocation2 + $0x10] sm:$0xff] %v11950_v27  ;;  %v11792_v11 = vpop.f32.mrf.mxu3  ;;  %v11805_v53 = vadd.f32 %v11804_v55, %v11791_v43 }
 0xd69   : > { %v11793_v14 = vadd.f32 %v11792_v11, %v9905_v22 }
 0xd6b   : > { %v11778_v24 = vpop.f32.mrf.mxu2 }
 0xd6c   : > { %v11779_v33 = vadd.f32 %v11778_v24, %v11765_v8 }
 0xd6e   : > { %v11953_v10 = vadd.f32 %v11779_v33, %v20462_v1  ;;  %v11807_v1 = vadd.f32 %v11806_v38, %v11793_v14 }
 0xd70   : > { %11959 = vst [vmem:[#allocation2 + $0x18] sm:$0xff] %v11953_v10 }
 0xd72   : > { %v11846_v19 = vpop.f32.mrf.mxu3 }
 0xd77   : > { %v11818_v20 = vpop.f32.mrf.mxu1 }
 0xd78   : > { %v11819_v4 = vadd.f32 %v11818_v20, %v11805_v53 }
 0xd7a   : > { %v11848_v46 = vpop.f32.mrf.mxu3 }
 0xd7e   : > { %v11860_v0 = vpop.f32.mrf.mxu0 }
 0xd7f   : > { %v11820_v48 = vpop.f32.mrf.mxu1 }
 0xd80   : > { %v11821_v49 = vadd.f32 %v11820_v48, %v11807_v1 }
 0xd83   : > { %v11832_v32 = vpop.f32.mrf.mxu2 }
 0xd84   : > { %v11833_v12 = vadd.f32 %v11832_v32, %v11819_v4 }
 0xd86   : > { %v11847_v18 = vadd.f32 %v11846_v19, %v11833_v12  ;;  %v11862_v31 = vpop.f32.mrf.mxu0 }
 0xd88   : > { %v11861_v6 = vadd.f32 %v11860_v0, %v11847_v18 }
 0xd8b   : > { %v11834_v15 = vpop.f32.mrf.mxu2 }
 0xd8c   : > { %v11835_v39 = vadd.f32 %v11834_v15, %v11821_v49 }
 0xd8e   : > { %v11849_v57 = vadd.f32 %v11848_v46, %v11835_v39 }
 0xd90   : > { %v11863_v41 = vadd.f32 %v11862_v31, %v11849_v57 }
 0xd92   : > { %v11902_v62 = vpop.f32.mrf.mxu3 }
 0xd9a   : > { %v11904_v52 = vpop.f32.mrf.mxu3 }
 0xd9d   : > { %v11874_v36 = vpop.f32.mrf.mxu1 }
 0xd9e   : > { %v11875_v16 = vadd.f32 %v11874_v36, %v11861_v6 }
 0xd9f   : > { %v11916_v56 = vpop.f32.mrf.mxu0 }
 0xda3   : > { %v11888_v21 = vpop.f32.mrf.mxu2 }
 0xda4   : > { %v11889_v50 = vadd.f32 %v11888_v21, %v11875_v16 }
 0xda5   : > { %v11876_v45 = vpop.f32.mrf.mxu1 }
 0xda6   : > { %v11903_v47 = vadd.f32 %v11902_v62, %v11889_v50  ;;  %v11877_v40 = vadd.f32 %v11876_v45, %v11863_v41 }
 0xda7   : > { %v11918_v29 = vpop.f32.mrf.mxu0 }
 0xda8   : > { %v11917_v17 = vadd.f32 %v11916_v56, %v11903_v47 }
 0xdab   : > { %v11890_v3 = vpop.f32.mrf.mxu2 }
 0xdac   : > { %v11891_v9 = vadd.f32 %v11890_v3, %v11877_v40 }
 0xdae   : > { %v11905_v30 = vadd.f32 %v11904_v52, %v11891_v9 }
 0xdb0   : > { %v11919_v37 = vadd.f32 %v11918_v29, %v11905_v30 }
 0xdbd   : > { %v11930_v13 = vpop.f32.mrf.mxu1 }
 0xdbe   : > { %v11931_v61 = vadd.f32 %v11930_v13, %v11917_v17 }
 0xdc3   : > { %v11944_v42 = vpop.f32.mrf.mxu2 }
 0xdc4   : > { %v11945_v5 = vadd.f32 %v11944_v42, %v11931_v61 }
 0xdc5   : > { %v11932_v44 = vpop.f32.mrf.mxu1 }
 0xdc6   : > { %v11951_v23 = vadd.f32 %v11945_v5, %v20457_v51  ;;  %v11933_v26 = vadd.f32 %v11932_v44, %v11919_v37 }
 0xdc8   : > { %11957 = vst [vmem:[#allocation2 + $0x8] sm:$0xff] %v11951_v23 }
 0xdcb   : > { %v11946_v59 = vpop.f32.mrf.mxu2 }
 0xdcc   : > { %v11947_v54 = vadd.f32 %v11946_v59, %v11933_v26  ;;  %11964 = sbr.rel (%p16352_p4) target bundleno = 3826 (0xef2), region = 156 }
 0xdce   : > { %v11954_v63 = vadd.f32 %v11947_v54, %v20466_v7 }
 0xdd0   : > { %11960 = vst [vmem:[#allocation2 + $0x20] sm:$0xff] %v11954_v63 }
 0xdd1   : > { %v11965_v28 = vld [vmem:[#allocation2 + $0x28] sm:$0xff]  ;;  %v11966_v60 = vld [vmem:[#allocation2 + $0x10] sm:$0xff]  ;;  %v11968_v25 = vld [vmem:[#allocation2] sm:$0xff]  ;;  %vm11980_vm2 = vcmask 1040384   ;;  %vm11986_vm3 = vcmask 1041408  }
 0xdd2   : > { %v11967_v27 = vld [vmem:[#allocation2 + $0x8] sm:$0xff]  ;;  %v11969_v34 = vld [vmem:[#allocation2 + $0x18] sm:$0xff]  ;;  %v11974_v51 = vrot.slane %v11968_v25, 7  ;;  %v11985_v57 = vld [vmem:[#allocation26] sm:$0x7] }
 0xdd3   : > { %v11975_v8 = vrot.slane %v11969_v34, 7  ;;  %v11984_v45 = vld [vmem:[#allocation24] sm:$0x7]  ;;  %v12035_v41 = vperm.slane %v11985_v57, 1  ;;  %v12036_v13 = vperm.slane %v11985_v57, 2  ;;  %v12034_v17 = vperm.slane %v11985_v57, 0 }
 0xdd4   : > { %v11981_v33 = vsel %vm11980_vm2, %v11965_v28, %v11974_v51  ;;  %v12024_v62 = vperm.slane %v11984_v45, 0  ;;  %v12025_v3 = vperm.slane %v11984_v45, 1  ;;  %v12026_v47 = vperm.slane %v11984_v45, 2 }
 0xdd5   : > { %v11982_v10 = vsel %vm11980_vm2, %v11966_v60, %v11975_v8  ;;  %v11987_v7 = vsel %vm11986_vm3, %v11981_v33, 0.0 }
 0xdd6   : > { %v11988_v55 = vsel %vm11986_vm3, %v11982_v10, 0.0 }
 0xdd7   : > { %v11970_v35 = vld [vmem:[#allocation2 + $0x20] sm:$0xff]  ;;  %v11989_v11 = vadd.f32 %v11988_v55, %v11987_v7 }
 0xdd8   : > { %v11976_v24 = vrot.slane %v11970_v35, 7 }
 0xdda   : > { %v11983_v58 = vsel %vm11980_vm2, %v11967_v27, %v11976_v24 }
 0xddb   : > { %v11990_v20 = vsel %vm11986_vm3, %v11983_v58, 0.0 }
 0xddc   : > { %v11991_v32 = vadd.f32 %v11990_v20, %v11989_v11 }
 0xdde   : > { %11992 = vadd.xlane.f32.xlu0 %v11991_v32 }
 0xe51   : > { %v11993_v22 = vpop.xlane.xlu0 %11992 }
 0xe52   : > { %v11994_v38 = vmul.f32 %v11993_v22, %v18792_v2 }
 0xe54   : > { %v11995_v48 = vsub.f32 %v11981_v33, %v11994_v38  ;;  %v11996_v43 = vsub.f32 %v11982_v10, %v11994_v38  ;;  %v11997_v19 = vsub.f32 %v11983_v58, %v11994_v38 }
 0xe56   : > { %v11998_v53 = vmul.f32 %v11995_v48, %v11995_v48  ;;  %v11999_v15 = vmul.f32 %v11996_v43, %v11996_v43  ;;  %v12000_v4 = vmul.f32 %v11997_v19, %v11997_v19 }
 0xe58   : > { %v12001_v0 = vsel %vm11986_vm3, %v11998_v53, 0.0  ;;  %v12002_v36 = vsel %vm11986_vm3, %v11999_v15, 0.0  ;;  %v12004_v14 = vsel %vm11986_vm3, %v12000_v4, 0.0 }
 0xe59   : > { %v12003_v12 = vadd.f32 %v12002_v36, %v12001_v0 }
 0xe5b   : > { %v12005_v1 = vadd.f32 %v12004_v14, %v12003_v12 }
 0xe5d   : > { %12006 = vadd.xlane.f32.xlu0 %v12005_v1 }
 0xed0   : > { %v12007_v18 = vpop.xlane.xlu0 %12006 }
 0xed1   : > { %v12008_v46 = vmul.f32 %v12007_v18, %v18792_v2 }
 0xed3   : > { %v12009_v21 = vadd.f32 1e-06, %v12008_v46 }
 0xed5   : > { %17648 = vrsqrt.f32 %v12009_v21  ;;  %vm12016_vm5 = vweird.f32 %v12009_v21 }
 0xedb   : > { %v17649_v49 = vpop.eup %17648 }
 0xedc   : > { %v12011_v39 = vmul.f32 %v17649_v49, %v12009_v21  ;;  %vm12017_vm4 = vweird.f32 %v17649_v49 }
 0xedd   : > { %vm12018_vm6 = vmor %vm12016_vm5, %vm12017_vm4 }
 0xede   : > { %v12012_v6 = vmul.f32 %v17649_v49, %v12011_v39 }
 0xee0   : > { %v12013_v31 = vmul.f32 0.5, %v12012_v6 }
 0xee2   : > { %v12014_v16 = vsub.f32 1.5, %v12013_v31 }
 0xee4   : > { %v12015_v50 = vmul.f32 %v17649_v49, %v12014_v16 }
 0xee6   : > { %v12019_v56 = vsel %vm12018_vm6, %v17649_v49, %v12015_v50 }
 0xee7   : > { %v12020_v2 = vmul.f32 %v12019_v56, %v11995_v48  ;;  %v12021_v40 = vmul.f32 %v12019_v56, %v11996_v43  ;;  %v12022_v9 = vmul.f32 %v12019_v56, %v11997_v19 }
 0xee9   : > { %v12030_v61 = vmul.f32 %v12024_v62, %v12020_v2  ;;  %v12031_v52 = vmul.f32 %v12025_v3, %v12021_v40  ;;  %v12032_v42 = vmul.f32 %v12026_v47, %v12022_v9 }
 0xeeb   : > { %v12041_v30 = vadd.f32 %v12035_v41, %v12031_v52  ;;  %v12042_v5 = vadd.f32 %v12036_v13, %v12032_v42  ;;  %v12040_v23 = vadd.f32 %v12034_v17, %v12030_v61 }
 0xeed   : > { %v12046_v29 = vrot.slane %v12041_v30, 6  ;;  %v12047_v44 = vrot.slane %v12042_v5, 4 }
 0xeef   : > { %v12048_v37 = vsel %vm11986_vm3, %v12040_v23, %v12046_v29 }
 0xef0   : > { %v12049_v26 = vsel %vm4787_vm9, %v12048_v37, %v12047_v44 }
 0xef1   : > { %12051 = vst [vmem:[#allocation27] sm:$0x3f] %v12049_v26 }
 0xef2 PF: > { %s22271_s24 = sld [smem:[#allocation39_spill]]  ;;  %s18188_s30 = smov [#allocation27]  }
 0xef3   : > { %s12058_s16 = sshll.u32 %s18188_s30, 4  ;;  %s22272_s25 = sld [smem:[#allocation54_spill]]  ;;  %s12059_s16 = int_to_ptr.vmem [resolvable:$true] %s12058_s16 }
 0xef8   : > { %p17427_p5 = scmp.eq.s32.totalorder %s22271_s24, 1 }
 0xef9   : > { %s12060_s17 = sshll.u32 %s22272_s25, 4  ;;  %s12061_s17 = int_to_ptr.hbm [resolvable:$true] %s12060_s17 }
 0xefa   : > { %17408 = dma.vmem_to_hbm [thread:$0]  (%p17427_p5), %s12059_s16, 96, %s12061_s17, [#allocation5]  }
 0xefb   : > { %18153 = dma.done.wait (%p17427_p5), [#allocation5], 96  }
 0xefc   : > { %18155 = vsyncadd (%p17427_p5), [#allocation5], 4294967200 }
 0xefd PF: > { %s22273_s27 = sld [smem:[#allocation40_spill]] }
 0xefe   : > { %s22274_s24 = sld [smem:[#allocation37_spill]] }
 0xeff   : > { %s22275_s25 = sld [smem:[#allocation38_spill]] }
 0xf00   : > { %s22276_s26 = sld [smem:[#allocation41_spill]] }
 0xf03   : > { %p45_p8 = scmp.ge.s32.totalorder %s22273_s27, 4  }
 0xf05   :  { %47 = sbr.rel (!%p45_p8) target bundleno = 28 (0x1c), region = 277 }
 0xf0a   :  { %12074 = vsyncpa [#allocation4], 1 }
 0xf0b   :  { %12076 = vsyncpa [#allocation4 + $0x1], 1 }
 0xf0c   :  { %12077 = vsyncpa [#allocation7], 1 }
 0xf0d   :  { %12079 = vsyncpa [#allocation7 + $0x1], 1 }
 0xf0e   :  { %12080 = vsyncpa [#allocation10], 1 }
 0xf0f   :  { %12082 = vsyncpa [#allocation10 + $0x1], 1 }
 0xf10   :  { %12083 = vsyncpa [#allocation13], 1 }
 0xf11   :  { %12085 = vsyncpa [#allocation13 + $0x1], 1 }
 0xf12   :  { %12086 = vsyncpa [#allocation16], 1 }
 0xf13   :  { %12088 = vsyncpa [#allocation16 + $0x1], 1 }
 0xf14   :  { %12089 = vsyncpa [#allocation19], 1 }
 0xf15   :  { %12091 = vsyncpa [#allocation19 + $0x1], 1 }
 0xf16   :  { %12092 = vsyncpa [#allocation22], 1 }
 0xf17   :  { %12094 = vsyncpa [#allocation22 + $0x1], 1 }
 0xf18   :  { %12095 = vsyncpa [#allocation25], 1 }
 0xf19   :  { %12096 = vsyncpa [#allocation5], 1 }
 0xf1a   :  { %12098 = vsyncpa [#allocation5 + $0x1], 1 }

</bundles_post_ra>
